<compile_context>
chip_gen: v6e
topology: v6e:2x2x1
jax: 0.10.0
libtpu: 0.0.40
codegen_flags: <defaults>
</compile_context>

<pallas_src>
import functools

import jax
import jax.numpy as jnp
from jax.experimental import pallas as pl
from jax.experimental.pallas import tpu as pltpu

_LN_EPS = 1e-5                      # torch.nn.LayerNorm default eps


def _vmem_limit_bytes():
    """Per-generation VMEM limit: ~3/4 of physical (48 MiB v7x, 96 MiB v5e/v6e)."""
    try:
        cap = int(pltpu.get_tpu_info().vmem_capacity_bytes)
    except Exception:
        cap = 64 * 1024 * 1024      # conservative (v7x-sized) fallback
    return (cap * 3) // 4


def _pick_batch_tile(batch, seq, target_rows=512):
    """Largest divisor of `batch` with tile*seq <= target_rows; keep >=2 grid steps."""
    want = max(1, target_rows // max(seq, 1))
    best = 1
    for bt in range(1, batch + 1):
        if batch % bt == 0 and bt <= want:
            best = bt
    if best == batch and batch >= 2:
        # Keep at least 2 grid steps so both v7x TensorCores get work.
        for bt in range(best - 1, 0, -1):
            if batch % bt == 0 and batch // bt >= 2:
                best = bt
                break
    return best


def _layernorm_f32(x, gamma, beta, eps=_LN_EPS):
    """LayerNorm over the last dim in f32 (biased variance, like PyTorch)."""
    mu = jnp.mean(x, axis=-1, keepdims=True)
    var = jnp.mean(jnp.square(x - mu), axis=-1, keepdims=True)
    return (x - mu) * jax.lax.rsqrt(var + eps) * gamma + beta


# ---------------------------------------------------------------------------
# Fused transformer-layer kernel
# ---------------------------------------------------------------------------
def _layer_kernel(x_ref, ln1g_ref, ln1b_ref, wqkv_ref, wp_ref, bp_ref,
                  ln2g_ref, ln2b_ref, w1_ref, b1_ref, w2_ref, b2_ref,
                  o_ref, attn_ref, *, num_heads, scale):
    """x + proj(MHA(LN1(x))) followed by x + fc2(relu(fc1(LN2(x)))) on one
    (Bt, S, D) batch tile.  All matmuls on the flattened (Bt*S, D) row slab."""
    bt, seq, dim = x_ref.shape
    rows = bt * seq
    hd = dim // num_heads
    bf16 = jnp.bfloat16
    f32 = jnp.float32

    x = x_ref[...].reshape(rows, dim)                         # (M, D) f32

    # ---- LN1 + fused QKV projection (one MXU pass, N = 3D) ----
    xn = _layernorm_f32(x, ln1g_ref[...], ln1b_ref[...])
    qkv = jnp.dot(xn.astype(wqkv_ref.dtype), wqkv_ref[...],
                  preferred_element_type=f32)                 # (M, 3D)
    # torch: to_keys_values(y).reshape(b,m,2,H,hd) -> first D cols = keys,
    # last D = values; head h occupies columns [h*hd, (h+1)*hd).
    q = (qkv[:, :dim] * scale).astype(bf16).reshape(bt, seq, dim)   # scale folded once
    k = qkv[:, dim:2 * dim].astype(bf16).reshape(bt, seq, dim)
    v = qkv[:, 2 * dim:].astype(bf16).reshape(bt, seq, dim)

    # ---- per-head softmax attention, batched over the Bt batch elements ----
    # Per-head outputs go straight into a VMEM scratch (no lane concat).
    for h in range(num_heads):                                # static unroll (H=8)
        sl = slice(h * hd, (h + 1) * hd)
        s = jnp.einsum("bnd,bmd->bnm", q[:, :, sl], k[:, :, sl],
                       preferred_element_type=f32)            # (bt, S, S) f32
        s = s - jnp.max(s, axis=-1, keepdims=True)            # stable softmax
        e = jnp.exp(s)
        p = e * pl.reciprocal(jnp.sum(e, axis=-1, keepdims=True), approx=True)
        o = jnp.einsum("bnm,bmd->bnd", p.astype(bf16), v[:, :, sl],
                       preferred_element_type=f32)            # (bt, S, hd)
        attn_ref[:, sl] = o.reshape(rows, hd)

    proj = jnp.dot(attn_ref[...].astype(wp_ref.dtype), wp_ref[...],
                   preferred_element_type=f32) + bp_ref[...]
    h1 = x + proj                                             # residual 1, f32

    # ---- LN2 + MLP (dropout p=0.0 == identity) ----
    yn = _layernorm_f32(h1, ln2g_ref[...], ln2b_ref[...])
    a = jnp.dot(yn.astype(w1_ref.dtype), w1_ref[...],
                preferred_element_type=f32) + b1_ref[...]
    a = jnp.maximum(a, 0.0)
    mlp_out = jnp.dot(a.astype(w2_ref.dtype), w2_ref[...],
                      preferred_element_type=f32) + b2_ref[...]

    o_ref[...] = (h1 + mlp_out).reshape(bt, seq, dim).astype(o_ref.dtype)


# ---------------------------------------------------------------------------
# pallas_call wrapper for one layer
# ---------------------------------------------------------------------------
def _const_spec(shape, single_buffer):
    """BlockSpec for a grid-invariant operand (weights / biases / LN params).
    Single-buffering halves its resident VMEM footprint (matters on v7x)."""
    idx = lambda *_: (0,) * len(shape)
    if single_buffer:
        return pl.BlockSpec(shape, idx, pipeline_mode=pl.Buffered(1))
    return pl.BlockSpec(shape, idx)


def transformer_layer(h, lp, *, num_heads, batch_tile, single_buffer_weights,
                      vmem_limit):
    B, S, D = h.shape
    hdim = lp["w1"].shape[1]
    hd = D // num_heads
    scale = float(hd) ** -0.5
    bt = batch_tile
    M = B * S

    kern = functools.partial(_layer_kernel, num_heads=num_heads, scale=scale)
    const = functools.partial(_const_spec, single_buffer=single_buffer_weights)

    cost = pl.CostEstimate(
        flops=int(2 * M * D * 3 * D + 4 * M * S * D + 2 * M * D * D
                  + 4 * M * D * hdim),
        transcendentals=int(B * num_heads * S * S + 2 * M + B * num_heads * S),
        bytes_accessed=int(2 * M * D * 4
                           + (3 * D * D + D * D + 2 * D * hdim) * 2
                           + (6 * D + hdim) * 4))

    return pl.pallas_call(
        kern,
        out_shape=jax.ShapeDtypeStruct((B, S, D), h.dtype),
        grid=(B // bt,),
        in_specs=[
            pl.BlockSpec((bt, S, D), lambda i: (i, 0, 0)),    # residual stream
            const((1, D)), const((1, D)),                     # LN1 gamma/beta
            const((D, 3 * D)),                                # fused [Q|K|V] (bf16)
            const((D, D)), const((1, D)),                     # out-proj w (bf16), b
            const((1, D)), const((1, D)),                     # LN2 gamma/beta
            const((D, hdim)), const((1, hdim)),               # fc1 w (bf16), b
            const((hdim, D)), const((1, D)),                  # fc2 w (bf16), b
        ],
        out_specs=pl.BlockSpec((bt, S, D), lambda i: (i, 0, 0)),
        scratch_shapes=[pltpu.VMEM((bt * S, D), jnp.float32)],  # attention output
        input_output_aliases={0: 0},                          # update h in place
        compiler_params=pltpu.CompilerParams(
            dimension_semantics=("parallel",),
            vmem_limit_bytes=vmem_limit),
        cost_estimate=cost,
    )(h, lp["ln1_g"].reshape(1, D), lp["ln1_b"].reshape(1, D),
      lp["wqkv"], lp["wp"], lp["bp"].reshape(1, D),
      lp["ln2_g"].reshape(1, D), lp["ln2_b"].reshape(1, D),
      lp["w1"], lp["b1"].reshape(1, hdim), lp["w2"], lp["b2"].reshape(1, D))


# ---------------------------------------------------------------------------
# Full TransformerMapperSeq forward (Pallas) and a matching pure-JAX reference
# ---------------------------------------------------------------------------
def transformer_mapper_seq_forward(x, params, *, clip_length, num_heads,
                                   single_buffer_weights=False):
    B = x.shape[0]
    P, D = params["prefix_const"].shape
    tokens = x.reshape(B, clip_length, D)                     # x.view(B, clip, -1)
    prefix = jnp.broadcast_to(params["prefix_const"][None], (B, P, D))
    h = jnp.concatenate([tokens, prefix], axis=1)             # (B, S, D)
    S = clip_length + P
    bt = _pick_batch_tile(B, S)
    vmem_limit = _vmem_limit_bytes()
    for lp in params["layers"]:
        h = transformer_layer(h, lp, num_heads=num_heads, batch_tile=bt,
                              single_buffer_weights=single_buffer_weights,
                              vmem_limit=vmem_limit)
    return h[:, clip_length:]


def reference_forward(x, params, *, clip_length, num_heads):
    """Pure-JAX reference using the same bf16 quantization points as the kernel.
    NOTE: softmax probabilities / q,k,v are bf16 here too, so this validates the
    kernel, not full-f32 PyTorch numerics."""
    f32, bf16 = jnp.float32, jnp.bfloat16
    B = x.shape[0]
    P, D = params["prefix_const"].shape
    hd = D // num_heads
    scale = float(hd) ** -0.5
    tokens = x.reshape(B, clip_length, D)
    prefix = jnp.broadcast_to(params["prefix_const"][None], (B, P, D))
    h = jnp.concatenate([tokens, prefix], axis=1)
    S = h.shape[1]
    for lp in params["layers"]:
        xn = _layernorm_f32(h, lp["ln1_g"], lp["ln1_b"]).astype(bf16)
        qkv = jnp.einsum("bnd,de->bne", xn, lp["wqkv"], preferred_element_type=f32)
        q = (qkv[..., :D] * scale).astype(bf16).reshape(B, S, num_heads, hd)
        k = qkv[..., D:2 * D].astype(bf16).reshape(B, S, num_heads, hd)
        v = qkv[..., 2 * D:].astype(bf16).reshape(B, S, num_heads, hd)
        att = jnp.einsum("bnhd,bmhd->bnmh", q, k, preferred_element_type=f32)
        att = jax.nn.softmax(att, axis=2)
        out = jnp.einsum("bnmh,bmhd->bnhd", att.astype(bf16), v,
                         preferred_element_type=f32).reshape(B, S, D)
        out = jnp.einsum("bnd,de->bne", out.astype(bf16), lp["wp"],
                         preferred_element_type=f32) + lp["bp"]
        h = h + out
        yn = _layernorm_f32(h, lp["ln2_g"], lp["ln2_b"]).astype(bf16)
        a = jnp.einsum("bnd,dh->bnh", yn, lp["w1"], preferred_element_type=f32) + lp["b1"]
        a = jnp.maximum(a, 0.0)
        o = jnp.einsum("bnh,hd->bnd", a.astype(bf16), lp["w2"],
                       preferred_element_type=f32) + lp["b2"]
        h = h + o
    return h[:, clip_length:]


def init_params(key, *, dim, num_heads, num_layers, prefix_length, mlp_ratio):
    del num_heads  # head count only affects how D is split, not the param shapes
    hdim = int(dim * mlp_ratio)
    k_prefix, *layer_keys = jax.random.split(key, num_layers + 1)
    params = {"prefix_const":
              jax.random.normal(k_prefix, (prefix_length, dim), jnp.float32)}

    def dense(k, fan_in, shape):
        lim = 1.0 / (fan_in ** 0.5)      # nn.Linear-style uniform init
        return jax.random.uniform(k, shape, jnp.float32, -lim, lim)

    layers = []
    for lk in layer_keys:
        ks = jax.random.split(lk, 12)
        wq = dense(ks[2], dim, (dim, dim))
        wkv = dense(ks[3], dim, (dim, 2 * dim))
        layers.append(dict(
            ln1_g=1.0 + 0.02 * jax.random.normal(ks[0], (dim,), jnp.float32),
            ln1_b=0.02 * jax.random.normal(ks[1], (dim,), jnp.float32),
            # fused [Q | K | V] weight, bf16 storage, f32 accumulation in-kernel
            wqkv=jnp.concatenate([wq, wkv], axis=1).astype(jnp.bfloat16),
            wp=dense(ks[4], dim, (dim, dim)).astype(jnp.bfloat16),
            bp=dense(ks[5], dim, (dim,)),
            ln2_g=1.0 + 0.02 * jax.random.normal(ks[6], (dim,), jnp.float32),
            ln2_b=0.02 * jax.random.normal(ks[7], (dim,), jnp.float32),
            w1=dense(ks[8], dim, (dim, hdim)).astype(jnp.bfloat16),
            b1=dense(ks[9], dim, (hdim,)),
            w2=dense(ks[10], hdim, (hdim, dim)).astype(jnp.bfloat16),
            b2=dense(ks[11], hdim, (dim,)),
        ))
    params["layers"] = layers
    return params


if __name__ == "__main__":
    # Small, lane-dense shapes consistent with the module:
    # dim_embedding=128 (8 heads x head_dim 16), mlp_ratio=2.0 (hidden=256),
    # clip_length=4 + prefix_length=4 -> seq=8, batch=2, 2 layers.
    batch = 2
    dim_embedding = 128
    num_heads = 8            # fixed by TransformerMapperSeq (Transformer(dim, 8, L))
    num_layers = 2
    clip_length = 4
    prefix_length = 4
    mlp_ratio = 2.0          # Transformer default

    key = jax.random.PRNGKey(0)
    k_params, k_x = jax.random.split(key)
    params = init_params(k_params, dim=dim_embedding, num_heads=num_heads,
                         num_layers=num_layers, prefix_length=prefix_length,
                         mlp_ratio=mlp_ratio)
    # The module does x.view(B, clip_length, -1): raw input is (B, clip_length * D).
    x = jax.random.normal(k_x, (batch, clip_length * dim_embedding), jnp.float32)

    ref = reference_forward(x, params, clip_length=clip_length,
                            num_heads=num_heads)

    def run_and_check(single_buffer_weights):
        fwd = jax.jit(functools.partial(
            transformer_mapper_seq_forward, clip_length=clip_length,
            num_heads=num_heads, single_buffer_weights=single_buffer_weights))
        out = jax.block_until_ready(fwd(x, params))
        assert out.shape == (batch, prefix_length, dim_embedding), out.shape
        max_err = float(jnp.max(jnp.abs(out - ref)))
        assert jnp.allclose(out, ref, atol=2e-2, rtol=2e-2), f"max abs err {max_err}"
        return out

    try:
        # Preferred configuration: single-buffered grid-invariant weights.
        out = run_and_check(True)
    except Exception:
        # Fall back to double-buffered weights if pl.Buffered(1) is not
        # supported by this Pallas build (correctness is re-verified).
        out = run_and_check(False)

    print("KERNEL_OK")
</pallas_src>

<mosaic_0001>
module attributes {stable_mosaic.version = 11 : i64} {
  func.func @_layer_kernel(%arg0: i32, %arg1: memref<1x8x128xf32, #tpu.memory_space<vmem>>, %arg2: memref<1x128xf32, #tpu.memory_space<vmem>>, %arg3: memref<1x128xf32, #tpu.memory_space<vmem>>, %arg4: memref<128x384xbf16, #tpu.memory_space<vmem>>, %arg5: memref<128x128xbf16, #tpu.memory_space<vmem>>, %arg6: memref<1x128xf32, #tpu.memory_space<vmem>>, %arg7: memref<1x128xf32, #tpu.memory_space<vmem>>, %arg8: memref<1x128xf32, #tpu.memory_space<vmem>>, %arg9: memref<128x256xbf16, #tpu.memory_space<vmem>>, %arg10: memref<1x256xf32, #tpu.memory_space<vmem>>, %arg11: memref<256x128xbf16, #tpu.memory_space<vmem>>, %arg12: memref<1x128xf32, #tpu.memory_space<vmem>>, %arg13: memref<1x8x128xf32, #tpu.memory_space<vmem>>, %arg14: memref<8x128xf32, #tpu.memory_space<vmem>>) attributes {dimension_semantics = [#tpu.dimension_semantics<parallel>], iteration_bounds = array<i64: 2>, scalar_prefetch = 0 : i64, scratch_operands = 1 : i64, tpu.core_type = #tpu.core_type<tc>, window_params = [{transform_indices = @transform_0, window_bounds = array<i64: 1, 8, 128>}, {pipeline_mode = #tpu.pipeline_mode<synchronous>, transform_indices = @transform_1, window_bounds = array<i64: 1, 128>}, {pipeline_mode = #tpu.pipeline_mode<synchronous>, transform_indices = @transform_2, window_bounds = array<i64: 1, 128>}, {pipeline_mode = #tpu.pipeline_mode<synchronous>, transform_indices = @transform_3, window_bounds = array<i64: 128, 384>}, {pipeline_mode = #tpu.pipeline_mode<synchronous>, transform_indices = @transform_4, window_bounds = array<i64: 128, 128>}, {pipeline_mode = #tpu.pipeline_mode<synchronous>, transform_indices = @transform_5, window_bounds = array<i64: 1, 128>}, {pipeline_mode = #tpu.pipeline_mode<synchronous>, transform_indices = @transform_6, window_bounds = array<i64: 1, 128>}, {pipeline_mode = #tpu.pipeline_mode<synchronous>, transform_indices = @transform_7, window_bounds = array<i64: 1, 128>}, {pipeline_mode = #tpu.pipeline_mode<synchronous>, transform_indices = @transform_8, window_bounds = array<i64: 128, 256>}, {pipeline_mode = #tpu.pipeline_mode<synchronous>, transform_indices = @transform_9, window_bounds = array<i64: 1, 256>}, {pipeline_mode = #tpu.pipeline_mode<synchronous>, transform_indices = @transform_10, window_bounds = array<i64: 256, 128>}, {pipeline_mode = #tpu.pipeline_mode<synchronous>, transform_indices = @transform_11, window_bounds = array<i64: 1, 128>}, {transform_indices = @transform_12, window_bounds = array<i64: 1, 8, 128>}]} {
    %c0 = arith.constant 0 : index
    %c0_0 = arith.constant 0 : index
    %c0_1 = arith.constant 0 : index
    %0 = vector.load %arg1[%c0, %c0_0, %c0_1] : memref<1x8x128xf32, #tpu.memory_space<vmem>>, vector<1x8x128xf32>
    %1 = vector.shape_cast %0 : vector<1x8x128xf32> to vector<8x128xf32>
    %c0_2 = arith.constant 0 : index
    %c0_3 = arith.constant 0 : index
    %2 = vector.load %arg2[%c0_2, %c0_3] : memref<1x128xf32, #tpu.memory_space<vmem>>, vector<1x128xf32>
    %c0_4 = arith.constant 0 : index
    %c0_5 = arith.constant 0 : index
    %3 = vector.load %arg3[%c0_4, %c0_5] : memref<1x128xf32, #tpu.memory_space<vmem>>, vector<1x128xf32>
    %cst = arith.constant dense<0.000000e+00> : vector<8xf32>
    %4 = vector.multi_reduction <add>, %1, %cst [1] : vector<8x128xf32> to vector<8xf32>
    %5 = vector.shape_cast %4 : vector<8xf32> to vector<8x1xf32>
    %cst_6 = arith.constant 1.280000e+02 : f32
    %6 = vector.broadcast %cst_6 : f32 to vector<8x1xf32>
    %7 = arith.divf %5, %6 : vector<8x1xf32>
    %8 = vector.broadcast %7 : vector<8x1xf32> to vector<8x128xf32>
    %9 = arith.subf %1, %8 : vector<8x128xf32>
    %10 = arith.mulf %9, %9 : vector<8x128xf32>
    %cst_7 = arith.constant dense<0.000000e+00> : vector<8xf32>
    %11 = vector.multi_reduction <add>, %10, %cst_7 [1] : vector<8x128xf32> to vector<8xf32>
    %12 = vector.shape_cast %11 : vector<8xf32> to vector<8x1xf32>
    %cst_8 = arith.constant 1.280000e+02 : f32
    %13 = vector.broadcast %cst_8 : f32 to vector<8x1xf32>
    %14 = arith.divf %12, %13 : vector<8x1xf32>
    %15 = vector.broadcast %7 : vector<8x1xf32> to vector<8x128xf32>
    %16 = arith.subf %1, %15 : vector<8x128xf32>
    %cst_9 = arith.constant 9.99999974E-6 : f32
    %17 = vector.broadcast %cst_9 : f32 to vector<8x1xf32>
    %18 = arith.addf %14, %17 : vector<8x1xf32>
    %19 = math.rsqrt %18 : vector<8x1xf32>
    %20 = vector.broadcast %19 : vector<8x1xf32> to vector<8x128xf32>
    %21 = arith.mulf %16, %20 : vector<8x128xf32>
    %22 = vector.broadcast %2 : vector<1x128xf32> to vector<8x128xf32>
    %23 = arith.mulf %21, %22 : vector<8x128xf32>
    %24 = vector.broadcast %3 : vector<1x128xf32> to vector<8x128xf32>
    %25 = arith.addf %23, %24 : vector<8x128xf32>
    %26 = arith.truncf %25 : vector<8x128xf32> to vector<8x128xbf16>
    %c0_10 = arith.constant 0 : index
    %c0_11 = arith.constant 0 : index
    %27 = vector.load %arg4[%c0_10, %c0_11] : memref<128x384xbf16, #tpu.memory_space<vmem>>, vector<128x384xbf16>
    %cst_12 = arith.constant dense<0.000000e+00> : vector<8x384xf32>
    %28 = tpu.matmul %26, %27, %cst_12 {dimension_numbers = #tpu.dot_dimension_numbers<[1], [0], [0], [1], [0, 0, 1, 1], [], []>} : vector<8x128xbf16>, vector<128x384xbf16>, vector<8x384xf32> -> vector<8x384xf32>
    %29 = vector.extract_strided_slice %28 {offsets = [0, 0], sizes = [8, 128], strides = [1, 1]} : vector<8x384xf32> to vector<8x128xf32>
    %cst_13 = arith.constant 2.500000e-01 : f32
    %30 = vector.broadcast %cst_13 : f32 to vector<8x128xf32>
    %31 = arith.mulf %29, %30 : vector<8x128xf32>
    %32 = arith.truncf %31 : vector<8x128xf32> to vector<8x128xbf16>
    %33 = vector.shape_cast %32 : vector<8x128xbf16> to vector<1x8x128xbf16>
    %34 = vector.extract_strided_slice %28 {offsets = [0, 128], sizes = [8, 128], strides = [1, 1]} : vector<8x384xf32> to vector<8x128xf32>
    %35 = arith.truncf %34 : vector<8x128xf32> to vector<8x128xbf16>
    %36 = vector.shape_cast %35 : vector<8x128xbf16> to vector<1x8x128xbf16>
    %37 = vector.extract_strided_slice %28 {offsets = [0, 256], sizes = [8, 128], strides = [1, 1]} : vector<8x384xf32> to vector<8x128xf32>
    %38 = arith.truncf %37 : vector<8x128xf32> to vector<8x128xbf16>
    %39 = vector.shape_cast %38 : vector<8x128xbf16> to vector<1x8x128xbf16>
    %40 = vector.extract_strided_slice %33 {offsets = [0, 0, 0], sizes = [1, 8, 16], strides = [1, 1, 1]} : vector<1x8x128xbf16> to vector<1x8x16xbf16>
    %41 = vector.extract_strided_slice %36 {offsets = [0, 0, 0], sizes = [1, 8, 16], strides = [1, 1, 1]} : vector<1x8x128xbf16> to vector<1x8x16xbf16>
    "tpu.trace_start"() <{level = 10 : i32, message = "bnd,bmd->bnm"}> : () -> ()
    %cst_14 = arith.constant dense<0.000000e+00> : vector<1x8x8xf32>
    %42 = tpu.matmul %40, %41, %cst_14 {dimension_numbers = #tpu.dot_dimension_numbers<[2], [2], [1], [1], [0, 0, 0, 1, 1, 1], [0], [0]>} : vector<1x8x16xbf16>, vector<1x8x16xbf16>, vector<1x8x8xf32> -> vector<1x8x8xf32>
    "tpu.trace_stop"() : () -> ()
    %cst_15 = arith.constant dense<0xFF800000> : vector<1x8xf32>
    %43 = vector.multi_reduction <maximumf>, %42, %cst_15 [2] : vector<1x8x8xf32> to vector<1x8xf32>
    %44 = vector.shape_cast %43 : vector<1x8xf32> to vector<1x8x1xf32>
    %45 = vector.broadcast %44 : vector<1x8x1xf32> to vector<1x8x8xf32>
    %46 = arith.subf %42, %45 : vector<1x8x8xf32>
    %47 = math.exp %46 : vector<1x8x8xf32>
    %cst_16 = arith.constant dense<0.000000e+00> : vector<1x8xf32>
    %48 = vector.multi_reduction <add>, %47, %cst_16 [2] : vector<1x8x8xf32> to vector<1x8xf32>
    %49 = vector.shape_cast %48 : vector<1x8xf32> to vector<1x8x1xf32>
    %50 = tpu.reciprocal %49 {approx = true} : vector<1x8x1xf32> -> vector<1x8x1xf32>
    %51 = vector.broadcast %50 : vector<1x8x1xf32> to vector<1x8x8xf32>
    %52 = arith.mulf %47, %51 : vector<1x8x8xf32>
    %53 = arith.truncf %52 : vector<1x8x8xf32> to vector<1x8x8xbf16>
    %54 = vector.extract_strided_slice %39 {offsets = [0, 0, 0], sizes = [1, 8, 16], strides = [1, 1, 1]} : vector<1x8x128xbf16> to vector<1x8x16xbf16>
    "tpu.trace_start"() <{level = 10 : i32, message = "bnm,bmd->bnd"}> : () -> ()
    %cst_17 = arith.constant dense<0.000000e+00> : vector<1x8x16xf32>
    %55 = tpu.matmul %53, %54, %cst_17 {dimension_numbers = #tpu.dot_dimension_numbers<[2], [1], [1], [2], [0, 0, 0, 1, 1, 2], [0], [0]>} : vector<1x8x8xbf16>, vector<1x8x16xbf16>, vector<1x8x16xf32> -> vector<1x8x16xf32>
    "tpu.trace_stop"() : () -> ()
    %56 = vector.shape_cast %55 : vector<1x8x16xf32> to vector<8x16xf32>
    %c0_18 = arith.constant 0 : index
    %c0_19 = arith.constant 0 : index
    %57 = vector.load %arg14[%c0_18, %c0_19] : memref<8x128xf32, #tpu.memory_space<vmem>>, vector<8x16xf32>
    tpu.vector_store %arg14[%c0_18, %c0_19], %56 {strides = array<i32>} : memref<8x128xf32, #tpu.memory_space<vmem>>, vector<8x16xf32>,
    %58 = vector.extract_strided_slice %33 {offsets = [0, 0, 16], sizes = [1, 8, 16], strides = [1, 1, 1]} : vector<1x8x128xbf16> to vector<1x8x16xbf16>
    %59 = vector.extract_strided_slice %36 {offsets = [0, 0, 16], sizes = [1, 8, 16], strides = [1, 1, 1]} : vector<1x8x128xbf16> to vector<1x8x16xbf16>
    "tpu.trace_start"() <{level = 10 : i32, message = "bnd,bmd->bnm"}> : () -> ()
    %cst_20 = arith.constant dense<0.000000e+00> : vector<1x8x8xf32>
    %60 = tpu.matmul %58, %59, %cst_20 {dimension_numbers = #tpu.dot_dimension_numbers<[2], [2], [1], [1], [0, 0, 0, 1, 1, 1], [0], [0]>} : vector<1x8x16xbf16>, vector<1x8x16xbf16>, vector<1x8x8xf32> -> vector<1x8x8xf32>
    "tpu.trace_stop"() : () -> ()
    %cst_21 = arith.constant dense<0xFF800000> : vector<1x8xf32>
    %61 = vector.multi_reduction <maximumf>, %60, %cst_21 [2] : vector<1x8x8xf32> to vector<1x8xf32>
    %62 = vector.shape_cast %61 : vector<1x8xf32> to vector<1x8x1xf32>
    %63 = vector.broadcast %62 : vector<1x8x1xf32> to vector<1x8x8xf32>
    %64 = arith.subf %60, %63 : vector<1x8x8xf32>
    %65 = math.exp %64 : vector<1x8x8xf32>
    %cst_22 = arith.constant dense<0.000000e+00> : vector<1x8xf32>
    %66 = vector.multi_reduction <add>, %65, %cst_22 [2] : vector<1x8x8xf32> to vector<1x8xf32>
    %67 = vector.shape_cast %66 : vector<1x8xf32> to vector<1x8x1xf32>
    %68 = tpu.reciprocal %67 {approx = true} : vector<1x8x1xf32> -> vector<1x8x1xf32>
    %69 = vector.broadcast %68 : vector<1x8x1xf32> to vector<1x8x8xf32>
    %70 = arith.mulf %65, %69 : vector<1x8x8xf32>
    %71 = arith.truncf %70 : vector<1x8x8xf32> to vector<1x8x8xbf16>
    %72 = vector.extract_strided_slice %39 {offsets = [0, 0, 16], sizes = [1, 8, 16], strides = [1, 1, 1]} : vector<1x8x128xbf16> to vector<1x8x16xbf16>
    "tpu.trace_start"() <{level = 10 : i32, message = "bnm,bmd->bnd"}> : () -> ()
    %cst_23 = arith.constant dense<0.000000e+00> : vector<1x8x16xf32>
    %73 = tpu.matmul %71, %72, %cst_23 {dimension_numbers = #tpu.dot_dimension_numbers<[2], [1], [1], [2], [0, 0, 0, 1, 1, 2], [0], [0]>} : vector<1x8x8xbf16>, vector<1x8x16xbf16>, vector<1x8x16xf32> -> vector<1x8x16xf32>
    "tpu.trace_stop"() : () -> ()
    %74 = vector.shape_cast %73 : vector<1x8x16xf32> to vector<8x16xf32>
    %c0_24 = arith.constant 0 : index
    %c16 = arith.constant 16 : index
    %75 = vector.load %arg14[%c0_24, %c16] : memref<8x128xf32, #tpu.memory_space<vmem>>, vector<8x16xf32>
    tpu.vector_store %arg14[%c0_24, %c16], %74 {strides = array<i32>} : memref<8x128xf32, #tpu.memory_space<vmem>>, vector<8x16xf32>,
    %76 = vector.extract_strided_slice %33 {offsets = [0, 0, 32], sizes = [1, 8, 16], strides = [1, 1, 1]} : vector<1x8x128xbf16> to vector<1x8x16xbf16>
    %77 = vector.extract_strided_slice %36 {offsets = [0, 0, 32], sizes = [1, 8, 16], strides = [1, 1, 1]} : vector<1x8x128xbf16> to vector<1x8x16xbf16>
    "tpu.trace_start"() <{level = 10 : i32, message = "bnd,bmd->bnm"}> : () -> ()
    %cst_25 = arith.constant dense<0.000000e+00> : vector<1x8x8xf32>
    %78 = tpu.matmul %76, %77, %cst_25 {dimension_numbers = #tpu.dot_dimension_numbers<[2], [2], [1], [1], [0, 0, 0, 1, 1, 1], [0], [0]>} : vector<1x8x16xbf16>, vector<1x8x16xbf16>, vector<1x8x8xf32> -> vector<1x8x8xf32>
    "tpu.trace_stop"() : () -> ()
    %cst_26 = arith.constant dense<0xFF800000> : vector<1x8xf32>
    %79 = vector.multi_reduction <maximumf>, %78, %cst_26 [2] : vector<1x8x8xf32> to vector<1x8xf32>
    %80 = vector.shape_cast %79 : vector<1x8xf32> to vector<1x8x1xf32>
    %81 = vector.broadcast %80 : vector<1x8x1xf32> to vector<1x8x8xf32>
    %82 = arith.subf %78, %81 : vector<1x8x8xf32>
    %83 = math.exp %82 : vector<1x8x8xf32>
    %cst_27 = arith.constant dense<0.000000e+00> : vector<1x8xf32>
    %84 = vector.multi_reduction <add>, %83, %cst_27 [2] : vector<1x8x8xf32> to vector<1x8xf32>
    %85 = vector.shape_cast %84 : vector<1x8xf32> to vector<1x8x1xf32>
    %86 = tpu.reciprocal %85 {approx = true} : vector<1x8x1xf32> -> vector<1x8x1xf32>
    %87 = vector.broadcast %86 : vector<1x8x1xf32> to vector<1x8x8xf32>
    %88 = arith.mulf %83, %87 : vector<1x8x8xf32>
    %89 = arith.truncf %88 : vector<1x8x8xf32> to vector<1x8x8xbf16>
    %90 = vector.extract_strided_slice %39 {offsets = [0, 0, 32], sizes = [1, 8, 16], strides = [1, 1, 1]} : vector<1x8x128xbf16> to vector<1x8x16xbf16>
    "tpu.trace_start"() <{level = 10 : i32, message = "bnm,bmd->bnd"}> : () -> ()
    %cst_28 = arith.constant dense<0.000000e+00> : vector<1x8x16xf32>
    %91 = tpu.matmul %89, %90, %cst_28 {dimension_numbers = #tpu.dot_dimension_numbers<[2], [1], [1], [2], [0, 0, 0, 1, 1, 2], [0], [0]>} : vector<1x8x8xbf16>, vector<1x8x16xbf16>, vector<1x8x16xf32> -> vector<1x8x16xf32>
    "tpu.trace_stop"() : () -> ()
    %92 = vector.shape_cast %91 : vector<1x8x16xf32> to vector<8x16xf32>
    %c0_29 = arith.constant 0 : index
    %c32 = arith.constant 32 : index
    %93 = vector.load %arg14[%c0_29, %c32] : memref<8x128xf32, #tpu.memory_space<vmem>>, vector<8x16xf32>
    tpu.vector_store %arg14[%c0_29, %c32], %92 {strides = array<i32>} : memref<8x128xf32, #tpu.memory_space<vmem>>, vector<8x16xf32>,
    %94 = vector.extract_strided_slice %33 {offsets = [0, 0, 48], sizes = [1, 8, 16], strides = [1, 1, 1]} : vector<1x8x128xbf16> to vector<1x8x16xbf16>
    %95 = vector.extract_strided_slice %36 {offsets = [0, 0, 48], sizes = [1, 8, 16], strides = [1, 1, 1]} : vector<1x8x128xbf16> to vector<1x8x16xbf16>
    "tpu.trace_start"() <{level = 10 : i32, message = "bnd,bmd->bnm"}> : () -> ()
    %cst_30 = arith.constant dense<0.000000e+00> : vector<1x8x8xf32>
    %96 = tpu.matmul %94, %95, %cst_30 {dimension_numbers = #tpu.dot_dimension_numbers<[2], [2], [1], [1], [0, 0, 0, 1, 1, 1], [0], [0]>} : vector<1x8x16xbf16>, vector<1x8x16xbf16>, vector<1x8x8xf32> -> vector<1x8x8xf32>
    "tpu.trace_stop"() : () -> ()
    %cst_31 = arith.constant dense<0xFF800000> : vector<1x8xf32>
    %97 = vector.multi_reduction <maximumf>, %96, %cst_31 [2] : vector<1x8x8xf32> to vector<1x8xf32>
    %98 = vector.shape_cast %97 : vector<1x8xf32> to vector<1x8x1xf32>
    %99 = vector.broadcast %98 : vector<1x8x1xf32> to vector<1x8x8xf32>
    %100 = arith.subf %96, %99 : vector<1x8x8xf32>
    %101 = math.exp %100 : vector<1x8x8xf32>
    %cst_32 = arith.constant dense<0.000000e+00> : vector<1x8xf32>
    %102 = vector.multi_reduction <add>, %101, %cst_32 [2] : vector<1x8x8xf32> to vector<1x8xf32>
    %103 = vector.shape_cast %102 : vector<1x8xf32> to vector<1x8x1xf32>
    %104 = tpu.reciprocal %103 {approx = true} : vector<1x8x1xf32> -> vector<1x8x1xf32>
    %105 = vector.broadcast %104 : vector<1x8x1xf32> to vector<1x8x8xf32>
    %106 = arith.mulf %101, %105 : vector<1x8x8xf32>
    %107 = arith.truncf %106 : vector<1x8x8xf32> to vector<1x8x8xbf16>
    %108 = vector.extract_strided_slice %39 {offsets = [0, 0, 48], sizes = [1, 8, 16], strides = [1, 1, 1]} : vector<1x8x128xbf16> to vector<1x8x16xbf16>
    "tpu.trace_start"() <{level = 10 : i32, message = "bnm,bmd->bnd"}> : () -> ()
    %cst_33 = arith.constant dense<0.000000e+00> : vector<1x8x16xf32>
    %109 = tpu.matmul %107, %108, %cst_33 {dimension_numbers = #tpu.dot_dimension_numbers<[2], [1], [1], [2], [0, 0, 0, 1, 1, 2], [0], [0]>} : vector<1x8x8xbf16>, vector<1x8x16xbf16>, vector<1x8x16xf32> -> vector<1x8x16xf32>
    "tpu.trace_stop"() : () -> ()
    %110 = vector.shape_cast %109 : vector<1x8x16xf32> to vector<8x16xf32>
    %c0_34 = arith.constant 0 : index
    %c48 = arith.constant 48 : index
    %111 = vector.load %arg14[%c0_34, %c48] : memref<8x128xf32, #tpu.memory_space<vmem>>, vector<8x16xf32>
    tpu.vector_store %arg14[%c0_34, %c48], %110 {strides = array<i32>} : memref<8x128xf32, #tpu.memory_space<vmem>>, vector<8x16xf32>,
    %112 = vector.extract_strided_slice %33 {offsets = [0, 0, 64], sizes = [1, 8, 16], strides = [1, 1, 1]} : vector<1x8x128xbf16> to vector<1x8x16xbf16>
    %113 = vector.extract_strided_slice %36 {offsets = [0, 0, 64], sizes = [1, 8, 16], strides = [1, 1, 1]} : vector<1x8x128xbf16> to vector<1x8x16xbf16>
    "tpu.trace_start"() <{level = 10 : i32, message = "bnd,bmd->bnm"}> : () -> ()
    %cst_35 = arith.constant dense<0.000000e+00> : vector<1x8x8xf32>
    %114 = tpu.matmul %112, %113, %cst_35 {dimension_numbers = #tpu.dot_dimension_numbers<[2], [2], [1], [1], [0, 0, 0, 1, 1, 1], [0], [0]>} : vector<1x8x16xbf16>, vector<1x8x16xbf16>, vector<1x8x8xf32> -> vector<1x8x8xf32>
    "tpu.trace_stop"() : () -> ()
    %cst_36 = arith.constant dense<0xFF800000> : vector<1x8xf32>
    %115 = vector.multi_reduction <maximumf>, %114, %cst_36 [2] : vector<1x8x8xf32> to vector<1x8xf32>
    %116 = vector.shape_cast %115 : vector<1x8xf32> to vector<1x8x1xf32>
    %117 = vector.broadcast %116 : vector<1x8x1xf32> to vector<1x8x8xf32>
    %118 = arith.subf %114, %117 : vector<1x8x8xf32>
    %119 = math.exp %118 : vector<1x8x8xf32>
    %cst_37 = arith.constant dense<0.000000e+00> : vector<1x8xf32>
    %120 = vector.multi_reduction <add>, %119, %cst_37 [2] : vector<1x8x8xf32> to vector<1x8xf32>
    %121 = vector.shape_cast %120 : vector<1x8xf32> to vector<1x8x1xf32>
    %122 = tpu.reciprocal %121 {approx = true} : vector<1x8x1xf32> -> vector<1x8x1xf32>
    %123 = vector.broadcast %122 : vector<1x8x1xf32> to vector<1x8x8xf32>
    %124 = arith.mulf %119, %123 : vector<1x8x8xf32>
    %125 = arith.truncf %124 : vector<1x8x8xf32> to vector<1x8x8xbf16>
    %126 = vector.extract_strided_slice %39 {offsets = [0, 0, 64], sizes = [1, 8, 16], strides = [1, 1, 1]} : vector<1x8x128xbf16> to vector<1x8x16xbf16>
    "tpu.trace_start"() <{level = 10 : i32, message = "bnm,bmd->bnd"}> : () -> ()
    %cst_38 = arith.constant dense<0.000000e+00> : vector<1x8x16xf32>
    %127 = tpu.matmul %125, %126, %cst_38 {dimension_numbers = #tpu.dot_dimension_numbers<[2], [1], [1], [2], [0, 0, 0, 1, 1, 2], [0], [0]>} : vector<1x8x8xbf16>, vector<1x8x16xbf16>, vector<1x8x16xf32> -> vector<1x8x16xf32>
    "tpu.trace_stop"() : () -> ()
    %128 = vector.shape_cast %127 : vector<1x8x16xf32> to vector<8x16xf32>
    %c0_39 = arith.constant 0 : index
    %c64 = arith.constant 64 : index
    %129 = vector.load %arg14[%c0_39, %c64] : memref<8x128xf32, #tpu.memory_space<vmem>>, vector<8x16xf32>
    tpu.vector_store %arg14[%c0_39, %c64], %128 {strides = array<i32>} : memref<8x128xf32, #tpu.memory_space<vmem>>, vector<8x16xf32>,
    %130 = vector.extract_strided_slice %33 {offsets = [0, 0, 80], sizes = [1, 8, 16], strides = [1, 1, 1]} : vector<1x8x128xbf16> to vector<1x8x16xbf16>
    %131 = vector.extract_strided_slice %36 {offsets = [0, 0, 80], sizes = [1, 8, 16], strides = [1, 1, 1]} : vector<1x8x128xbf16> to vector<1x8x16xbf16>
    "tpu.trace_start"() <{level = 10 : i32, message = "bnd,bmd->bnm"}> : () -> ()
    %cst_40 = arith.constant dense<0.000000e+00> : vector<1x8x8xf32>
    %132 = tpu.matmul %130, %131, %cst_40 {dimension_numbers = #tpu.dot_dimension_numbers<[2], [2], [1], [1], [0, 0, 0, 1, 1, 1], [0], [0]>} : vector<1x8x16xbf16>, vector<1x8x16xbf16>, vector<1x8x8xf32> -> vector<1x8x8xf32>
    "tpu.trace_stop"() : () -> ()
    %cst_41 = arith.constant dense<0xFF800000> : vector<1x8xf32>
    %133 = vector.multi_reduction <maximumf>, %132, %cst_41 [2] : vector<1x8x8xf32> to vector<1x8xf32>
    %134 = vector.shape_cast %133 : vector<1x8xf32> to vector<1x8x1xf32>
    %135 = vector.broadcast %134 : vector<1x8x1xf32> to vector<1x8x8xf32>
    %136 = arith.subf %132, %135 : vector<1x8x8xf32>
    %137 = math.exp %136 : vector<1x8x8xf32>
    %cst_42 = arith.constant dense<0.000000e+00> : vector<1x8xf32>
    %138 = vector.multi_reduction <add>, %137, %cst_42 [2] : vector<1x8x8xf32> to vector<1x8xf32>
    %139 = vector.shape_cast %138 : vector<1x8xf32> to vector<1x8x1xf32>
    %140 = tpu.reciprocal %139 {approx = true} : vector<1x8x1xf32> -> vector<1x8x1xf32>
    %141 = vector.broadcast %140 : vector<1x8x1xf32> to vector<1x8x8xf32>
    %142 = arith.mulf %137, %141 : vector<1x8x8xf32>
    %143 = arith.truncf %142 : vector<1x8x8xf32> to vector<1x8x8xbf16>
    %144 = vector.extract_strided_slice %39 {offsets = [0, 0, 80], sizes = [1, 8, 16], strides = [1, 1, 1]} : vector<1x8x128xbf16> to vector<1x8x16xbf16>
    "tpu.trace_start"() <{level = 10 : i32, message = "bnm,bmd->bnd"}> : () -> ()
    %cst_43 = arith.constant dense<0.000000e+00> : vector<1x8x16xf32>
    %145 = tpu.matmul %143, %144, %cst_43 {dimension_numbers = #tpu.dot_dimension_numbers<[2], [1], [1], [2], [0, 0, 0, 1, 1, 2], [0], [0]>} : vector<1x8x8xbf16>, vector<1x8x16xbf16>, vector<1x8x16xf32> -> vector<1x8x16xf32>
    "tpu.trace_stop"() : () -> ()
    %146 = vector.shape_cast %145 : vector<1x8x16xf32> to vector<8x16xf32>
    %c0_44 = arith.constant 0 : index
    %c80 = arith.constant 80 : index
    %147 = vector.load %arg14[%c0_44, %c80] : memref<8x128xf32, #tpu.memory_space<vmem>>, vector<8x16xf32>
    tpu.vector_store %arg14[%c0_44, %c80], %146 {strides = array<i32>} : memref<8x128xf32, #tpu.memory_space<vmem>>, vector<8x16xf32>,
    %148 = vector.extract_strided_slice %33 {offsets = [0, 0, 96], sizes = [1, 8, 16], strides = [1, 1, 1]} : vector<1x8x128xbf16> to vector<1x8x16xbf16>
    %149 = vector.extract_strided_slice %36 {offsets = [0, 0, 96], sizes = [1, 8, 16], strides = [1, 1, 1]} : vector<1x8x128xbf16> to vector<1x8x16xbf16>
    "tpu.trace_start"() <{level = 10 : i32, message = "bnd,bmd->bnm"}> : () -> ()
    %cst_45 = arith.constant dense<0.000000e+00> : vector<1x8x8xf32>
    %150 = tpu.matmul %148, %149, %cst_45 {dimension_numbers = #tpu.dot_dimension_numbers<[2], [2], [1], [1], [0, 0, 0, 1, 1, 1], [0], [0]>} : vector<1x8x16xbf16>, vector<1x8x16xbf16>, vector<1x8x8xf32> -> vector<1x8x8xf32>
    "tpu.trace_stop"() : () -> ()
    %cst_46 = arith.constant dense<0xFF800000> : vector<1x8xf32>
    %151 = vector.multi_reduction <maximumf>, %150, %cst_46 [2] : vector<1x8x8xf32> to vector<1x8xf32>
    %152 = vector.shape_cast %151 : vector<1x8xf32> to vector<1x8x1xf32>
    %153 = vector.broadcast %152 : vector<1x8x1xf32> to vector<1x8x8xf32>
    %154 = arith.subf %150, %153 : vector<1x8x8xf32>
    %155 = math.exp %154 : vector<1x8x8xf32>
    %cst_47 = arith.constant dense<0.000000e+00> : vector<1x8xf32>
    %156 = vector.multi_reduction <add>, %155, %cst_47 [2] : vector<1x8x8xf32> to vector<1x8xf32>
    %157 = vector.shape_cast %156 : vector<1x8xf32> to vector<1x8x1xf32>
    %158 = tpu.reciprocal %157 {approx = true} : vector<1x8x1xf32> -> vector<1x8x1xf32>
    %159 = vector.broadcast %158 : vector<1x8x1xf32> to vector<1x8x8xf32>
    %160 = arith.mulf %155, %159 : vector<1x8x8xf32>
    %161 = arith.truncf %160 : vector<1x8x8xf32> to vector<1x8x8xbf16>
    %162 = vector.extract_strided_slice %39 {offsets = [0, 0, 96], sizes = [1, 8, 16], strides = [1, 1, 1]} : vector<1x8x128xbf16> to vector<1x8x16xbf16>
    "tpu.trace_start"() <{level = 10 : i32, message = "bnm,bmd->bnd"}> : () -> ()
    %cst_48 = arith.constant dense<0.000000e+00> : vector<1x8x16xf32>
    %163 = tpu.matmul %161, %162, %cst_48 {dimension_numbers = #tpu.dot_dimension_numbers<[2], [1], [1], [2], [0, 0, 0, 1, 1, 2], [0], [0]>} : vector<1x8x8xbf16>, vector<1x8x16xbf16>, vector<1x8x16xf32> -> vector<1x8x16xf32>
    "tpu.trace_stop"() : () -> ()
    %164 = vector.shape_cast %163 : vector<1x8x16xf32> to vector<8x16xf32>
    %c0_49 = arith.constant 0 : index
    %c96 = arith.constant 96 : index
    %165 = vector.load %arg14[%c0_49, %c96] : memref<8x128xf32, #tpu.memory_space<vmem>>, vector<8x16xf32>
    tpu.vector_store %arg14[%c0_49, %c96], %164 {strides = array<i32>} : memref<8x128xf32, #tpu.memory_space<vmem>>, vector<8x16xf32>,
    %166 = vector.extract_strided_slice %33 {offsets = [0, 0, 112], sizes = [1, 8, 16], strides = [1, 1, 1]} : vector<1x8x128xbf16> to vector<1x8x16xbf16>
    %167 = vector.extract_strided_slice %36 {offsets = [0, 0, 112], sizes = [1, 8, 16], strides = [1, 1, 1]} : vector<1x8x128xbf16> to vector<1x8x16xbf16>
    "tpu.trace_start"() <{level = 10 : i32, message = "bnd,bmd->bnm"}> : () -> ()
    %cst_50 = arith.constant dense<0.000000e+00> : vector<1x8x8xf32>
    %168 = tpu.matmul %166, %167, %cst_50 {dimension_numbers = #tpu.dot_dimension_numbers<[2], [2], [1], [1], [0, 0, 0, 1, 1, 1], [0], [0]>} : vector<1x8x16xbf16>, vector<1x8x16xbf16>, vector<1x8x8xf32> -> vector<1x8x8xf32>
    "tpu.trace_stop"() : () -> ()
    %cst_51 = arith.constant dense<0xFF800000> : vector<1x8xf32>
    %169 = vector.multi_reduction <maximumf>, %168, %cst_51 [2] : vector<1x8x8xf32> to vector<1x8xf32>
    %170 = vector.shape_cast %169 : vector<1x8xf32> to vector<1x8x1xf32>
    %171 = vector.broadcast %170 : vector<1x8x1xf32> to vector<1x8x8xf32>
    %172 = arith.subf %168, %171 : vector<1x8x8xf32>
    %173 = math.exp %172 : vector<1x8x8xf32>
    %cst_52 = arith.constant dense<0.000000e+00> : vector<1x8xf32>
    %174 = vector.multi_reduction <add>, %173, %cst_52 [2] : vector<1x8x8xf32> to vector<1x8xf32>
    %175 = vector.shape_cast %174 : vector<1x8xf32> to vector<1x8x1xf32>
    %176 = tpu.reciprocal %175 {approx = true} : vector<1x8x1xf32> -> vector<1x8x1xf32>
    %177 = vector.broadcast %176 : vector<1x8x1xf32> to vector<1x8x8xf32>
    %178 = arith.mulf %173, %177 : vector<1x8x8xf32>
    %179 = arith.truncf %178 : vector<1x8x8xf32> to vector<1x8x8xbf16>
    %180 = vector.extract_strided_slice %39 {offsets = [0, 0, 112], sizes = [1, 8, 16], strides = [1, 1, 1]} : vector<1x8x128xbf16> to vector<1x8x16xbf16>
    "tpu.trace_start"() <{level = 10 : i32, message = "bnm,bmd->bnd"}> : () -> ()
    %cst_53 = arith.constant dense<0.000000e+00> : vector<1x8x16xf32>
    %181 = tpu.matmul %179, %180, %cst_53 {dimension_numbers = #tpu.dot_dimension_numbers<[2], [1], [1], [2], [0, 0, 0, 1, 1, 2], [0], [0]>} : vector<1x8x8xbf16>, vector<1x8x16xbf16>, vector<1x8x16xf32> -> vector<1x8x16xf32>
    "tpu.trace_stop"() : () -> ()
    %182 = vector.shape_cast %181 : vector<1x8x16xf32> to vector<8x16xf32>
    %c0_54 = arith.constant 0 : index
    %c112 = arith.constant 112 : index
    %183 = vector.load %arg14[%c0_54, %c112] : memref<8x128xf32, #tpu.memory_space<vmem>>, vector<8x16xf32>
    tpu.vector_store %arg14[%c0_54, %c112], %182 {strides = array<i32>} : memref<8x128xf32, #tpu.memory_space<vmem>>, vector<8x16xf32>,
    %c0_55 = arith.constant 0 : index
    %c0_56 = arith.constant 0 : index
    %184 = vector.load %arg14[%c0_55, %c0_56] : memref<8x128xf32, #tpu.memory_space<vmem>>, vector<8x128xf32>
    %185 = arith.truncf %184 : vector<8x128xf32> to vector<8x128xbf16>
    %c0_57 = arith.constant 0 : index
    %c0_58 = arith.constant 0 : index
    %186 = vector.load %arg5[%c0_57, %c0_58] : memref<128x128xbf16, #tpu.memory_space<vmem>>, vector<128x128xbf16>
    %cst_59 = arith.constant dense<0.000000e+00> : vector<8x128xf32>
    %187 = tpu.matmul %185, %186, %cst_59 {dimension_numbers = #tpu.dot_dimension_numbers<[1], [0], [0], [1], [0, 0, 1, 1], [], []>} : vector<8x128xbf16>, vector<128x128xbf16>, vector<8x128xf32> -> vector<8x128xf32>
    %c0_60 = arith.constant 0 : index
    %c0_61 = arith.constant 0 : index
    %188 = vector.load %arg6[%c0_60, %c0_61] : memref<1x128xf32, #tpu.memory_space<vmem>>, vector<1x128xf32>
    %189 = vector.broadcast %188 : vector<1x128xf32> to vector<8x128xf32>
    %190 = arith.addf %187, %189 : vector<8x128xf32>
    %191 = arith.addf %1, %190 : vector<8x128xf32>
    %c0_62 = arith.constant 0 : index
    %c0_63 = arith.constant 0 : index
    %192 = vector.load %arg7[%c0_62, %c0_63] : memref<1x128xf32, #tpu.memory_space<vmem>>, vector<1x128xf32>
    %c0_64 = arith.constant 0 : index
    %c0_65 = arith.constant 0 : index
    %193 = vector.load %arg8[%c0_64, %c0_65] : memref<1x128xf32, #tpu.memory_space<vmem>>, vector<1x128xf32>
    %cst_66 = arith.constant dense<0.000000e+00> : vector<8xf32>
    %194 = vector.multi_reduction <add>, %191, %cst_66 [1] : vector<8x128xf32> to vector<8xf32>
    %195 = vector.shape_cast %194 : vector<8xf32> to vector<8x1xf32>
    %cst_67 = arith.constant 1.280000e+02 : f32
    %196 = vector.broadcast %cst_67 : f32 to vector<8x1xf32>
    %197 = arith.divf %195, %196 : vector<8x1xf32>
    %198 = vector.broadcast %197 : vector<8x1xf32> to vector<8x128xf32>
    %199 = arith.subf %191, %198 : vector<8x128xf32>
    %200 = arith.mulf %199, %199 : vector<8x128xf32>
    %cst_68 = arith.constant dense<0.000000e+00> : vector<8xf32>
    %201 = vector.multi_reduction <add>, %200, %cst_68 [1] : vector<8x128xf32> to vector<8xf32>
    %202 = vector.shape_cast %201 : vector<8xf32> to vector<8x1xf32>
    %cst_69 = arith.constant 1.280000e+02 : f32
    %203 = vector.broadcast %cst_69 : f32 to vector<8x1xf32>
    %204 = arith.divf %202, %203 : vector<8x1xf32>
    %205 = vector.broadcast %197 : vector<8x1xf32> to vector<8x128xf32>
    %206 = arith.subf %191, %205 : vector<8x128xf32>
    %cst_70 = arith.constant 9.99999974E-6 : f32
    %207 = vector.broadcast %cst_70 : f32 to vector<8x1xf32>
    %208 = arith.addf %204, %207 : vector<8x1xf32>
    %209 = math.rsqrt %208 : vector<8x1xf32>
    %210 = vector.broadcast %209 : vector<8x1xf32> to vector<8x128xf32>
    %211 = arith.mulf %206, %210 : vector<8x128xf32>
    %212 = vector.broadcast %192 : vector<1x128xf32> to vector<8x128xf32>
    %213 = arith.mulf %211, %212 : vector<8x128xf32>
    %214 = vector.broadcast %193 : vector<1x128xf32> to vector<8x128xf32>
    %215 = arith.addf %213, %214 : vector<8x128xf32>
    %216 = arith.truncf %215 : vector<8x128xf32> to vector<8x128xbf16>
    %c0_71 = arith.constant 0 : index
    %c0_72 = arith.constant 0 : index
    %217 = vector.load %arg9[%c0_71, %c0_72] : memref<128x256xbf16, #tpu.memory_space<vmem>>, vector<128x256xbf16>
    %cst_73 = arith.constant dense<0.000000e+00> : vector<8x256xf32>
    %218 = tpu.matmul %216, %217, %cst_73 {dimension_numbers = #tpu.dot_dimension_numbers<[1], [0], [0], [1], [0, 0, 1, 1], [], []>} : vector<8x128xbf16>, vector<128x256xbf16>, vector<8x256xf32> -> vector<8x256xf32>
    %c0_74 = arith.constant 0 : index
    %c0_75 = arith.constant 0 : index
    %219 = vector.load %arg10[%c0_74, %c0_75] : memref<1x256xf32, #tpu.memory_space<vmem>>, vector<1x256xf32>
    %220 = vector.broadcast %219 : vector<1x256xf32> to vector<8x256xf32>
    %221 = arith.addf %218, %220 : vector<8x256xf32>
    %cst_76 = arith.constant 0.000000e+00 : f32
    %222 = vector.broadcast %cst_76 : f32 to vector<8x256xf32>
    %223 = arith.maximumf %221, %222 : vector<8x256xf32>
    %224 = arith.truncf %223 : vector<8x256xf32> to vector<8x256xbf16>
    %c0_77 = arith.constant 0 : index
    %c0_78 = arith.constant 0 : index
    %225 = vector.load %arg11[%c0_77, %c0_78] : memref<256x128xbf16, #tpu.memory_space<vmem>>, vector<256x128xbf16>
    %cst_79 = arith.constant dense<0.000000e+00> : vector<8x128xf32>
    %226 = tpu.matmul %224, %225, %cst_79 {dimension_numbers = #tpu.dot_dimension_numbers<[1], [0], [0], [1], [0, 0, 1, 1], [], []>} : vector<8x256xbf16>, vector<256x128xbf16>, vector<8x128xf32> -> vector<8x128xf32>
    %c0_80 = arith.constant 0 : index
    %c0_81 = arith.constant 0 : index
    %227 = vector.load %arg12[%c0_80, %c0_81] : memref<1x128xf32, #tpu.memory_space<vmem>>, vector<1x128xf32>
    %228 = vector.broadcast %227 : vector<1x128xf32> to vector<8x128xf32>
    %229 = arith.addf %226, %228 : vector<8x128xf32>
    %230 = arith.addf %191, %229 : vector<8x128xf32>
    %231 = vector.shape_cast %230 : vector<8x128xf32> to vector<1x8x128xf32>
    %c0_82 = arith.constant 0 : index
    %c0_83 = arith.constant 0 : index
    %c0_84 = arith.constant 0 : index
    %232 = vector.load %arg13[%c0_82, %c0_83, %c0_84] : memref<1x8x128xf32, #tpu.memory_space<vmem>>, vector<1x8x128xf32>
    tpu.vector_store %arg13[%c0_82, %c0_83, %c0_84], %231 {strides = array<i32>} : memref<1x8x128xf32, #tpu.memory_space<vmem>>, vector<1x8x128xf32>,
    return
  }
  func.func @transform_0(%arg0: i32) -> (i32, i32, i32) {
    %c0_i32 = arith.constant 0 : i32
    %c0_i32_0 = arith.constant 0 : i32
    %c0_i32_1 = arith.constant 0 : i32
    return %arg0, %c0_i32, %c0_i32_0 : i32, i32, i32
  }
  func.func @transform_1(%arg0: i32) -> (i32, i32) {
    %c0_i32 = arith.constant 0 : i32
    %c0_i32_0 = arith.constant 0 : i32
    %c0_i32_1 = arith.constant 0 : i32
    return %c0_i32, %c0_i32_0 : i32, i32
  }
  func.func @transform_2(%arg0: i32) -> (i32, i32) {
    %c0_i32 = arith.constant 0 : i32
    %c0_i32_0 = arith.constant 0 : i32
    %c0_i32_1 = arith.constant 0 : i32
    return %c0_i32, %c0_i32_0 : i32, i32
  }
  func.func @transform_3(%arg0: i32) -> (i32, i32) {
    %c0_i32 = arith.constant 0 : i32
    %c0_i32_0 = arith.constant 0 : i32
    %c0_i32_1 = arith.constant 0 : i32
    return %c0_i32, %c0_i32_0 : i32, i32
  }
  func.func @transform_4(%arg0: i32) -> (i32, i32) {
    %c0_i32 = arith.constant 0 : i32
    %c0_i32_0 = arith.constant 0 : i32
    %c0_i32_1 = arith.constant 0 : i32
    return %c0_i32, %c0_i32_0 : i32, i32
  }
  func.func @transform_5(%arg0: i32) -> (i32, i32) {
    %c0_i32 = arith.constant 0 : i32
    %c0_i32_0 = arith.constant 0 : i32
    %c0_i32_1 = arith.constant 0 : i32
    return %c0_i32, %c0_i32_0 : i32, i32
  }
  func.func @transform_6(%arg0: i32) -> (i32, i32) {
    %c0_i32 = arith.constant 0 : i32
    %c0_i32_0 = arith.constant 0 : i32
    %c0_i32_1 = arith.constant 0 : i32
    return %c0_i32, %c0_i32_0 : i32, i32
  }
  func.func @transform_7(%arg0: i32) -> (i32, i32) {
    %c0_i32 = arith.constant 0 : i32
    %c0_i32_0 = arith.constant 0 : i32
    %c0_i32_1 = arith.constant 0 : i32
    return %c0_i32, %c0_i32_0 : i32, i32
  }
  func.func @transform_8(%arg0: i32) -> (i32, i32) {
    %c0_i32 = arith.constant 0 : i32
    %c0_i32_0 = arith.constant 0 : i32
    %c0_i32_1 = arith.constant 0 : i32
    return %c0_i32, %c0_i32_0 : i32, i32
  }
  func.func @transform_9(%arg0: i32) -> (i32, i32) {
    %c0_i32 = arith.constant 0 : i32
    %c0_i32_0 = arith.constant 0 : i32
    %c0_i32_1 = arith.constant 0 : i32
    return %c0_i32, %c0_i32_0 : i32, i32
  }
  func.func @transform_10(%arg0: i32) -> (i32, i32) {
    %c0_i32 = arith.constant 0 : i32
    %c0_i32_0 = arith.constant 0 : i32
    %c0_i32_1 = arith.constant 0 : i32
    return %c0_i32, %c0_i32_0 : i32, i32
  }
  func.func @transform_11(%arg0: i32) -> (i32, i32) {
    %c0_i32 = arith.constant 0 : i32
    %c0_i32_0 = arith.constant 0 : i32
    %c0_i32_1 = arith.constant 0 : i32
    return %c0_i32, %c0_i32_0 : i32, i32
  }
  func.func @transform_12(%arg0: i32) -> (i32, i32, i32) {
    %c0_i32 = arith.constant 0 : i32
    %c0_i32_0 = arith.constant 0 : i32
    %c0_i32_1 = arith.constant 0 : i32
    return %arg0, %c0_i32, %c0_i32_0 : i32, i32, i32
  }
}

module attributes {stable_mosaic.version = 11 : i64} {
  func.func @_layer_kernel(%arg0: i32, %arg1: memref<1x8x128xf32, #tpu.memory_space<vmem>>, %arg2: memref<1x128xf32, #tpu.memory_space<vmem>>, %arg3: memref<1x128xf32, #tpu.memory_space<vmem>>, %arg4: memref<128x384xbf16, #tpu.memory_space<vmem>>, %arg5: memref<128x128xbf16, #tpu.memory_space<vmem>>, %arg6: memref<1x128xf32, #tpu.memory_space<vmem>>, %arg7: memref<1x128xf32, #tpu.memory_space<vmem>>, %arg8: memref<1x128xf32, #tpu.memory_space<vmem>>, %arg9: memref<128x256xbf16, #tpu.memory_space<vmem>>, %arg10: memref<1x256xf32, #tpu.memory_space<vmem>>, %arg11: memref<256x128xbf16, #tpu.memory_space<vmem>>, %arg12: memref<1x128xf32, #tpu.memory_space<vmem>>, %arg13: memref<1x8x128xf32, #tpu.memory_space<vmem>>, %arg14: memref<8x128xf32, #tpu.memory_space<vmem>>) attributes {dimension_semantics = [#tpu.dimension_semantics<parallel>], iteration_bounds = array<i64: 2>, scalar_prefetch = 0 : i64, scratch_operands = 1 : i64, tpu.core_type = #tpu.core_type<tc>, window_params = [{transform_indices = @transform_0, window_bounds = array<i64: 1, 8, 128>}, {pipeline_mode = #tpu.pipeline_mode<synchronous>, transform_indices = @transform_1, window_bounds = array<i64: 1, 128>}, {pipeline_mode = #tpu.pipeline_mode<synchronous>, transform_indices = @transform_2, window_bounds = array<i64: 1, 128>}, {pipeline_mode = #tpu.pipeline_mode<synchronous>, transform_indices = @transform_3, window_bounds = array<i64: 128, 384>}, {pipeline_mode = #tpu.pipeline_mode<synchronous>, transform_indices = @transform_4, window_bounds = array<i64: 128, 128>}, {pipeline_mode = #tpu.pipeline_mode<synchronous>, transform_indices = @transform_5, window_bounds = array<i64: 1, 128>}, {pipeline_mode = #tpu.pipeline_mode<synchronous>, transform_indices = @transform_6, window_bounds = array<i64: 1, 128>}, {pipeline_mode = #tpu.pipeline_mode<synchronous>, transform_indices = @transform_7, window_bounds = array<i64: 1, 128>}, {pipeline_mode = #tpu.pipeline_mode<synchronous>, transform_indices = @transform_8, window_bounds = array<i64: 128, 256>}, {pipeline_mode = #tpu.pipeline_mode<synchronous>, transform_indices = @transform_9, window_bounds = array<i64: 1, 256>}, {pipeline_mode = #tpu.pipeline_mode<synchronous>, transform_indices = @transform_10, window_bounds = array<i64: 256, 128>}, {pipeline_mode = #tpu.pipeline_mode<synchronous>, transform_indices = @transform_11, window_bounds = array<i64: 1, 128>}, {transform_indices = @transform_12, window_bounds = array<i64: 1, 8, 128>}]} {
    %c0 = arith.constant 0 : index
    %c0_0 = arith.constant 0 : index
    %c0_1 = arith.constant 0 : index
    %0 = vector.load %arg1[%c0, %c0_0, %c0_1] : memref<1x8x128xf32, #tpu.memory_space<vmem>>, vector<1x8x128xf32>
    %1 = vector.shape_cast %0 : vector<1x8x128xf32> to vector<8x128xf32>
    %c0_2 = arith.constant 0 : index
    %c0_3 = arith.constant 0 : index
    %2 = vector.load %arg2[%c0_2, %c0_3] : memref<1x128xf32, #tpu.memory_space<vmem>>, vector<1x128xf32>
    %c0_4 = arith.constant 0 : index
    %c0_5 = arith.constant 0 : index
    %3 = vector.load %arg3[%c0_4, %c0_5] : memref<1x128xf32, #tpu.memory_space<vmem>>, vector<1x128xf32>
    %cst = arith.constant dense<0.000000e+00> : vector<8xf32>
    %4 = vector.multi_reduction <add>, %1, %cst [1] : vector<8x128xf32> to vector<8xf32>
    %5 = vector.shape_cast %4 : vector<8xf32> to vector<8x1xf32>
    %cst_6 = arith.constant 1.280000e+02 : f32
    %6 = vector.broadcast %cst_6 : f32 to vector<8x1xf32>
    %7 = arith.divf %5, %6 : vector<8x1xf32>
    %8 = vector.broadcast %7 : vector<8x1xf32> to vector<8x128xf32>
    %9 = arith.subf %1, %8 : vector<8x128xf32>
    %10 = arith.mulf %9, %9 : vector<8x128xf32>
    %cst_7 = arith.constant dense<0.000000e+00> : vector<8xf32>
    %11 = vector.multi_reduction <add>, %10, %cst_7 [1] : vector<8x128xf32> to vector<8xf32>
    %12 = vector.shape_cast %11 : vector<8xf32> to vector<8x1xf32>
    %cst_8 = arith.constant 1.280000e+02 : f32
    %13 = vector.broadcast %cst_8 : f32 to vector<8x1xf32>
    %14 = arith.divf %12, %13 : vector<8x1xf32>
    %15 = vector.broadcast %7 : vector<8x1xf32> to vector<8x128xf32>
    %16 = arith.subf %1, %15 : vector<8x128xf32>
    %cst_9 = arith.constant 9.99999974E-6 : f32
    %17 = vector.broadcast %cst_9 : f32 to vector<8x1xf32>
    %18 = arith.addf %14, %17 : vector<8x1xf32>
    %19 = math.rsqrt %18 : vector<8x1xf32>
    %20 = vector.broadcast %19 : vector<8x1xf32> to vector<8x128xf32>
    %21 = arith.mulf %16, %20 : vector<8x128xf32>
    %22 = vector.broadcast %2 : vector<1x128xf32> to vector<8x128xf32>
    %23 = arith.mulf %21, %22 : vector<8x128xf32>
    %24 = vector.broadcast %3 : vector<1x128xf32> to vector<8x128xf32>
    %25 = arith.addf %23, %24 : vector<8x128xf32>
    %26 = arith.truncf %25 : vector<8x128xf32> to vector<8x128xbf16>
    %c0_10 = arith.constant 0 : index
    %c0_11 = arith.constant 0 : index
    %27 = vector.load %arg4[%c0_10, %c0_11] : memref<128x384xbf16, #tpu.memory_space<vmem>>, vector<128x384xbf16>
    %cst_12 = arith.constant dense<0.000000e+00> : vector<8x384xf32>
    %28 = tpu.matmul %26, %27, %cst_12 {dimension_numbers = #tpu.dot_dimension_numbers<[1], [0], [0], [1], [0, 0, 1, 1], [], []>} : vector<8x128xbf16>, vector<128x384xbf16>, vector<8x384xf32> -> vector<8x384xf32>
    %29 = vector.extract_strided_slice %28 {offsets = [0, 0], sizes = [8, 128], strides = [1, 1]} : vector<8x384xf32> to vector<8x128xf32>
    %cst_13 = arith.constant 2.500000e-01 : f32
    %30 = vector.broadcast %cst_13 : f32 to vector<8x128xf32>
    %31 = arith.mulf %29, %30 : vector<8x128xf32>
    %32 = arith.truncf %31 : vector<8x128xf32> to vector<8x128xbf16>
    %33 = vector.shape_cast %32 : vector<8x128xbf16> to vector<1x8x128xbf16>
    %34 = vector.extract_strided_slice %28 {offsets = [0, 128], sizes = [8, 128], strides = [1, 1]} : vector<8x384xf32> to vector<8x128xf32>
    %35 = arith.truncf %34 : vector<8x128xf32> to vector<8x128xbf16>
    %36 = vector.shape_cast %35 : vector<8x128xbf16> to vector<1x8x128xbf16>
    %37 = vector.extract_strided_slice %28 {offsets = [0, 256], sizes = [8, 128], strides = [1, 1]} : vector<8x384xf32> to vector<8x128xf32>
    %38 = arith.truncf %37 : vector<8x128xf32> to vector<8x128xbf16>
    %39 = vector.shape_cast %38 : vector<8x128xbf16> to vector<1x8x128xbf16>
    %40 = vector.extract_strided_slice %33 {offsets = [0, 0, 0], sizes = [1, 8, 16], strides = [1, 1, 1]} : vector<1x8x128xbf16> to vector<1x8x16xbf16>
    %41 = vector.extract_strided_slice %36 {offsets = [0, 0, 0], sizes = [1, 8, 16], strides = [1, 1, 1]} : vector<1x8x128xbf16> to vector<1x8x16xbf16>
    "tpu.trace_start"() <{level = 10 : i32, message = "bnd,bmd->bnm"}> : () -> ()
    %cst_14 = arith.constant dense<0.000000e+00> : vector<1x8x8xf32>
    %42 = tpu.matmul %40, %41, %cst_14 {dimension_numbers = #tpu.dot_dimension_numbers<[2], [2], [1], [1], [0, 0, 0, 1, 1, 1], [0], [0]>} : vector<1x8x16xbf16>, vector<1x8x16xbf16>, vector<1x8x8xf32> -> vector<1x8x8xf32>
    "tpu.trace_stop"() : () -> ()
    %cst_15 = arith.constant dense<0xFF800000> : vector<1x8xf32>
    %43 = vector.multi_reduction <maximumf>, %42, %cst_15 [2] : vector<1x8x8xf32> to vector<1x8xf32>
    %44 = vector.shape_cast %43 : vector<1x8xf32> to vector<1x8x1xf32>
    %45 = vector.broadcast %44 : vector<1x8x1xf32> to vector<1x8x8xf32>
    %46 = arith.subf %42, %45 : vector<1x8x8xf32>
    %47 = math.exp %46 : vector<1x8x8xf32>
    %cst_16 = arith.constant dense<0.000000e+00> : vector<1x8xf32>
    %48 = vector.multi_reduction <add>, %47, %cst_16 [2] : vector<1x8x8xf32> to vector<1x8xf32>
    %49 = vector.shape_cast %48 : vector<1x8xf32> to vector<1x8x1xf32>
    %50 = tpu.reciprocal %49 {approx = true} : vector<1x8x1xf32> -> vector<1x8x1xf32>
    %51 = vector.broadcast %50 : vector<1x8x1xf32> to vector<1x8x8xf32>
    %52 = arith.mulf %47, %51 : vector<1x8x8xf32>
    %53 = arith.truncf %52 : vector<1x8x8xf32> to vector<1x8x8xbf16>
    %54 = vector.extract_strided_slice %39 {offsets = [0, 0, 0], sizes = [1, 8, 16], strides = [1, 1, 1]} : vector<1x8x128xbf16> to vector<1x8x16xbf16>
    "tpu.trace_start"() <{level = 10 : i32, message = "bnm,bmd->bnd"}> : () -> ()
    %cst_17 = arith.constant dense<0.000000e+00> : vector<1x8x16xf32>
    %55 = tpu.matmul %53, %54, %cst_17 {dimension_numbers = #tpu.dot_dimension_numbers<[2], [1], [1], [2], [0, 0, 0, 1, 1, 2], [0], [0]>} : vector<1x8x8xbf16>, vector<1x8x16xbf16>, vector<1x8x16xf32> -> vector<1x8x16xf32>
    "tpu.trace_stop"() : () -> ()
    %56 = vector.shape_cast %55 : vector<1x8x16xf32> to vector<8x16xf32>
    %c0_18 = arith.constant 0 : index
    %c0_19 = arith.constant 0 : index
    %57 = vector.load %arg14[%c0_18, %c0_19] : memref<8x128xf32, #tpu.memory_space<vmem>>, vector<8x16xf32>
    tpu.vector_store %arg14[%c0_18, %c0_19], %56 {strides = array<i32>} : memref<8x128xf32, #tpu.memory_space<vmem>>, vector<8x16xf32>,
    %58 = vector.extract_strided_slice %33 {offsets = [0, 0, 16], sizes = [1, 8, 16], strides = [1, 1, 1]} : vector<1x8x128xbf16> to vector<1x8x16xbf16>
    %59 = vector.extract_strided_slice %36 {offsets = [0, 0, 16], sizes = [1, 8, 16], strides = [1, 1, 1]} : vector<1x8x128xbf16> to vector<1x8x16xbf16>
    "tpu.trace_start"() <{level = 10 : i32, message = "bnd,bmd->bnm"}> : () -> ()
    %cst_20 = arith.constant dense<0.000000e+00> : vector<1x8x8xf32>
    %60 = tpu.matmul %58, %59, %cst_20 {dimension_numbers = #tpu.dot_dimension_numbers<[2], [2], [1], [1], [0, 0, 0, 1, 1, 1], [0], [0]>} : vector<1x8x16xbf16>, vector<1x8x16xbf16>, vector<1x8x8xf32> -> vector<1x8x8xf32>
    "tpu.trace_stop"() : () -> ()
    %cst_21 = arith.constant dense<0xFF800000> : vector<1x8xf32>
    %61 = vector.multi_reduction <maximumf>, %60, %cst_21 [2] : vector<1x8x8xf32> to vector<1x8xf32>
    %62 = vector.shape_cast %61 : vector<1x8xf32> to vector<1x8x1xf32>
    %63 = vector.broadcast %62 : vector<1x8x1xf32> to vector<1x8x8xf32>
    %64 = arith.subf %60, %63 : vector<1x8x8xf32>
    %65 = math.exp %64 : vector<1x8x8xf32>
    %cst_22 = arith.constant dense<0.000000e+00> : vector<1x8xf32>
    %66 = vector.multi_reduction <add>, %65, %cst_22 [2] : vector<1x8x8xf32> to vector<1x8xf32>
    %67 = vector.shape_cast %66 : vector<1x8xf32> to vector<1x8x1xf32>
    %68 = tpu.reciprocal %67 {approx = true} : vector<1x8x1xf32> -> vector<1x8x1xf32>
    %69 = vector.broadcast %68 : vector<1x8x1xf32> to vector<1x8x8xf32>
    %70 = arith.mulf %65, %69 : vector<1x8x8xf32>
    %71 = arith.truncf %70 : vector<1x8x8xf32> to vector<1x8x8xbf16>
    %72 = vector.extract_strided_slice %39 {offsets = [0, 0, 16], sizes = [1, 8, 16], strides = [1, 1, 1]} : vector<1x8x128xbf16> to vector<1x8x16xbf16>
    "tpu.trace_start"() <{level = 10 : i32, message = "bnm,bmd->bnd"}> : () -> ()
    %cst_23 = arith.constant dense<0.000000e+00> : vector<1x8x16xf32>
    %73 = tpu.matmul %71, %72, %cst_23 {dimension_numbers = #tpu.dot_dimension_numbers<[2], [1], [1], [2], [0, 0, 0, 1, 1, 2], [0], [0]>} : vector<1x8x8xbf16>, vector<1x8x16xbf16>, vector<1x8x16xf32> -> vector<1x8x16xf32>
    "tpu.trace_stop"() : () -> ()
    %74 = vector.shape_cast %73 : vector<1x8x16xf32> to vector<8x16xf32>
    %c0_24 = arith.constant 0 : index
    %c16 = arith.constant 16 : index
    %75 = vector.load %arg14[%c0_24, %c16] : memref<8x128xf32, #tpu.memory_space<vmem>>, vector<8x16xf32>
    tpu.vector_store %arg14[%c0_24, %c16], %74 {strides = array<i32>} : memref<8x128xf32, #tpu.memory_space<vmem>>, vector<8x16xf32>,
    %76 = vector.extract_strided_slice %33 {offsets = [0, 0, 32], sizes = [1, 8, 16], strides = [1, 1, 1]} : vector<1x8x128xbf16> to vector<1x8x16xbf16>
    %77 = vector.extract_strided_slice %36 {offsets = [0, 0, 32], sizes = [1, 8, 16], strides = [1, 1, 1]} : vector<1x8x128xbf16> to vector<1x8x16xbf16>
    "tpu.trace_start"() <{level = 10 : i32, message = "bnd,bmd->bnm"}> : () -> ()
    %cst_25 = arith.constant dense<0.000000e+00> : vector<1x8x8xf32>
    %78 = tpu.matmul %76, %77, %cst_25 {dimension_numbers = #tpu.dot_dimension_numbers<[2], [2], [1], [1], [0, 0, 0, 1, 1, 1], [0], [0]>} : vector<1x8x16xbf16>, vector<1x8x16xbf16>, vector<1x8x8xf32> -> vector<1x8x8xf32>
    "tpu.trace_stop"() : () -> ()
    %cst_26 = arith.constant dense<0xFF800000> : vector<1x8xf32>
    %79 = vector.multi_reduction <maximumf>, %78, %cst_26 [2] : vector<1x8x8xf32> to vector<1x8xf32>
    %80 = vector.shape_cast %79 : vector<1x8xf32> to vector<1x8x1xf32>
    %81 = vector.broadcast %80 : vector<1x8x1xf32> to vector<1x8x8xf32>
    %82 = arith.subf %78, %81 : vector<1x8x8xf32>
    %83 = math.exp %82 : vector<1x8x8xf32>
    %cst_27 = arith.constant dense<0.000000e+00> : vector<1x8xf32>
    %84 = vector.multi_reduction <add>, %83, %cst_27 [2] : vector<1x8x8xf32> to vector<1x8xf32>
    %85 = vector.shape_cast %84 : vector<1x8xf32> to vector<1x8x1xf32>
    %86 = tpu.reciprocal %85 {approx = true} : vector<1x8x1xf32> -> vector<1x8x1xf32>
    %87 = vector.broadcast %86 : vector<1x8x1xf32> to vector<1x8x8xf32>
    %88 = arith.mulf %83, %87 : vector<1x8x8xf32>
    %89 = arith.truncf %88 : vector<1x8x8xf32> to vector<1x8x8xbf16>
    %90 = vector.extract_strided_slice %39 {offsets = [0, 0, 32], sizes = [1, 8, 16], strides = [1, 1, 1]} : vector<1x8x128xbf16> to vector<1x8x16xbf16>
    "tpu.trace_start"() <{level = 10 : i32, message = "bnm,bmd->bnd"}> : () -> ()
    %cst_28 = arith.constant dense<0.000000e+00> : vector<1x8x16xf32>
    %91 = tpu.matmul %89, %90, %cst_28 {dimension_numbers = #tpu.dot_dimension_numbers<[2], [1], [1], [2], [0, 0, 0, 1, 1, 2], [0], [0]>} : vector<1x8x8xbf16>, vector<1x8x16xbf16>, vector<1x8x16xf32> -> vector<1x8x16xf32>
    "tpu.trace_stop"() : () -> ()
    %92 = vector.shape_cast %91 : vector<1x8x16xf32> to vector<8x16xf32>
    %c0_29 = arith.constant 0 : index
    %c32 = arith.constant 32 : index
    %93 = vector.load %arg14[%c0_29, %c32] : memref<8x128xf32, #tpu.memory_space<vmem>>, vector<8x16xf32>
    tpu.vector_store %arg14[%c0_29, %c32], %92 {strides = array<i32>} : memref<8x128xf32, #tpu.memory_space<vmem>>, vector<8x16xf32>,
    %94 = vector.extract_strided_slice %33 {offsets = [0, 0, 48], sizes = [1, 8, 16], strides = [1, 1, 1]} : vector<1x8x128xbf16> to vector<1x8x16xbf16>
    %95 = vector.extract_strided_slice %36 {offsets = [0, 0, 48], sizes = [1, 8, 16], strides = [1, 1, 1]} : vector<1x8x128xbf16> to vector<1x8x16xbf16>
    "tpu.trace_start"() <{level = 10 : i32, message = "bnd,bmd->bnm"}> : () -> ()
    %cst_30 = arith.constant dense<0.000000e+00> : vector<1x8x8xf32>
    %96 = tpu.matmul %94, %95, %cst_30 {dimension_numbers = #tpu.dot_dimension_numbers<[2], [2], [1], [1], [0, 0, 0, 1, 1, 1], [0], [0]>} : vector<1x8x16xbf16>, vector<1x8x16xbf16>, vector<1x8x8xf32> -> vector<1x8x8xf32>
    "tpu.trace_stop"() : () -> ()
    %cst_31 = arith.constant dense<0xFF800000> : vector<1x8xf32>
    %97 = vector.multi_reduction <maximumf>, %96, %cst_31 [2] : vector<1x8x8xf32> to vector<1x8xf32>
    %98 = vector.shape_cast %97 : vector<1x8xf32> to vector<1x8x1xf32>
    %99 = vector.broadcast %98 : vector<1x8x1xf32> to vector<1x8x8xf32>
    %100 = arith.subf %96, %99 : vector<1x8x8xf32>
    %101 = math.exp %100 : vector<1x8x8xf32>
    %cst_32 = arith.constant dense<0.000000e+00> : vector<1x8xf32>
    %102 = vector.multi_reduction <add>, %101, %cst_32 [2] : vector<1x8x8xf32> to vector<1x8xf32>
    %103 = vector.shape_cast %102 : vector<1x8xf32> to vector<1x8x1xf32>
    %104 = tpu.reciprocal %103 {approx = true} : vector<1x8x1xf32> -> vector<1x8x1xf32>
    %105 = vector.broadcast %104 : vector<1x8x1xf32> to vector<1x8x8xf32>
    %106 = arith.mulf %101, %105 : vector<1x8x8xf32>
    %107 = arith.truncf %106 : vector<1x8x8xf32> to vector<1x8x8xbf16>
    %108 = vector.extract_strided_slice %39 {offsets = [0, 0, 48], sizes = [1, 8, 16], strides = [1, 1, 1]} : vector<1x8x128xbf16> to vector<1x8x16xbf16>
    "tpu.trace_start"() <{level = 10 : i32, message = "bnm,bmd->bnd"}> : () -> ()
    %cst_33 = arith.constant dense<0.000000e+00> : vector<1x8x16xf32>
    %109 = tpu.matmul %107, %108, %cst_33 {dimension_numbers = #tpu.dot_dimension_numbers<[2], [1], [1], [2], [0, 0, 0, 1, 1, 2], [0], [0]>} : vector<1x8x8xbf16>, vector<1x8x16xbf16>, vector<1x8x16xf32> -> vector<1x8x16xf32>
    "tpu.trace_stop"() : () -> ()
    %110 = vector.shape_cast %109 : vector<1x8x16xf32> to vector<8x16xf32>
    %c0_34 = arith.constant 0 : index
    %c48 = arith.constant 48 : index
    %111 = vector.load %arg14[%c0_34, %c48] : memref<8x128xf32, #tpu.memory_space<vmem>>, vector<8x16xf32>
    tpu.vector_store %arg14[%c0_34, %c48], %110 {strides = array<i32>} : memref<8x128xf32, #tpu.memory_space<vmem>>, vector<8x16xf32>,
    %112 = vector.extract_strided_slice %33 {offsets = [0, 0, 64], sizes = [1, 8, 16], strides = [1, 1, 1]} : vector<1x8x128xbf16> to vector<1x8x16xbf16>
    %113 = vector.extract_strided_slice %36 {offsets = [0, 0, 64], sizes = [1, 8, 16], strides = [1, 1, 1]} : vector<1x8x128xbf16> to vector<1x8x16xbf16>
    "tpu.trace_start"() <{level = 10 : i32, message = "bnd,bmd->bnm"}> : () -> ()
    %cst_35 = arith.constant dense<0.000000e+00> : vector<1x8x8xf32>
    %114 = tpu.matmul %112, %113, %cst_35 {dimension_numbers = #tpu.dot_dimension_numbers<[2], [2], [1], [1], [0, 0, 0, 1, 1, 1], [0], [0]>} : vector<1x8x16xbf16>, vector<1x8x16xbf16>, vector<1x8x8xf32> -> vector<1x8x8xf32>
    "tpu.trace_stop"() : () -> ()
    %cst_36 = arith.constant dense<0xFF800000> : vector<1x8xf32>
    %115 = vector.multi_reduction <maximumf>, %114, %cst_36 [2] : vector<1x8x8xf32> to vector<1x8xf32>
    %116 = vector.shape_cast %115 : vector<1x8xf32> to vector<1x8x1xf32>
    %117 = vector.broadcast %116 : vector<1x8x1xf32> to vector<1x8x8xf32>
    %118 = arith.subf %114, %117 : vector<1x8x8xf32>
    %119 = math.exp %118 : vector<1x8x8xf32>
    %cst_37 = arith.constant dense<0.000000e+00> : vector<1x8xf32>
    %120 = vector.multi_reduction <add>, %119, %cst_37 [2] : vector<1x8x8xf32> to vector<1x8xf32>
    %121 = vector.shape_cast %120 : vector<1x8xf32> to vector<1x8x1xf32>
    %122 = tpu.reciprocal %121 {approx = true} : vector<1x8x1xf32> -> vector<1x8x1xf32>
    %123 = vector.broadcast %122 : vector<1x8x1xf32> to vector<1x8x8xf32>
    %124 = arith.mulf %119, %123 : vector<1x8x8xf32>
    %125 = arith.truncf %124 : vector<1x8x8xf32> to vector<1x8x8xbf16>
    %126 = vector.extract_strided_slice %39 {offsets = [0, 0, 64], sizes = [1, 8, 16], strides = [1, 1, 1]} : vector<1x8x128xbf16> to vector<1x8x16xbf16>
    "tpu.trace_start"() <{level = 10 : i32, message = "bnm,bmd->bnd"}> : () -> ()
    %cst_38 = arith.constant dense<0.000000e+00> : vector<1x8x16xf32>
    %127 = tpu.matmul %125, %126, %cst_38 {dimension_numbers = #tpu.dot_dimension_numbers<[2], [1], [1], [2], [0, 0, 0, 1, 1, 2], [0], [0]>} : vector<1x8x8xbf16>, vector<1x8x16xbf16>, vector<1x8x16xf32> -> vector<1x8x16xf32>
    "tpu.trace_stop"() : () -> ()
    %128 = vector.shape_cast %127 : vector<1x8x16xf32> to vector<8x16xf32>
    %c0_39 = arith.constant 0 : index
    %c64 = arith.constant 64 : index
    %129 = vector.load %arg14[%c0_39, %c64] : memref<8x128xf32, #tpu.memory_space<vmem>>, vector<8x16xf32>
    tpu.vector_store %arg14[%c0_39, %c64], %128 {strides = array<i32>} : memref<8x128xf32, #tpu.memory_space<vmem>>, vector<8x16xf32>,
    %130 = vector.extract_strided_slice %33 {offsets = [0, 0, 80], sizes = [1, 8, 16], strides = [1, 1, 1]} : vector<1x8x128xbf16> to vector<1x8x16xbf16>
    %131 = vector.extract_strided_slice %36 {offsets = [0, 0, 80], sizes = [1, 8, 16], strides = [1, 1, 1]} : vector<1x8x128xbf16> to vector<1x8x16xbf16>
    "tpu.trace_start"() <{level = 10 : i32, message = "bnd,bmd->bnm"}> : () -> ()
    %cst_40 = arith.constant dense<0.000000e+00> : vector<1x8x8xf32>
    %132 = tpu.matmul %130, %131, %cst_40 {dimension_numbers = #tpu.dot_dimension_numbers<[2], [2], [1], [1], [0, 0, 0, 1, 1, 1], [0], [0]>} : vector<1x8x16xbf16>, vector<1x8x16xbf16>, vector<1x8x8xf32> -> vector<1x8x8xf32>
    "tpu.trace_stop"() : () -> ()
    %cst_41 = arith.constant dense<0xFF800000> : vector<1x8xf32>
    %133 = vector.multi_reduction <maximumf>, %132, %cst_41 [2] : vector<1x8x8xf32> to vector<1x8xf32>
    %134 = vector.shape_cast %133 : vector<1x8xf32> to vector<1x8x1xf32>
    %135 = vector.broadcast %134 : vector<1x8x1xf32> to vector<1x8x8xf32>
    %136 = arith.subf %132, %135 : vector<1x8x8xf32>
    %137 = math.exp %136 : vector<1x8x8xf32>
    %cst_42 = arith.constant dense<0.000000e+00> : vector<1x8xf32>
    %138 = vector.multi_reduction <add>, %137, %cst_42 [2] : vector<1x8x8xf32> to vector<1x8xf32>
    %139 = vector.shape_cast %138 : vector<1x8xf32> to vector<1x8x1xf32>
    %140 = tpu.reciprocal %139 {approx = true} : vector<1x8x1xf32> -> vector<1x8x1xf32>
    %141 = vector.broadcast %140 : vector<1x8x1xf32> to vector<1x8x8xf32>
    %142 = arith.mulf %137, %141 : vector<1x8x8xf32>
    %143 = arith.truncf %142 : vector<1x8x8xf32> to vector<1x8x8xbf16>
    %144 = vector.extract_strided_slice %39 {offsets = [0, 0, 80], sizes = [1, 8, 16], strides = [1, 1, 1]} : vector<1x8x128xbf16> to vector<1x8x16xbf16>
    "tpu.trace_start"() <{level = 10 : i32, message = "bnm,bmd->bnd"}> : () -> ()
    %cst_43 = arith.constant dense<0.000000e+00> : vector<1x8x16xf32>
    %145 = tpu.matmul %143, %144, %cst_43 {dimension_numbers = #tpu.dot_dimension_numbers<[2], [1], [1], [2], [0, 0, 0, 1, 1, 2], [0], [0]>} : vector<1x8x8xbf16>, vector<1x8x16xbf16>, vector<1x8x16xf32> -> vector<1x8x16xf32>
    "tpu.trace_stop"() : () -> ()
    %146 = vector.shape_cast %145 : vector<1x8x16xf32> to vector<8x16xf32>
    %c0_44 = arith.constant 0 : index
    %c80 = arith.constant 80 : index
    %147 = vector.load %arg14[%c0_44, %c80] : memref<8x128xf32, #tpu.memory_space<vmem>>, vector<8x16xf32>
    tpu.vector_store %arg14[%c0_44, %c80], %146 {strides = array<i32>} : memref<8x128xf32, #tpu.memory_space<vmem>>, vector<8x16xf32>,
    %148 = vector.extract_strided_slice %33 {offsets = [0, 0, 96], sizes = [1, 8, 16], strides = [1, 1, 1]} : vector<1x8x128xbf16> to vector<1x8x16xbf16>
    %149 = vector.extract_strided_slice %36 {offsets = [0, 0, 96], sizes = [1, 8, 16], strides = [1, 1, 1]} : vector<1x8x128xbf16> to vector<1x8x16xbf16>
    "tpu.trace_start"() <{level = 10 : i32, message = "bnd,bmd->bnm"}> : () -> ()
    %cst_45 = arith.constant dense<0.000000e+00> : vector<1x8x8xf32>
    %150 = tpu.matmul %148, %149, %cst_45 {dimension_numbers = #tpu.dot_dimension_numbers<[2], [2], [1], [1], [0, 0, 0, 1, 1, 1], [0], [0]>} : vector<1x8x16xbf16>, vector<1x8x16xbf16>, vector<1x8x8xf32> -> vector<1x8x8xf32>
    "tpu.trace_stop"() : () -> ()
    %cst_46 = arith.constant dense<0xFF800000> : vector<1x8xf32>
    %151 = vector.multi_reduction <maximumf>, %150, %cst_46 [2] : vector<1x8x8xf32> to vector<1x8xf32>
    %152 = vector.shape_cast %151 : vector<1x8xf32> to vector<1x8x1xf32>
    %153 = vector.broadcast %152 : vector<1x8x1xf32> to vector<1x8x8xf32>
    %154 = arith.subf %150, %153 : vector<1x8x8xf32>
    %155 = math.exp %154 : vector<1x8x8xf32>
    %cst_47 = arith.constant dense<0.000000e+00> : vector<1x8xf32>
    %156 = vector.multi_reduction <add>, %155, %cst_47 [2] : vector<1x8x8xf32> to vector<1x8xf32>
    %157 = vector.shape_cast %156 : vector<1x8xf32> to vector<1x8x1xf32>
    %158 = tpu.reciprocal %157 {approx = true} : vector<1x8x1xf32> -> vector<1x8x1xf32>
    %159 = vector.broadcast %158 : vector<1x8x1xf32> to vector<1x8x8xf32>
    %160 = arith.mulf %155, %159 : vector<1x8x8xf32>
    %161 = arith.truncf %160 : vector<1x8x8xf32> to vector<1x8x8xbf16>
    %162 = vector.extract_strided_slice %39 {offsets = [0, 0, 96], sizes = [1, 8, 16], strides = [1, 1, 1]} : vector<1x8x128xbf16> to vector<1x8x16xbf16>
    "tpu.trace_start"() <{level = 10 : i32, message = "bnm,bmd->bnd"}> : () -> ()
    %cst_48 = arith.constant dense<0.000000e+00> : vector<1x8x16xf32>
    %163 = tpu.matmul %161, %162, %cst_48 {dimension_numbers = #tpu.dot_dimension_numbers<[2], [1], [1], [2], [0, 0, 0, 1, 1, 2], [0], [0]>} : vector<1x8x8xbf16>, vector<1x8x16xbf16>, vector<1x8x16xf32> -> vector<1x8x16xf32>
    "tpu.trace_stop"() : () -> ()
    %164 = vector.shape_cast %163 : vector<1x8x16xf32> to vector<8x16xf32>
    %c0_49 = arith.constant 0 : index
    %c96 = arith.constant 96 : index
    %165 = vector.load %arg14[%c0_49, %c96] : memref<8x128xf32, #tpu.memory_space<vmem>>, vector<8x16xf32>
    tpu.vector_store %arg14[%c0_49, %c96], %164 {strides = array<i32>} : memref<8x128xf32, #tpu.memory_space<vmem>>, vector<8x16xf32>,
    %166 = vector.extract_strided_slice %33 {offsets = [0, 0, 112], sizes = [1, 8, 16], strides = [1, 1, 1]} : vector<1x8x128xbf16> to vector<1x8x16xbf16>
    %167 = vector.extract_strided_slice %36 {offsets = [0, 0, 112], sizes = [1, 8, 16], strides = [1, 1, 1]} : vector<1x8x128xbf16> to vector<1x8x16xbf16>
    "tpu.trace_start"() <{level = 10 : i32, message = "bnd,bmd->bnm"}> : () -> ()
    %cst_50 = arith.constant dense<0.000000e+00> : vector<1x8x8xf32>
    %168 = tpu.matmul %166, %167, %cst_50 {dimension_numbers = #tpu.dot_dimension_numbers<[2], [2], [1], [1], [0, 0, 0, 1, 1, 1], [0], [0]>} : vector<1x8x16xbf16>, vector<1x8x16xbf16>, vector<1x8x8xf32> -> vector<1x8x8xf32>
    "tpu.trace_stop"() : () -> ()
    %cst_51 = arith.constant dense<0xFF800000> : vector<1x8xf32>
    %169 = vector.multi_reduction <maximumf>, %168, %cst_51 [2] : vector<1x8x8xf32> to vector<1x8xf32>
    %170 = vector.shape_cast %169 : vector<1x8xf32> to vector<1x8x1xf32>
    %171 = vector.broadcast %170 : vector<1x8x1xf32> to vector<1x8x8xf32>
    %172 = arith.subf %168, %171 : vector<1x8x8xf32>
    %173 = math.exp %172 : vector<1x8x8xf32>
    %cst_52 = arith.constant dense<0.000000e+00> : vector<1x8xf32>
    %174 = vector.multi_reduction <add>, %173, %cst_52 [2] : vector<1x8x8xf32> to vector<1x8xf32>
    %175 = vector.shape_cast %174 : vector<1x8xf32> to vector<1x8x1xf32>
    %176 = tpu.reciprocal %175 {approx = true} : vector<1x8x1xf32> -> vector<1x8x1xf32>
    %177 = vector.broadcast %176 : vector<1x8x1xf32> to vector<1x8x8xf32>
    %178 = arith.mulf %173, %177 : vector<1x8x8xf32>
    %179 = arith.truncf %178 : vector<1x8x8xf32> to vector<1x8x8xbf16>
    %180 = vector.extract_strided_slice %39 {offsets = [0, 0, 112], sizes = [1, 8, 16], strides = [1, 1, 1]} : vector<1x8x128xbf16> to vector<1x8x16xbf16>
    "tpu.trace_start"() <{level = 10 : i32, message = "bnm,bmd->bnd"}> : () -> ()
    %cst_53 = arith.constant dense<0.000000e+00> : vector<1x8x16xf32>
    %181 = tpu.matmul %179, %180, %cst_53 {dimension_numbers = #tpu.dot_dimension_numbers<[2], [1], [1], [2], [0, 0, 0, 1, 1, 2], [0], [0]>} : vector<1x8x8xbf16>, vector<1x8x16xbf16>, vector<1x8x16xf32> -> vector<1x8x16xf32>
    "tpu.trace_stop"() : () -> ()
    %182 = vector.shape_cast %181 : vector<1x8x16xf32> to vector<8x16xf32>
    %c0_54 = arith.constant 0 : index
    %c112 = arith.constant 112 : index
    %183 = vector.load %arg14[%c0_54, %c112] : memref<8x128xf32, #tpu.memory_space<vmem>>, vector<8x16xf32>
    tpu.vector_store %arg14[%c0_54, %c112], %182 {strides = array<i32>} : memref<8x128xf32, #tpu.memory_space<vmem>>, vector<8x16xf32>,
    %c0_55 = arith.constant 0 : index
    %c0_56 = arith.constant 0 : index
    %184 = vector.load %arg14[%c0_55, %c0_56] : memref<8x128xf32, #tpu.memory_space<vmem>>, vector<8x128xf32>
    %185 = arith.truncf %184 : vector<8x128xf32> to vector<8x128xbf16>
    %c0_57 = arith.constant 0 : index
    %c0_58 = arith.constant 0 : index
    %186 = vector.load %arg5[%c0_57, %c0_58] : memref<128x128xbf16, #tpu.memory_space<vmem>>, vector<128x128xbf16>
    %cst_59 = arith.constant dense<0.000000e+00> : vector<8x128xf32>
    %187 = tpu.matmul %185, %186, %cst_59 {dimension_numbers = #tpu.dot_dimension_numbers<[1], [0], [0], [1], [0, 0, 1, 1], [], []>} : vector<8x128xbf16>, vector<128x128xbf16>, vector<8x128xf32> -> vector<8x128xf32>
    %c0_60 = arith.constant 0 : index
    %c0_61 = arith.constant 0 : index
    %188 = vector.load %arg6[%c0_60, %c0_61] : memref<1x128xf32, #tpu.memory_space<vmem>>, vector<1x128xf32>
    %189 = vector.broadcast %188 : vector<1x128xf32> to vector<8x128xf32>
    %190 = arith.addf %187, %189 : vector<8x128xf32>
    %191 = arith.addf %1, %190 : vector<8x128xf32>
    %c0_62 = arith.constant 0 : index
    %c0_63 = arith.constant 0 : index
    %192 = vector.load %arg7[%c0_62, %c0_63] : memref<1x128xf32, #tpu.memory_space<vmem>>, vector<1x128xf32>
    %c0_64 = arith.constant 0 : index
    %c0_65 = arith.constant 0 : index
    %193 = vector.load %arg8[%c0_64, %c0_65] : memref<1x128xf32, #tpu.memory_space<vmem>>, vector<1x128xf32>
    %cst_66 = arith.constant dense<0.000000e+00> : vector<8xf32>
    %194 = vector.multi_reduction <add>, %191, %cst_66 [1] : vector<8x128xf32> to vector<8xf32>
    %195 = vector.shape_cast %194 : vector<8xf32> to vector<8x1xf32>
    %cst_67 = arith.constant 1.280000e+02 : f32
    %196 = vector.broadcast %cst_67 : f32 to vector<8x1xf32>
    %197 = arith.divf %195, %196 : vector<8x1xf32>
    %198 = vector.broadcast %197 : vector<8x1xf32> to vector<8x128xf32>
    %199 = arith.subf %191, %198 : vector<8x128xf32>
    %200 = arith.mulf %199, %199 : vector<8x128xf32>
    %cst_68 = arith.constant dense<0.000000e+00> : vector<8xf32>
    %201 = vector.multi_reduction <add>, %200, %cst_68 [1] : vector<8x128xf32> to vector<8xf32>
    %202 = vector.shape_cast %201 : vector<8xf32> to vector<8x1xf32>
    %cst_69 = arith.constant 1.280000e+02 : f32
    %203 = vector.broadcast %cst_69 : f32 to vector<8x1xf32>
    %204 = arith.divf %202, %203 : vector<8x1xf32>
    %205 = vector.broadcast %197 : vector<8x1xf32> to vector<8x128xf32>
    %206 = arith.subf %191, %205 : vector<8x128xf32>
    %cst_70 = arith.constant 9.99999974E-6 : f32
    %207 = vector.broadcast %cst_70 : f32 to vector<8x1xf32>
    %208 = arith.addf %204, %207 : vector<8x1xf32>
    %209 = math.rsqrt %208 : vector<8x1xf32>
    %210 = vector.broadcast %209 : vector<8x1xf32> to vector<8x128xf32>
    %211 = arith.mulf %206, %210 : vector<8x128xf32>
    %212 = vector.broadcast %192 : vector<1x128xf32> to vector<8x128xf32>
    %213 = arith.mulf %211, %212 : vector<8x128xf32>
    %214 = vector.broadcast %193 : vector<1x128xf32> to vector<8x128xf32>
    %215 = arith.addf %213, %214 : vector<8x128xf32>
    %216 = arith.truncf %215 : vector<8x128xf32> to vector<8x128xbf16>
    %c0_71 = arith.constant 0 : index
    %c0_72 = arith.constant 0 : index
    %217 = vector.load %arg9[%c0_71, %c0_72] : memref<128x256xbf16, #tpu.memory_space<vmem>>, vector<128x256xbf16>
    %cst_73 = arith.constant dense<0.000000e+00> : vector<8x256xf32>
    %218 = tpu.matmul %216, %217, %cst_73 {dimension_numbers = #tpu.dot_dimension_numbers<[1], [0], [0], [1], [0, 0, 1, 1], [], []>} : vector<8x128xbf16>, vector<128x256xbf16>, vector<8x256xf32> -> vector<8x256xf32>
    %c0_74 = arith.constant 0 : index
    %c0_75 = arith.constant 0 : index
    %219 = vector.load %arg10[%c0_74, %c0_75] : memref<1x256xf32, #tpu.memory_space<vmem>>, vector<1x256xf32>
    %220 = vector.broadcast %219 : vector<1x256xf32> to vector<8x256xf32>
    %221 = arith.addf %218, %220 : vector<8x256xf32>
    %cst_76 = arith.constant 0.000000e+00 : f32
    %222 = vector.broadcast %cst_76 : f32 to vector<8x256xf32>
    %223 = arith.maximumf %221, %222 : vector<8x256xf32>
    %224 = arith.truncf %223 : vector<8x256xf32> to vector<8x256xbf16>
    %c0_77 = arith.constant 0 : index
    %c0_78 = arith.constant 0 : index
    %225 = vector.load %arg11[%c0_77, %c0_78] : memref<256x128xbf16, #tpu.memory_space<vmem>>, vector<256x128xbf16>
    %cst_79 = arith.constant dense<0.000000e+00> : vector<8x128xf32>
    %226 = tpu.matmul %224, %225, %cst_79 {dimension_numbers = #tpu.dot_dimension_numbers<[1], [0], [0], [1], [0, 0, 1, 1], [], []>} : vector<8x256xbf16>, vector<256x128xbf16>, vector<8x128xf32> -> vector<8x128xf32>
    %c0_80 = arith.constant 0 : index
    %c0_81 = arith.constant 0 : index
    %227 = vector.load %arg12[%c0_80, %c0_81] : memref<1x128xf32, #tpu.memory_space<vmem>>, vector<1x128xf32>
    %228 = vector.broadcast %227 : vector<1x128xf32> to vector<8x128xf32>
    %229 = arith.addf %226, %228 : vector<8x128xf32>
    %230 = arith.addf %191, %229 : vector<8x128xf32>
    %231 = vector.shape_cast %230 : vector<8x128xf32> to vector<1x8x128xf32>
    %c0_82 = arith.constant 0 : index
    %c0_83 = arith.constant 0 : index
    %c0_84 = arith.constant 0 : index
    %232 = vector.load %arg13[%c0_82, %c0_83, %c0_84] : memref<1x8x128xf32, #tpu.memory_space<vmem>>, vector<1x8x128xf32>
    tpu.vector_store %arg13[%c0_82, %c0_83, %c0_84], %231 {strides = array<i32>} : memref<1x8x128xf32, #tpu.memory_space<vmem>>, vector<1x8x128xf32>,
    return
  }
  func.func @transform_0(%arg0: i32) -> (i32, i32, i32) {
    %c0_i32 = arith.constant 0 : i32
    %c0_i32_0 = arith.constant 0 : i32
    %c0_i32_1 = arith.constant 0 : i32
    return %arg0, %c0_i32, %c0_i32_0 : i32, i32, i32
  }
  func.func @transform_1(%arg0: i32) -> (i32, i32) {
    %c0_i32 = arith.constant 0 : i32
    %c0_i32_0 = arith.constant 0 : i32
    %c0_i32_1 = arith.constant 0 : i32
    return %c0_i32, %c0_i32_0 : i32, i32
  }
  func.func @transform_2(%arg0: i32) -> (i32, i32) {
    %c0_i32 = arith.constant 0 : i32
    %c0_i32_0 = arith.constant 0 : i32
    %c0_i32_1 = arith.constant 0 : i32
    return %c0_i32, %c0_i32_0 : i32, i32
  }
  func.func @transform_3(%arg0: i32) -> (i32, i32) {
    %c0_i32 = arith.constant 0 : i32
    %c0_i32_0 = arith.constant 0 : i32
    %c0_i32_1 = arith.constant 0 : i32
    return %c0_i32, %c0_i32_0 : i32, i32
  }
  func.func @transform_4(%arg0: i32) -> (i32, i32) {
    %c0_i32 = arith.constant 0 : i32
    %c0_i32_0 = arith.constant 0 : i32
    %c0_i32_1 = arith.constant 0 : i32
    return %c0_i32, %c0_i32_0 : i32, i32
  }
  func.func @transform_5(%arg0: i32) -> (i32, i32) {
    %c0_i32 = arith.constant 0 : i32
    %c0_i32_0 = arith.constant 0 : i32
    %c0_i32_1 = arith.constant 0 : i32
    return %c0_i32, %c0_i32_0 : i32, i32
  }
  func.func @transform_6(%arg0: i32) -> (i32, i32) {
    %c0_i32 = arith.constant 0 : i32
    %c0_i32_0 = arith.constant 0 : i32
    %c0_i32_1 = arith.constant 0 : i32
    return %c0_i32, %c0_i32_0 : i32, i32
  }
  func.func @transform_7(%arg0: i32) -> (i32, i32) {
    %c0_i32 = arith.constant 0 : i32
    %c0_i32_0 = arith.constant 0 : i32
    %c0_i32_1 = arith.constant 0 : i32
    return %c0_i32, %c0_i32_0 : i32, i32
  }
  func.func @transform_8(%arg0: i32) -> (i32, i32) {
    %c0_i32 = arith.constant 0 : i32
    %c0_i32_0 = arith.constant 0 : i32
    %c0_i32_1 = arith.constant 0 : i32
    return %c0_i32, %c0_i32_0 : i32, i32
  }
  func.func @transform_9(%arg0: i32) -> (i32, i32) {
    %c0_i32 = arith.constant 0 : i32
    %c0_i32_0 = arith.constant 0 : i32
    %c0_i32_1 = arith.constant 0 : i32
    return %c0_i32, %c0_i32_0 : i32, i32
  }
  func.func @transform_10(%arg0: i32) -> (i32, i32) {
    %c0_i32 = arith.constant 0 : i32
    %c0_i32_0 = arith.constant 0 : i32
    %c0_i32_1 = arith.constant 0 : i32
    return %c0_i32, %c0_i32_0 : i32, i32
  }
  func.func @transform_11(%arg0: i32) -> (i32, i32) {
    %c0_i32 = arith.constant 0 : i32
    %c0_i32_0 = arith.constant 0 : i32
    %c0_i32_1 = arith.constant 0 : i32
    return %c0_i32, %c0_i32_0 : i32, i32
  }
  func.func @transform_12(%arg0: i32) -> (i32, i32, i32) {
    %c0_i32 = arith.constant 0 : i32
    %c0_i32_0 = arith.constant 0 : i32
    %c0_i32_1 = arith.constant 0 : i32
    return %arg0, %c0_i32, %c0_i32_0 : i32, i32, i32
  }
}

module attributes {stable_mosaic.version = 11 : i64} {
  func.func @_layer_kernel(%arg0: i32, %arg1: memref<1x8x128xf32, #tpu.memory_space<vmem>>, %arg2: memref<1x128xf32, #tpu.memory_space<vmem>>, %arg3: memref<1x128xf32, #tpu.memory_space<vmem>>, %arg4: memref<128x384xbf16, #tpu.memory_space<vmem>>, %arg5: memref<128x128xbf16, #tpu.memory_space<vmem>>, %arg6: memref<1x128xf32, #tpu.memory_space<vmem>>, %arg7: memref<1x128xf32, #tpu.memory_space<vmem>>, %arg8: memref<1x128xf32, #tpu.memory_space<vmem>>, %arg9: memref<128x256xbf16, #tpu.memory_space<vmem>>, %arg10: memref<1x256xf32, #tpu.memory_space<vmem>>, %arg11: memref<256x128xbf16, #tpu.memory_space<vmem>>, %arg12: memref<1x128xf32, #tpu.memory_space<vmem>>, %arg13: memref<1x8x128xf32, #tpu.memory_space<vmem>>, %arg14: memref<8x128xf32, #tpu.memory_space<vmem>>) attributes {dimension_semantics = [#tpu.dimension_semantics<parallel>], iteration_bounds = array<i64: 2>, scalar_prefetch = 0 : i64, scratch_operands = 1 : i64, tpu.core_type = #tpu.core_type<tc>, window_params = [{transform_indices = @transform_0, window_bounds = array<i64: 1, 8, 128>}, {pipeline_mode = #tpu.pipeline_mode<synchronous>, transform_indices = @transform_1, window_bounds = array<i64: 1, 128>}, {pipeline_mode = #tpu.pipeline_mode<synchronous>, transform_indices = @transform_2, window_bounds = array<i64: 1, 128>}, {pipeline_mode = #tpu.pipeline_mode<synchronous>, transform_indices = @transform_3, window_bounds = array<i64: 128, 384>}, {pipeline_mode = #tpu.pipeline_mode<synchronous>, transform_indices = @transform_4, window_bounds = array<i64: 128, 128>}, {pipeline_mode = #tpu.pipeline_mode<synchronous>, transform_indices = @transform_5, window_bounds = array<i64: 1, 128>}, {pipeline_mode = #tpu.pipeline_mode<synchronous>, transform_indices = @transform_6, window_bounds = array<i64: 1, 128>}, {pipeline_mode = #tpu.pipeline_mode<synchronous>, transform_indices = @transform_7, window_bounds = array<i64: 1, 128>}, {pipeline_mode = #tpu.pipeline_mode<synchronous>, transform_indices = @transform_8, window_bounds = array<i64: 128, 256>}, {pipeline_mode = #tpu.pipeline_mode<synchronous>, transform_indices = @transform_9, window_bounds = array<i64: 1, 256>}, {pipeline_mode = #tpu.pipeline_mode<synchronous>, transform_indices = @transform_10, window_bounds = array<i64: 256, 128>}, {pipeline_mode = #tpu.pipeline_mode<synchronous>, transform_indices = @transform_11, window_bounds = array<i64: 1, 128>}, {transform_indices = @transform_12, window_bounds = array<i64: 1, 8, 128>}]} {
    %c0 = arith.constant 0 : index
    %c0_0 = arith.constant 0 : index
    %c0_1 = arith.constant 0 : index
    %0 = vector.load %arg1[%c0, %c0_0, %c0_1] : memref<1x8x128xf32, #tpu.memory_space<vmem>>, vector<1x8x128xf32>
    %1 = vector.shape_cast %0 : vector<1x8x128xf32> to vector<8x128xf32>
    %c0_2 = arith.constant 0 : index
    %c0_3 = arith.constant 0 : index
    %2 = vector.load %arg2[%c0_2, %c0_3] : memref<1x128xf32, #tpu.memory_space<vmem>>, vector<1x128xf32>
    %c0_4 = arith.constant 0 : index
    %c0_5 = arith.constant 0 : index
    %3 = vector.load %arg3[%c0_4, %c0_5] : memref<1x128xf32, #tpu.memory_space<vmem>>, vector<1x128xf32>
    %cst = arith.constant dense<0.000000e+00> : vector<8xf32>
    %4 = vector.multi_reduction <add>, %1, %cst [1] : vector<8x128xf32> to vector<8xf32>
    %5 = vector.shape_cast %4 : vector<8xf32> to vector<8x1xf32>
    %cst_6 = arith.constant 1.280000e+02 : f32
    %6 = vector.broadcast %cst_6 : f32 to vector<8x1xf32>
    %7 = arith.divf %5, %6 : vector<8x1xf32>
    %8 = vector.broadcast %7 : vector<8x1xf32> to vector<8x128xf32>
    %9 = arith.subf %1, %8 : vector<8x128xf32>
    %10 = arith.mulf %9, %9 : vector<8x128xf32>
    %cst_7 = arith.constant dense<0.000000e+00> : vector<8xf32>
    %11 = vector.multi_reduction <add>, %10, %cst_7 [1] : vector<8x128xf32> to vector<8xf32>
    %12 = vector.shape_cast %11 : vector<8xf32> to vector<8x1xf32>
    %cst_8 = arith.constant 1.280000e+02 : f32
    %13 = vector.broadcast %cst_8 : f32 to vector<8x1xf32>
    %14 = arith.divf %12, %13 : vector<8x1xf32>
    %15 = vector.broadcast %7 : vector<8x1xf32> to vector<8x128xf32>
    %16 = arith.subf %1, %15 : vector<8x128xf32>
    %cst_9 = arith.constant 9.99999974E-6 : f32
    %17 = vector.broadcast %cst_9 : f32 to vector<8x1xf32>
    %18 = arith.addf %14, %17 : vector<8x1xf32>
    %19 = math.rsqrt %18 : vector<8x1xf32>
    %20 = vector.broadcast %19 : vector<8x1xf32> to vector<8x128xf32>
    %21 = arith.mulf %16, %20 : vector<8x128xf32>
    %22 = vector.broadcast %2 : vector<1x128xf32> to vector<8x128xf32>
    %23 = arith.mulf %21, %22 : vector<8x128xf32>
    %24 = vector.broadcast %3 : vector<1x128xf32> to vector<8x128xf32>
    %25 = arith.addf %23, %24 : vector<8x128xf32>
    %26 = arith.truncf %25 : vector<8x128xf32> to vector<8x128xbf16>
    %c0_10 = arith.constant 0 : index
    %c0_11 = arith.constant 0 : index
    %27 = vector.load %arg4[%c0_10, %c0_11] : memref<128x384xbf16, #tpu.memory_space<vmem>>, vector<128x384xbf16>
    %cst_12 = arith.constant dense<0.000000e+00> : vector<8x384xf32>
    %28 = tpu.matmul %26, %27, %cst_12 {dimension_numbers = #tpu.dot_dimension_numbers<[1], [0], [0], [1], [0, 0, 1, 1], [], []>} : vector<8x128xbf16>, vector<128x384xbf16>, vector<8x384xf32> -> vector<8x384xf32>
    %29 = vector.extract_strided_slice %28 {offsets = [0, 0], sizes = [8, 128], strides = [1, 1]} : vector<8x384xf32> to vector<8x128xf32>
    %cst_13 = arith.constant 2.500000e-01 : f32
    %30 = vector.broadcast %cst_13 : f32 to vector<8x128xf32>
    %31 = arith.mulf %29, %30 : vector<8x128xf32>
    %32 = arith.truncf %31 : vector<8x128xf32> to vector<8x128xbf16>
    %33 = vector.shape_cast %32 : vector<8x128xbf16> to vector<1x8x128xbf16>
    %34 = vector.extract_strided_slice %28 {offsets = [0, 128], sizes = [8, 128], strides = [1, 1]} : vector<8x384xf32> to vector<8x128xf32>
    %35 = arith.truncf %34 : vector<8x128xf32> to vector<8x128xbf16>
    %36 = vector.shape_cast %35 : vector<8x128xbf16> to vector<1x8x128xbf16>
    %37 = vector.extract_strided_slice %28 {offsets = [0, 256], sizes = [8, 128], strides = [1, 1]} : vector<8x384xf32> to vector<8x128xf32>
    %38 = arith.truncf %37 : vector<8x128xf32> to vector<8x128xbf16>
    %39 = vector.shape_cast %38 : vector<8x128xbf16> to vector<1x8x128xbf16>
    %40 = vector.extract_strided_slice %33 {offsets = [0, 0, 0], sizes = [1, 8, 16], strides = [1, 1, 1]} : vector<1x8x128xbf16> to vector<1x8x16xbf16>
    %41 = vector.extract_strided_slice %36 {offsets = [0, 0, 0], sizes = [1, 8, 16], strides = [1, 1, 1]} : vector<1x8x128xbf16> to vector<1x8x16xbf16>
    "tpu.trace_start"() <{level = 10 : i32, message = "bnd,bmd->bnm"}> : () -> ()
    %cst_14 = arith.constant dense<0.000000e+00> : vector<1x8x8xf32>
    %42 = tpu.matmul %40, %41, %cst_14 {dimension_numbers = #tpu.dot_dimension_numbers<[2], [2], [1], [1], [0, 0, 0, 1, 1, 1], [0], [0]>} : vector<1x8x16xbf16>, vector<1x8x16xbf16>, vector<1x8x8xf32> -> vector<1x8x8xf32>
    "tpu.trace_stop"() : () -> ()
    %cst_15 = arith.constant dense<0xFF800000> : vector<1x8xf32>
    %43 = vector.multi_reduction <maximumf>, %42, %cst_15 [2] : vector<1x8x8xf32> to vector<1x8xf32>
    %44 = vector.shape_cast %43 : vector<1x8xf32> to vector<1x8x1xf32>
    %45 = vector.broadcast %44 : vector<1x8x1xf32> to vector<1x8x8xf32>
    %46 = arith.subf %42, %45 : vector<1x8x8xf32>
    %47 = math.exp %46 : vector<1x8x8xf32>
    %cst_16 = arith.constant dense<0.000000e+00> : vector<1x8xf32>
    %48 = vector.multi_reduction <add>, %47, %cst_16 [2] : vector<1x8x8xf32> to vector<1x8xf32>
    %49 = vector.shape_cast %48 : vector<1x8xf32> to vector<1x8x1xf32>
    %50 = tpu.reciprocal %49 {approx = true} : vector<1x8x1xf32> -> vector<1x8x1xf32>
    %51 = vector.broadcast %50 : vector<1x8x1xf32> to vector<1x8x8xf32>
    %52 = arith.mulf %47, %51 : vector<1x8x8xf32>
    %53 = arith.truncf %52 : vector<1x8x8xf32> to vector<1x8x8xbf16>
    %54 = vector.extract_strided_slice %39 {offsets = [0, 0, 0], sizes = [1, 8, 16], strides = [1, 1, 1]} : vector<1x8x128xbf16> to vector<1x8x16xbf16>
    "tpu.trace_start"() <{level = 10 : i32, message = "bnm,bmd->bnd"}> : () -> ()
    %cst_17 = arith.constant dense<0.000000e+00> : vector<1x8x16xf32>
    %55 = tpu.matmul %53, %54, %cst_17 {dimension_numbers = #tpu.dot_dimension_numbers<[2], [1], [1], [2], [0, 0, 0, 1, 1, 2], [0], [0]>} : vector<1x8x8xbf16>, vector<1x8x16xbf16>, vector<1x8x16xf32> -> vector<1x8x16xf32>
    "tpu.trace_stop"() : () -> ()
    %56 = vector.shape_cast %55 : vector<1x8x16xf32> to vector<8x16xf32>
    %c0_18 = arith.constant 0 : index
    %c0_19 = arith.constant 0 : index
    %57 = vector.load %arg14[%c0_18, %c0_19] : memref<8x128xf32, #tpu.memory_space<vmem>>, vector<8x16xf32>
    tpu.vector_store %arg14[%c0_18, %c0_19], %56 {strides = array<i32>} : memref<8x128xf32, #tpu.memory_space<vmem>>, vector<8x16xf32>,
    %58 = vector.extract_strided_slice %33 {offsets = [0, 0, 16], sizes = [1, 8, 16], strides = [1, 1, 1]} : vector<1x8x128xbf16> to vector<1x8x16xbf16>
    %59 = vector.extract_strided_slice %36 {offsets = [0, 0, 16], sizes = [1, 8, 16], strides = [1, 1, 1]} : vector<1x8x128xbf16> to vector<1x8x16xbf16>
    "tpu.trace_start"() <{level = 10 : i32, message = "bnd,bmd->bnm"}> : () -> ()
    %cst_20 = arith.constant dense<0.000000e+00> : vector<1x8x8xf32>
    %60 = tpu.matmul %58, %59, %cst_20 {dimension_numbers = #tpu.dot_dimension_numbers<[2], [2], [1], [1], [0, 0, 0, 1, 1, 1], [0], [0]>} : vector<1x8x16xbf16>, vector<1x8x16xbf16>, vector<1x8x8xf32> -> vector<1x8x8xf32>
    "tpu.trace_stop"() : () -> ()
    %cst_21 = arith.constant dense<0xFF800000> : vector<1x8xf32>
    %61 = vector.multi_reduction <maximumf>, %60, %cst_21 [2] : vector<1x8x8xf32> to vector<1x8xf32>
    %62 = vector.shape_cast %61 : vector<1x8xf32> to vector<1x8x1xf32>
    %63 = vector.broadcast %62 : vector<1x8x1xf32> to vector<1x8x8xf32>
    %64 = arith.subf %60, %63 : vector<1x8x8xf32>
    %65 = math.exp %64 : vector<1x8x8xf32>
    %cst_22 = arith.constant dense<0.000000e+00> : vector<1x8xf32>
    %66 = vector.multi_reduction <add>, %65, %cst_22 [2] : vector<1x8x8xf32> to vector<1x8xf32>
    %67 = vector.shape_cast %66 : vector<1x8xf32> to vector<1x8x1xf32>
    %68 = tpu.reciprocal %67 {approx = true} : vector<1x8x1xf32> -> vector<1x8x1xf32>
    %69 = vector.broadcast %68 : vector<1x8x1xf32> to vector<1x8x8xf32>
    %70 = arith.mulf %65, %69 : vector<1x8x8xf32>
    %71 = arith.truncf %70 : vector<1x8x8xf32> to vector<1x8x8xbf16>
    %72 = vector.extract_strided_slice %39 {offsets = [0, 0, 16], sizes = [1, 8, 16], strides = [1, 1, 1]} : vector<1x8x128xbf16> to vector<1x8x16xbf16>
    "tpu.trace_start"() <{level = 10 : i32, message = "bnm,bmd->bnd"}> : () -> ()
    %cst_23 = arith.constant dense<0.000000e+00> : vector<1x8x16xf32>
    %73 = tpu.matmul %71, %72, %cst_23 {dimension_numbers = #tpu.dot_dimension_numbers<[2], [1], [1], [2], [0, 0, 0, 1, 1, 2], [0], [0]>} : vector<1x8x8xbf16>, vector<1x8x16xbf16>, vector<1x8x16xf32> -> vector<1x8x16xf32>
    "tpu.trace_stop"() : () -> ()
    %74 = vector.shape_cast %73 : vector<1x8x16xf32> to vector<8x16xf32>
    %c0_24 = arith.constant 0 : index
    %c16 = arith.constant 16 : index
    %75 = vector.load %arg14[%c0_24, %c16] : memref<8x128xf32, #tpu.memory_space<vmem>>, vector<8x16xf32>
    tpu.vector_store %arg14[%c0_24, %c16], %74 {strides = array<i32>} : memref<8x128xf32, #tpu.memory_space<vmem>>, vector<8x16xf32>,
    %76 = vector.extract_strided_slice %33 {offsets = [0, 0, 32], sizes = [1, 8, 16], strides = [1, 1, 1]} : vector<1x8x128xbf16> to vector<1x8x16xbf16>
    %77 = vector.extract_strided_slice %36 {offsets = [0, 0, 32], sizes = [1, 8, 16], strides = [1, 1, 1]} : vector<1x8x128xbf16> to vector<1x8x16xbf16>
    "tpu.trace_start"() <{level = 10 : i32, message = "bnd,bmd->bnm"}> : () -> ()
    %cst_25 = arith.constant dense<0.000000e+00> : vector<1x8x8xf32>
    %78 = tpu.matmul %76, %77, %cst_25 {dimension_numbers = #tpu.dot_dimension_numbers<[2], [2], [1], [1], [0, 0, 0, 1, 1, 1], [0], [0]>} : vector<1x8x16xbf16>, vector<1x8x16xbf16>, vector<1x8x8xf32> -> vector<1x8x8xf32>
    "tpu.trace_stop"() : () -> ()
    %cst_26 = arith.constant dense<0xFF800000> : vector<1x8xf32>
    %79 = vector.multi_reduction <maximumf>, %78, %cst_26 [2] : vector<1x8x8xf32> to vector<1x8xf32>
    %80 = vector.shape_cast %79 : vector<1x8xf32> to vector<1x8x1xf32>
    %81 = vector.broadcast %80 : vector<1x8x1xf32> to vector<1x8x8xf32>
    %82 = arith.subf %78, %81 : vector<1x8x8xf32>
    %83 = math.exp %82 : vector<1x8x8xf32>
    %cst_27 = arith.constant dense<0.000000e+00> : vector<1x8xf32>
    %84 = vector.multi_reduction <add>, %83, %cst_27 [2] : vector<1x8x8xf32> to vector<1x8xf32>
    %85 = vector.shape_cast %84 : vector<1x8xf32> to vector<1x8x1xf32>
    %86 = tpu.reciprocal %85 {approx = true} : vector<1x8x1xf32> -> vector<1x8x1xf32>
    %87 = vector.broadcast %86 : vector<1x8x1xf32> to vector<1x8x8xf32>
    %88 = arith.mulf %83, %87 : vector<1x8x8xf32>
    %89 = arith.truncf %88 : vector<1x8x8xf32> to vector<1x8x8xbf16>
    %90 = vector.extract_strided_slice %39 {offsets = [0, 0, 32], sizes = [1, 8, 16], strides = [1, 1, 1]} : vector<1x8x128xbf16> to vector<1x8x16xbf16>
    "tpu.trace_start"() <{level = 10 : i32, message = "bnm,bmd->bnd"}> : () -> ()
    %cst_28 = arith.constant dense<0.000000e+00> : vector<1x8x16xf32>
    %91 = tpu.matmul %89, %90, %cst_28 {dimension_numbers = #tpu.dot_dimension_numbers<[2], [1], [1], [2], [0, 0, 0, 1, 1, 2], [0], [0]>} : vector<1x8x8xbf16>, vector<1x8x16xbf16>, vector<1x8x16xf32> -> vector<1x8x16xf32>
    "tpu.trace_stop"() : () -> ()
    %92 = vector.shape_cast %91 : vector<1x8x16xf32> to vector<8x16xf32>
    %c0_29 = arith.constant 0 : index
    %c32 = arith.constant 32 : index
    %93 = vector.load %arg14[%c0_29, %c32] : memref<8x128xf32, #tpu.memory_space<vmem>>, vector<8x16xf32>
    tpu.vector_store %arg14[%c0_29, %c32], %92 {strides = array<i32>} : memref<8x128xf32, #tpu.memory_space<vmem>>, vector<8x16xf32>,
    %94 = vector.extract_strided_slice %33 {offsets = [0, 0, 48], sizes = [1, 8, 16], strides = [1, 1, 1]} : vector<1x8x128xbf16> to vector<1x8x16xbf16>
    %95 = vector.extract_strided_slice %36 {offsets = [0, 0, 48], sizes = [1, 8, 16], strides = [1, 1, 1]} : vector<1x8x128xbf16> to vector<1x8x16xbf16>
    "tpu.trace_start"() <{level = 10 : i32, message = "bnd,bmd->bnm"}> : () -> ()
    %cst_30 = arith.constant dense<0.000000e+00> : vector<1x8x8xf32>
    %96 = tpu.matmul %94, %95, %cst_30 {dimension_numbers = #tpu.dot_dimension_numbers<[2], [2], [1], [1], [0, 0, 0, 1, 1, 1], [0], [0]>} : vector<1x8x16xbf16>, vector<1x8x16xbf16>, vector<1x8x8xf32> -> vector<1x8x8xf32>
    "tpu.trace_stop"() : () -> ()
    %cst_31 = arith.constant dense<0xFF800000> : vector<1x8xf32>
    %97 = vector.multi_reduction <maximumf>, %96, %cst_31 [2] : vector<1x8x8xf32> to vector<1x8xf32>
    %98 = vector.shape_cast %97 : vector<1x8xf32> to vector<1x8x1xf32>
    %99 = vector.broadcast %98 : vector<1x8x1xf32> to vector<1x8x8xf32>
    %100 = arith.subf %96, %99 : vector<1x8x8xf32>
    %101 = math.exp %100 : vector<1x8x8xf32>
    %cst_32 = arith.constant dense<0.000000e+00> : vector<1x8xf32>
    %102 = vector.multi_reduction <add>, %101, %cst_32 [2] : vector<1x8x8xf32> to vector<1x8xf32>
    %103 = vector.shape_cast %102 : vector<1x8xf32> to vector<1x8x1xf32>
    %104 = tpu.reciprocal %103 {approx = true} : vector<1x8x1xf32> -> vector<1x8x1xf32>
    %105 = vector.broadcast %104 : vector<1x8x1xf32> to vector<1x8x8xf32>
    %106 = arith.mulf %101, %105 : vector<1x8x8xf32>
    %107 = arith.truncf %106 : vector<1x8x8xf32> to vector<1x8x8xbf16>
    %108 = vector.extract_strided_slice %39 {offsets = [0, 0, 48], sizes = [1, 8, 16], strides = [1, 1, 1]} : vector<1x8x128xbf16> to vector<1x8x16xbf16>
    "tpu.trace_start"() <{level = 10 : i32, message = "bnm,bmd->bnd"}> : () -> ()
    %cst_33 = arith.constant dense<0.000000e+00> : vector<1x8x16xf32>
    %109 = tpu.matmul %107, %108, %cst_33 {dimension_numbers = #tpu.dot_dimension_numbers<[2], [1], [1], [2], [0, 0, 0, 1, 1, 2], [0], [0]>} : vector<1x8x8xbf16>, vector<1x8x16xbf16>, vector<1x8x16xf32> -> vector<1x8x16xf32>
    "tpu.trace_stop"() : () -> ()
    %110 = vector.shape_cast %109 : vector<1x8x16xf32> to vector<8x16xf32>
    %c0_34 = arith.constant 0 : index
    %c48 = arith.constant 48 : index
    %111 = vector.load %arg14[%c0_34, %c48] : memref<8x128xf32, #tpu.memory_space<vmem>>, vector<8x16xf32>
    tpu.vector_store %arg14[%c0_34, %c48], %110 {strides = array<i32>} : memref<8x128xf32, #tpu.memory_space<vmem>>, vector<8x16xf32>,
    %112 = vector.extract_strided_slice %33 {offsets = [0, 0, 64], sizes = [1, 8, 16], strides = [1, 1, 1]} : vector<1x8x128xbf16> to vector<1x8x16xbf16>
    %113 = vector.extract_strided_slice %36 {offsets = [0, 0, 64], sizes = [1, 8, 16], strides = [1, 1, 1]} : vector<1x8x128xbf16> to vector<1x8x16xbf16>
    "tpu.trace_start"() <{level = 10 : i32, message = "bnd,bmd->bnm"}> : () -> ()
    %cst_35 = arith.constant dense<0.000000e+00> : vector<1x8x8xf32>
    %114 = tpu.matmul %112, %113, %cst_35 {dimension_numbers = #tpu.dot_dimension_numbers<[2], [2], [1], [1], [0, 0, 0, 1, 1, 1], [0], [0]>} : vector<1x8x16xbf16>, vector<1x8x16xbf16>, vector<1x8x8xf32> -> vector<1x8x8xf32>
    "tpu.trace_stop"() : () -> ()
    %cst_36 = arith.constant dense<0xFF800000> : vector<1x8xf32>
    %115 = vector.multi_reduction <maximumf>, %114, %cst_36 [2] : vector<1x8x8xf32> to vector<1x8xf32>
    %116 = vector.shape_cast %115 : vector<1x8xf32> to vector<1x8x1xf32>
    %117 = vector.broadcast %116 : vector<1x8x1xf32> to vector<1x8x8xf32>
    %118 = arith.subf %114, %117 : vector<1x8x8xf32>
    %119 = math.exp %118 : vector<1x8x8xf32>
    %cst_37 = arith.constant dense<0.000000e+00> : vector<1x8xf32>
    %120 = vector.multi_reduction <add>, %119, %cst_37 [2] : vector<1x8x8xf32> to vector<1x8xf32>
    %121 = vector.shape_cast %120 : vector<1x8xf32> to vector<1x8x1xf32>
    %122 = tpu.reciprocal %121 {approx = true} : vector<1x8x1xf32> -> vector<1x8x1xf32>
    %123 = vector.broadcast %122 : vector<1x8x1xf32> to vector<1x8x8xf32>
    %124 = arith.mulf %119, %123 : vector<1x8x8xf32>
    %125 = arith.truncf %124 : vector<1x8x8xf32> to vector<1x8x8xbf16>
    %126 = vector.extract_strided_slice %39 {offsets = [0, 0, 64], sizes = [1, 8, 16], strides = [1, 1, 1]} : vector<1x8x128xbf16> to vector<1x8x16xbf16>
    "tpu.trace_start"() <{level = 10 : i32, message = "bnm,bmd->bnd"}> : () -> ()
    %cst_38 = arith.constant dense<0.000000e+00> : vector<1x8x16xf32>
    %127 = tpu.matmul %125, %126, %cst_38 {dimension_numbers = #tpu.dot_dimension_numbers<[2], [1], [1], [2], [0, 0, 0, 1, 1, 2], [0], [0]>} : vector<1x8x8xbf16>, vector<1x8x16xbf16>, vector<1x8x16xf32> -> vector<1x8x16xf32>
    "tpu.trace_stop"() : () -> ()
    %128 = vector.shape_cast %127 : vector<1x8x16xf32> to vector<8x16xf32>
    %c0_39 = arith.constant 0 : index
    %c64 = arith.constant 64 : index
    %129 = vector.load %arg14[%c0_39, %c64] : memref<8x128xf32, #tpu.memory_space<vmem>>, vector<8x16xf32>
    tpu.vector_store %arg14[%c0_39, %c64], %128 {strides = array<i32>} : memref<8x128xf32, #tpu.memory_space<vmem>>, vector<8x16xf32>,
    %130 = vector.extract_strided_slice %33 {offsets = [0, 0, 80], sizes = [1, 8, 16], strides = [1, 1, 1]} : vector<1x8x128xbf16> to vector<1x8x16xbf16>
    %131 = vector.extract_strided_slice %36 {offsets = [0, 0, 80], sizes = [1, 8, 16], strides = [1, 1, 1]} : vector<1x8x128xbf16> to vector<1x8x16xbf16>
    "tpu.trace_start"() <{level = 10 : i32, message = "bnd,bmd->bnm"}> : () -> ()
    %cst_40 = arith.constant dense<0.000000e+00> : vector<1x8x8xf32>
    %132 = tpu.matmul %130, %131, %cst_40 {dimension_numbers = #tpu.dot_dimension_numbers<[2], [2], [1], [1], [0, 0, 0, 1, 1, 1], [0], [0]>} : vector<1x8x16xbf16>, vector<1x8x16xbf16>, vector<1x8x8xf32> -> vector<1x8x8xf32>
    "tpu.trace_stop"() : () -> ()
    %cst_41 = arith.constant dense<0xFF800000> : vector<1x8xf32>
    %133 = vector.multi_reduction <maximumf>, %132, %cst_41 [2] : vector<1x8x8xf32> to vector<1x8xf32>
    %134 = vector.shape_cast %133 : vector<1x8xf32> to vector<1x8x1xf32>
    %135 = vector.broadcast %134 : vector<1x8x1xf32> to vector<1x8x8xf32>
    %136 = arith.subf %132, %135 : vector<1x8x8xf32>
    %137 = math.exp %136 : vector<1x8x8xf32>
    %cst_42 = arith.constant dense<0.000000e+00> : vector<1x8xf32>
    %138 = vector.multi_reduction <add>, %137, %cst_42 [2] : vector<1x8x8xf32> to vector<1x8xf32>
    %139 = vector.shape_cast %138 : vector<1x8xf32> to vector<1x8x1xf32>
    %140 = tpu.reciprocal %139 {approx = true} : vector<1x8x1xf32> -> vector<1x8x1xf32>
    %141 = vector.broadcast %140 : vector<1x8x1xf32> to vector<1x8x8xf32>
    %142 = arith.mulf %137, %141 : vector<1x8x8xf32>
    %143 = arith.truncf %142 : vector<1x8x8xf32> to vector<1x8x8xbf16>
    %144 = vector.extract_strided_slice %39 {offsets = [0, 0, 80], sizes = [1, 8, 16], strides = [1, 1, 1]} : vector<1x8x128xbf16> to vector<1x8x16xbf16>
    "tpu.trace_start"() <{level = 10 : i32, message = "bnm,bmd->bnd"}> : () -> ()
    %cst_43 = arith.constant dense<0.000000e+00> : vector<1x8x16xf32>
    %145 = tpu.matmul %143, %144, %cst_43 {dimension_numbers = #tpu.dot_dimension_numbers<[2], [1], [1], [2], [0, 0, 0, 1, 1, 2], [0], [0]>} : vector<1x8x8xbf16>, vector<1x8x16xbf16>, vector<1x8x16xf32> -> vector<1x8x16xf32>
    "tpu.trace_stop"() : () -> ()
    %146 = vector.shape_cast %145 : vector<1x8x16xf32> to vector<8x16xf32>
    %c0_44 = arith.constant 0 : index
    %c80 = arith.constant 80 : index
    %147 = vector.load %arg14[%c0_44, %c80] : memref<8x128xf32, #tpu.memory_space<vmem>>, vector<8x16xf32>
    tpu.vector_store %arg14[%c0_44, %c80], %146 {strides = array<i32>} : memref<8x128xf32, #tpu.memory_space<vmem>>, vector<8x16xf32>,
    %148 = vector.extract_strided_slice %33 {offsets = [0, 0, 96], sizes = [1, 8, 16], strides = [1, 1, 1]} : vector<1x8x128xbf16> to vector<1x8x16xbf16>
    %149 = vector.extract_strided_slice %36 {offsets = [0, 0, 96], sizes = [1, 8, 16], strides = [1, 1, 1]} : vector<1x8x128xbf16> to vector<1x8x16xbf16>
    "tpu.trace_start"() <{level = 10 : i32, message = "bnd,bmd->bnm"}> : () -> ()
    %cst_45 = arith.constant dense<0.000000e+00> : vector<1x8x8xf32>
    %150 = tpu.matmul %148, %149, %cst_45 {dimension_numbers = #tpu.dot_dimension_numbers<[2], [2], [1], [1], [0, 0, 0, 1, 1, 1], [0], [0]>} : vector<1x8x16xbf16>, vector<1x8x16xbf16>, vector<1x8x8xf32> -> vector<1x8x8xf32>
    "tpu.trace_stop"() : () -> ()
    %cst_46 = arith.constant dense<0xFF800000> : vector<1x8xf32>
    %151 = vector.multi_reduction <maximumf>, %150, %cst_46 [2] : vector<1x8x8xf32> to vector<1x8xf32>
    %152 = vector.shape_cast %151 : vector<1x8xf32> to vector<1x8x1xf32>
    %153 = vector.broadcast %152 : vector<1x8x1xf32> to vector<1x8x8xf32>
    %154 = arith.subf %150, %153 : vector<1x8x8xf32>
    %155 = math.exp %154 : vector<1x8x8xf32>
    %cst_47 = arith.constant dense<0.000000e+00> : vector<1x8xf32>
    %156 = vector.multi_reduction <add>, %155, %cst_47 [2] : vector<1x8x8xf32> to vector<1x8xf32>
    %157 = vector.shape_cast %156 : vector<1x8xf32> to vector<1x8x1xf32>
    %158 = tpu.reciprocal %157 {approx = true} : vector<1x8x1xf32> -> vector<1x8x1xf32>
    %159 = vector.broadcast %158 : vector<1x8x1xf32> to vector<1x8x8xf32>
    %160 = arith.mulf %155, %159 : vector<1x8x8xf32>
    %161 = arith.truncf %160 : vector<1x8x8xf32> to vector<1x8x8xbf16>
    %162 = vector.extract_strided_slice %39 {offsets = [0, 0, 96], sizes = [1, 8, 16], strides = [1, 1, 1]} : vector<1x8x128xbf16> to vector<1x8x16xbf16>
    "tpu.trace_start"() <{level = 10 : i32, message = "bnm,bmd->bnd"}> : () -> ()
    %cst_48 = arith.constant dense<0.000000e+00> : vector<1x8x16xf32>
    %163 = tpu.matmul %161, %162, %cst_48 {dimension_numbers = #tpu.dot_dimension_numbers<[2], [1], [1], [2], [0, 0, 0, 1, 1, 2], [0], [0]>} : vector<1x8x8xbf16>, vector<1x8x16xbf16>, vector<1x8x16xf32> -> vector<1x8x16xf32>
    "tpu.trace_stop"() : () -> ()
    %164 = vector.shape_cast %163 : vector<1x8x16xf32> to vector<8x16xf32>
    %c0_49 = arith.constant 0 : index
    %c96 = arith.constant 96 : index
    %165 = vector.load %arg14[%c0_49, %c96] : memref<8x128xf32, #tpu.memory_space<vmem>>, vector<8x16xf32>
    tpu.vector_store %arg14[%c0_49, %c96], %164 {strides = array<i32>} : memref<8x128xf32, #tpu.memory_space<vmem>>, vector<8x16xf32>,
    %166 = vector.extract_strided_slice %33 {offsets = [0, 0, 112], sizes = [1, 8, 16], strides = [1, 1, 1]} : vector<1x8x128xbf16> to vector<1x8x16xbf16>
    %167 = vector.extract_strided_slice %36 {offsets = [0, 0, 112], sizes = [1, 8, 16], strides = [1, 1, 1]} : vector<1x8x128xbf16> to vector<1x8x16xbf16>
    "tpu.trace_start"() <{level = 10 : i32, message = "bnd,bmd->bnm"}> : () -> ()
    %cst_50 = arith.constant dense<0.000000e+00> : vector<1x8x8xf32>
    %168 = tpu.matmul %166, %167, %cst_50 {dimension_numbers = #tpu.dot_dimension_numbers<[2], [2], [1], [1], [0, 0, 0, 1, 1, 1], [0], [0]>} : vector<1x8x16xbf16>, vector<1x8x16xbf16>, vector<1x8x8xf32> -> vector<1x8x8xf32>
    "tpu.trace_stop"() : () -> ()
    %cst_51 = arith.constant dense<0xFF800000> : vector<1x8xf32>
    %169 = vector.multi_reduction <maximumf>, %168, %cst_51 [2] : vector<1x8x8xf32> to vector<1x8xf32>
    %170 = vector.shape_cast %169 : vector<1x8xf32> to vector<1x8x1xf32>
    %171 = vector.broadcast %170 : vector<1x8x1xf32> to vector<1x8x8xf32>
    %172 = arith.subf %168, %171 : vector<1x8x8xf32>
    %173 = math.exp %172 : vector<1x8x8xf32>
    %cst_52 = arith.constant dense<0.000000e+00> : vector<1x8xf32>
    %174 = vector.multi_reduction <add>, %173, %cst_52 [2] : vector<1x8x8xf32> to vector<1x8xf32>
    %175 = vector.shape_cast %174 : vector<1x8xf32> to vector<1x8x1xf32>
    %176 = tpu.reciprocal %175 {approx = true} : vector<1x8x1xf32> -> vector<1x8x1xf32>
    %177 = vector.broadcast %176 : vector<1x8x1xf32> to vector<1x8x8xf32>
    %178 = arith.mulf %173, %177 : vector<1x8x8xf32>
    %179 = arith.truncf %178 : vector<1x8x8xf32> to vector<1x8x8xbf16>
    %180 = vector.extract_strided_slice %39 {offsets = [0, 0, 112], sizes = [1, 8, 16], strides = [1, 1, 1]} : vector<1x8x128xbf16> to vector<1x8x16xbf16>
    "tpu.trace_start"() <{level = 10 : i32, message = "bnm,bmd->bnd"}> : () -> ()
    %cst_53 = arith.constant dense<0.000000e+00> : vector<1x8x16xf32>
    %181 = tpu.matmul %179, %180, %cst_53 {dimension_numbers = #tpu.dot_dimension_numbers<[2], [1], [1], [2], [0, 0, 0, 1, 1, 2], [0], [0]>} : vector<1x8x8xbf16>, vector<1x8x16xbf16>, vector<1x8x16xf32> -> vector<1x8x16xf32>
    "tpu.trace_stop"() : () -> ()
    %182 = vector.shape_cast %181 : vector<1x8x16xf32> to vector<8x16xf32>
    %c0_54 = arith.constant 0 : index
    %c112 = arith.constant 112 : index
    %183 = vector.load %arg14[%c0_54, %c112] : memref<8x128xf32, #tpu.memory_space<vmem>>, vector<8x16xf32>
    tpu.vector_store %arg14[%c0_54, %c112], %182 {strides = array<i32>} : memref<8x128xf32, #tpu.memory_space<vmem>>, vector<8x16xf32>,
    %c0_55 = arith.constant 0 : index
    %c0_56 = arith.constant 0 : index
    %184 = vector.load %arg14[%c0_55, %c0_56] : memref<8x128xf32, #tpu.memory_space<vmem>>, vector<8x128xf32>
    %185 = arith.truncf %184 : vector<8x128xf32> to vector<8x128xbf16>
    %c0_57 = arith.constant 0 : index
    %c0_58 = arith.constant 0 : index
    %186 = vector.load %arg5[%c0_57, %c0_58] : memref<128x128xbf16, #tpu.memory_space<vmem>>, vector<128x128xbf16>
    %cst_59 = arith.constant dense<0.000000e+00> : vector<8x128xf32>
    %187 = tpu.matmul %185, %186, %cst_59 {dimension_numbers = #tpu.dot_dimension_numbers<[1], [0], [0], [1], [0, 0, 1, 1], [], []>} : vector<8x128xbf16>, vector<128x128xbf16>, vector<8x128xf32> -> vector<8x128xf32>
    %c0_60 = arith.constant 0 : index
    %c0_61 = arith.constant 0 : index
    %188 = vector.load %arg6[%c0_60, %c0_61] : memref<1x128xf32, #tpu.memory_space<vmem>>, vector<1x128xf32>
    %189 = vector.broadcast %188 : vector<1x128xf32> to vector<8x128xf32>
    %190 = arith.addf %187, %189 : vector<8x128xf32>
    %191 = arith.addf %1, %190 : vector<8x128xf32>
    %c0_62 = arith.constant 0 : index
    %c0_63 = arith.constant 0 : index
    %192 = vector.load %arg7[%c0_62, %c0_63] : memref<1x128xf32, #tpu.memory_space<vmem>>, vector<1x128xf32>
    %c0_64 = arith.constant 0 : index
    %c0_65 = arith.constant 0 : index
    %193 = vector.load %arg8[%c0_64, %c0_65] : memref<1x128xf32, #tpu.memory_space<vmem>>, vector<1x128xf32>
    %cst_66 = arith.constant dense<0.000000e+00> : vector<8xf32>
    %194 = vector.multi_reduction <add>, %191, %cst_66 [1] : vector<8x128xf32> to vector<8xf32>
    %195 = vector.shape_cast %194 : vector<8xf32> to vector<8x1xf32>
    %cst_67 = arith.constant 1.280000e+02 : f32
    %196 = vector.broadcast %cst_67 : f32 to vector<8x1xf32>
    %197 = arith.divf %195, %196 : vector<8x1xf32>
    %198 = vector.broadcast %197 : vector<8x1xf32> to vector<8x128xf32>
    %199 = arith.subf %191, %198 : vector<8x128xf32>
    %200 = arith.mulf %199, %199 : vector<8x128xf32>
    %cst_68 = arith.constant dense<0.000000e+00> : vector<8xf32>
    %201 = vector.multi_reduction <add>, %200, %cst_68 [1] : vector<8x128xf32> to vector<8xf32>
    %202 = vector.shape_cast %201 : vector<8xf32> to vector<8x1xf32>
    %cst_69 = arith.constant 1.280000e+02 : f32
    %203 = vector.broadcast %cst_69 : f32 to vector<8x1xf32>
    %204 = arith.divf %202, %203 : vector<8x1xf32>
    %205 = vector.broadcast %197 : vector<8x1xf32> to vector<8x128xf32>
    %206 = arith.subf %191, %205 : vector<8x128xf32>
    %cst_70 = arith.constant 9.99999974E-6 : f32
    %207 = vector.broadcast %cst_70 : f32 to vector<8x1xf32>
    %208 = arith.addf %204, %207 : vector<8x1xf32>
    %209 = math.rsqrt %208 : vector<8x1xf32>
    %210 = vector.broadcast %209 : vector<8x1xf32> to vector<8x128xf32>
    %211 = arith.mulf %206, %210 : vector<8x128xf32>
    %212 = vector.broadcast %192 : vector<1x128xf32> to vector<8x128xf32>
    %213 = arith.mulf %211, %212 : vector<8x128xf32>
    %214 = vector.broadcast %193 : vector<1x128xf32> to vector<8x128xf32>
    %215 = arith.addf %213, %214 : vector<8x128xf32>
    %216 = arith.truncf %215 : vector<8x128xf32> to vector<8x128xbf16>
    %c0_71 = arith.constant 0 : index
    %c0_72 = arith.constant 0 : index
    %217 = vector.load %arg9[%c0_71, %c0_72] : memref<128x256xbf16, #tpu.memory_space<vmem>>, vector<128x256xbf16>
    %cst_73 = arith.constant dense<0.000000e+00> : vector<8x256xf32>
    %218 = tpu.matmul %216, %217, %cst_73 {dimension_numbers = #tpu.dot_dimension_numbers<[1], [0], [0], [1], [0, 0, 1, 1], [], []>} : vector<8x128xbf16>, vector<128x256xbf16>, vector<8x256xf32> -> vector<8x256xf32>
    %c0_74 = arith.constant 0 : index
    %c0_75 = arith.constant 0 : index
    %219 = vector.load %arg10[%c0_74, %c0_75] : memref<1x256xf32, #tpu.memory_space<vmem>>, vector<1x256xf32>
    %220 = vector.broadcast %219 : vector<1x256xf32> to vector<8x256xf32>
    %221 = arith.addf %218, %220 : vector<8x256xf32>
    %cst_76 = arith.constant 0.000000e+00 : f32
    %222 = vector.broadcast %cst_76 : f32 to vector<8x256xf32>
    %223 = arith.maximumf %221, %222 : vector<8x256xf32>
    %224 = arith.truncf %223 : vector<8x256xf32> to vector<8x256xbf16>
    %c0_77 = arith.constant 0 : index
    %c0_78 = arith.constant 0 : index
    %225 = vector.load %arg11[%c0_77, %c0_78] : memref<256x128xbf16, #tpu.memory_space<vmem>>, vector<256x128xbf16>
    %cst_79 = arith.constant dense<0.000000e+00> : vector<8x128xf32>
    %226 = tpu.matmul %224, %225, %cst_79 {dimension_numbers = #tpu.dot_dimension_numbers<[1], [0], [0], [1], [0, 0, 1, 1], [], []>} : vector<8x256xbf16>, vector<256x128xbf16>, vector<8x128xf32> -> vector<8x128xf32>
    %c0_80 = arith.constant 0 : index
    %c0_81 = arith.constant 0 : index
    %227 = vector.load %arg12[%c0_80, %c0_81] : memref<1x128xf32, #tpu.memory_space<vmem>>, vector<1x128xf32>
    %228 = vector.broadcast %227 : vector<1x128xf32> to vector<8x128xf32>
    %229 = arith.addf %226, %228 : vector<8x128xf32>
    %230 = arith.addf %191, %229 : vector<8x128xf32>
    %231 = vector.shape_cast %230 : vector<8x128xf32> to vector<1x8x128xf32>
    %c0_82 = arith.constant 0 : index
    %c0_83 = arith.constant 0 : index
    %c0_84 = arith.constant 0 : index
    %232 = vector.load %arg13[%c0_82, %c0_83, %c0_84] : memref<1x8x128xf32, #tpu.memory_space<vmem>>, vector<1x8x128xf32>
    tpu.vector_store %arg13[%c0_82, %c0_83, %c0_84], %231 {strides = array<i32>} : memref<1x8x128xf32, #tpu.memory_space<vmem>>, vector<1x8x128xf32>,
    return
  }
  func.func @transform_0(%arg0: i32) -> (i32, i32, i32) {
    %c0_i32 = arith.constant 0 : i32
    %c0_i32_0 = arith.constant 0 : i32
    %c0_i32_1 = arith.constant 0 : i32
    return %arg0, %c0_i32, %c0_i32_0 : i32, i32, i32
  }
  func.func @transform_1(%arg0: i32) -> (i32, i32) {
    %c0_i32 = arith.constant 0 : i32
    %c0_i32_0 = arith.constant 0 : i32
    %c0_i32_1 = arith.constant 0 : i32
    return %c0_i32, %c0_i32_0 : i32, i32
  }
  func.func @transform_2(%arg0: i32) -> (i32, i32) {
    %c0_i32 = arith.constant 0 : i32
    %c0_i32_0 = arith.constant 0 : i32
    %c0_i32_1 = arith.constant 0 : i32
    return %c0_i32, %c0_i32_0 : i32, i32
  }
  func.func @transform_3(%arg0: i32) -> (i32, i32) {
    %c0_i32 = arith.constant 0 : i32
    %c0_i32_0 = arith.constant 0 : i32
    %c0_i32_1 = arith.constant 0 : i32
    return %c0_i32, %c0_i32_0 : i32, i32
  }
  func.func @transform_4(%arg0: i32) -> (i32, i32) {
    %c0_i32 = arith.constant 0 : i32
    %c0_i32_0 = arith.constant 0 : i32
    %c0_i32_1 = arith.constant 0 : i32
    return %c0_i32, %c0_i32_0 : i32, i32
  }
  func.func @transform_5(%arg0: i32) -> (i32, i32) {
    %c0_i32 = arith.constant 0 : i32
    %c0_i32_0 = arith.constant 0 : i32
    %c0_i32_1 = arith.constant 0 : i32
    return %c0_i32, %c0_i32_0 : i32, i32
  }
  func.func @transform_6(%arg0: i32) -> (i32, i32) {
    %c0_i32 = arith.constant 0 : i32
    %c0_i32_0 = arith.constant 0 : i32
    %c0_i32_1 = arith.constant 0 : i32
    return %c0_i32, %c0_i32_0 : i32, i32
  }
  func.func @transform_7(%arg0: i32) -> (i32, i32) {
    %c0_i32 = arith.constant 0 : i32
    %c0_i32_0 = arith.constant 0 : i32
    %c0_i32_1 = arith.constant 0 : i32
    return %c0_i32, %c0_i32_0 : i32, i32
  }
  func.func @transform_8(%arg0: i32) -> (i32, i32) {
    %c0_i32 = arith.constant 0 : i32
    %c0_i32_0 = arith.constant 0 : i32
    %c0_i32_1 = arith.constant 0 : i32
    return %c0_i32, %c0_i32_0 : i32, i32
  }
  func.func @transform_9(%arg0: i32) -> (i32, i32) {
    %c0_i32 = arith.constant 0 : i32
    %c0_i32_0 = arith.constant 0 : i32
    %c0_i32_1 = arith.constant 0 : i32
    return %c0_i32, %c0_i32_0 : i32, i32
  }
  func.func @transform_10(%arg0: i32) -> (i32, i32) {
    %c0_i32 = arith.constant 0 : i32
    %c0_i32_0 = arith.constant 0 : i32
    %c0_i32_1 = arith.constant 0 : i32
    return %c0_i32, %c0_i32_0 : i32, i32
  }
  func.func @transform_11(%arg0: i32) -> (i32, i32) {
    %c0_i32 = arith.constant 0 : i32
    %c0_i32_0 = arith.constant 0 : i32
    %c0_i32_1 = arith.constant 0 : i32
    return %c0_i32, %c0_i32_0 : i32, i32
  }
  func.func @transform_12(%arg0: i32) -> (i32, i32, i32) {
    %c0_i32 = arith.constant 0 : i32
    %c0_i32_0 = arith.constant 0 : i32
    %c0_i32_1 = arith.constant 0 : i32
    return %arg0, %c0_i32, %c0_i32_0 : i32, i32, i32
  }
}

module attributes {stable_mosaic.version = 11 : i64} {
  func.func @_layer_kernel(%arg0: i32, %arg1: memref<1x8x128xf32, #tpu.memory_space<vmem>>, %arg2: memref<1x128xf32, #tpu.memory_space<vmem>>, %arg3: memref<1x128xf32, #tpu.memory_space<vmem>>, %arg4: memref<128x384xbf16, #tpu.memory_space<vmem>>, %arg5: memref<128x128xbf16, #tpu.memory_space<vmem>>, %arg6: memref<1x128xf32, #tpu.memory_space<vmem>>, %arg7: memref<1x128xf32, #tpu.memory_space<vmem>>, %arg8: memref<1x128xf32, #tpu.memory_space<vmem>>, %arg9: memref<128x256xbf16, #tpu.memory_space<vmem>>, %arg10: memref<1x256xf32, #tpu.memory_space<vmem>>, %arg11: memref<256x128xbf16, #tpu.memory_space<vmem>>, %arg12: memref<1x128xf32, #tpu.memory_space<vmem>>, %arg13: memref<1x8x128xf32, #tpu.memory_space<vmem>>, %arg14: memref<8x128xf32, #tpu.memory_space<vmem>>) attributes {dimension_semantics = [#tpu.dimension_semantics<parallel>], iteration_bounds = array<i64: 2>, scalar_prefetch = 0 : i64, scratch_operands = 1 : i64, tpu.core_type = #tpu.core_type<tc>, window_params = [{transform_indices = @transform_0, window_bounds = array<i64: 1, 8, 128>}, {pipeline_mode = #tpu.pipeline_mode<synchronous>, transform_indices = @transform_1, window_bounds = array<i64: 1, 128>}, {pipeline_mode = #tpu.pipeline_mode<synchronous>, transform_indices = @transform_2, window_bounds = array<i64: 1, 128>}, {pipeline_mode = #tpu.pipeline_mode<synchronous>, transform_indices = @transform_3, window_bounds = array<i64: 128, 384>}, {pipeline_mode = #tpu.pipeline_mode<synchronous>, transform_indices = @transform_4, window_bounds = array<i64: 128, 128>}, {pipeline_mode = #tpu.pipeline_mode<synchronous>, transform_indices = @transform_5, window_bounds = array<i64: 1, 128>}, {pipeline_mode = #tpu.pipeline_mode<synchronous>, transform_indices = @transform_6, window_bounds = array<i64: 1, 128>}, {pipeline_mode = #tpu.pipeline_mode<synchronous>, transform_indices = @transform_7, window_bounds = array<i64: 1, 128>}, {pipeline_mode = #tpu.pipeline_mode<synchronous>, transform_indices = @transform_8, window_bounds = array<i64: 128, 256>}, {pipeline_mode = #tpu.pipeline_mode<synchronous>, transform_indices = @transform_9, window_bounds = array<i64: 1, 256>}, {pipeline_mode = #tpu.pipeline_mode<synchronous>, transform_indices = @transform_10, window_bounds = array<i64: 256, 128>}, {pipeline_mode = #tpu.pipeline_mode<synchronous>, transform_indices = @transform_11, window_bounds = array<i64: 1, 128>}, {transform_indices = @transform_12, window_bounds = array<i64: 1, 8, 128>}]} {
    %c0 = arith.constant 0 : index
    %c0_0 = arith.constant 0 : index
    %c0_1 = arith.constant 0 : index
    %0 = vector.load %arg1[%c0, %c0_0, %c0_1] : memref<1x8x128xf32, #tpu.memory_space<vmem>>, vector<1x8x128xf32>
    %1 = vector.shape_cast %0 : vector<1x8x128xf32> to vector<8x128xf32>
    %c0_2 = arith.constant 0 : index
    %c0_3 = arith.constant 0 : index
    %2 = vector.load %arg2[%c0_2, %c0_3] : memref<1x128xf32, #tpu.memory_space<vmem>>, vector<1x128xf32>
    %c0_4 = arith.constant 0 : index
    %c0_5 = arith.constant 0 : index
    %3 = vector.load %arg3[%c0_4, %c0_5] : memref<1x128xf32, #tpu.memory_space<vmem>>, vector<1x128xf32>
    %cst = arith.constant dense<0.000000e+00> : vector<8xf32>
    %4 = vector.multi_reduction <add>, %1, %cst [1] : vector<8x128xf32> to vector<8xf32>
    %5 = vector.shape_cast %4 : vector<8xf32> to vector<8x1xf32>
    %cst_6 = arith.constant 1.280000e+02 : f32
    %6 = vector.broadcast %cst_6 : f32 to vector<8x1xf32>
    %7 = arith.divf %5, %6 : vector<8x1xf32>
    %8 = vector.broadcast %7 : vector<8x1xf32> to vector<8x128xf32>
    %9 = arith.subf %1, %8 : vector<8x128xf32>
    %10 = arith.mulf %9, %9 : vector<8x128xf32>
    %cst_7 = arith.constant dense<0.000000e+00> : vector<8xf32>
    %11 = vector.multi_reduction <add>, %10, %cst_7 [1] : vector<8x128xf32> to vector<8xf32>
    %12 = vector.shape_cast %11 : vector<8xf32> to vector<8x1xf32>
    %cst_8 = arith.constant 1.280000e+02 : f32
    %13 = vector.broadcast %cst_8 : f32 to vector<8x1xf32>
    %14 = arith.divf %12, %13 : vector<8x1xf32>
    %15 = vector.broadcast %7 : vector<8x1xf32> to vector<8x128xf32>
    %16 = arith.subf %1, %15 : vector<8x128xf32>
    %cst_9 = arith.constant 9.99999974E-6 : f32
    %17 = vector.broadcast %cst_9 : f32 to vector<8x1xf32>
    %18 = arith.addf %14, %17 : vector<8x1xf32>
    %19 = math.rsqrt %18 : vector<8x1xf32>
    %20 = vector.broadcast %19 : vector<8x1xf32> to vector<8x128xf32>
    %21 = arith.mulf %16, %20 : vector<8x128xf32>
    %22 = vector.broadcast %2 : vector<1x128xf32> to vector<8x128xf32>
    %23 = arith.mulf %21, %22 : vector<8x128xf32>
    %24 = vector.broadcast %3 : vector<1x128xf32> to vector<8x128xf32>
    %25 = arith.addf %23, %24 : vector<8x128xf32>
    %26 = arith.truncf %25 : vector<8x128xf32> to vector<8x128xbf16>
    %c0_10 = arith.constant 0 : index
    %c0_11 = arith.constant 0 : index
    %27 = vector.load %arg4[%c0_10, %c0_11] : memref<128x384xbf16, #tpu.memory_space<vmem>>, vector<128x384xbf16>
    %cst_12 = arith.constant dense<0.000000e+00> : vector<8x384xf32>
    %28 = tpu.matmul %26, %27, %cst_12 {dimension_numbers = #tpu.dot_dimension_numbers<[1], [0], [0], [1], [0, 0, 1, 1], [], []>} : vector<8x128xbf16>, vector<128x384xbf16>, vector<8x384xf32> -> vector<8x384xf32>
    %29 = vector.extract_strided_slice %28 {offsets = [0, 0], sizes = [8, 128], strides = [1, 1]} : vector<8x384xf32> to vector<8x128xf32>
    %cst_13 = arith.constant 2.500000e-01 : f32
    %30 = vector.broadcast %cst_13 : f32 to vector<8x128xf32>
    %31 = arith.mulf %29, %30 : vector<8x128xf32>
    %32 = arith.truncf %31 : vector<8x128xf32> to vector<8x128xbf16>
    %33 = vector.shape_cast %32 : vector<8x128xbf16> to vector<1x8x128xbf16>
    %34 = vector.extract_strided_slice %28 {offsets = [0, 128], sizes = [8, 128], strides = [1, 1]} : vector<8x384xf32> to vector<8x128xf32>
    %35 = arith.truncf %34 : vector<8x128xf32> to vector<8x128xbf16>
    %36 = vector.shape_cast %35 : vector<8x128xbf16> to vector<1x8x128xbf16>
    %37 = vector.extract_strided_slice %28 {offsets = [0, 256], sizes = [8, 128], strides = [1, 1]} : vector<8x384xf32> to vector<8x128xf32>
    %38 = arith.truncf %37 : vector<8x128xf32> to vector<8x128xbf16>
    %39 = vector.shape_cast %38 : vector<8x128xbf16> to vector<1x8x128xbf16>
    %40 = vector.extract_strided_slice %33 {offsets = [0, 0, 0], sizes = [1, 8, 16], strides = [1, 1, 1]} : vector<1x8x128xbf16> to vector<1x8x16xbf16>
    %41 = vector.extract_strided_slice %36 {offsets = [0, 0, 0], sizes = [1, 8, 16], strides = [1, 1, 1]} : vector<1x8x128xbf16> to vector<1x8x16xbf16>
    "tpu.trace_start"() <{level = 10 : i32, message = "bnd,bmd->bnm"}> : () -> ()
    %cst_14 = arith.constant dense<0.000000e+00> : vector<1x8x8xf32>
    %42 = tpu.matmul %40, %41, %cst_14 {dimension_numbers = #tpu.dot_dimension_numbers<[2], [2], [1], [1], [0, 0, 0, 1, 1, 1], [0], [0]>} : vector<1x8x16xbf16>, vector<1x8x16xbf16>, vector<1x8x8xf32> -> vector<1x8x8xf32>
    "tpu.trace_stop"() : () -> ()
    %cst_15 = arith.constant dense<0xFF800000> : vector<1x8xf32>
    %43 = vector.multi_reduction <maximumf>, %42, %cst_15 [2] : vector<1x8x8xf32> to vector<1x8xf32>
    %44 = vector.shape_cast %43 : vector<1x8xf32> to vector<1x8x1xf32>
    %45 = vector.broadcast %44 : vector<1x8x1xf32> to vector<1x8x8xf32>
    %46 = arith.subf %42, %45 : vector<1x8x8xf32>
    %47 = math.exp %46 : vector<1x8x8xf32>
    %cst_16 = arith.constant dense<0.000000e+00> : vector<1x8xf32>
    %48 = vector.multi_reduction <add>, %47, %cst_16 [2] : vector<1x8x8xf32> to vector<1x8xf32>
    %49 = vector.shape_cast %48 : vector<1x8xf32> to vector<1x8x1xf32>
    %50 = tpu.reciprocal %49 {approx = true} : vector<1x8x1xf32> -> vector<1x8x1xf32>
    %51 = vector.broadcast %50 : vector<1x8x1xf32> to vector<1x8x8xf32>
    %52 = arith.mulf %47, %51 : vector<1x8x8xf32>
    %53 = arith.truncf %52 : vector<1x8x8xf32> to vector<1x8x8xbf16>
    %54 = vector.extract_strided_slice %39 {offsets = [0, 0, 0], sizes = [1, 8, 16], strides = [1, 1, 1]} : vector<1x8x128xbf16> to vector<1x8x16xbf16>
    "tpu.trace_start"() <{level = 10 : i32, message = "bnm,bmd->bnd"}> : () -> ()
    %cst_17 = arith.constant dense<0.000000e+00> : vector<1x8x16xf32>
    %55 = tpu.matmul %53, %54, %cst_17 {dimension_numbers = #tpu.dot_dimension_numbers<[2], [1], [1], [2], [0, 0, 0, 1, 1, 2], [0], [0]>} : vector<1x8x8xbf16>, vector<1x8x16xbf16>, vector<1x8x16xf32> -> vector<1x8x16xf32>
    "tpu.trace_stop"() : () -> ()
    %56 = vector.shape_cast %55 : vector<1x8x16xf32> to vector<8x16xf32>
    %c0_18 = arith.constant 0 : index
    %c0_19 = arith.constant 0 : index
    %57 = vector.load %arg14[%c0_18, %c0_19] : memref<8x128xf32, #tpu.memory_space<vmem>>, vector<8x16xf32>
    tpu.vector_store %arg14[%c0_18, %c0_19], %56 {strides = array<i32>} : memref<8x128xf32, #tpu.memory_space<vmem>>, vector<8x16xf32>,
    %58 = vector.extract_strided_slice %33 {offsets = [0, 0, 16], sizes = [1, 8, 16], strides = [1, 1, 1]} : vector<1x8x128xbf16> to vector<1x8x16xbf16>
    %59 = vector.extract_strided_slice %36 {offsets = [0, 0, 16], sizes = [1, 8, 16], strides = [1, 1, 1]} : vector<1x8x128xbf16> to vector<1x8x16xbf16>
    "tpu.trace_start"() <{level = 10 : i32, message = "bnd,bmd->bnm"}> : () -> ()
    %cst_20 = arith.constant dense<0.000000e+00> : vector<1x8x8xf32>
    %60 = tpu.matmul %58, %59, %cst_20 {dimension_numbers = #tpu.dot_dimension_numbers<[2], [2], [1], [1], [0, 0, 0, 1, 1, 1], [0], [0]>} : vector<1x8x16xbf16>, vector<1x8x16xbf16>, vector<1x8x8xf32> -> vector<1x8x8xf32>
    "tpu.trace_stop"() : () -> ()
    %cst_21 = arith.constant dense<0xFF800000> : vector<1x8xf32>
    %61 = vector.multi_reduction <maximumf>, %60, %cst_21 [2] : vector<1x8x8xf32> to vector<1x8xf32>
    %62 = vector.shape_cast %61 : vector<1x8xf32> to vector<1x8x1xf32>
    %63 = vector.broadcast %62 : vector<1x8x1xf32> to vector<1x8x8xf32>
    %64 = arith.subf %60, %63 : vector<1x8x8xf32>
    %65 = math.exp %64 : vector<1x8x8xf32>
    %cst_22 = arith.constant dense<0.000000e+00> : vector<1x8xf32>
    %66 = vector.multi_reduction <add>, %65, %cst_22 [2] : vector<1x8x8xf32> to vector<1x8xf32>
    %67 = vector.shape_cast %66 : vector<1x8xf32> to vector<1x8x1xf32>
    %68 = tpu.reciprocal %67 {approx = true} : vector<1x8x1xf32> -> vector<1x8x1xf32>
    %69 = vector.broadcast %68 : vector<1x8x1xf32> to vector<1x8x8xf32>
    %70 = arith.mulf %65, %69 : vector<1x8x8xf32>
    %71 = arith.truncf %70 : vector<1x8x8xf32> to vector<1x8x8xbf16>
    %72 = vector.extract_strided_slice %39 {offsets = [0, 0, 16], sizes = [1, 8, 16], strides = [1, 1, 1]} : vector<1x8x128xbf16> to vector<1x8x16xbf16>
    "tpu.trace_start"() <{level = 10 : i32, message = "bnm,bmd->bnd"}> : () -> ()
    %cst_23 = arith.constant dense<0.000000e+00> : vector<1x8x16xf32>
    %73 = tpu.matmul %71, %72, %cst_23 {dimension_numbers = #tpu.dot_dimension_numbers<[2], [1], [1], [2], [0, 0, 0, 1, 1, 2], [0], [0]>} : vector<1x8x8xbf16>, vector<1x8x16xbf16>, vector<1x8x16xf32> -> vector<1x8x16xf32>
    "tpu.trace_stop"() : () -> ()
    %74 = vector.shape_cast %73 : vector<1x8x16xf32> to vector<8x16xf32>
    %c0_24 = arith.constant 0 : index
    %c16 = arith.constant 16 : index
    %75 = vector.load %arg14[%c0_24, %c16] : memref<8x128xf32, #tpu.memory_space<vmem>>, vector<8x16xf32>
    tpu.vector_store %arg14[%c0_24, %c16], %74 {strides = array<i32>} : memref<8x128xf32, #tpu.memory_space<vmem>>, vector<8x16xf32>,
    %76 = vector.extract_strided_slice %33 {offsets = [0, 0, 32], sizes = [1, 8, 16], strides = [1, 1, 1]} : vector<1x8x128xbf16> to vector<1x8x16xbf16>
    %77 = vector.extract_strided_slice %36 {offsets = [0, 0, 32], sizes = [1, 8, 16], strides = [1, 1, 1]} : vector<1x8x128xbf16> to vector<1x8x16xbf16>
    "tpu.trace_start"() <{level = 10 : i32, message = "bnd,bmd->bnm"}> : () -> ()
    %cst_25 = arith.constant dense<0.000000e+00> : vector<1x8x8xf32>
    %78 = tpu.matmul %76, %77, %cst_25 {dimension_numbers = #tpu.dot_dimension_numbers<[2], [2], [1], [1], [0, 0, 0, 1, 1, 1], [0], [0]>} : vector<1x8x16xbf16>, vector<1x8x16xbf16>, vector<1x8x8xf32> -> vector<1x8x8xf32>
    "tpu.trace_stop"() : () -> ()
    %cst_26 = arith.constant dense<0xFF800000> : vector<1x8xf32>
    %79 = vector.multi_reduction <maximumf>, %78, %cst_26 [2] : vector<1x8x8xf32> to vector<1x8xf32>
    %80 = vector.shape_cast %79 : vector<1x8xf32> to vector<1x8x1xf32>
    %81 = vector.broadcast %80 : vector<1x8x1xf32> to vector<1x8x8xf32>
    %82 = arith.subf %78, %81 : vector<1x8x8xf32>
    %83 = math.exp %82 : vector<1x8x8xf32>
    %cst_27 = arith.constant dense<0.000000e+00> : vector<1x8xf32>
    %84 = vector.multi_reduction <add>, %83, %cst_27 [2] : vector<1x8x8xf32> to vector<1x8xf32>
    %85 = vector.shape_cast %84 : vector<1x8xf32> to vector<1x8x1xf32>
    %86 = tpu.reciprocal %85 {approx = true} : vector<1x8x1xf32> -> vector<1x8x1xf32>
    %87 = vector.broadcast %86 : vector<1x8x1xf32> to vector<1x8x8xf32>
    %88 = arith.mulf %83, %87 : vector<1x8x8xf32>
    %89 = arith.truncf %88 : vector<1x8x8xf32> to vector<1x8x8xbf16>
    %90 = vector.extract_strided_slice %39 {offsets = [0, 0, 32], sizes = [1, 8, 16], strides = [1, 1, 1]} : vector<1x8x128xbf16> to vector<1x8x16xbf16>
    "tpu.trace_start"() <{level = 10 : i32, message = "bnm,bmd->bnd"}> : () -> ()
    %cst_28 = arith.constant dense<0.000000e+00> : vector<1x8x16xf32>
    %91 = tpu.matmul %89, %90, %cst_28 {dimension_numbers = #tpu.dot_dimension_numbers<[2], [1], [1], [2], [0, 0, 0, 1, 1, 2], [0], [0]>} : vector<1x8x8xbf16>, vector<1x8x16xbf16>, vector<1x8x16xf32> -> vector<1x8x16xf32>
    "tpu.trace_stop"() : () -> ()
    %92 = vector.shape_cast %91 : vector<1x8x16xf32> to vector<8x16xf32>
    %c0_29 = arith.constant 0 : index
    %c32 = arith.constant 32 : index
    %93 = vector.load %arg14[%c0_29, %c32] : memref<8x128xf32, #tpu.memory_space<vmem>>, vector<8x16xf32>
    tpu.vector_store %arg14[%c0_29, %c32], %92 {strides = array<i32>} : memref<8x128xf32, #tpu.memory_space<vmem>>, vector<8x16xf32>,
    %94 = vector.extract_strided_slice %33 {offsets = [0, 0, 48], sizes = [1, 8, 16], strides = [1, 1, 1]} : vector<1x8x128xbf16> to vector<1x8x16xbf16>
    %95 = vector.extract_strided_slice %36 {offsets = [0, 0, 48], sizes = [1, 8, 16], strides = [1, 1, 1]} : vector<1x8x128xbf16> to vector<1x8x16xbf16>
    "tpu.trace_start"() <{level = 10 : i32, message = "bnd,bmd->bnm"}> : () -> ()
    %cst_30 = arith.constant dense<0.000000e+00> : vector<1x8x8xf32>
    %96 = tpu.matmul %94, %95, %cst_30 {dimension_numbers = #tpu.dot_dimension_numbers<[2], [2], [1], [1], [0, 0, 0, 1, 1, 1], [0], [0]>} : vector<1x8x16xbf16>, vector<1x8x16xbf16>, vector<1x8x8xf32> -> vector<1x8x8xf32>
    "tpu.trace_stop"() : () -> ()
    %cst_31 = arith.constant dense<0xFF800000> : vector<1x8xf32>
    %97 = vector.multi_reduction <maximumf>, %96, %cst_31 [2] : vector<1x8x8xf32> to vector<1x8xf32>
    %98 = vector.shape_cast %97 : vector<1x8xf32> to vector<1x8x1xf32>
    %99 = vector.broadcast %98 : vector<1x8x1xf32> to vector<1x8x8xf32>
    %100 = arith.subf %96, %99 : vector<1x8x8xf32>
    %101 = math.exp %100 : vector<1x8x8xf32>
    %cst_32 = arith.constant dense<0.000000e+00> : vector<1x8xf32>
    %102 = vector.multi_reduction <add>, %101, %cst_32 [2] : vector<1x8x8xf32> to vector<1x8xf32>
    %103 = vector.shape_cast %102 : vector<1x8xf32> to vector<1x8x1xf32>
    %104 = tpu.reciprocal %103 {approx = true} : vector<1x8x1xf32> -> vector<1x8x1xf32>
    %105 = vector.broadcast %104 : vector<1x8x1xf32> to vector<1x8x8xf32>
    %106 = arith.mulf %101, %105 : vector<1x8x8xf32>
    %107 = arith.truncf %106 : vector<1x8x8xf32> to vector<1x8x8xbf16>
    %108 = vector.extract_strided_slice %39 {offsets = [0, 0, 48], sizes = [1, 8, 16], strides = [1, 1, 1]} : vector<1x8x128xbf16> to vector<1x8x16xbf16>
    "tpu.trace_start"() <{level = 10 : i32, message = "bnm,bmd->bnd"}> : () -> ()
    %cst_33 = arith.constant dense<0.000000e+00> : vector<1x8x16xf32>
    %109 = tpu.matmul %107, %108, %cst_33 {dimension_numbers = #tpu.dot_dimension_numbers<[2], [1], [1], [2], [0, 0, 0, 1, 1, 2], [0], [0]>} : vector<1x8x8xbf16>, vector<1x8x16xbf16>, vector<1x8x16xf32> -> vector<1x8x16xf32>
    "tpu.trace_stop"() : () -> ()
    %110 = vector.shape_cast %109 : vector<1x8x16xf32> to vector<8x16xf32>
    %c0_34 = arith.constant 0 : index
    %c48 = arith.constant 48 : index
    %111 = vector.load %arg14[%c0_34, %c48] : memref<8x128xf32, #tpu.memory_space<vmem>>, vector<8x16xf32>
    tpu.vector_store %arg14[%c0_34, %c48], %110 {strides = array<i32>} : memref<8x128xf32, #tpu.memory_space<vmem>>, vector<8x16xf32>,
    %112 = vector.extract_strided_slice %33 {offsets = [0, 0, 64], sizes = [1, 8, 16], strides = [1, 1, 1]} : vector<1x8x128xbf16> to vector<1x8x16xbf16>
    %113 = vector.extract_strided_slice %36 {offsets = [0, 0, 64], sizes = [1, 8, 16], strides = [1, 1, 1]} : vector<1x8x128xbf16> to vector<1x8x16xbf16>
    "tpu.trace_start"() <{level = 10 : i32, message = "bnd,bmd->bnm"}> : () -> ()
    %cst_35 = arith.constant dense<0.000000e+00> : vector<1x8x8xf32>
    %114 = tpu.matmul %112, %113, %cst_35 {dimension_numbers = #tpu.dot_dimension_numbers<[2], [2], [1], [1], [0, 0, 0, 1, 1, 1], [0], [0]>} : vector<1x8x16xbf16>, vector<1x8x16xbf16>, vector<1x8x8xf32> -> vector<1x8x8xf32>
    "tpu.trace_stop"() : () -> ()
    %cst_36 = arith.constant dense<0xFF800000> : vector<1x8xf32>
    %115 = vector.multi_reduction <maximumf>, %114, %cst_36 [2] : vector<1x8x8xf32> to vector<1x8xf32>
    %116 = vector.shape_cast %115 : vector<1x8xf32> to vector<1x8x1xf32>
    %117 = vector.broadcast %116 : vector<1x8x1xf32> to vector<1x8x8xf32>
    %118 = arith.subf %114, %117 : vector<1x8x8xf32>
    %119 = math.exp %118 : vector<1x8x8xf32>
    %cst_37 = arith.constant dense<0.000000e+00> : vector<1x8xf32>
    %120 = vector.multi_reduction <add>, %119, %cst_37 [2] : vector<1x8x8xf32> to vector<1x8xf32>
    %121 = vector.shape_cast %120 : vector<1x8xf32> to vector<1x8x1xf32>
    %122 = tpu.reciprocal %121 {approx = true} : vector<1x8x1xf32> -> vector<1x8x1xf32>
    %123 = vector.broadcast %122 : vector<1x8x1xf32> to vector<1x8x8xf32>
    %124 = arith.mulf %119, %123 : vector<1x8x8xf32>
    %125 = arith.truncf %124 : vector<1x8x8xf32> to vector<1x8x8xbf16>
    %126 = vector.extract_strided_slice %39 {offsets = [0, 0, 64], sizes = [1, 8, 16], strides = [1, 1, 1]} : vector<1x8x128xbf16> to vector<1x8x16xbf16>
    "tpu.trace_start"() <{level = 10 : i32, message = "bnm,bmd->bnd"}> : () -> ()
    %cst_38 = arith.constant dense<0.000000e+00> : vector<1x8x16xf32>
    %127 = tpu.matmul %125, %126, %cst_38 {dimension_numbers = #tpu.dot_dimension_numbers<[2], [1], [1], [2], [0, 0, 0, 1, 1, 2], [0], [0]>} : vector<1x8x8xbf16>, vector<1x8x16xbf16>, vector<1x8x16xf32> -> vector<1x8x16xf32>
    "tpu.trace_stop"() : () -> ()
    %128 = vector.shape_cast %127 : vector<1x8x16xf32> to vector<8x16xf32>
    %c0_39 = arith.constant 0 : index
    %c64 = arith.constant 64 : index
    %129 = vector.load %arg14[%c0_39, %c64] : memref<8x128xf32, #tpu.memory_space<vmem>>, vector<8x16xf32>
    tpu.vector_store %arg14[%c0_39, %c64], %128 {strides = array<i32>} : memref<8x128xf32, #tpu.memory_space<vmem>>, vector<8x16xf32>,
    %130 = vector.extract_strided_slice %33 {offsets = [0, 0, 80], sizes = [1, 8, 16], strides = [1, 1, 1]} : vector<1x8x128xbf16> to vector<1x8x16xbf16>
    %131 = vector.extract_strided_slice %36 {offsets = [0, 0, 80], sizes = [1, 8, 16], strides = [1, 1, 1]} : vector<1x8x128xbf16> to vector<1x8x16xbf16>
    "tpu.trace_start"() <{level = 10 : i32, message = "bnd,bmd->bnm"}> : () -> ()
    %cst_40 = arith.constant dense<0.000000e+00> : vector<1x8x8xf32>
    %132 = tpu.matmul %130, %131, %cst_40 {dimension_numbers = #tpu.dot_dimension_numbers<[2], [2], [1], [1], [0, 0, 0, 1, 1, 1], [0], [0]>} : vector<1x8x16xbf16>, vector<1x8x16xbf16>, vector<1x8x8xf32> -> vector<1x8x8xf32>
    "tpu.trace_stop"() : () -> ()
    %cst_41 = arith.constant dense<0xFF800000> : vector<1x8xf32>
    %133 = vector.multi_reduction <maximumf>, %132, %cst_41 [2] : vector<1x8x8xf32> to vector<1x8xf32>
    %134 = vector.shape_cast %133 : vector<1x8xf32> to vector<1x8x1xf32>
    %135 = vector.broadcast %134 : vector<1x8x1xf32> to vector<1x8x8xf32>
    %136 = arith.subf %132, %135 : vector<1x8x8xf32>
    %137 = math.exp %136 : vector<1x8x8xf32>
    %cst_42 = arith.constant dense<0.000000e+00> : vector<1x8xf32>
    %138 = vector.multi_reduction <add>, %137, %cst_42 [2] : vector<1x8x8xf32> to vector<1x8xf32>
    %139 = vector.shape_cast %138 : vector<1x8xf32> to vector<1x8x1xf32>
    %140 = tpu.reciprocal %139 {approx = true} : vector<1x8x1xf32> -> vector<1x8x1xf32>
    %141 = vector.broadcast %140 : vector<1x8x1xf32> to vector<1x8x8xf32>
    %142 = arith.mulf %137, %141 : vector<1x8x8xf32>
    %143 = arith.truncf %142 : vector<1x8x8xf32> to vector<1x8x8xbf16>
    %144 = vector.extract_strided_slice %39 {offsets = [0, 0, 80], sizes = [1, 8, 16], strides = [1, 1, 1]} : vector<1x8x128xbf16> to vector<1x8x16xbf16>
    "tpu.trace_start"() <{level = 10 : i32, message = "bnm,bmd->bnd"}> : () -> ()
    %cst_43 = arith.constant dense<0.000000e+00> : vector<1x8x16xf32>
    %145 = tpu.matmul %143, %144, %cst_43 {dimension_numbers = #tpu.dot_dimension_numbers<[2], [1], [1], [2], [0, 0, 0, 1, 1, 2], [0], [0]>} : vector<1x8x8xbf16>, vector<1x8x16xbf16>, vector<1x8x16xf32> -> vector<1x8x16xf32>
    "tpu.trace_stop"() : () -> ()
    %146 = vector.shape_cast %145 : vector<1x8x16xf32> to vector<8x16xf32>
    %c0_44 = arith.constant 0 : index
    %c80 = arith.constant 80 : index
    %147 = vector.load %arg14[%c0_44, %c80] : memref<8x128xf32, #tpu.memory_space<vmem>>, vector<8x16xf32>
    tpu.vector_store %arg14[%c0_44, %c80], %146 {strides = array<i32>} : memref<8x128xf32, #tpu.memory_space<vmem>>, vector<8x16xf32>,
    %148 = vector.extract_strided_slice %33 {offsets = [0, 0, 96], sizes = [1, 8, 16], strides = [1, 1, 1]} : vector<1x8x128xbf16> to vector<1x8x16xbf16>
    %149 = vector.extract_strided_slice %36 {offsets = [0, 0, 96], sizes = [1, 8, 16], strides = [1, 1, 1]} : vector<1x8x128xbf16> to vector<1x8x16xbf16>
    "tpu.trace_start"() <{level = 10 : i32, message = "bnd,bmd->bnm"}> : () -> ()
    %cst_45 = arith.constant dense<0.000000e+00> : vector<1x8x8xf32>
    %150 = tpu.matmul %148, %149, %cst_45 {dimension_numbers = #tpu.dot_dimension_numbers<[2], [2], [1], [1], [0, 0, 0, 1, 1, 1], [0], [0]>} : vector<1x8x16xbf16>, vector<1x8x16xbf16>, vector<1x8x8xf32> -> vector<1x8x8xf32>
    "tpu.trace_stop"() : () -> ()
    %cst_46 = arith.constant dense<0xFF800000> : vector<1x8xf32>
    %151 = vector.multi_reduction <maximumf>, %150, %cst_46 [2] : vector<1x8x8xf32> to vector<1x8xf32>
    %152 = vector.shape_cast %151 : vector<1x8xf32> to vector<1x8x1xf32>
    %153 = vector.broadcast %152 : vector<1x8x1xf32> to vector<1x8x8xf32>
    %154 = arith.subf %150, %153 : vector<1x8x8xf32>
    %155 = math.exp %154 : vector<1x8x8xf32>
    %cst_47 = arith.constant dense<0.000000e+00> : vector<1x8xf32>
    %156 = vector.multi_reduction <add>, %155, %cst_47 [2] : vector<1x8x8xf32> to vector<1x8xf32>
    %157 = vector.shape_cast %156 : vector<1x8xf32> to vector<1x8x1xf32>
    %158 = tpu.reciprocal %157 {approx = true} : vector<1x8x1xf32> -> vector<1x8x1xf32>
    %159 = vector.broadcast %158 : vector<1x8x1xf32> to vector<1x8x8xf32>
    %160 = arith.mulf %155, %159 : vector<1x8x8xf32>
    %161 = arith.truncf %160 : vector<1x8x8xf32> to vector<1x8x8xbf16>
    %162 = vector.extract_strided_slice %39 {offsets = [0, 0, 96], sizes = [1, 8, 16], strides = [1, 1, 1]} : vector<1x8x128xbf16> to vector<1x8x16xbf16>
    "tpu.trace_start"() <{level = 10 : i32, message = "bnm,bmd->bnd"}> : () -> ()
    %cst_48 = arith.constant dense<0.000000e+00> : vector<1x8x16xf32>
    %163 = tpu.matmul %161, %162, %cst_48 {dimension_numbers = #tpu.dot_dimension_numbers<[2], [1], [1], [2], [0, 0, 0, 1, 1, 2], [0], [0]>} : vector<1x8x8xbf16>, vector<1x8x16xbf16>, vector<1x8x16xf32> -> vector<1x8x16xf32>
    "tpu.trace_stop"() : () -> ()
    %164 = vector.shape_cast %163 : vector<1x8x16xf32> to vector<8x16xf32>
    %c0_49 = arith.constant 0 : index
    %c96 = arith.constant 96 : index
    %165 = vector.load %arg14[%c0_49, %c96] : memref<8x128xf32, #tpu.memory_space<vmem>>, vector<8x16xf32>
    tpu.vector_store %arg14[%c0_49, %c96], %164 {strides = array<i32>} : memref<8x128xf32, #tpu.memory_space<vmem>>, vector<8x16xf32>,
    %166 = vector.extract_strided_slice %33 {offsets = [0, 0, 112], sizes = [1, 8, 16], strides = [1, 1, 1]} : vector<1x8x128xbf16> to vector<1x8x16xbf16>
    %167 = vector.extract_strided_slice %36 {offsets = [0, 0, 112], sizes = [1, 8, 16], strides = [1, 1, 1]} : vector<1x8x128xbf16> to vector<1x8x16xbf16>
    "tpu.trace_start"() <{level = 10 : i32, message = "bnd,bmd->bnm"}> : () -> ()
    %cst_50 = arith.constant dense<0.000000e+00> : vector<1x8x8xf32>
    %168 = tpu.matmul %166, %167, %cst_50 {dimension_numbers = #tpu.dot_dimension_numbers<[2], [2], [1], [1], [0, 0, 0, 1, 1, 1], [0], [0]>} : vector<1x8x16xbf16>, vector<1x8x16xbf16>, vector<1x8x8xf32> -> vector<1x8x8xf32>
    "tpu.trace_stop"() : () -> ()
    %cst_51 = arith.constant dense<0xFF800000> : vector<1x8xf32>
    %169 = vector.multi_reduction <maximumf>, %168, %cst_51 [2] : vector<1x8x8xf32> to vector<1x8xf32>
    %170 = vector.shape_cast %169 : vector<1x8xf32> to vector<1x8x1xf32>
    %171 = vector.broadcast %170 : vector<1x8x1xf32> to vector<1x8x8xf32>
    %172 = arith.subf %168, %171 : vector<1x8x8xf32>
    %173 = math.exp %172 : vector<1x8x8xf32>
    %cst_52 = arith.constant dense<0.000000e+00> : vector<1x8xf32>
    %174 = vector.multi_reduction <add>, %173, %cst_52 [2] : vector<1x8x8xf32> to vector<1x8xf32>
    %175 = vector.shape_cast %174 : vector<1x8xf32> to vector<1x8x1xf32>
    %176 = tpu.reciprocal %175 {approx = true} : vector<1x8x1xf32> -> vector<1x8x1xf32>
    %177 = vector.broadcast %176 : vector<1x8x1xf32> to vector<1x8x8xf32>
    %178 = arith.mulf %173, %177 : vector<1x8x8xf32>
    %179 = arith.truncf %178 : vector<1x8x8xf32> to vector<1x8x8xbf16>
    %180 = vector.extract_strided_slice %39 {offsets = [0, 0, 112], sizes = [1, 8, 16], strides = [1, 1, 1]} : vector<1x8x128xbf16> to vector<1x8x16xbf16>
    "tpu.trace_start"() <{level = 10 : i32, message = "bnm,bmd->bnd"}> : () -> ()
    %cst_53 = arith.constant dense<0.000000e+00> : vector<1x8x16xf32>
    %181 = tpu.matmul %179, %180, %cst_53 {dimension_numbers = #tpu.dot_dimension_numbers<[2], [1], [1], [2], [0, 0, 0, 1, 1, 2], [0], [0]>} : vector<1x8x8xbf16>, vector<1x8x16xbf16>, vector<1x8x16xf32> -> vector<1x8x16xf32>
    "tpu.trace_stop"() : () -> ()
    %182 = vector.shape_cast %181 : vector<1x8x16xf32> to vector<8x16xf32>
    %c0_54 = arith.constant 0 : index
    %c112 = arith.constant 112 : index
    %183 = vector.load %arg14[%c0_54, %c112] : memref<8x128xf32, #tpu.memory_space<vmem>>, vector<8x16xf32>
    tpu.vector_store %arg14[%c0_54, %c112], %182 {strides = array<i32>} : memref<8x128xf32, #tpu.memory_space<vmem>>, vector<8x16xf32>,
    %c0_55 = arith.constant 0 : index
    %c0_56 = arith.constant 0 : index
    %184 = vector.load %arg14[%c0_55, %c0_56] : memref<8x128xf32, #tpu.memory_space<vmem>>, vector<8x128xf32>
    %185 = arith.truncf %184 : vector<8x128xf32> to vector<8x128xbf16>
    %c0_57 = arith.constant 0 : index
    %c0_58 = arith.constant 0 : index
    %186 = vector.load %arg5[%c0_57, %c0_58] : memref<128x128xbf16, #tpu.memory_space<vmem>>, vector<128x128xbf16>
    %cst_59 = arith.constant dense<0.000000e+00> : vector<8x128xf32>
    %187 = tpu.matmul %185, %186, %cst_59 {dimension_numbers = #tpu.dot_dimension_numbers<[1], [0], [0], [1], [0, 0, 1, 1], [], []>} : vector<8x128xbf16>, vector<128x128xbf16>, vector<8x128xf32> -> vector<8x128xf32>
    %c0_60 = arith.constant 0 : index
    %c0_61 = arith.constant 0 : index
    %188 = vector.load %arg6[%c0_60, %c0_61] : memref<1x128xf32, #tpu.memory_space<vmem>>, vector<1x128xf32>
    %189 = vector.broadcast %188 : vector<1x128xf32> to vector<8x128xf32>
    %190 = arith.addf %187, %189 : vector<8x128xf32>
    %191 = arith.addf %1, %190 : vector<8x128xf32>
    %c0_62 = arith.constant 0 : index
    %c0_63 = arith.constant 0 : index
    %192 = vector.load %arg7[%c0_62, %c0_63] : memref<1x128xf32, #tpu.memory_space<vmem>>, vector<1x128xf32>
    %c0_64 = arith.constant 0 : index
    %c0_65 = arith.constant 0 : index
    %193 = vector.load %arg8[%c0_64, %c0_65] : memref<1x128xf32, #tpu.memory_space<vmem>>, vector<1x128xf32>
    %cst_66 = arith.constant dense<0.000000e+00> : vector<8xf32>
    %194 = vector.multi_reduction <add>, %191, %cst_66 [1] : vector<8x128xf32> to vector<8xf32>
    %195 = vector.shape_cast %194 : vector<8xf32> to vector<8x1xf32>
    %cst_67 = arith.constant 1.280000e+02 : f32
    %196 = vector.broadcast %cst_67 : f32 to vector<8x1xf32>
    %197 = arith.divf %195, %196 : vector<8x1xf32>
    %198 = vector.broadcast %197 : vector<8x1xf32> to vector<8x128xf32>
    %199 = arith.subf %191, %198 : vector<8x128xf32>
    %200 = arith.mulf %199, %199 : vector<8x128xf32>
    %cst_68 = arith.constant dense<0.000000e+00> : vector<8xf32>
    %201 = vector.multi_reduction <add>, %200, %cst_68 [1] : vector<8x128xf32> to vector<8xf32>
    %202 = vector.shape_cast %201 : vector<8xf32> to vector<8x1xf32>
    %cst_69 = arith.constant 1.280000e+02 : f32
    %203 = vector.broadcast %cst_69 : f32 to vector<8x1xf32>
    %204 = arith.divf %202, %203 : vector<8x1xf32>
    %205 = vector.broadcast %197 : vector<8x1xf32> to vector<8x128xf32>
    %206 = arith.subf %191, %205 : vector<8x128xf32>
    %cst_70 = arith.constant 9.99999974E-6 : f32
    %207 = vector.broadcast %cst_70 : f32 to vector<8x1xf32>
    %208 = arith.addf %204, %207 : vector<8x1xf32>
    %209 = math.rsqrt %208 : vector<8x1xf32>
    %210 = vector.broadcast %209 : vector<8x1xf32> to vector<8x128xf32>
    %211 = arith.mulf %206, %210 : vector<8x128xf32>
    %212 = vector.broadcast %192 : vector<1x128xf32> to vector<8x128xf32>
    %213 = arith.mulf %211, %212 : vector<8x128xf32>
    %214 = vector.broadcast %193 : vector<1x128xf32> to vector<8x128xf32>
    %215 = arith.addf %213, %214 : vector<8x128xf32>
    %216 = arith.truncf %215 : vector<8x128xf32> to vector<8x128xbf16>
    %c0_71 = arith.constant 0 : index
    %c0_72 = arith.constant 0 : index
    %217 = vector.load %arg9[%c0_71, %c0_72] : memref<128x256xbf16, #tpu.memory_space<vmem>>, vector<128x256xbf16>
    %cst_73 = arith.constant dense<0.000000e+00> : vector<8x256xf32>
    %218 = tpu.matmul %216, %217, %cst_73 {dimension_numbers = #tpu.dot_dimension_numbers<[1], [0], [0], [1], [0, 0, 1, 1], [], []>} : vector<8x128xbf16>, vector<128x256xbf16>, vector<8x256xf32> -> vector<8x256xf32>
    %c0_74 = arith.constant 0 : index
    %c0_75 = arith.constant 0 : index
    %219 = vector.load %arg10[%c0_74, %c0_75] : memref<1x256xf32, #tpu.memory_space<vmem>>, vector<1x256xf32>
    %220 = vector.broadcast %219 : vector<1x256xf32> to vector<8x256xf32>
    %221 = arith.addf %218, %220 : vector<8x256xf32>
    %cst_76 = arith.constant 0.000000e+00 : f32
    %222 = vector.broadcast %cst_76 : f32 to vector<8x256xf32>
    %223 = arith.maximumf %221, %222 : vector<8x256xf32>
    %224 = arith.truncf %223 : vector<8x256xf32> to vector<8x256xbf16>
    %c0_77 = arith.constant 0 : index
    %c0_78 = arith.constant 0 : index
    %225 = vector.load %arg11[%c0_77, %c0_78] : memref<256x128xbf16, #tpu.memory_space<vmem>>, vector<256x128xbf16>
    %cst_79 = arith.constant dense<0.000000e+00> : vector<8x128xf32>
    %226 = tpu.matmul %224, %225, %cst_79 {dimension_numbers = #tpu.dot_dimension_numbers<[1], [0], [0], [1], [0, 0, 1, 1], [], []>} : vector<8x256xbf16>, vector<256x128xbf16>, vector<8x128xf32> -> vector<8x128xf32>
    %c0_80 = arith.constant 0 : index
    %c0_81 = arith.constant 0 : index
    %227 = vector.load %arg12[%c0_80, %c0_81] : memref<1x128xf32, #tpu.memory_space<vmem>>, vector<1x128xf32>
    %228 = vector.broadcast %227 : vector<1x128xf32> to vector<8x128xf32>
    %229 = arith.addf %226, %228 : vector<8x128xf32>
    %230 = arith.addf %191, %229 : vector<8x128xf32>
    %231 = vector.shape_cast %230 : vector<8x128xf32> to vector<1x8x128xf32>
    %c0_82 = arith.constant 0 : index
    %c0_83 = arith.constant 0 : index
    %c0_84 = arith.constant 0 : index
    %232 = vector.load %arg13[%c0_82, %c0_83, %c0_84] : memref<1x8x128xf32, #tpu.memory_space<vmem>>, vector<1x8x128xf32>
    tpu.vector_store %arg13[%c0_82, %c0_83, %c0_84], %231 {strides = array<i32>} : memref<1x8x128xf32, #tpu.memory_space<vmem>>, vector<1x8x128xf32>,
    return
  }
  func.func @transform_0(%arg0: i32) -> (i32, i32, i32) {
    %c0_i32 = arith.constant 0 : i32
    %c0_i32_0 = arith.constant 0 : i32
    %c0_i32_1 = arith.constant 0 : i32
    return %arg0, %c0_i32, %c0_i32_0 : i32, i32, i32
  }
  func.func @transform_1(%arg0: i32) -> (i32, i32) {
    %c0_i32 = arith.constant 0 : i32
    %c0_i32_0 = arith.constant 0 : i32
    %c0_i32_1 = arith.constant 0 : i32
    return %c0_i32, %c0_i32_0 : i32, i32
  }
  func.func @transform_2(%arg0: i32) -> (i32, i32) {
    %c0_i32 = arith.constant 0 : i32
    %c0_i32_0 = arith.constant 0 : i32
    %c0_i32_1 = arith.constant 0 : i32
    return %c0_i32, %c0_i32_0 : i32, i32
  }
  func.func @transform_3(%arg0: i32) -> (i32, i32) {
    %c0_i32 = arith.constant 0 : i32
    %c0_i32_0 = arith.constant 0 : i32
    %c0_i32_1 = arith.constant 0 : i32
    return %c0_i32, %c0_i32_0 : i32, i32
  }
  func.func @transform_4(%arg0: i32) -> (i32, i32) {
    %c0_i32 = arith.constant 0 : i32
    %c0_i32_0 = arith.constant 0 : i32
    %c0_i32_1 = arith.constant 0 : i32
    return %c0_i32, %c0_i32_0 : i32, i32
  }
  func.func @transform_5(%arg0: i32) -> (i32, i32) {
    %c0_i32 = arith.constant 0 : i32
    %c0_i32_0 = arith.constant 0 : i32
    %c0_i32_1 = arith.constant 0 : i32
    return %c0_i32, %c0_i32_0 : i32, i32
  }
  func.func @transform_6(%arg0: i32) -> (i32, i32) {
    %c0_i32 = arith.constant 0 : i32
    %c0_i32_0 = arith.constant 0 : i32
    %c0_i32_1 = arith.constant 0 : i32
    return %c0_i32, %c0_i32_0 : i32, i32
  }
  func.func @transform_7(%arg0: i32) -> (i32, i32) {
    %c0_i32 = arith.constant 0 : i32
    %c0_i32_0 = arith.constant 0 : i32
    %c0_i32_1 = arith.constant 0 : i32
    return %c0_i32, %c0_i32_0 : i32, i32
  }
  func.func @transform_8(%arg0: i32) -> (i32, i32) {
    %c0_i32 = arith.constant 0 : i32
    %c0_i32_0 = arith.constant 0 : i32
    %c0_i32_1 = arith.constant 0 : i32
    return %c0_i32, %c0_i32_0 : i32, i32
  }
  func.func @transform_9(%arg0: i32) -> (i32, i32) {
    %c0_i32 = arith.constant 0 : i32
    %c0_i32_0 = arith.constant 0 : i32
    %c0_i32_1 = arith.constant 0 : i32
    return %c0_i32, %c0_i32_0 : i32, i32
  }
  func.func @transform_10(%arg0: i32) -> (i32, i32) {
    %c0_i32 = arith.constant 0 : i32
    %c0_i32_0 = arith.constant 0 : i32
    %c0_i32_1 = arith.constant 0 : i32
    return %c0_i32, %c0_i32_0 : i32, i32
  }
  func.func @transform_11(%arg0: i32) -> (i32, i32) {
    %c0_i32 = arith.constant 0 : i32
    %c0_i32_0 = arith.constant 0 : i32
    %c0_i32_1 = arith.constant 0 : i32
    return %c0_i32, %c0_i32_0 : i32, i32
  }
  func.func @transform_12(%arg0: i32) -> (i32, i32, i32) {
    %c0_i32 = arith.constant 0 : i32
    %c0_i32_0 = arith.constant 0 : i32
    %c0_i32_1 = arith.constant 0 : i32
    return %arg0, %c0_i32, %c0_i32_0 : i32, i32, i32
  }
}

</mosaic_0001>

<bundles_post_ra>
// kernel: transformer_mapper_seq_forward.3
= control target key start
LH: loop header
LB: loop body
LE: loop exit
PB: predicated region body
PF: predicated region fallthrough
CT: control target
= control target key end

     0   :  { %s2654_s21 = smov 0   ;;  %s3081_s0 = inlined_call_operand.vmem [shape: f32[2,8,128], index: 0, kind: input, shape index: {}, may-alias: {0,12}]   ;;  %s3082_s1 = inlined_call_operand.vmem [shape: f32[1,128], index: 1, kind: input, shape index: {}]   ;;  %s3083_s2 = inlined_call_operand.vmem [shape: f32[1,128], index: 2, kind: input, shape index: {}]   ;;  %s3084_s3 = inlined_call_operand.vmem [shape: bf16[128,384], index: 3, kind: input, shape index: {}]   ;;  %s3085_s4 = inlined_call_operand.vmem [shape: bf16[128,128], index: 4, kind: input, shape index: {}]   ;;  %s3086_s5 = inlined_call_operand.vmem [shape: f32[1,128], index: 5, kind: input, shape index: {}]   ;;  %s3087_s6 = inlined_call_operand.vmem [shape: f32[1,128], index: 6, kind: input, shape index: {}]   ;;  %s3088_s7 = inlined_call_operand.vmem [shape: f32[1,128], index: 7, kind: input, shape index: {}]   ;;  %s3089_s8 = inlined_call_operand.vmem [shape: bf16[128,256], index: 8, kind: input, shape index: {}]   ;;  %s3090_s9 = inlined_call_operand.vmem [shape: f32[1,256], index: 9, kind: input, shape index: {}]   ;;  %s3091_s10 = inlined_call_operand.vmem [shape: bf16[256,128], index: 10, kind: input, shape index: {}]   ;;  %s3092_s11 = inlined_call_operand.vmem [shape: f32[1,128], index: 11, kind: input, shape index: {}]   ;;  %s3093_s12 = inlined_call_operand.vmem [shape: f32[2,8,128], index: 12, kind: output, shape index: {}, may-alias: {0,12}]  }
   0x1 LB: > { %s2133_s22 = sadd.s32 4294967295, %s2577_s21   ;;  %p2137_p0 = scmp.ge.s32.totalorder %s2577_s21, 1  ;;  %s2577_s21 = sphi %s2654_s21, %s22_s21  }
   0x2   : > { %p361_p1 = scmp.lt.s32.totalorder %s2577_s21, 3 }
   0x4   : > { %p362_p2 = pnand %p2137_p0, %p361_p1 }
   0x5   : > { %p401_p3 = scmp.lt.s32.totalorder (!%p362_p2), %s2133_s22, 1  ;;  %s2582_s19 = smov (!%p362_p2), 112  }
   0x6   : > { %365 = sbr.rel (%p362_p2) target bundleno = 2854 (0xb26), region = 68  ;;  %s2583_s20 = smov (!%p362_p2), 80  }
   0x7   : > { %s2584_s24 = smov (!%p362_p2), 64   ;;  %s2585_s25 = smov (!%p362_p2), 48  }
   0x8   : > { %s2586_s27 = smov (!%p362_p2), 32   ;;  %s2587_s28 = smov (!%p362_p2), 16  }
   0x9   : > { %s2588_s29 = smov (!%p362_p2), 96  }
   0xb   : > { %s3095_s22 = smov (!%p401_p3, %s2133_s22), 1  ;;  %v2454_v1 = vld [vmem:[%s3084_s3 + $0xac] ss:$12 sps:$4 sm:$0xff]   ;;  %v2456_v2 = vld [vmem:[%s3084_s3 + $0xa8] ss:$12 sps:$4 sm:$0xff]   ;;  %v2579_v3 = vmov 0.0  }
   0xc   : > { %s2138_s23 = sshll.u32 %s3095_s22, 3  ;;  %2300 = vmatprep.subr.bf16.mxu1 %v2579_v3  ;;  %v2457_v4 = vld [vmem:[%s3084_s3 + $0xb0] ss:$12 sps:$4 sm:$0xff]   ;;  %v2458_v5 = vld [vmem:[%s3084_s3 + $0x94] ss:$12 sps:$4 sm:$0xff]   ;;  %600 = vmatprep.subr.bf16.mxu0 %v2454_v1  ;;  %v2580_v22 = vmov 0  }
   0xd   : > { %s2670_s26 = scalar_lea.vmem %s3081_s0, %s2138_s23  ;;  %v2460_v6 = vld [vmem:[%s3084_s3 + $0x90] ss:$12 sps:$4 sm:$0xff]   ;;  %v2461_v7 = vld [vmem:[%s3084_s3 + $0x98] ss:$12 sps:$4 sm:$0xff]   ;;  %601 = vmatpush1.bf16.msra.mxu0 %v2456_v2  ;;  %2301 = vmatpush3.bf16.msra.mxu1 %v2457_v4  ;;  %v2465_v14 = vld [vmem:[%s3084_s3 + $0x80] ss:$12 sps:$4 sm:$0xff]  }
   0xe   : > { %v410_v0 = vld [vmem:[%s2670_s26] sm:$0xff]  ;;  %602 = vmatprep.subr.bf16.mxu0 %v2458_v5  ;;  %2302 = vmatprep.subr.bf16.mxu1 %v2579_v3  ;;  %v2462_v12 = vld [vmem:[%s3084_s3 + $0x7c] ss:$12 sps:$4 sm:$0xff]   ;;  %v2470_v18 = vld [vmem:[%s3084_s3 + $0x4c] ss:$12 sps:$4 sm:$0xff]   ;;  %vm2581_vm0 = vmmov 0  }
   0xf   : > { %413 = vadd.xlane.f32.xlu0 %v410_v0  ;;  %v2464_v13 = vld [vmem:[%s3084_s3 + $0x78] ss:$12 sps:$4 sm:$0xff]   ;;  %v2468_v16 = vld [vmem:[%s3084_s3 + $0x60] ss:$12 sps:$4 sm:$0xff]   ;;  %v2469_v17 = vld [vmem:[%s3084_s3 + $0x68] ss:$12 sps:$4 sm:$0xff]   ;;  %632 = vmatprep.mubr.bf16.mxu0 %v2580_v22 }
  0x10   : > { %v2466_v15 = vld [vmem:[%s3084_s3 + $0x64] ss:$12 sps:$4 sm:$0xff]   ;;  %v2472_v19 = vld [vmem:[%s3084_s3 + $0x48] ss:$12 sps:$4 sm:$0xff]   ;;  %2316 = vmatprep.mubr.msk.bf16.mxu1 %vm2581_vm0, %v2579_v3  ;;  %v2481_v27 = vld [vmem:[%s3084_s3 + $0x20] ss:$12 sps:$4 sm:$0xff]  }
  0x11   : > { %603 = vmatpush1.bf16.msra.mxu0 %v2460_v6  ;;  %2303 = vmatpush3.bf16.msra.mxu1 %v2461_v7  ;;  %v2473_v20 = vld [vmem:[%s3084_s3 + $0x50] ss:$12 sps:$4 sm:$0xff]   ;;  %v2474_v21 = vld [vmem:[%s3084_s3 + $0x34] ss:$12 sps:$4 sm:$0xff]   ;;  %v2477_v24 = vld [vmem:[%s3084_s3 + $0x38] ss:$12 sps:$4 sm:$0xff]  }
  0x12   : > { %2304 = vmatprep.subr.bf16.mxu1 %v2579_v3  ;;  %604 = vmatprep.subr.bf16.mxu0 %v2462_v12  ;;  %v2476_v23 = vld [vmem:[%s3084_s3 + $0x30] ss:$12 sps:$4 sm:$0xff]   ;;  %v2480_v26 = vld [vmem:[%s3084_s3 + $0x18] ss:$12 sps:$4 sm:$0xff]   ;;  %v2484_v29 = vld [vmem:[%s3084_s3] ss:$12 sps:$4 sm:$0xff]  }
  0x13   : > { %v2478_v25 = vld [vmem:[%s3084_s3 + $0x1c] ss:$12 sps:$4 sm:$0xff]   ;;  %v2482_v28 = vld [vmem:[%s3084_s3 + $0x4] ss:$12 sps:$4 sm:$0xff]   ;;  %v2140_v35 = vld [vmem:[%s3082_s1] ss:$0 sm:$0xff] }
  0x14   : > { %v2485_v30 = vld [vmem:[%s3084_s3 + $0x8] ss:$12 sps:$4 sm:$0xff]   ;;  %v2141_v37 = vld [vmem:[%s3083_s2] ss:$0 sm:$0xff]  ;;  %vm685_vm1 = vcmask 130048   ;;  %vm748_vm2 = vcmask 1043456  }
  0x15   : > { %605 = vmatpush1.bf16.msra.mxu0 %v2464_v13  ;;  %2305 = vmatpush3.bf16.msra.mxu1 %v2465_v14  ;;  %vm732_vm3 = vcmask 64512   ;;  %vm910_vm4 = vcmask 261248   ;;  %vm1026_vm5 = vcmask 392448   ;;  %vm1142_vm6 = vcmask 523648  }
  0x16   : > { %2306 = vmatprep.subr.bf16.mxu1 %v2579_v3  ;;  %606 = vmatprep.subr.bf16.mxu0 %v2466_v15  ;;  %vm1258_vm7 = vcmask 654848   ;;  %vm1374_vm8 = vcmask 786048   ;;  %vm1490_vm9 = vcmask 917248   ;;  %vm1606_vm10 = vcmask 1048448  }
  0x19   : > { %607 = vmatpush1.bf16.msra.mxu0 %v2468_v16  ;;  %2307 = vmatpush3.bf16.msra.mxu1 %v2469_v17 }
  0x1a   : > { %608 = vmatprep.subr.bf16.mxu0 %v2470_v18  ;;  %2308 = vmatprep.subr.bf16.mxu1 %v2579_v3 }
  0x1d   : > { %609 = vmatpush1.bf16.msra.mxu0 %v2472_v19  ;;  %2309 = vmatpush3.bf16.msra.mxu1 %v2473_v20 }
  0x1e   : > { %610 = vmatprep.subr.bf16.mxu0 %v2474_v21  ;;  %2310 = vmatprep.subr.bf16.mxu1 %v2579_v3 }
  0x21   : > { %611 = vmatpush1.bf16.msra.mxu0 %v2476_v23  ;;  %2311 = vmatpush3.bf16.msra.mxu1 %v2477_v24 }
  0x22   : > { %612 = vmatprep.subr.bf16.mxu0 %v2478_v25  ;;  %2312 = vmatprep.subr.bf16.mxu1 %v2579_v3 }
  0x25   : > { %613 = vmatpush1.bf16.msra.mxu0 %v2480_v26  ;;  %2313 = vmatpush3.bf16.msra.mxu1 %v2481_v27 }
  0x26   : > { %614 = vmatprep.subr.bf16.mxu0 %v2482_v28  ;;  %2314 = vmatprep.subr.bf16.mxu1 %v2579_v3 }
  0x29   : > { %615 = vmatpush1.bf16.msra.mxu0 %v2484_v29  ;;  %2315 = vmatpush3.bf16.msra.mxu1 %v2485_v30 }
  0x2a   : > { %2320 = vmatprep.subr.bf16.mxu1 %v2579_v3  ;;  %2344 = vmatprep.subr.bf16.mxu0 %v2579_v3 }
  0x98   : > { %v414_v8 = vpop.xlane.xlu0 %413 }
  0x99   : > { %v416_v9 = vmul.f32 0.0078125, %v414_v8 }
  0x9b   : > { %v417_v10 = vsub.f32 %v410_v0, %v416_v9 }
  0x9d   : > { %v418_v11 = vmul.f32 %v417_v10, %v417_v10 }
  0x9f   : > { %419 = vadd.xlane.f32.xlu0 %v418_v11 }
 0x128   : > { %v420_v31 = vpop.xlane.xlu0 %419 }
 0x129   : > { %v421_v32 = vmul.f32 0.0078125, %v420_v31 }
 0x12b   : > { %v422_v33 = vadd.f32 1e-05, %v421_v32 }
 0x12d   : > { %2534 = vrsqrt.f32 %v422_v33 }
 0x13a   : > { %v2535_v34 = vpop.eup %2534 }
 0x13b   : > { %v424_v36 = vmul.f32 %v2535_v34, %v417_v10 }
 0x13d   : > { %v431_v38 = vmul.f32 %v2140_v35, %v424_v36 }
 0x13f   : > { %v438_v39 = vadd.f32 %v2141_v37, %v431_v38 }
 0x141   : > { %v439_v40 = vpack.c.bf16 %v438_v39, %v438_v39 }
 0x143   : > { %633 = vmatmul.mubr.bf16.vlgmr.msra.gmra.mxu0 %v439_v40  ;;  %2317 = vmatmul.mubr.bf16.vlgmr.msra.gmra.mxu1 %v439_v40 }
 0x144   : > { %2322 = vmatprep.mubr.msk.bf16.mxu1 %vm2581_vm0, %v2579_v3  ;;  %2346 = vmatprep.mubr.msk.bf16.mxu0 %vm2581_vm0, %v2579_v3 }
 0x203   : > { %v634_v41 = vpop.f32.mrf.mxu0  ;;  %v675_v42 = vpop.f32.mrf.mxu1 }
 0x204   : > { %v681_v51 = vmul.f32 0.25, %v634_v41  ;;  %v2771_v52 = vpack.c.bf16 %v675_v42, %v675_v42 }
 0x205   : > { %v636_v43 = vpop.f32.mrf.mxu0  ;;  %v2318_v44 = vpop.f32.mrf.mxu1 }
 0x206   : > { %v683_v45 = vpack.c.bf16 %v636_v43, %v636_v43  ;;  %v682_v53 = vpack.c.bf16 %v681_v51, %v681_v51  ;;  %v750_v54 = vsel %vm748_vm2, %v2771_v52, 0 }
 0x207   : > { %v638_v46 = vpop.f32.mrf.mxu0  ;;  %v678_v47 = vpop.f32.mrf.mxu1 }
 0x208   : > { %797 = vrot.lane.b32.xlu0 %v683_v45, %s2582_s19  ;;  %v690_v48 = vsel %vm685_vm1, %v683_v45, 0 }
 0x209   : > { %v639_v49 = vpop.f32.mrf.mxu0  ;;  %v2319_v50 = vpop.f32.mrf.mxu1  ;;  %2321 = vmatpush3.bf16.xpose.msra.mxu1 %v690_v48 }
 0x20a   : > { %2326 = vmatprep.subr.bf16.mxu1 %v2579_v3 }
 0x20c   : > { %1030 = vrot.lane.b32.xlu0 %v683_v45, %s2583_s20 }
 0x210   : > { %1146 = vrot.lane.b32.xlu0 %v683_v45, %s2584_s24  ;;  %2323 = vmatmul.mubr.msk.bf16.vlgmr.msra.gmra.mxu1 %vm685_vm1, %v682_v53 }
 0x211   : > { %2327 = vmatpush3.bf16.msra.mxu1 %v750_v54  ;;  %2328 = vmatprep.mubr.msk.bf16.mxu1 %vm2581_vm0, %v2579_v3 }
 0x212   : > { %2332 = vmatprep.subr.bf16.mxu1 %v2579_v3 }
 0x214   : > { %1262 = vrot.lane.b32.xlu0 %v683_v45, %s2585_s25 }
 0x218   : > { %1378 = vrot.lane.b32.xlu0 %v683_v45, %s2586_s27 }
 0x21c   : > { %1494 = vrot.lane.b32.xlu0 %v683_v45, %s2587_s28 }
 0x27a   : > { %v798_v4 = vpop.permute.xlu0 %797 }
 0x27b   : > { %v803_v13 = vsel %vm685_vm1, %v798_v4, 0 }
 0x27e   : > { %v1031_v8 = vpop.permute.xlu0 %1030 }
 0x27f   : > { %v1036_v11 = vsel %vm685_vm1, %v1031_v8, 0 }
 0x282   : > { %v1147_v14 = vpop.permute.xlu0 %1146 }
 0x283   : > { %v1152_v16 = vsel %vm685_vm1, %v1147_v14, 0 }
 0x286   : > { %v1263_v17 = vpop.permute.xlu0 %1262 }
 0x287   : > { %v1268_v19 = vsel %vm685_vm1, %v1263_v17, 0 }
 0x28a   : > { %v1379_v20 = vpop.permute.xlu0 %1378 }
 0x28b   : > { %v1384_v23 = vsel %vm685_vm1, %v1379_v20, 0 }
 0x28e   : > { %v1495_v24 = vpop.permute.xlu0 %1494 }
 0x28f   : > { %v1500_v26 = vsel %vm685_vm1, %v1495_v24, 0 }
 0x2d0   : > { %v726_v55 = vpop.f32.mrf.mxu1 }
 0x2d1   : > { %v733_v56 = vsel %vm732_vm3, %v726_v55, -inf }
 0x2d2   : > { %734 = vmax.xlane.f32.xlu1 %v733_v56  ;;  %v2324_v57 = vpop.f32.mrf.mxu1 }
 0x2d4   : > { %v729_v58 = vpop.f32.mrf.mxu1 }
 0x2d6   : > { %v2325_v59 = vpop.f32.mrf.mxu1 }
 0x35b   : > { %v735_v60 = vpop.xlane.xlu1 %734 }
 0x35c   : > { %v736_v61 = vsub.f32 %v726_v55, %v735_v60 }
 0x35e   : > { %v737_v62 = vmul.f32 1.442695, %v736_v61 }
 0x360   : > { %2536 = vpow2.f32 %v737_v62 }
 0x36d   : > { %v2537_v63 = vpop.eup %2536 }
 0x36e   : > { %v739_v0 = vsel %vm732_vm3, %v2537_v63, 0.0 }
 0x36f   : > { %740 = vadd.xlane.f32.xlu1 %v739_v0 }
 0x380   : > { %794 = vrot.lane.b32.xlu1 %v682_v53, %s2582_s19 }
 0x384   : > { %914 = vrot.lane.b32.xlu1 %v683_v45, %s2588_s29 }
 0x388   : > { %912 = vrot.lane.b32.xlu1 %v682_v53, %s2588_s29 }
 0x38c   : > { %1028 = vrot.lane.b32.xlu1 %v682_v53, %s2583_s20 }
 0x390   : > { %1144 = vrot.lane.b32.xlu1 %v682_v53, %s2584_s24 }
 0x394   : > { %1260 = vrot.lane.b32.xlu1 %v682_v53, %s2585_s25 }
 0x398   : > { %1376 = vrot.lane.b32.xlu1 %v682_v53, %s2586_s27 }
 0x39c   : > { %1492 = vrot.lane.b32.xlu1 %v682_v53, %s2587_s28 }
 0x3f8   : > { %v741_v1 = vpop.xlane.xlu1 %740 }
 0x3f9   : > { %2538 = vrcp.f32 %v741_v1 }
 0x3fc   : > { %v795_v2 = vpop.permute.xlu1 %794 }
 0x400   : > { %v915_v5 = vpop.permute.xlu1 %914 }
 0x401   : > { %v920_v6 = vsel %vm685_vm1, %v915_v5, 0 }
 0x402   : > { %2345 = vmatpush3.bf16.xpose.msra.mxu0 %v920_v6 }
 0x403   : > { %2356 = vmatprep.subr.bf16.mxu0 %v2579_v3 }
 0x404   : > { %v913_v10 = vpop.permute.xlu1 %912 }
 0x406   : > { %v2539_v7 = vpop.eup %2538 }
 0x407   : > { %v743_v9 = vmul.f32 %v2539_v7, %v2537_v63 }
 0x408   : > { %v1029_v15 = vpop.permute.xlu1 %1028 }
 0x409   : > { %2347 = vmatmul.mubr.msk.bf16.vlgmr.msra.gmra.mxu0 %vm685_vm1, %v913_v10  ;;  %v744_v12 = vpack.c.bf16 %v743_v9, %v743_v9 }
 0x40a   : > { %2357 = vmatpush3.bf16.xpose.msra.mxu0 %v1036_v11  ;;  %2358 = vmatprep.mubr.msk.bf16.mxu0 %vm2581_vm0, %v2579_v3 }
 0x40b   : > { %2329 = vmatmul.mubr.msk.bf16.vlgmr.msra.gmra.mxu1 %vm732_vm3, %v744_v12  ;;  %2368 = vmatprep.subr.bf16.mxu0 %v2579_v3 }
 0x40c   : > { %2333 = vmatpush3.bf16.xpose.msra.mxu1 %v803_v13  ;;  %2334 = vmatprep.mubr.msk.bf16.mxu1 %vm2581_vm0, %v2579_v3  ;;  %v1145_v18 = vpop.permute.xlu1 %1144 }
 0x40d   : > { %2338 = vmatprep.subr.bf16.mxu1 %v2579_v3 }
 0x410   : > { %v1261_v21 = vpop.permute.xlu1 %1260 }
 0x411   : > { %2359 = vmatmul.mubr.msk.bf16.vlgmr.msra.gmra.mxu0 %vm685_vm1, %v1029_v15 }
 0x412   : > { %2369 = vmatpush3.bf16.xpose.msra.mxu0 %v1152_v16  ;;  %2370 = vmatprep.mubr.msk.bf16.mxu0 %vm2581_vm0, %v2579_v3 }
 0x413   : > { %2335 = vmatmul.mubr.msk.bf16.vlgmr.msra.gmra.mxu1 %vm685_vm1, %v795_v2  ;;  %2380 = vmatprep.subr.bf16.mxu0 %v2579_v3 }
 0x414   : > { %2340 = vmatprep.mubr.msk.bf16.mxu1 %vm2581_vm0, %v2579_v3  ;;  %v1377_v25 = vpop.permute.xlu1 %1376 }
 0x418   : > { %v1493_v27 = vpop.permute.xlu1 %1492 }
 0x419   : > { %2371 = vmatmul.mubr.msk.bf16.vlgmr.msra.gmra.mxu0 %vm685_vm1, %v1145_v18 }
 0x41a   : > { %2381 = vmatpush3.bf16.xpose.msra.mxu0 %v1268_v19  ;;  %2382 = vmatprep.mubr.msk.bf16.mxu0 %vm2581_vm0, %v2579_v3 }
 0x41b   : > { %2392 = vmatprep.subr.bf16.mxu0 %v2579_v3 }
 0x421   : > { %2383 = vmatmul.mubr.msk.bf16.vlgmr.msra.gmra.mxu0 %vm685_vm1, %v1261_v21 }
 0x422   : > { %2393 = vmatpush3.bf16.xpose.msra.mxu0 %v1384_v23  ;;  %2394 = vmatprep.mubr.msk.bf16.mxu0 %vm2581_vm0, %v2579_v3 }
 0x423   : > { %2404 = vmatprep.subr.bf16.mxu0 %v2579_v3 }
 0x429   : > { %2395 = vmatmul.mubr.msk.bf16.vlgmr.msra.gmra.mxu0 %vm685_vm1, %v1377_v25 }
 0x42a   : > { %2405 = vmatpush3.bf16.xpose.msra.mxu0 %v1500_v26  ;;  %2406 = vmatprep.mubr.msk.bf16.mxu0 %vm2581_vm0, %v2579_v3 }
 0x42b   : > { %2416 = vmatprep.subr.bf16.mxu0 %v2579_v3 }
 0x431   : > { %2407 = vmatmul.mubr.msk.bf16.vlgmr.msra.gmra.mxu0 %vm685_vm1, %v1493_v27 }
 0x432   : > { %2432 = vmatprep.mubr.msk.bf16.mxu0 %vm2581_vm0, %v2579_v3 }
 0x4c9   : > { %v956_v28 = vpop.f32.mrf.mxu0 }
 0x4ca   : > { %v962_v29 = vsel %vm732_vm3, %v956_v28, -inf }
 0x4cb   : > { %v786_v30 = vpop.f32.mrf.mxu1  ;;  %963 = vmax.xlane.f32.xlu1 %v962_v29  ;;  %v2348_v31 = vpop.f32.mrf.mxu0 }
 0x4cc   : > { %792 = vst.msk [vmem:[#allocation2] sm:$0xff] %vm685_vm1, %v786_v30 }
 0x4cd   : > { %v2330_v32 = vpop.f32.mrf.mxu1  ;;  %v959_v33 = vpop.f32.mrf.mxu0 }
 0x4cf   : > { %v789_v34 = vpop.f32.mrf.mxu1  ;;  %v2349_v35 = vpop.f32.mrf.mxu0 }
 0x4d1   : > { %v2331_v36 = vpop.f32.mrf.mxu1  ;;  %v1072_v37 = vpop.f32.mrf.mxu0 }
 0x4d2   : > { %v1078_v45 = vsel %vm732_vm3, %v1072_v37, -inf }
 0x4d3   : > { %v839_v38 = vpop.f32.mrf.mxu1  ;;  %v2360_v39 = vpop.f32.mrf.mxu0 }
 0x4d4   : > { %v845_v40 = vsel %vm732_vm3, %v839_v38, -inf }
 0x4d5   : > { %846 = vmax.xlane.f32.xlu0 %v845_v40  ;;  %v2336_v41 = vpop.f32.mrf.mxu1  ;;  %v1075_v42 = vpop.f32.mrf.mxu0 }
 0x4d7   : > { %v842_v43 = vpop.f32.mrf.mxu1  ;;  %v2361_v44 = vpop.f32.mrf.mxu0 }
 0x4d9   : > { %v2337_v46 = vpop.f32.mrf.mxu1  ;;  %1079 = vmax.xlane.f32.xlu0 %v1078_v45  ;;  %v1188_v47 = vpop.f32.mrf.mxu0 }
 0x4da   : > { %v1194_v49 = vsel %vm732_vm3, %v1188_v47, -inf }
 0x4db   : > { %v2372_v48 = vpop.f32.mrf.mxu0 }
 0x4dd   : > { %1195 = vmax.xlane.f32.xlu0 %v1194_v49  ;;  %v1191_v50 = vpop.f32.mrf.mxu0 }
 0x4df   : > { %v2373_v51 = vpop.f32.mrf.mxu0 }
 0x4e1   : > { %v1304_v53 = vpop.f32.mrf.mxu0 }
 0x4e2   : > { %v1310_v54 = vsel %vm732_vm3, %v1304_v53, -inf }
 0x4e3   : > { %1311 = vmax.xlane.f32.xlu0 %v1310_v54  ;;  %v2384_v55 = vpop.f32.mrf.mxu0 }
 0x4e5   : > { %v1307_v56 = vpop.f32.mrf.mxu0 }
 0x4e7   : > { %v2385_v57 = vpop.f32.mrf.mxu0 }
 0x4e9   : > { %v1420_v58 = vpop.f32.mrf.mxu0 }
 0x4ea   : > { %v1426_v59 = vsel %vm732_vm3, %v1420_v58, -inf }
 0x4eb   : > { %1427 = vmax.xlane.f32.xlu1 %v1426_v59  ;;  %v2396_v60 = vpop.f32.mrf.mxu0 }
 0x4ed   : > { %v1423_v61 = vpop.f32.mrf.mxu0 }
 0x4ef   : > { %v2397_v62 = vpop.f32.mrf.mxu0 }
 0x4f1   : > { %v1536_v63 = vpop.f32.mrf.mxu0 }
 0x4f2   : > { %v1542_v0 = vsel %vm732_vm3, %v1536_v63, -inf }
 0x4f3   : > { %1543 = vmax.xlane.f32.xlu0 %v1542_v0  ;;  %v2408_v1 = vpop.f32.mrf.mxu0 }
 0x4f5   : > { %v1539_v2 = vpop.f32.mrf.mxu0 }
 0x4f7   : > { %v2409_v4 = vpop.f32.mrf.mxu0 }
 0x554   : > { %v964_v5 = vpop.xlane.xlu1 %963 }
 0x555   : > { %v965_v6 = vsub.f32 %v956_v28, %v964_v5 }
 0x557   : > { %v966_v7 = vmul.f32 1.442695, %v965_v6 }
 0x559   : > { %2540 = vpow2.f32 %v966_v7 }
 0x55e   : > { %v847_v8 = vpop.xlane.xlu0 %846 }
 0x55f   : > { %v848_v9 = vsub.f32 %v839_v38, %v847_v8 }
 0x561   : > { %v849_v12 = vmul.f32 1.442695, %v848_v9 }
 0x562   : > { %v1080_v10 = vpop.xlane.xlu0 %1079 }
 0x563   : > { %v1081_v11 = vsub.f32 %v1072_v37, %v1080_v10 }
 0x565   : > { %v1082_v13 = vmul.f32 1.442695, %v1081_v11 }
 0x566   : > { %v2840_v14 = vpop.eup %2540  ;;  %v1196_v15 = vpop.xlane.xlu0 %1195 }
 0x567   : > { %2542 = vpow2.f32 %v1082_v13  ;;  %v1197_v16 = vsub.f32 %v1188_v47, %v1196_v15  ;;  %v968_v17 = vsel %vm732_vm3, %v2840_v14, 0.0 }
 0x568   : > { %969 = vadd.xlane.f32.xlu0 %v968_v17  ;;  %2544 = vpow2.f32 %v849_v12 }
 0x569   : > { %v1198_v18 = vmul.f32 1.442695, %v1197_v16 }
 0x56b   : > { %2546 = vpow2.f32 %v1198_v18 }
 0x56c   : > { %v1312_v19 = vpop.xlane.xlu0 %1311 }
 0x56d   : > { %v1313_v20 = vsub.f32 %v1304_v53, %v1312_v19 }
 0x56f   : > { %v1314_v21 = vmul.f32 1.442695, %v1313_v20 }
 0x571   : > { %2548 = vpow2.f32 %v1314_v21 }
 0x574   : > { %v2844_v23 = vpop.eup %2542  ;;  %v1428_v31 = vpop.xlane.xlu1 %1427 }
 0x575   : > { %v1084_v24 = vsel %vm732_vm3, %v2844_v23, 0.0  ;;  %v2545_v25 = vpop.eup %2544  ;;  %v1429_v32 = vsub.f32 %v1420_v58, %v1428_v31 }
 0x576   : > { %1085 = vadd.xlane.f32.xlu1 %v1084_v24  ;;  %v851_v27 = vsel %vm732_vm3, %v2545_v25, 0.0 }
 0x577   : > { %v1430_v33 = vmul.f32 1.442695, %v1429_v32 }
 0x578   : > { %v2848_v26 = vpop.eup %2546 }
 0x579   : > { %v1200_v28 = vsel %vm732_vm3, %v2848_v26, 0.0  ;;  %2550 = vpow2.f32 %v1430_v33  ;;  %v2487_v33 = vld [vmem:[%s3085_s4 + $0x30] sm:$0xff]  }
 0x57a   : > { %852 = vadd.xlane.f32.xlu1 %v851_v27  ;;  %1201 = vadd.xlane.f32.xlu0 %v1200_v28 }
 0x57c   : > { %v1544_v34 = vpop.xlane.xlu0 %1543 }
 0x57d   : > { %v1545_v35 = vsub.f32 %v1536_v63, %v1544_v34  ;;  %v2488_v34 = vld [vmem:[%s3085_s4 + $0x28] sm:$0xff]  }
 0x57e   : > { %v2853_v29 = vpop.eup %2548 }
 0x57f   : > { %v1316_v30 = vsel %vm732_vm3, %v2853_v29, 0.0  ;;  %v1546_v36 = vmul.f32 1.442695, %v1545_v35 }
 0x580   : > { %1317 = vadd.xlane.f32.xlu0 %v1316_v30 }
 0x581   : > { %2552 = vpow2.f32 %v1546_v36  ;;  %v2489_v36 = vld [vmem:[%s3085_s4 + $0x20] sm:$0xff]  }
 0x586   : > { %v2863_v37 = vpop.eup %2550 }
 0x587   : > { %v1432_v38 = vsel %vm732_vm3, %v2863_v37, 0.0 }
 0x58b   : > { %858 = vrot.lane.b32.xlu1 %v2771_v52, %s2582_s19 }
 0x58e   : > { %v2867_v39 = vpop.eup %2552 }
 0x58f   : > { %v1548_v40 = vsel %vm732_vm3, %v2867_v39, 0.0 }
 0x596   : > { %974 = vrot.lane.b32.xlu0 %v2771_v52, %s2588_s29 }
 0x59a   : > { %1090 = vrot.lane.b32.xlu0 %v2771_v52, %s2583_s20 }
 0x5af   : > { %1433 = vadd.xlane.f32.xlu1 %v1432_v38 }
 0x5b9   : > { %1549 = vadd.xlane.f32.xlu0 %v1548_v40  ;;  %v2490_v40 = vld [vmem:[%s3085_s4 + $0x18] sm:$0xff]  }
 0x5c0   : > { %1206 = vrot.lane.b32.xlu1 %v2771_v52, %s2584_s24 }
 0x5c4   : > { %1438 = vrot.lane.b32.xlu1 %v2771_v52, %s2586_s27 }
 0x5c8   : > { %1554 = vrot.lane.b32.xlu1 %v2771_v52, %s2587_s28 }
 0x5cf   : > { %1322 = vrot.lane.b32.xlu0 %v2771_v52, %s2585_s25 }
 0x5f1   : > { %v970_v43 = vpop.xlane.xlu0 %969 }
 0x5ff   : > { %v1086_v41 = vpop.xlane.xlu1 %1085 }
 0x603   : > { %v853_v42 = vpop.xlane.xlu1 %852  ;;  %v1202_v46 = vpop.xlane.xlu0 %1201 }
 0x604   : > { %2554 = vrcp.f32 %v853_v42 }
 0x605   : > { %2556 = vrcp.f32 %v970_v43 }
 0x606   : > { %2558 = vrcp.f32 %v1086_v41  ;;  %v2491_v41 = vld [vmem:[%s3085_s4 + $0x10] sm:$0xff]  }
 0x607   : > { %v859_v44 = vpop.permute.xlu1 %858  ;;  %2560 = vrcp.f32 %v1202_v46 }
 0x608   : > { %v864_v45 = vsel %vm748_vm2, %v859_v44, 0 }
 0x609   : > { %2339 = vmatpush3.bf16.msra.mxu1 %v864_v45  ;;  %v1318_v47 = vpop.xlane.xlu0 %1317  ;;  %v2492_v45 = vld [vmem:[%s3085_s4 + $0x8] sm:$0xff]  }
 0x60a   : > { %2350 = vmatprep.subr.bf16.mxu1 %v2579_v3  ;;  %2562 = vrcp.f32 %v1318_v47  ;;  %v2493_v47 = vld [vmem:[%s3085_s4] sm:$0xff]  }
 0x60d   : > { %v975_v50 = vpop.permute.xlu0 %974 }
 0x60e   : > { %v980_v52 = vsel %vm748_vm2, %v975_v50, 0 }
 0x611   : > { %v2555_v48 = vpop.eup %2554  ;;  %v1091_v55 = vpop.permute.xlu0 %1090 }
 0x612   : > { %v855_v49 = vmul.f32 %v2555_v48, %v2545_v25  ;;  %v2557_v53 = vpop.eup %2556  ;;  %v1096_v58 = vsel %vm748_vm2, %v1091_v55, 0 }
 0x613   : > { %v972_v54 = vmul.f32 %v2557_v53, %v2840_v14  ;;  %v2559_v57 = vpop.eup %2558 }
 0x614   : > { %v856_v51 = vpack.c.bf16 %v855_v49, %v855_v49  ;;  %v1088_v59 = vmul.f32 %v2559_v57, %v2844_v23  ;;  %v2561_v61 = vpop.eup %2560 }
 0x615   : > { %v973_v56 = vpack.c.bf16 %v972_v54, %v972_v54  ;;  %v1204_v63 = vmul.f32 %v2561_v61, %v2848_v26 }
 0x616   : > { %2341 = vmatmul.mubr.msk.bf16.vlgmr.msra.gmra.mxu1 %vm732_vm3, %v856_v51  ;;  %v1089_v60 = vpack.c.bf16 %v1088_v59, %v1088_v59 }
 0x617   : > { %2351 = vmatpush3.bf16.msra.mxu1 %v980_v52  ;;  %2352 = vmatprep.mubr.msk.bf16.mxu1 %vm2581_vm0, %v2579_v3  ;;  %v1205_v2 = vpack.c.bf16 %v1204_v63, %v1204_v63  ;;  %v2563_v4 = vpop.eup %2562 }
 0x618   : > { %2362 = vmatprep.subr.bf16.mxu1 %v2579_v3  ;;  %v1320_v6 = vmul.f32 %v2563_v4, %v2853_v29 }
 0x61a   : > { %v1321_v10 = vpack.c.bf16 %v1320_v6, %v1320_v6 }
 0x61e   : > { %2353 = vmatmul.mubr.msk.bf16.vlgmr.msra.gmra.mxu1 %vm732_vm3, %v973_v56 }
 0x61f   : > { %2363 = vmatpush3.bf16.msra.mxu1 %v1096_v58  ;;  %2364 = vmatprep.mubr.msk.bf16.mxu1 %vm2581_vm0, %v2579_v3 }
 0x620   : > { %2374 = vmatprep.subr.bf16.mxu1 %v2579_v3 }
 0x626   : > { %2365 = vmatmul.mubr.msk.bf16.vlgmr.msra.gmra.mxu1 %vm732_vm3, %v1089_v60 }
 0x627   : > { %2376 = vmatprep.mubr.msk.bf16.mxu1 %vm2581_vm0, %v2579_v3 }
 0x638   : > { %v1434_v62 = vpop.xlane.xlu1 %1433 }
 0x639   : > { %2564 = vrcp.f32 %v1434_v62 }
 0x63c   : > { %v1207_v0 = vpop.permute.xlu1 %1206 }
 0x63d   : > { %v1212_v1 = vsel %vm748_vm2, %v1207_v0, 0  ;;  %v2182_v0 = vld [vmem:[%s3086_s5] ss:$0 sm:$0xff] }
 0x63e   : > { %2375 = vmatpush3.bf16.msra.mxu1 %v1212_v1 }
 0x63f   : > { %2386 = vmatprep.subr.bf16.mxu1 %v2579_v3 }
 0x640   : > { %v1439_v9 = vpop.permute.xlu1 %1438 }
 0x641   : > { %2377 = vmatmul.mubr.msk.bf16.vlgmr.msra.gmra.mxu1 %vm732_vm3, %v1205_v2  ;;  %v1444_v12 = vsel %vm748_vm2, %v1439_v9, 0  ;;  %v2494_v9 = vld [vmem:[%s3089_s8 + $0x70] ss:$8 sps:$4 sm:$0xff]  }
 0x642   : > { %v1550_v5 = vpop.xlane.xlu0 %1549  ;;  %2388 = vmatprep.mubr.msk.bf16.mxu1 %vm2581_vm0, %v2579_v3 }
 0x643   : > { %2566 = vrcp.f32 %v1550_v5  ;;  %v2570_v5 = vld [vmem:[%s2670_s26] sm:$0xff] }
 0x644   : > { %v1555_v14 = vpop.permute.xlu1 %1554 }
 0x645   : > { %v1560_v17 = vsel %vm748_vm2, %v1555_v14, 0 }
 0x646   : > { %v1323_v7 = vpop.permute.xlu0 %1322  ;;  %v2565_v11 = vpop.eup %2564 }
 0x647   : > { %v1328_v8 = vsel %vm748_vm2, %v1323_v7, 0  ;;  %v1436_v13 = vmul.f32 %v2565_v11, %v2863_v37  ;;  %v2499_v11 = vld [vmem:[%s3089_s8 + $0x64] ss:$8 sps:$4 sm:$0xff]  }
 0x648   : > { %2387 = vmatpush3.bf16.msra.mxu1 %v1328_v8 }
 0x649   : > { %2398 = vmatprep.subr.bf16.mxu1 %v2579_v3  ;;  %v1437_v15 = vpack.c.bf16 %v1436_v13, %v1436_v13 }
 0x64b   : > { %2389 = vmatmul.mubr.msk.bf16.vlgmr.msra.gmra.mxu1 %vm732_vm3, %v1321_v10  ;;  %v2496_v10 = vld [vmem:[%s3089_s8 + $0x74] ss:$8 sps:$4 sm:$0xff]  }
 0x64c   : > { %2399 = vmatpush3.bf16.msra.mxu1 %v1444_v12  ;;  %2400 = vmatprep.mubr.msk.bf16.mxu1 %vm2581_vm0, %v2579_v3  ;;  %v2497_v12 = vld [vmem:[%s3089_s8 + $0x60] ss:$8 sps:$4 sm:$0xff]  }
 0x64d   : > { %2410 = vmatprep.subr.bf16.mxu1 %v2579_v3 }
 0x650   : > { %v2567_v16 = vpop.eup %2566 }
 0x651   : > { %v1552_v18 = vmul.f32 %v2567_v16, %v2867_v39 }
 0x653   : > { %2401 = vmatmul.mubr.msk.bf16.vlgmr.msra.gmra.mxu1 %vm732_vm3, %v1437_v15  ;;  %v1553_v19 = vpack.c.bf16 %v1552_v18, %v1552_v18  ;;  %v2500_v18 = vld [vmem:[%s3089_s8 + $0x50] ss:$8 sps:$4 sm:$0xff]  }
 0x654   : > { %2411 = vmatpush3.bf16.msra.mxu1 %v1560_v17  ;;  %2412 = vmatprep.mubr.msk.bf16.mxu1 %vm2581_vm0, %v2579_v3  ;;  %v2502_v17 = vld [vmem:[%s3089_s8 + $0x54] ss:$8 sps:$4 sm:$0xff]  }
 0x655   : > { %1858 = vmatprep.subr.bf16.mxu1 %v2496_v10  ;;  %v2209_v10 = vld [vmem:[%s3092_s11] ss:$0 sm:$0xff] }
 0x65b   : > { %2413 = vmatmul.mubr.msk.bf16.vlgmr.msra.gmra.mxu1 %vm732_vm3, %v1553_v19  ;;  %v2503_v19 = vld [vmem:[%s3089_s8 + $0x40] ss:$8 sps:$4 sm:$0xff]  }
 0x65c   : > { %1890 = vmatprep.mubr.bf16.mxu1 %v2580_v22  ;;  %v2486_v22 = vld [vmem:[%s3085_s4 + $0x38] sm:$0xff]   ;;  %1859 = vmatpush1.bf16.msra.mxu1 %v2494_v9 }
 0x65d   : > { %2417 = vmatpush3.bf16.msra.mxu0 %v2486_v22  ;;  %1860 = vmatprep.subr.bf16.mxu1 %v2499_v11  ;;  %v2521_v22 = vld [vmem:[%s3091_s10 + $0x30] sm:$0xff]  }
 0x65e   : > { %2418 = vmatprep.subr.bf16.mxu0 %v2579_v3 }
 0x660   : > { %1861 = vmatpush1.bf16.msra.mxu1 %v2497_v12 }
 0x661   : > { %2419 = vmatpush3.bf16.msra.mxu0 %v2487_v33  ;;  %1862 = vmatprep.subr.bf16.mxu1 %v2502_v17  ;;  %v2522_v33 = vld [vmem:[%s3091_s10 + $0x68] sm:$0xff]  }
 0x662   : > { %2420 = vmatprep.subr.bf16.mxu0 %v2579_v3 }
 0x664   : > { %1863 = vmatpush1.bf16.msra.mxu1 %v2500_v18 }
 0x665   : > { %2421 = vmatpush3.bf16.msra.mxu0 %v2488_v34  ;;  %v2523_v34 = vld [vmem:[%s3091_s10 + $0x28] sm:$0xff]  }
 0x666   : > { %2422 = vmatprep.subr.bf16.mxu0 %v2579_v3 }
 0x669   : > { %2423 = vmatpush3.bf16.msra.mxu0 %v2489_v36  ;;  %v2525_v36 = vld [vmem:[%s3091_s10 + $0x20] sm:$0xff]  }
 0x66a   : > { %2424 = vmatprep.subr.bf16.mxu0 %v2579_v3 }
 0x66d   : > { %2425 = vmatpush3.bf16.msra.mxu0 %v2490_v40  ;;  %v2529_v40 = vld [vmem:[%s3091_s10 + $0x10] sm:$0xff]  }
 0x66e   : > { %2426 = vmatprep.subr.bf16.mxu0 %v2579_v3 }
 0x671   : > { %2427 = vmatpush3.bf16.msra.mxu0 %v2491_v41 }
 0x672   : > { %2428 = vmatprep.subr.bf16.mxu0 %v2579_v3 }
 0x675   : > { %2429 = vmatpush3.bf16.msra.mxu0 %v2492_v45  ;;  %v2191_v45 = vld [vmem:[%s3087_s6] ss:$0 sm:$0xff] }
 0x676   : > { %2430 = vmatprep.subr.bf16.mxu0 %v2579_v3 }
 0x679   : > { %2431 = vmatpush3.bf16.msra.mxu0 %v2493_v47  ;;  %v2192_v47 = vld [vmem:[%s3088_s7] ss:$0 sm:$0xff] }
 0x6d6   : > { %v900_v20 = vpop.f32.mrf.mxu1 }
 0x6d7   : > { %907 = vrot.lane.b32.xlu1 %v900_v20, %s2587_s28  ;;  %v2505_v20 = vld [vmem:[%s3089_s8 + $0x44] ss:$8 sps:$4 sm:$0xff]  }
 0x6d8   : > { %v2342_v21 = vpop.f32.mrf.mxu1  ;;  %1864 = vmatprep.subr.bf16.mxu1 %v2505_v20 }
 0x6d9   : > { %v2508_v21 = vld [vmem:[%s3089_s8 + $0x34] ss:$8 sps:$4 sm:$0xff]   ;;  %1865 = vmatpush1.bf16.msra.mxu1 %v2503_v19 }
 0x6da   : > { %v903_v23 = vpop.f32.mrf.mxu1  ;;  %1866 = vmatprep.subr.bf16.mxu1 %v2508_v21 }
 0x6db   : > { %v2506_v23 = vld [vmem:[%s3089_s8 + $0x30] ss:$8 sps:$4 sm:$0xff]  }
 0x6dc   : > { %v2343_v24 = vpop.f32.mrf.mxu1 }
 0x6dd   : > { %v2511_v24 = vld [vmem:[%s3089_s8 + $0x24] ss:$8 sps:$4 sm:$0xff]   ;;  %1867 = vmatpush1.bf16.msra.mxu1 %v2506_v23 }
 0x6de   : > { %v1016_v25 = vpop.f32.mrf.mxu1  ;;  %1868 = vmatprep.subr.bf16.mxu1 %v2511_v24 }
 0x6df   : > { %1023 = vrot.lane.b32.xlu1 %v1016_v25, %s2586_s27  ;;  %v2509_v25 = vld [vmem:[%s3089_s8 + $0x20] ss:$8 sps:$4 sm:$0xff]  }
 0x6e0   : > { %v2354_v26 = vpop.f32.mrf.mxu1 }
 0x6e1   : > { %v2514_v26 = vld [vmem:[%s3089_s8 + $0x14] ss:$8 sps:$4 sm:$0xff]   ;;  %1869 = vmatpush1.bf16.msra.mxu1 %v2509_v25 }
 0x6e2   : > { %v1019_v27 = vpop.f32.mrf.mxu1  ;;  %1870 = vmatprep.subr.bf16.mxu1 %v2514_v26 }
 0x6e3   : > { %v2512_v27 = vld [vmem:[%s3089_s8 + $0x10] ss:$8 sps:$4 sm:$0xff]  }
 0x6e4   : > { %v2355_v28 = vpop.f32.mrf.mxu1 }
 0x6e5   : > { %v2517_v28 = vld [vmem:[%s3089_s8 + $0x4] ss:$8 sps:$4 sm:$0xff]   ;;  %1871 = vmatpush1.bf16.msra.mxu1 %v2512_v27 }
 0x6e6   : > { %v1132_v29 = vpop.f32.mrf.mxu1  ;;  %1872 = vmatprep.subr.bf16.mxu1 %v2517_v28 }
 0x6e7   : > { %1139 = vrot.lane.b32.xlu1 %v1132_v29, %s2585_s25  ;;  %v2515_v29 = vld [vmem:[%s3089_s8] ss:$8 sps:$4 sm:$0xff]  }
 0x6e8   : > { %v2366_v30 = vpop.f32.mrf.mxu1 }
 0x6e9   : > { %1873 = vmatpush1.bf16.msra.mxu1 %v2515_v29  ;;  %v2518_v30 = vld [vmem:[%s3091_s10 + $0x78] sm:$0xff]  }
 0x6ea   : > { %v1135_v31 = vpop.f32.mrf.mxu1  ;;  %2278 = vmatprep.subr.bf16.mxu0 %v2518_v30 }
 0x6eb   : > { %v2519_v31 = vld [vmem:[%s3091_s10 + $0x38] sm:$0xff]  }
 0x6ec   : > { %v2367_v32 = vpop.f32.mrf.mxu1 }
 0x6ed   : > { %v2520_v32 = vld [vmem:[%s3091_s10 + $0x70] sm:$0xff]  }
 0x701   : > { %v1248_v35 = vpop.f32.mrf.mxu1 }
 0x702   : > { %1255 = vrot.lane.b32.xlu0 %v1248_v35, %s2584_s24  ;;  %v2524_v35 = vld [vmem:[%s3091_s10 + $0x60] sm:$0xff]  }
 0x703   : > { %v2378_v37 = vpop.f32.mrf.mxu1 }
 0x704   : > { %v2526_v37 = vld [vmem:[%s3091_s10 + $0x58] sm:$0xff]  }
 0x705   : > { %v1251_v38 = vpop.f32.mrf.mxu1 }
 0x706   : > { %v2527_v38 = vld [vmem:[%s3091_s10 + $0x18] sm:$0xff]  }
 0x707   : > { %v2379_v39 = vpop.f32.mrf.mxu1 }
 0x708   : > { %v2528_v39 = vld [vmem:[%s3091_s10 + $0x50] sm:$0xff]  }
 0x70b   : > { %v1364_v42 = vpop.f32.mrf.mxu1 }
 0x70c   : > { %1371 = vrot.lane.b32.xlu1 %v1364_v42, %s2583_s20  ;;  %s408_s20 = scalar_lea.vmem %s3093_s12, %s2138_s23 }
 0x70d   : > { %v2390_v43 = vpop.f32.mrf.mxu1 }
 0x70f   : > { %v1367_v44 = vpop.f32.mrf.mxu1 }
 0x711   : > { %v2391_v46 = vpop.f32.mrf.mxu1 }
 0x713   : > { %v1480_v48 = vpop.f32.mrf.mxu1 }
 0x714   : > { %1487 = vrot.lane.b32.xlu0 %v1480_v48, %s2588_s29 }
 0x715   : > { %v2402_v49 = vpop.f32.mrf.mxu1 }
 0x717   : > { %v1483_v50 = vpop.f32.mrf.mxu1 }
 0x719   : > { %v2403_v51 = vpop.f32.mrf.mxu1 }
 0x71a   : > { %v2530_v51 = vld [vmem:[%s3091_s10 + $0x48] sm:$0xff]  }
 0x71b   : > { %v1596_v53 = vpop.f32.mrf.mxu1 }
 0x71c   : > { %1603 = vrot.lane.b32.xlu1 %v1596_v53, %s2582_s19  ;;  %v2531_v53 = vld [vmem:[%s3091_s10 + $0x8] sm:$0xff]  }
 0x71d   : > { %v2414_v52 = vpop.f32.mrf.mxu1 }
 0x71e   : > { %v2532_v52 = vld [vmem:[%s3091_s10 + $0x40] sm:$0xff]  }
 0x71f   : > { %v1599_v54 = vpop.f32.mrf.mxu1 }
 0x720   : > { %v2533_v54 = vld [vmem:[%s3091_s10] sm:$0xff]  }
 0x721   : > { %v2415_v55 = vpop.f32.mrf.mxu1 }
 0x722   : > { %v1768_v55 = vlaneseq }
 0x749   : > { %v908_v56 = vpop.permute.xlu1 %907 }
 0x74a   : > { %911 = vst.msk [vmem:[#allocation2] sm:$0xff] %vm910_vm4, %v908_v56  ;;  %v1769_v56 = vshrl.u32 %v1768_v55, 7 }
 0x751   : > { %v1024_v57 = vpop.permute.xlu1 %1023 }
 0x752   : > { %1027 = vst.msk [vmem:[#allocation2] sm:$0xff] %vm1026_vm5, %v1024_v57  ;;  %v1770_v57 = vsub.s32 0, %v1769_v56 }
 0x759   : > { %v1140_v3 = vpop.permute.xlu1 %1139 }
 0x75a   : > { %1143 = vst.msk [vmem:[#allocation2] sm:$0xff] %vm1142_vm6, %v1140_v3  ;;  %v1766_v3 = vld [vmem:[%s3090_s9] sm:$0x3] }
 0x774   : > { %v1256_v58 = vpop.permute.xlu0 %1255 }
 0x775   : > { %1259 = vst.msk [vmem:[#allocation2] sm:$0xff] %vm1258_vm7, %v1256_v58  ;;  %v1774_v58 = vsub.s32 1, %v1769_v56 }
 0x77e   : > { %v1372_v59 = vpop.permute.xlu1 %1371 }
 0x77f   : > { %1375 = vst.msk [vmem:[#allocation2] sm:$0xff] %vm1374_vm8, %v1372_v59  ;;  %v1771_v59 = vrot.slane %v1766_v3, %v1770_v57 }
 0x786   : > { %v1488_v60 = vpop.permute.xlu0 %1487 }
 0x787   : > { %1491 = vst.msk [vmem:[#allocation2] sm:$0xff] %vm1490_vm9, %v1488_v60  ;;  %v1775_v60 = vrot.slane %v1766_v3, %v1774_v58 }
 0x78e   : > { %v1604_v61 = vpop.permute.xlu1 %1603 }
 0x78f   : > { %1607 = vst.msk [vmem:[#allocation2] sm:$0xff] %vm1606_vm10, %v1604_v61 }
 0x796   : > { %v1608_v62 = vld [vmem:[#allocation2] sm:$0xff] }
 0x797   : > { %v1609_v63 = vpack.c.bf16 %v1608_v62, %v1608_v62 }
 0x799   : > { %2433 = vmatmul.mubr.bf16.vlgmr.msra.gmra.mxu0 %v1609_v63 }
 0x79a   : > { %2279 = vmatpush3.bf16.msra.mxu0 %v2519_v31 }
 0x79b   : > { %2280 = vmatprep.subr.bf16.mxu0 %v2520_v32 }
 0x79e   : > { %2281 = vmatpush3.bf16.msra.mxu0 %v2521_v22 }
 0x79f   : > { %2282 = vmatprep.subr.bf16.mxu0 %v2522_v33 }
 0x7a2   : > { %2283 = vmatpush3.bf16.msra.mxu0 %v2523_v34 }
 0x7a3   : > { %2284 = vmatprep.subr.bf16.mxu0 %v2524_v35 }
 0x7a6   : > { %2285 = vmatpush3.bf16.msra.mxu0 %v2525_v36 }
 0x7a7   : > { %2286 = vmatprep.subr.bf16.mxu0 %v2526_v37 }
 0x7aa   : > { %2287 = vmatpush3.bf16.msra.mxu0 %v2527_v38 }
 0x7ab   : > { %2288 = vmatprep.subr.bf16.mxu0 %v2528_v39 }
 0x7ae   : > { %2289 = vmatpush3.bf16.msra.mxu0 %v2529_v40 }
 0x7af   : > { %2290 = vmatprep.subr.bf16.mxu0 %v2530_v51 }
 0x7b2   : > { %2291 = vmatpush3.bf16.msra.mxu0 %v2531_v53 }
 0x7b3   : > { %2292 = vmatprep.subr.bf16.mxu0 %v2532_v52 }
 0x7b6   : > { %2293 = vmatpush3.bf16.msra.mxu0 %v2533_v54 }
 0x859   : > { %v1715_v1 = vpop.f32.mrf.mxu0 }
 0x85a   : > { %v1716_v2 = vadd.f32 %v2182_v0, %v1715_v1 }
 0x85b   : > { %v2434_v4 = vpop.f32.mrf.mxu0 }
 0x85c   : > { %v2960_v6 = vadd.f32 %v2570_v5, %v1716_v2 }
 0x85d   : > { %v1718_v7 = vpop.f32.mrf.mxu0 }
 0x85e   : > { %1724 = vadd.xlane.f32.xlu0 %v2960_v6 }
 0x85f   : > { %v2435_v8 = vpop.f32.mrf.mxu0 }
 0x8e7   : > { %v1725_v13 = vpop.xlane.xlu0 %1724 }
 0x8e8   : > { %v1726_v14 = vmul.f32 0.0078125, %v1725_v13 }
 0x8ea   : > { %v1727_v15 = vsub.f32 %v2960_v6, %v1726_v14 }
 0x8ec   : > { %v1728_v16 = vmul.f32 %v1727_v15, %v1727_v15 }
 0x8ee   : > { %1729 = vadd.xlane.f32.xlu1 %v1728_v16 }
 0x977   : > { %v1730_v41 = vpop.xlane.xlu1 %1729 }
 0x978   : > { %v1731_v42 = vmul.f32 0.0078125, %v1730_v41 }
 0x97a   : > { %v1732_v43 = vadd.f32 1e-05, %v1731_v42 }
 0x97c   : > { %2568 = vrsqrt.f32 %v1732_v43 }
 0x989   : > { %v2569_v44 = vpop.eup %2568 }
 0x98a   : > { %v1734_v46 = vmul.f32 %v2569_v44, %v1727_v15 }
 0x98c   : > { %v1741_v48 = vmul.f32 %v2191_v45, %v1734_v46 }
 0x98e   : > { %v1748_v49 = vadd.f32 %v2192_v47, %v1741_v48 }
 0x990   : > { %v1749_v50 = vpack.c.bf16 %v1748_v49, %v1748_v49 }
 0x992   : > { %1891 = vmatmul.mubr.bf16.vlgmr.msra.gmra.mxu1 %v1749_v50 }
 0xa52   : > { %v1892_v61 = vpop.f32.mrf.mxu1 }
 0xa53   : > { %v1893_v62 = vadd.f32 %v1892_v61, %v1771_v59 }
 0xa54   : > { %v1894_v63 = vpop.f32.mrf.mxu1 }
 0xa55   : > { %v1895_v0 = vadd.f32 %v1894_v63, %v1775_v60  ;;  %v1899_v1 = vmax.f32 %v1893_v62, 0.0 }
 0xa56   : > { %v1896_v2 = vpop.f32.mrf.mxu1 }
 0xa57   : > { %v1900_v4 = vmax.f32 %v1895_v0, 0.0  ;;  %v1901_v8 = vpack.c.bf16 %v1899_v1, %v1899_v1 }
 0xa58   : > { %v1897_v5 = vpop.f32.mrf.mxu1 }
 0xa59   : > { %v1902_v7 = vpack.c.bf16 %v1900_v4, %v1900_v4 }
 0xa5b   : > { %2070 = vmatprep.mubr.bf16.mxu0 %v1902_v7 }
 0xa5c   : > { %2071 = vmatmul.mubr.bf16.vlgmr.msra.gmra.mxu0 %v1901_v8 }
 0xb1c   : > { %v2294_v9 = vpop.f32.mrf.mxu0 }
 0xb1e   : > { %v2295_v11 = vpop.f32.mrf.mxu0 }
 0xb1f   : > { %v2296_v12 = vadd.f32 %v2295_v11, %v2294_v9 }
 0xb20   : > { %v2297_v13 = vpop.f32.mrf.mxu0 }
 0xb21   : > { %v2073_v14 = vadd.f32 %v2296_v12, %v2209_v10 }
 0xb22   : > { %v2298_v15 = vpop.f32.mrf.mxu0 }
 0xb23   : > { %v2078_v16 = vadd.f32 %v2073_v14, %v2960_v6 }
 0xb25   : > { %2079 = vst [vmem:[%s408_s20] sm:$0xff] %v2078_v16 }
 0xb26 PF: > { %s22_s21 = sadd.s32 1, %s2577_s21  }
 0xb27   : > { %p19_p4 = scmp.ge.s32.totalorder %s22_s21, 4  }
 0xb29   :  { %21 = sbr.rel (!%p19_p4) target bundleno = 1 (0x1), region = 98 }

// kernel: transformer_mapper_seq_forward.2
= control target key start
LH: loop header
LB: loop body
LE: loop exit
PB: predicated region body
PF: predicated region fallthrough
CT: control target
= control target key end

     0   :  { %17 = vsyncpa [#allocation4], 0  ;;  %s3189_s0 = inlined_call_operand.vmem [shape: f32[2,8,128], index: 0, kind: input, shape index: {}, may-alias: {0,12}]   ;;  %s3190_s1 = inlined_call_operand.vmem [shape: f32[1,128], index: 1, kind: input, shape index: {}]   ;;  %s3191_s2 = inlined_call_operand.vmem [shape: f32[1,128], index: 2, kind: input, shape index: {}]   ;;  %s3192_s3 = inlined_call_operand.hbm [shape: bf16[128,384], index: 3, kind: input, shape index: {}]   ;;  %s3193_s4 = inlined_call_operand.vmem [shape: bf16[128,128], index: 4, kind: input, shape index: {}]   ;;  %s3194_s5 = inlined_call_operand.vmem [shape: f32[1,128], index: 5, kind: input, shape index: {}]   ;;  %s3195_s6 = inlined_call_operand.vmem [shape: f32[1,128], index: 6, kind: input, shape index: {}]   ;;  %s3196_s7 = inlined_call_operand.vmem [shape: f32[1,128], index: 7, kind: input, shape index: {}]   ;;  %s3197_s8 = inlined_call_operand.hbm [shape: bf16[128,256], index: 8, kind: input, shape index: {}]   ;;  %s3198_s9 = inlined_call_operand.vmem [shape: f32[1,256], index: 9, kind: input, shape index: {}]   ;;  %s3199_s10 = inlined_call_operand.hbm [shape: bf16[256,128], index: 10, kind: input, shape index: {}]   ;;  %s3200_s11 = inlined_call_operand.vmem [shape: f32[1,128], index: 11, kind: input, shape index: {}]   ;;  %s3201_s12 = inlined_call_operand.vmem [shape: f32[2,8,128], index: 12, kind: output, shape index: {}, may-alias: {0,12}]  }
   0x1   :  { %18 = vsyncpa [#allocation6], 0  ;;  %s2867_s21 = smov 0  }
   0x2 LB: > { %s2783_s22 = smov [#allocation5]   ;;  %s2873_s24 = sadd.s32 4294967295, %s2781_s21   ;;  %s2781_s21 = sphi %s2867_s21, %s24_s21  }
   0x3   : > { %s355_s23 = sshll.u32 %s2783_s22, 4  ;;  %p2210_p0 = scmp.ge.s32.totalorder %s2781_s21, 1  ;;  %s356_s23 = int_to_ptr.vmem [resolvable:$true] %s355_s23 }
   0x4   : > { %p312_p1 = scmp.lt.s32.totalorder %s2781_s21, 3  ;;  %p2539_p2 = scmp.eq.s32.totalorder %s2873_s24, 0 }
   0x5   : > { %s2784_s26 = smov [#allocation3]   ;;  %s2785_s29 = smov [#allocation7]  }
   0x6   : > { %p2878_p3 = pnand %p2210_p0, %p312_p1  ;;  %s330_s27 = sshll.u32 %s2784_s26, 4  ;;  %s2884_s27 = int_to_ptr.vmem [resolvable:$true] %s330_s27 }
   0x7   : > { %s2892_s30 = sshll.u32 %s2785_s29, 4  ;;  %s2700_s13 = scalar_lea.vmem %s356_s23, 2048  ;;  %s372_s30 = int_to_ptr.vmem [resolvable:$true] %s2892_s30 }
   0x8   : > { %p2529_p4 = pneg %p2878_p3  ;;  %p2701_p7 = scmp.ne.s32.totalorder %s356_s23, %s2700_s13 }
   0x9   : > { %p2708_p10 = scmp.lt.s32.totalorder %s356_s23, %s356_s23  ;;  %p2709_p11 = scmp.lt.s32.totalorder %s2700_s13, %s2700_s13 }
   0xa   : > { %p2888_p5 = pnand %p2539_p2, %p2529_p4 }
   0xb   : > { %p2710_p12 = por %p2709_p11, %p2708_p10 }
   0xc   : > { %p2691_p6 = pneg %p2888_p5 }
   0xe   : > { %p2703_p8 = pnand %p2701_p7, %p2691_p6 }
  0x10   : > { %p2704_p9 = pneg %p2703_p8 }
  0x12   : > { %p2711_p13 = pnand %p2710_p12, %p2704_p9 }
  0x14   : > { %2714 = shalt.err (!%p2711_p13)
}
  0x15   : > { %s2786_s14 = smov 128   ;;  %s2787_s15 = smov 8  }
  0x16   : > { %2535 = dma.hbm_to_vmem [thread:$0]  (!%p2888_p5), %s3197_s8, 2048, %s356_s23, [#allocation6], %s2786_s14, %s2786_s14, %s2787_s15  }
  0x17   : > { %s2726_s18 = scalar_lea.vmem %s2884_s27, 3072  ;;  %p2734_p7 = scmp.lt.s32.totalorder %s2884_s27, %s2884_s27 }
  0x18   : > { %p2727_p0 = scmp.ne.s32.totalorder %s2884_s27, %s2726_s18  ;;  %p2735_p8 = scmp.lt.s32.totalorder %s2726_s18, %s2726_s18 }
  0x1a   : > { %p2729_p1 = pnand %p2727_p0, %p2691_p6  ;;  %p2736_p9 = por %p2735_p8, %p2734_p7 }
  0x1c   : > { %p2730_p4 = pneg %p2729_p1 }
  0x1e   : > { %p2737_p10 = pnand %p2736_p9, %p2730_p4 }
  0x20   : > { %2740 = shalt.err (!%p2737_p10)
}
  0x21   : > { %s2788_s19 = smov 192   ;;  %s2789_s20 = smov 12  }
  0x22   : > { %2532 = dma.hbm_to_vmem [thread:$0]  (!%p2888_p5), %s3192_s3, 3072, %s2884_s27, [#allocation4], %s2788_s19, %s2788_s19, %s2789_s20  }
  0x23   : > { %s2752_s26 = scalar_lea.vmem %s372_s30, 2048  ;;  %p2760_p0 = scmp.lt.s32.totalorder %s372_s30, %s372_s30 }
  0x24   : > { %p2753_p11 = scmp.ne.s32.totalorder %s372_s30, %s2752_s26  ;;  %p2761_p1 = scmp.lt.s32.totalorder %s2752_s26, %s2752_s26 }
  0x26   : > { %p2755_p12 = pnand %p2753_p11, %p2691_p6  ;;  %p2762_p4 = por %p2761_p1, %p2760_p0 }
  0x28   : > { %p2756_p13 = pneg %p2755_p12 }
  0x2a   : > { %p2763_p7 = pnand %p2762_p4, %p2756_p13 }
  0x2c   : > { %2766 = shalt.err (!%p2763_p7)
}
  0x2d   : > { %s2790_s29 = smov 64   ;;  %s2791_s13 = smov 4  }
  0x2e   : > { %2538 = dma.hbm_to_vmem [thread:$0]  (!%p2888_p5), %s3199_s10, 2048, %s372_s30, [#allocation6], %s2790_s29, %s2790_s29, %s2791_s13  }
  0x2f   : > { %397 = sbr.rel (%p2878_p3) target bundleno = 2900 (0xb54), region = 68 }
  0x34   : > { %2772 = dma.done.wait (%p2539_p2), [#allocation4], 3072  }
  0x35   : > { %2774 = vsyncadd (%p2539_p2), [#allocation4], 4294964224 }
  0x36   : > { %2776 = dma.done.wait (%p2539_p2), [#allocation6], 4096  }
  0x37   : > { %2778 = vsyncadd (%p2539_p2), [#allocation6], 4294963200  ;;  %p445_p6 = scmp.lt.s32.totalorder %s2873_s24, 1  ;;  %v2572_v1 = vld [vmem:[#allocation3 + $0xac] ss:$12 sps:$4 sm:$0xff]   ;;  %v2792_v3 = vmov 0.0  }
  0x38   : > { %v2574_v2 = vld [vmem:[#allocation3 + $0xa8] ss:$12 sps:$4 sm:$0xff]   ;;  %2381 = vmatprep.subr.bf16.mxu1 %v2792_v3  ;;  %v2575_v4 = vld [vmem:[#allocation3 + $0xb0] ss:$12 sps:$4 sm:$0xff]   ;;  %644 = vmatprep.subr.bf16.mxu0 %v2572_v1  ;;  %v2579_v7 = vld [vmem:[#allocation3 + $0x98] ss:$12 sps:$4 sm:$0xff]  }
  0x39   : > { %s3205_s24 = smov (!%p445_p6, %s2873_s24), 1  ;;  %v2576_v5 = vld [vmem:[#allocation3 + $0x94] ss:$12 sps:$4 sm:$0xff]   ;;  %v2578_v6 = vld [vmem:[#allocation3 + $0x90] ss:$12 sps:$4 sm:$0xff]   ;;  %645 = vmatpush1.bf16.msra.mxu0 %v2574_v2  ;;  %2382 = vmatpush3.bf16.msra.mxu1 %v2575_v4  ;;  %v2793_v22 = vmov 0  }
  0x3a   : > { %s2219_s25 = sshll.u32 %s3205_s24, 3  ;;  %646 = vmatprep.subr.bf16.mxu0 %v2576_v5  ;;  %2383 = vmatprep.subr.bf16.mxu1 %v2792_v3  ;;  %v2580_v12 = vld [vmem:[#allocation3 + $0x7c] ss:$12 sps:$4 sm:$0xff]   ;;  %v2582_v13 = vld [vmem:[#allocation3 + $0x78] ss:$12 sps:$4 sm:$0xff]   ;;  %vm2794_vm0 = vmmov 0  }
  0x3b   : > { %s2946_s30 = scalar_lea.vmem %s3189_s0, %s2219_s25  ;;  %v2583_v14 = vld [vmem:[#allocation3 + $0x80] ss:$12 sps:$4 sm:$0xff]   ;;  %v2584_v15 = vld [vmem:[#allocation3 + $0x64] ss:$12 sps:$4 sm:$0xff]   ;;  %v2587_v17 = vld [vmem:[#allocation3 + $0x68] ss:$12 sps:$4 sm:$0xff]   ;;  %676 = vmatprep.mubr.bf16.mxu0 %v2793_v22  ;;  %2397 = vmatprep.mubr.msk.bf16.mxu1 %vm2794_vm0, %v2792_v3  ;;  %s452_s28 = scalar_lea.vmem %s3201_s12, %s2219_s25 }
  0x3c   : > { %v454_v0 = vld [vmem:[%s2946_s30] sm:$0xff]  ;;  %v2586_v16 = vld [vmem:[#allocation3 + $0x60] ss:$12 sps:$4 sm:$0xff]   ;;  %v2590_v19 = vld [vmem:[#allocation3 + $0x48] ss:$12 sps:$4 sm:$0xff]   ;;  %vm729_vm1 = vcmask 130048  }
  0x3d   : > { %457 = vadd.xlane.f32.xlu0 %v454_v0  ;;  %647 = vmatpush1.bf16.msra.mxu0 %v2578_v6  ;;  %v2588_v18 = vld [vmem:[#allocation3 + $0x4c] ss:$12 sps:$4 sm:$0xff]   ;;  %v2591_v20 = vld [vmem:[#allocation3 + $0x50] ss:$12 sps:$4 sm:$0xff]   ;;  %v2592_v21 = vld [vmem:[#allocation3 + $0x34] ss:$12 sps:$4 sm:$0xff]  }
  0x3e   : > { %2384 = vmatpush3.bf16.msra.mxu1 %v2579_v7  ;;  %648 = vmatprep.subr.bf16.mxu0 %v2580_v12  ;;  %v2594_v23 = vld [vmem:[#allocation3 + $0x30] ss:$12 sps:$4 sm:$0xff]   ;;  %v2595_v24 = vld [vmem:[#allocation3 + $0x38] ss:$12 sps:$4 sm:$0xff]   ;;  %v2599_v27 = vld [vmem:[#allocation3 + $0x20] ss:$12 sps:$4 sm:$0xff]  }
  0x3f   : > { %2385 = vmatprep.subr.bf16.mxu1 %v2792_v3  ;;  %v2596_v25 = vld [vmem:[#allocation3 + $0x1c] ss:$12 sps:$4 sm:$0xff]   ;;  %v2598_v26 = vld [vmem:[#allocation3 + $0x18] ss:$12 sps:$4 sm:$0xff]   ;;  %v2602_v29 = vld [vmem:[#allocation3] ss:$12 sps:$4 sm:$0xff]  }
  0x40   : > { %v2600_v28 = vld [vmem:[#allocation3 + $0x4] ss:$12 sps:$4 sm:$0xff]   ;;  %v2603_v30 = vld [vmem:[#allocation3 + $0x8] ss:$12 sps:$4 sm:$0xff]   ;;  %v2221_v35 = vld [vmem:[%s3190_s1] ss:$0 sm:$0xff] }
  0x41   : > { %649 = vmatpush1.bf16.msra.mxu0 %v2582_v13  ;;  %v2222_v37 = vld [vmem:[%s3191_s2] ss:$0 sm:$0xff]  ;;  %s2795_s20 = smov 112   ;;  %s2796_s22 = smov 80   ;;  %vm792_vm2 = vcmask 1043456   ;;  %vm776_vm3 = vcmask 64512  }
  0x42   : > { %2386 = vmatpush3.bf16.msra.mxu1 %v2583_v14  ;;  %650 = vmatprep.subr.bf16.mxu0 %v2584_v15  ;;  %s2797_s23 = smov 64   ;;  %s2798_s26 = smov 48   ;;  %vm954_vm4 = vcmask 261248   ;;  %vm1070_vm5 = vcmask 392448   ;;  %vm1186_vm6 = vcmask 523648   ;;  %vm1302_vm7 = vcmask 654848  }
  0x43   : > { %2387 = vmatprep.subr.bf16.mxu1 %v2792_v3  ;;  %s2799_s29 = smov 32   ;;  %s2800_s13 = smov 16   ;;  %vm1418_vm8 = vcmask 786048   ;;  %vm1534_vm9 = vcmask 917248   ;;  %vm1650_vm10 = vcmask 1048448  }
  0x44   : > { %s2801_s14 = smov 96  }
  0x45   : > { %651 = vmatpush1.bf16.msra.mxu0 %v2586_v16 }
  0x46   : > { %2388 = vmatpush3.bf16.msra.mxu1 %v2587_v17  ;;  %652 = vmatprep.subr.bf16.mxu0 %v2588_v18 }
  0x47   : > { %2389 = vmatprep.subr.bf16.mxu1 %v2792_v3 }
  0x49   : > { %653 = vmatpush1.bf16.msra.mxu0 %v2590_v19 }
  0x4a   : > { %2390 = vmatpush3.bf16.msra.mxu1 %v2591_v20  ;;  %654 = vmatprep.subr.bf16.mxu0 %v2592_v21 }
  0x4b   : > { %2391 = vmatprep.subr.bf16.mxu1 %v2792_v3 }
  0x4d   : > { %655 = vmatpush1.bf16.msra.mxu0 %v2594_v23 }
  0x4e   : > { %2392 = vmatpush3.bf16.msra.mxu1 %v2595_v24  ;;  %656 = vmatprep.subr.bf16.mxu0 %v2596_v25 }
  0x4f   : > { %2393 = vmatprep.subr.bf16.mxu1 %v2792_v3 }
  0x51   : > { %657 = vmatpush1.bf16.msra.mxu0 %v2598_v26 }
  0x52   : > { %2394 = vmatpush3.bf16.msra.mxu1 %v2599_v27  ;;  %658 = vmatprep.subr.bf16.mxu0 %v2600_v28 }
  0x53   : > { %2395 = vmatprep.subr.bf16.mxu1 %v2792_v3 }
  0x55   : > { %659 = vmatpush1.bf16.msra.mxu0 %v2602_v29 }
  0x56   : > { %2396 = vmatpush3.bf16.msra.mxu1 %v2603_v30  ;;  %2425 = vmatprep.subr.bf16.mxu0 %v2792_v3 }
  0x57   : > { %2401 = vmatprep.subr.bf16.mxu1 %v2792_v3 }
  0xc6   : > { %v458_v8 = vpop.xlane.xlu0 %457 }
  0xc7   : > { %v460_v9 = vmul.f32 0.0078125, %v458_v8 }
  0xc9   : > { %v461_v10 = vsub.f32 %v454_v0, %v460_v9 }
  0xcb   : > { %v462_v11 = vmul.f32 %v461_v10, %v461_v10 }
  0xcd   : > { %463 = vadd.xlane.f32.xlu0 %v462_v11 }
 0x156   : > { %v464_v31 = vpop.xlane.xlu0 %463 }
 0x157   : > { %v465_v32 = vmul.f32 0.0078125, %v464_v31 }
 0x159   : > { %v466_v33 = vadd.f32 1e-05, %v465_v32 }
 0x15b   : > { %2652 = vrsqrt.f32 %v466_v33 }
 0x168   : > { %v2653_v34 = vpop.eup %2652 }
 0x169   : > { %v468_v36 = vmul.f32 %v2653_v34, %v461_v10 }
 0x16b   : > { %v475_v38 = vmul.f32 %v2221_v35, %v468_v36 }
 0x16d   : > { %v482_v39 = vadd.f32 %v2222_v37, %v475_v38 }
 0x16f   : > { %v483_v40 = vpack.c.bf16 %v482_v39, %v482_v39 }
 0x171   : > { %677 = vmatmul.mubr.bf16.vlgmr.msra.gmra.mxu0 %v483_v40  ;;  %2398 = vmatmul.mubr.bf16.vlgmr.msra.gmra.mxu1 %v483_v40 }
 0x172   : > { %2403 = vmatprep.mubr.msk.bf16.mxu1 %vm2794_vm0, %v2792_v3  ;;  %2427 = vmatprep.mubr.msk.bf16.mxu0 %vm2794_vm0, %v2792_v3 }
 0x231   : > { %v678_v41 = vpop.f32.mrf.mxu0  ;;  %v719_v42 = vpop.f32.mrf.mxu1 }
 0x232   : > { %v725_v51 = vmul.f32 0.25, %v678_v41  ;;  %v2975_v52 = vpack.c.bf16 %v719_v42, %v719_v42 }
 0x233   : > { %v680_v43 = vpop.f32.mrf.mxu0  ;;  %v2399_v44 = vpop.f32.mrf.mxu1 }
 0x234   : > { %v727_v45 = vpack.c.bf16 %v680_v43, %v680_v43  ;;  %v726_v53 = vpack.c.bf16 %v725_v51, %v725_v51  ;;  %v794_v54 = vsel %vm792_vm2, %v2975_v52, 0 }
 0x235   : > { %v682_v46 = vpop.f32.mrf.mxu0  ;;  %v722_v47 = vpop.f32.mrf.mxu1 }
 0x236   : > { %841 = vrot.lane.b32.xlu0 %v727_v45, %s2795_s20  ;;  %v734_v48 = vsel %vm729_vm1, %v727_v45, 0 }
 0x237   : > { %v683_v49 = vpop.f32.mrf.mxu0  ;;  %v2400_v50 = vpop.f32.mrf.mxu1  ;;  %2402 = vmatpush3.bf16.xpose.msra.mxu1 %v734_v48 }
 0x238   : > { %2407 = vmatprep.subr.bf16.mxu1 %v2792_v3 }
 0x23a   : > { %1074 = vrot.lane.b32.xlu0 %v727_v45, %s2796_s22 }
 0x23e   : > { %1190 = vrot.lane.b32.xlu0 %v727_v45, %s2797_s23  ;;  %2404 = vmatmul.mubr.msk.bf16.vlgmr.msra.gmra.mxu1 %vm729_vm1, %v726_v53 }
 0x23f   : > { %2408 = vmatpush3.bf16.msra.mxu1 %v794_v54  ;;  %2409 = vmatprep.mubr.msk.bf16.mxu1 %vm2794_vm0, %v2792_v3 }
 0x240   : > { %2413 = vmatprep.subr.bf16.mxu1 %v2792_v3 }
 0x242   : > { %1306 = vrot.lane.b32.xlu0 %v727_v45, %s2798_s26 }
 0x246   : > { %1422 = vrot.lane.b32.xlu0 %v727_v45, %s2799_s29 }
 0x24a   : > { %1538 = vrot.lane.b32.xlu0 %v727_v45, %s2800_s13 }
 0x2a8   : > { %v842_v4 = vpop.permute.xlu0 %841 }
 0x2a9   : > { %v847_v13 = vsel %vm729_vm1, %v842_v4, 0 }
 0x2ac   : > { %v1075_v8 = vpop.permute.xlu0 %1074 }
 0x2ad   : > { %v1080_v11 = vsel %vm729_vm1, %v1075_v8, 0 }
 0x2b0   : > { %v1191_v14 = vpop.permute.xlu0 %1190 }
 0x2b1   : > { %v1196_v16 = vsel %vm729_vm1, %v1191_v14, 0 }
 0x2b4   : > { %v1307_v17 = vpop.permute.xlu0 %1306 }
 0x2b5   : > { %v1312_v19 = vsel %vm729_vm1, %v1307_v17, 0 }
 0x2b8   : > { %v1423_v20 = vpop.permute.xlu0 %1422 }
 0x2b9   : > { %v1428_v23 = vsel %vm729_vm1, %v1423_v20, 0 }
 0x2bc   : > { %v1539_v24 = vpop.permute.xlu0 %1538 }
 0x2bd   : > { %v1544_v26 = vsel %vm729_vm1, %v1539_v24, 0 }
 0x2fe   : > { %v770_v55 = vpop.f32.mrf.mxu1 }
 0x2ff   : > { %v777_v56 = vsel %vm776_vm3, %v770_v55, -inf }
 0x300   : > { %778 = vmax.xlane.f32.xlu1 %v777_v56  ;;  %v2405_v57 = vpop.f32.mrf.mxu1 }
 0x302   : > { %v773_v58 = vpop.f32.mrf.mxu1 }
 0x304   : > { %v2406_v59 = vpop.f32.mrf.mxu1 }
 0x389   : > { %v779_v60 = vpop.xlane.xlu1 %778 }
 0x38a   : > { %v780_v61 = vsub.f32 %v770_v55, %v779_v60 }
 0x38c   : > { %v781_v62 = vmul.f32 1.442695, %v780_v61 }
 0x38e   : > { %2654 = vpow2.f32 %v781_v62 }
 0x39b   : > { %v2655_v63 = vpop.eup %2654 }
 0x39c   : > { %v783_v0 = vsel %vm776_vm3, %v2655_v63, 0.0 }
 0x39d   : > { %784 = vadd.xlane.f32.xlu1 %v783_v0 }
 0x3ae   : > { %838 = vrot.lane.b32.xlu1 %v726_v53, %s2795_s20 }
 0x3b2   : > { %958 = vrot.lane.b32.xlu1 %v727_v45, %s2801_s14 }
 0x3b6   : > { %956 = vrot.lane.b32.xlu1 %v726_v53, %s2801_s14 }
 0x3ba   : > { %1072 = vrot.lane.b32.xlu1 %v726_v53, %s2796_s22 }
 0x3be   : > { %1188 = vrot.lane.b32.xlu1 %v726_v53, %s2797_s23 }
 0x3c2   : > { %1304 = vrot.lane.b32.xlu1 %v726_v53, %s2798_s26 }
 0x3c6   : > { %1420 = vrot.lane.b32.xlu1 %v726_v53, %s2799_s29 }
 0x3ca   : > { %1536 = vrot.lane.b32.xlu1 %v726_v53, %s2800_s13 }
 0x426   : > { %v785_v1 = vpop.xlane.xlu1 %784 }
 0x427   : > { %2656 = vrcp.f32 %v785_v1 }
 0x42a   : > { %v839_v2 = vpop.permute.xlu1 %838 }
 0x42e   : > { %v959_v5 = vpop.permute.xlu1 %958 }
 0x42f   : > { %v964_v6 = vsel %vm729_vm1, %v959_v5, 0 }
 0x430   : > { %2426 = vmatpush3.bf16.xpose.msra.mxu0 %v964_v6 }
 0x431   : > { %2437 = vmatprep.subr.bf16.mxu0 %v2792_v3 }
 0x432   : > { %v957_v10 = vpop.permute.xlu1 %956 }
 0x434   : > { %v2657_v7 = vpop.eup %2656 }
 0x435   : > { %v787_v9 = vmul.f32 %v2657_v7, %v2655_v63 }
 0x436   : > { %v1073_v15 = vpop.permute.xlu1 %1072 }
 0x437   : > { %2428 = vmatmul.mubr.msk.bf16.vlgmr.msra.gmra.mxu0 %vm729_vm1, %v957_v10  ;;  %v788_v12 = vpack.c.bf16 %v787_v9, %v787_v9 }
 0x438   : > { %2438 = vmatpush3.bf16.xpose.msra.mxu0 %v1080_v11  ;;  %2439 = vmatprep.mubr.msk.bf16.mxu0 %vm2794_vm0, %v2792_v3 }
 0x439   : > { %2410 = vmatmul.mubr.msk.bf16.vlgmr.msra.gmra.mxu1 %vm776_vm3, %v788_v12  ;;  %2449 = vmatprep.subr.bf16.mxu0 %v2792_v3 }
 0x43a   : > { %2414 = vmatpush3.bf16.xpose.msra.mxu1 %v847_v13  ;;  %2415 = vmatprep.mubr.msk.bf16.mxu1 %vm2794_vm0, %v2792_v3  ;;  %v1189_v18 = vpop.permute.xlu1 %1188 }
 0x43b   : > { %2419 = vmatprep.subr.bf16.mxu1 %v2792_v3 }
 0x43e   : > { %v1305_v21 = vpop.permute.xlu1 %1304 }
 0x43f   : > { %2440 = vmatmul.mubr.msk.bf16.vlgmr.msra.gmra.mxu0 %vm729_vm1, %v1073_v15 }
 0x440   : > { %2450 = vmatpush3.bf16.xpose.msra.mxu0 %v1196_v16  ;;  %2451 = vmatprep.mubr.msk.bf16.mxu0 %vm2794_vm0, %v2792_v3 }
 0x441   : > { %2416 = vmatmul.mubr.msk.bf16.vlgmr.msra.gmra.mxu1 %vm729_vm1, %v839_v2  ;;  %2461 = vmatprep.subr.bf16.mxu0 %v2792_v3 }
 0x442   : > { %2421 = vmatprep.mubr.msk.bf16.mxu1 %vm2794_vm0, %v2792_v3  ;;  %v1421_v25 = vpop.permute.xlu1 %1420 }
 0x446   : > { %v1537_v27 = vpop.permute.xlu1 %1536 }
 0x447   : > { %2452 = vmatmul.mubr.msk.bf16.vlgmr.msra.gmra.mxu0 %vm729_vm1, %v1189_v18 }
 0x448   : > { %2462 = vmatpush3.bf16.xpose.msra.mxu0 %v1312_v19  ;;  %2463 = vmatprep.mubr.msk.bf16.mxu0 %vm2794_vm0, %v2792_v3 }
 0x449   : > { %2473 = vmatprep.subr.bf16.mxu0 %v2792_v3 }
 0x44f   : > { %2464 = vmatmul.mubr.msk.bf16.vlgmr.msra.gmra.mxu0 %vm729_vm1, %v1305_v21 }
 0x450   : > { %2474 = vmatpush3.bf16.xpose.msra.mxu0 %v1428_v23  ;;  %2475 = vmatprep.mubr.msk.bf16.mxu0 %vm2794_vm0, %v2792_v3 }
 0x451   : > { %2485 = vmatprep.subr.bf16.mxu0 %v2792_v3 }
 0x457   : > { %2476 = vmatmul.mubr.msk.bf16.vlgmr.msra.gmra.mxu0 %vm729_vm1, %v1421_v25 }
 0x458   : > { %2486 = vmatpush3.bf16.xpose.msra.mxu0 %v1544_v26  ;;  %2487 = vmatprep.mubr.msk.bf16.mxu0 %vm2794_vm0, %v2792_v3 }
 0x459   : > { %2497 = vmatprep.subr.bf16.mxu0 %v2792_v3 }
 0x45f   : > { %2488 = vmatmul.mubr.msk.bf16.vlgmr.msra.gmra.mxu0 %vm729_vm1, %v1537_v27 }
 0x460   : > { %2513 = vmatprep.mubr.msk.bf16.mxu0 %vm2794_vm0, %v2792_v3 }
 0x4f7   : > { %v1000_v28 = vpop.f32.mrf.mxu0 }
 0x4f8   : > { %v1006_v29 = vsel %vm776_vm3, %v1000_v28, -inf }
 0x4f9   : > { %v830_v30 = vpop.f32.mrf.mxu1  ;;  %1007 = vmax.xlane.f32.xlu1 %v1006_v29  ;;  %v2429_v31 = vpop.f32.mrf.mxu0 }
 0x4fa   : > { %836 = vst.msk [vmem:[#allocation2] sm:$0xff] %vm729_vm1, %v830_v30 }
 0x4fb   : > { %v2411_v32 = vpop.f32.mrf.mxu1  ;;  %v1003_v33 = vpop.f32.mrf.mxu0 }
 0x4fd   : > { %v833_v34 = vpop.f32.mrf.mxu1  ;;  %v2430_v35 = vpop.f32.mrf.mxu0 }
 0x4ff   : > { %v2412_v36 = vpop.f32.mrf.mxu1  ;;  %v1116_v37 = vpop.f32.mrf.mxu0 }
 0x500   : > { %v1122_v45 = vsel %vm776_vm3, %v1116_v37, -inf }
 0x501   : > { %v883_v38 = vpop.f32.mrf.mxu1  ;;  %v2441_v39 = vpop.f32.mrf.mxu0 }
 0x502   : > { %v889_v40 = vsel %vm776_vm3, %v883_v38, -inf }
 0x503   : > { %890 = vmax.xlane.f32.xlu0 %v889_v40  ;;  %v2417_v41 = vpop.f32.mrf.mxu1  ;;  %v1119_v42 = vpop.f32.mrf.mxu0 }
 0x505   : > { %v886_v43 = vpop.f32.mrf.mxu1  ;;  %v2442_v44 = vpop.f32.mrf.mxu0 }
 0x507   : > { %v2418_v46 = vpop.f32.mrf.mxu1  ;;  %1123 = vmax.xlane.f32.xlu0 %v1122_v45  ;;  %v1232_v47 = vpop.f32.mrf.mxu0 }
 0x508   : > { %v1238_v49 = vsel %vm776_vm3, %v1232_v47, -inf }
 0x509   : > { %v2453_v48 = vpop.f32.mrf.mxu0 }
 0x50b   : > { %1239 = vmax.xlane.f32.xlu0 %v1238_v49  ;;  %v1235_v50 = vpop.f32.mrf.mxu0 }
 0x50d   : > { %v2454_v51 = vpop.f32.mrf.mxu0 }
 0x50f   : > { %v1348_v53 = vpop.f32.mrf.mxu0 }
 0x510   : > { %v1354_v54 = vsel %vm776_vm3, %v1348_v53, -inf }
 0x511   : > { %1355 = vmax.xlane.f32.xlu0 %v1354_v54  ;;  %v2465_v55 = vpop.f32.mrf.mxu0 }
 0x513   : > { %v1351_v56 = vpop.f32.mrf.mxu0 }
 0x515   : > { %v2466_v57 = vpop.f32.mrf.mxu0 }
 0x517   : > { %v1464_v58 = vpop.f32.mrf.mxu0 }
 0x518   : > { %v1470_v59 = vsel %vm776_vm3, %v1464_v58, -inf }
 0x519   : > { %1471 = vmax.xlane.f32.xlu1 %v1470_v59  ;;  %v2477_v60 = vpop.f32.mrf.mxu0 }
 0x51b   : > { %v1467_v61 = vpop.f32.mrf.mxu0 }
 0x51d   : > { %v2478_v62 = vpop.f32.mrf.mxu0 }
 0x51f   : > { %v1580_v63 = vpop.f32.mrf.mxu0 }
 0x520   : > { %v1586_v0 = vsel %vm776_vm3, %v1580_v63, -inf }
 0x521   : > { %1587 = vmax.xlane.f32.xlu0 %v1586_v0  ;;  %v2489_v1 = vpop.f32.mrf.mxu0 }
 0x523   : > { %v1583_v2 = vpop.f32.mrf.mxu0 }
 0x525   : > { %v2490_v4 = vpop.f32.mrf.mxu0 }
 0x582   : > { %v1008_v5 = vpop.xlane.xlu1 %1007 }
 0x583   : > { %v1009_v6 = vsub.f32 %v1000_v28, %v1008_v5 }
 0x585   : > { %v1010_v7 = vmul.f32 1.442695, %v1009_v6 }
 0x587   : > { %2658 = vpow2.f32 %v1010_v7 }
 0x58c   : > { %v891_v8 = vpop.xlane.xlu0 %890 }
 0x58d   : > { %v892_v9 = vsub.f32 %v883_v38, %v891_v8 }
 0x58f   : > { %v893_v12 = vmul.f32 1.442695, %v892_v9 }
 0x590   : > { %v1124_v10 = vpop.xlane.xlu0 %1123 }
 0x591   : > { %v1125_v11 = vsub.f32 %v1116_v37, %v1124_v10 }
 0x593   : > { %v1126_v13 = vmul.f32 1.442695, %v1125_v11 }
 0x594   : > { %v3044_v14 = vpop.eup %2658  ;;  %v1240_v15 = vpop.xlane.xlu0 %1239 }
 0x595   : > { %2660 = vpow2.f32 %v1126_v13  ;;  %v1241_v16 = vsub.f32 %v1232_v47, %v1240_v15  ;;  %v1012_v17 = vsel %vm776_vm3, %v3044_v14, 0.0 }
 0x596   : > { %1013 = vadd.xlane.f32.xlu0 %v1012_v17  ;;  %2662 = vpow2.f32 %v893_v12 }
 0x597   : > { %v1242_v18 = vmul.f32 1.442695, %v1241_v16 }
 0x599   : > { %2664 = vpow2.f32 %v1242_v18 }
 0x59a   : > { %v1356_v19 = vpop.xlane.xlu0 %1355 }
 0x59b   : > { %v1357_v20 = vsub.f32 %v1348_v53, %v1356_v19 }
 0x59d   : > { %v1358_v21 = vmul.f32 1.442695, %v1357_v20 }
 0x59f   : > { %2666 = vpow2.f32 %v1358_v21 }
 0x5a2   : > { %v3048_v23 = vpop.eup %2660  ;;  %v1472_v31 = vpop.xlane.xlu1 %1471 }
 0x5a3   : > { %v1128_v24 = vsel %vm776_vm3, %v3048_v23, 0.0  ;;  %v2663_v25 = vpop.eup %2662  ;;  %v1473_v32 = vsub.f32 %v1464_v58, %v1472_v31 }
 0x5a4   : > { %1129 = vadd.xlane.f32.xlu1 %v1128_v24  ;;  %v895_v27 = vsel %vm776_vm3, %v2663_v25, 0.0 }
 0x5a5   : > { %v1474_v33 = vmul.f32 1.442695, %v1473_v32 }
 0x5a6   : > { %v3052_v26 = vpop.eup %2664 }
 0x5a7   : > { %v1244_v28 = vsel %vm776_vm3, %v3052_v26, 0.0  ;;  %2668 = vpow2.f32 %v1474_v33  ;;  %v2605_v33 = vld [vmem:[%s3193_s4 + $0x30] sm:$0xff]  }
 0x5a8   : > { %896 = vadd.xlane.f32.xlu1 %v895_v27  ;;  %1245 = vadd.xlane.f32.xlu0 %v1244_v28 }
 0x5aa   : > { %v1588_v34 = vpop.xlane.xlu0 %1587 }
 0x5ab   : > { %v1589_v35 = vsub.f32 %v1580_v63, %v1588_v34  ;;  %v2606_v34 = vld [vmem:[%s3193_s4 + $0x28] sm:$0xff]  }
 0x5ac   : > { %v3057_v29 = vpop.eup %2666 }
 0x5ad   : > { %v1360_v30 = vsel %vm776_vm3, %v3057_v29, 0.0  ;;  %v1590_v36 = vmul.f32 1.442695, %v1589_v35 }
 0x5ae   : > { %1361 = vadd.xlane.f32.xlu0 %v1360_v30 }
 0x5af   : > { %2670 = vpow2.f32 %v1590_v36  ;;  %v2607_v36 = vld [vmem:[%s3193_s4 + $0x20] sm:$0xff]  }
 0x5b4   : > { %v3067_v37 = vpop.eup %2668 }
 0x5b5   : > { %v1476_v38 = vsel %vm776_vm3, %v3067_v37, 0.0 }
 0x5b9   : > { %902 = vrot.lane.b32.xlu1 %v2975_v52, %s2795_s20 }
 0x5bc   : > { %v3071_v39 = vpop.eup %2670 }
 0x5bd   : > { %v1592_v40 = vsel %vm776_vm3, %v3071_v39, 0.0 }
 0x5c4   : > { %1018 = vrot.lane.b32.xlu0 %v2975_v52, %s2801_s14 }
 0x5c8   : > { %1134 = vrot.lane.b32.xlu0 %v2975_v52, %s2796_s22 }
 0x5dd   : > { %1477 = vadd.xlane.f32.xlu1 %v1476_v38 }
 0x5e7   : > { %1593 = vadd.xlane.f32.xlu0 %v1592_v40  ;;  %v2608_v40 = vld [vmem:[%s3193_s4 + $0x18] sm:$0xff]  }
 0x5ee   : > { %1250 = vrot.lane.b32.xlu1 %v2975_v52, %s2797_s23 }
 0x5f2   : > { %1482 = vrot.lane.b32.xlu1 %v2975_v52, %s2799_s29 }
 0x5f6   : > { %1598 = vrot.lane.b32.xlu1 %v2975_v52, %s2800_s13 }
 0x5fd   : > { %1366 = vrot.lane.b32.xlu0 %v2975_v52, %s2798_s26 }
 0x61f   : > { %v1014_v43 = vpop.xlane.xlu0 %1013 }
 0x62d   : > { %v1130_v41 = vpop.xlane.xlu1 %1129 }
 0x631   : > { %v897_v42 = vpop.xlane.xlu1 %896  ;;  %v1246_v46 = vpop.xlane.xlu0 %1245 }
 0x632   : > { %2672 = vrcp.f32 %v897_v42 }
 0x633   : > { %2674 = vrcp.f32 %v1014_v43 }
 0x634   : > { %2676 = vrcp.f32 %v1130_v41  ;;  %v2609_v41 = vld [vmem:[%s3193_s4 + $0x10] sm:$0xff]  }
 0x635   : > { %v903_v44 = vpop.permute.xlu1 %902  ;;  %2678 = vrcp.f32 %v1246_v46 }
 0x636   : > { %v908_v45 = vsel %vm792_vm2, %v903_v44, 0 }
 0x637   : > { %2420 = vmatpush3.bf16.msra.mxu1 %v908_v45  ;;  %v1362_v47 = vpop.xlane.xlu0 %1361  ;;  %v2610_v45 = vld [vmem:[%s3193_s4 + $0x8] sm:$0xff]  }
 0x638   : > { %2431 = vmatprep.subr.bf16.mxu1 %v2792_v3  ;;  %2680 = vrcp.f32 %v1362_v47  ;;  %v2611_v47 = vld [vmem:[%s3193_s4] sm:$0xff]  }
 0x63b   : > { %v1019_v50 = vpop.permute.xlu0 %1018 }
 0x63c   : > { %v1024_v52 = vsel %vm792_vm2, %v1019_v50, 0 }
 0x63f   : > { %v2673_v48 = vpop.eup %2672  ;;  %v1135_v55 = vpop.permute.xlu0 %1134 }
 0x640   : > { %v899_v49 = vmul.f32 %v2673_v48, %v2663_v25  ;;  %v2675_v53 = vpop.eup %2674  ;;  %v1140_v58 = vsel %vm792_vm2, %v1135_v55, 0 }
 0x641   : > { %v1016_v54 = vmul.f32 %v2675_v53, %v3044_v14  ;;  %v2677_v57 = vpop.eup %2676 }
 0x642   : > { %v900_v51 = vpack.c.bf16 %v899_v49, %v899_v49  ;;  %v1132_v59 = vmul.f32 %v2677_v57, %v3048_v23  ;;  %v2679_v61 = vpop.eup %2678 }
 0x643   : > { %v1017_v56 = vpack.c.bf16 %v1016_v54, %v1016_v54  ;;  %v1248_v63 = vmul.f32 %v2679_v61, %v3052_v26 }
 0x644   : > { %2422 = vmatmul.mubr.msk.bf16.vlgmr.msra.gmra.mxu1 %vm776_vm3, %v900_v51  ;;  %v1133_v60 = vpack.c.bf16 %v1132_v59, %v1132_v59 }
 0x645   : > { %2432 = vmatpush3.bf16.msra.mxu1 %v1024_v52  ;;  %2433 = vmatprep.mubr.msk.bf16.mxu1 %vm2794_vm0, %v2792_v3  ;;  %v1249_v2 = vpack.c.bf16 %v1248_v63, %v1248_v63  ;;  %v2681_v4 = vpop.eup %2680 }
 0x646   : > { %2443 = vmatprep.subr.bf16.mxu1 %v2792_v3  ;;  %v1364_v6 = vmul.f32 %v2681_v4, %v3057_v29 }
 0x648   : > { %v1365_v10 = vpack.c.bf16 %v1364_v6, %v1364_v6 }
 0x64c   : > { %2434 = vmatmul.mubr.msk.bf16.vlgmr.msra.gmra.mxu1 %vm776_vm3, %v1017_v56 }
 0x64d   : > { %2444 = vmatpush3.bf16.msra.mxu1 %v1140_v58  ;;  %2445 = vmatprep.mubr.msk.bf16.mxu1 %vm2794_vm0, %v2792_v3 }
 0x64e   : > { %2455 = vmatprep.subr.bf16.mxu1 %v2792_v3 }
 0x654   : > { %2446 = vmatmul.mubr.msk.bf16.vlgmr.msra.gmra.mxu1 %vm776_vm3, %v1133_v60 }
 0x655   : > { %2457 = vmatprep.mubr.msk.bf16.mxu1 %vm2794_vm0, %v2792_v3 }
 0x666   : > { %v1478_v62 = vpop.xlane.xlu1 %1477 }
 0x667   : > { %2682 = vrcp.f32 %v1478_v62 }
 0x66a   : > { %v1251_v0 = vpop.permute.xlu1 %1250 }
 0x66b   : > { %v1256_v1 = vsel %vm792_vm2, %v1251_v0, 0  ;;  %v2263_v0 = vld [vmem:[%s3194_s5] ss:$0 sm:$0xff] }
 0x66c   : > { %2456 = vmatpush3.bf16.msra.mxu1 %v1256_v1 }
 0x66d   : > { %2467 = vmatprep.subr.bf16.mxu1 %v2792_v3 }
 0x66e   : > { %v1483_v9 = vpop.permute.xlu1 %1482 }
 0x66f   : > { %2458 = vmatmul.mubr.msk.bf16.vlgmr.msra.gmra.mxu1 %vm776_vm3, %v1249_v2  ;;  %v1488_v12 = vsel %vm792_vm2, %v1483_v9, 0  ;;  %v2612_v9 = vld [vmem:[#allocation5 + $0x70] ss:$8 sps:$4 sm:$0xff]  }
 0x670   : > { %v1594_v5 = vpop.xlane.xlu0 %1593  ;;  %2469 = vmatprep.mubr.msk.bf16.mxu1 %vm2794_vm0, %v2792_v3 }
 0x671   : > { %2684 = vrcp.f32 %v1594_v5  ;;  %v2688_v5 = vld [vmem:[%s2946_s30] sm:$0xff] }
 0x672   : > { %v1599_v14 = vpop.permute.xlu1 %1598 }
 0x673   : > { %v1604_v17 = vsel %vm792_vm2, %v1599_v14, 0 }
 0x674   : > { %v1367_v7 = vpop.permute.xlu0 %1366  ;;  %v2683_v11 = vpop.eup %2682 }
 0x675   : > { %v1372_v8 = vsel %vm792_vm2, %v1367_v7, 0  ;;  %v1480_v13 = vmul.f32 %v2683_v11, %v3067_v37  ;;  %v2617_v11 = vld [vmem:[#allocation5 + $0x64] ss:$8 sps:$4 sm:$0xff]  }
 0x676   : > { %2468 = vmatpush3.bf16.msra.mxu1 %v1372_v8 }
 0x677   : > { %2479 = vmatprep.subr.bf16.mxu1 %v2792_v3  ;;  %v1481_v15 = vpack.c.bf16 %v1480_v13, %v1480_v13 }
 0x679   : > { %2470 = vmatmul.mubr.msk.bf16.vlgmr.msra.gmra.mxu1 %vm776_vm3, %v1365_v10  ;;  %v2614_v10 = vld [vmem:[#allocation5 + $0x74] ss:$8 sps:$4 sm:$0xff]  }
 0x67a   : > { %2480 = vmatpush3.bf16.msra.mxu1 %v1488_v12  ;;  %2481 = vmatprep.mubr.msk.bf16.mxu1 %vm2794_vm0, %v2792_v3  ;;  %v2615_v12 = vld [vmem:[#allocation5 + $0x60] ss:$8 sps:$4 sm:$0xff]  }
 0x67b   : > { %2491 = vmatprep.subr.bf16.mxu1 %v2792_v3 }
 0x67e   : > { %v2685_v16 = vpop.eup %2684 }
 0x67f   : > { %v1596_v18 = vmul.f32 %v2685_v16, %v3071_v39 }
 0x681   : > { %2482 = vmatmul.mubr.msk.bf16.vlgmr.msra.gmra.mxu1 %vm776_vm3, %v1481_v15  ;;  %v1597_v19 = vpack.c.bf16 %v1596_v18, %v1596_v18  ;;  %v2618_v18 = vld [vmem:[#allocation5 + $0x50] ss:$8 sps:$4 sm:$0xff]  }
 0x682   : > { %2492 = vmatpush3.bf16.msra.mxu1 %v1604_v17  ;;  %2493 = vmatprep.mubr.msk.bf16.mxu1 %vm2794_vm0, %v2792_v3  ;;  %v2620_v17 = vld [vmem:[#allocation5 + $0x54] ss:$8 sps:$4 sm:$0xff]  }
 0x683   : > { %1902 = vmatprep.subr.bf16.mxu1 %v2614_v10  ;;  %v2290_v10 = vld [vmem:[%s3200_s11] ss:$0 sm:$0xff] }
 0x689   : > { %2494 = vmatmul.mubr.msk.bf16.vlgmr.msra.gmra.mxu1 %vm776_vm3, %v1597_v19  ;;  %v2621_v19 = vld [vmem:[#allocation5 + $0x40] ss:$8 sps:$4 sm:$0xff]  }
 0x68a   : > { %1934 = vmatprep.mubr.bf16.mxu1 %v2793_v22  ;;  %v2604_v22 = vld [vmem:[%s3193_s4 + $0x38] sm:$0xff]   ;;  %1903 = vmatpush1.bf16.msra.mxu1 %v2612_v9 }
 0x68b   : > { %2498 = vmatpush3.bf16.msra.mxu0 %v2604_v22  ;;  %1904 = vmatprep.subr.bf16.mxu1 %v2617_v11  ;;  %v2639_v22 = vld [vmem:[#allocation7 + $0x30] sm:$0xff]  }
 0x68c   : > { %2499 = vmatprep.subr.bf16.mxu0 %v2792_v3 }
 0x68e   : > { %1905 = vmatpush1.bf16.msra.mxu1 %v2615_v12 }
 0x68f   : > { %2500 = vmatpush3.bf16.msra.mxu0 %v2605_v33  ;;  %1906 = vmatprep.subr.bf16.mxu1 %v2620_v17  ;;  %v2640_v33 = vld [vmem:[#allocation7 + $0x68] sm:$0xff]  }
 0x690   : > { %2501 = vmatprep.subr.bf16.mxu0 %v2792_v3 }
 0x692   : > { %1907 = vmatpush1.bf16.msra.mxu1 %v2618_v18 }
 0x693   : > { %2502 = vmatpush3.bf16.msra.mxu0 %v2606_v34  ;;  %v2641_v34 = vld [vmem:[#allocation7 + $0x28] sm:$0xff]  }
 0x694   : > { %2503 = vmatprep.subr.bf16.mxu0 %v2792_v3 }
 0x697   : > { %2504 = vmatpush3.bf16.msra.mxu0 %v2607_v36  ;;  %v2643_v36 = vld [vmem:[#allocation7 + $0x20] sm:$0xff]  }
 0x698   : > { %2505 = vmatprep.subr.bf16.mxu0 %v2792_v3 }
 0x69b   : > { %2506 = vmatpush3.bf16.msra.mxu0 %v2608_v40  ;;  %v2647_v40 = vld [vmem:[#allocation7 + $0x10] sm:$0xff]  }
 0x69c   : > { %2507 = vmatprep.subr.bf16.mxu0 %v2792_v3 }
 0x69f   : > { %2508 = vmatpush3.bf16.msra.mxu0 %v2609_v41 }
 0x6a0   : > { %2509 = vmatprep.subr.bf16.mxu0 %v2792_v3 }
 0x6a3   : > { %2510 = vmatpush3.bf16.msra.mxu0 %v2610_v45  ;;  %v2272_v45 = vld [vmem:[%s3195_s6] ss:$0 sm:$0xff] }
 0x6a4   : > { %2511 = vmatprep.subr.bf16.mxu0 %v2792_v3 }
 0x6a7   : > { %2512 = vmatpush3.bf16.msra.mxu0 %v2611_v47  ;;  %v2273_v47 = vld [vmem:[%s3196_s7] ss:$0 sm:$0xff] }
 0x704   : > { %v944_v20 = vpop.f32.mrf.mxu1 }
 0x705   : > { %951 = vrot.lane.b32.xlu1 %v944_v20, %s2800_s13  ;;  %v2623_v20 = vld [vmem:[#allocation5 + $0x44] ss:$8 sps:$4 sm:$0xff]  }
 0x706   : > { %v2423_v21 = vpop.f32.mrf.mxu1  ;;  %1908 = vmatprep.subr.bf16.mxu1 %v2623_v20 }
 0x707   : > { %v2626_v21 = vld [vmem:[#allocation5 + $0x34] ss:$8 sps:$4 sm:$0xff]   ;;  %1909 = vmatpush1.bf16.msra.mxu1 %v2621_v19 }
 0x708   : > { %v947_v23 = vpop.f32.mrf.mxu1  ;;  %1910 = vmatprep.subr.bf16.mxu1 %v2626_v21 }
 0x709   : > { %v2624_v23 = vld [vmem:[#allocation5 + $0x30] ss:$8 sps:$4 sm:$0xff]  }
 0x70a   : > { %v2424_v24 = vpop.f32.mrf.mxu1 }
 0x70b   : > { %v2629_v24 = vld [vmem:[#allocation5 + $0x24] ss:$8 sps:$4 sm:$0xff]   ;;  %1911 = vmatpush1.bf16.msra.mxu1 %v2624_v23 }
 0x70c   : > { %v1060_v25 = vpop.f32.mrf.mxu1  ;;  %1912 = vmatprep.subr.bf16.mxu1 %v2629_v24 }
 0x70d   : > { %1067 = vrot.lane.b32.xlu1 %v1060_v25, %s2799_s29  ;;  %v2627_v25 = vld [vmem:[#allocation5 + $0x20] ss:$8 sps:$4 sm:$0xff]  }
 0x70e   : > { %v2435_v26 = vpop.f32.mrf.mxu1 }
 0x70f   : > { %v2632_v26 = vld [vmem:[#allocation5 + $0x14] ss:$8 sps:$4 sm:$0xff]   ;;  %1913 = vmatpush1.bf16.msra.mxu1 %v2627_v25 }
 0x710   : > { %v1063_v27 = vpop.f32.mrf.mxu1  ;;  %1914 = vmatprep.subr.bf16.mxu1 %v2632_v26 }
 0x711   : > { %v2630_v27 = vld [vmem:[#allocation5 + $0x10] ss:$8 sps:$4 sm:$0xff]  }
 0x712   : > { %v2436_v28 = vpop.f32.mrf.mxu1 }
 0x713   : > { %v2635_v28 = vld [vmem:[#allocation5 + $0x4] ss:$8 sps:$4 sm:$0xff]   ;;  %1915 = vmatpush1.bf16.msra.mxu1 %v2630_v27 }
 0x714   : > { %v1176_v29 = vpop.f32.mrf.mxu1  ;;  %1916 = vmatprep.subr.bf16.mxu1 %v2635_v28 }
 0x715   : > { %1183 = vrot.lane.b32.xlu1 %v1176_v29, %s2798_s26  ;;  %v2633_v29 = vld [vmem:[#allocation5] ss:$8 sps:$4 sm:$0xff]  }
 0x716   : > { %v2447_v30 = vpop.f32.mrf.mxu1 }
 0x717   : > { %1917 = vmatpush1.bf16.msra.mxu1 %v2633_v29  ;;  %v2636_v30 = vld [vmem:[#allocation7 + $0x78] sm:$0xff]  }
 0x718   : > { %v1179_v31 = vpop.f32.mrf.mxu1  ;;  %2359 = vmatprep.subr.bf16.mxu0 %v2636_v30 }
 0x719   : > { %v2637_v31 = vld [vmem:[#allocation7 + $0x38] sm:$0xff]  }
 0x71a   : > { %v2448_v32 = vpop.f32.mrf.mxu1 }
 0x71b   : > { %v2638_v32 = vld [vmem:[#allocation7 + $0x70] sm:$0xff]  }
 0x72f   : > { %v1292_v35 = vpop.f32.mrf.mxu1 }
 0x730   : > { %1299 = vrot.lane.b32.xlu0 %v1292_v35, %s2797_s23  ;;  %v2642_v35 = vld [vmem:[#allocation7 + $0x60] sm:$0xff]  }
 0x731   : > { %v2459_v37 = vpop.f32.mrf.mxu1 }
 0x732   : > { %v2644_v37 = vld [vmem:[#allocation7 + $0x58] sm:$0xff]  }
 0x733   : > { %v1295_v38 = vpop.f32.mrf.mxu1 }
 0x734   : > { %v2645_v38 = vld [vmem:[#allocation7 + $0x18] sm:$0xff]  }
 0x735   : > { %v2460_v39 = vpop.f32.mrf.mxu1 }
 0x736   : > { %v2646_v39 = vld [vmem:[#allocation7 + $0x50] sm:$0xff]  }
 0x739   : > { %v1408_v42 = vpop.f32.mrf.mxu1 }
 0x73a   : > { %1415 = vrot.lane.b32.xlu1 %v1408_v42, %s2796_s22 }
 0x73b   : > { %v2471_v43 = vpop.f32.mrf.mxu1 }
 0x73d   : > { %v1411_v44 = vpop.f32.mrf.mxu1 }
 0x73f   : > { %v2472_v46 = vpop.f32.mrf.mxu1 }
 0x741   : > { %v1524_v48 = vpop.f32.mrf.mxu1 }
 0x742   : > { %1531 = vrot.lane.b32.xlu0 %v1524_v48, %s2801_s14 }
 0x743   : > { %v2483_v49 = vpop.f32.mrf.mxu1 }
 0x745   : > { %v1527_v50 = vpop.f32.mrf.mxu1 }
 0x747   : > { %v2484_v51 = vpop.f32.mrf.mxu1 }
 0x748   : > { %v2648_v51 = vld [vmem:[#allocation7 + $0x48] sm:$0xff]  }
 0x749   : > { %v1640_v53 = vpop.f32.mrf.mxu1 }
 0x74a   : > { %1647 = vrot.lane.b32.xlu1 %v1640_v53, %s2795_s20  ;;  %v2649_v53 = vld [vmem:[#allocation7 + $0x8] sm:$0xff]  }
 0x74b   : > { %v2495_v52 = vpop.f32.mrf.mxu1 }
 0x74c   : > { %v2650_v52 = vld [vmem:[#allocation7 + $0x40] sm:$0xff]  }
 0x74d   : > { %v1643_v54 = vpop.f32.mrf.mxu1 }
 0x74e   : > { %v2651_v54 = vld [vmem:[#allocation7] sm:$0xff]  }
 0x74f   : > { %v2496_v55 = vpop.f32.mrf.mxu1 }
 0x750   : > { %v1812_v55 = vlaneseq }
 0x777   : > { %v952_v56 = vpop.permute.xlu1 %951 }
 0x778   : > { %955 = vst.msk [vmem:[#allocation2] sm:$0xff] %vm954_vm4, %v952_v56  ;;  %v1813_v56 = vshrl.u32 %v1812_v55, 7 }
 0x77f   : > { %v1068_v57 = vpop.permute.xlu1 %1067 }
 0x780   : > { %1071 = vst.msk [vmem:[#allocation2] sm:$0xff] %vm1070_vm5, %v1068_v57  ;;  %v1814_v57 = vsub.s32 0, %v1813_v56 }
 0x787   : > { %v1184_v3 = vpop.permute.xlu1 %1183 }
 0x788   : > { %1187 = vst.msk [vmem:[#allocation2] sm:$0xff] %vm1186_vm6, %v1184_v3  ;;  %v1810_v3 = vld [vmem:[%s3198_s9] sm:$0x3] }
 0x7a2   : > { %v1300_v58 = vpop.permute.xlu0 %1299 }
 0x7a3   : > { %1303 = vst.msk [vmem:[#allocation2] sm:$0xff] %vm1302_vm7, %v1300_v58  ;;  %v1818_v58 = vsub.s32 1, %v1813_v56 }
 0x7ac   : > { %v1416_v59 = vpop.permute.xlu1 %1415 }
 0x7ad   : > { %1419 = vst.msk [vmem:[#allocation2] sm:$0xff] %vm1418_vm8, %v1416_v59  ;;  %v1815_v59 = vrot.slane %v1810_v3, %v1814_v57 }
 0x7b4   : > { %v1532_v60 = vpop.permute.xlu0 %1531 }
 0x7b5   : > { %1535 = vst.msk [vmem:[#allocation2] sm:$0xff] %vm1534_vm9, %v1532_v60  ;;  %v1819_v60 = vrot.slane %v1810_v3, %v1818_v58 }
 0x7bc   : > { %v1648_v61 = vpop.permute.xlu1 %1647 }
 0x7bd   : > { %1651 = vst.msk [vmem:[#allocation2] sm:$0xff] %vm1650_vm10, %v1648_v61 }
 0x7c4   : > { %v1652_v62 = vld [vmem:[#allocation2] sm:$0xff] }
 0x7c5   : > { %v1653_v63 = vpack.c.bf16 %v1652_v62, %v1652_v62 }
 0x7c7   : > { %2514 = vmatmul.mubr.bf16.vlgmr.msra.gmra.mxu0 %v1653_v63 }
 0x7c8   : > { %2360 = vmatpush3.bf16.msra.mxu0 %v2637_v31 }
 0x7c9   : > { %2361 = vmatprep.subr.bf16.mxu0 %v2638_v32 }
 0x7cc   : > { %2362 = vmatpush3.bf16.msra.mxu0 %v2639_v22 }
 0x7cd   : > { %2363 = vmatprep.subr.bf16.mxu0 %v2640_v33 }
 0x7d0   : > { %2364 = vmatpush3.bf16.msra.mxu0 %v2641_v34 }
 0x7d1   : > { %2365 = vmatprep.subr.bf16.mxu0 %v2642_v35 }
 0x7d4   : > { %2366 = vmatpush3.bf16.msra.mxu0 %v2643_v36 }
 0x7d5   : > { %2367 = vmatprep.subr.bf16.mxu0 %v2644_v37 }
 0x7d8   : > { %2368 = vmatpush3.bf16.msra.mxu0 %v2645_v38 }
 0x7d9   : > { %2369 = vmatprep.subr.bf16.mxu0 %v2646_v39 }
 0x7dc   : > { %2370 = vmatpush3.bf16.msra.mxu0 %v2647_v40 }
 0x7dd   : > { %2371 = vmatprep.subr.bf16.mxu0 %v2648_v51 }
 0x7e0   : > { %2372 = vmatpush3.bf16.msra.mxu0 %v2649_v53 }
 0x7e1   : > { %2373 = vmatprep.subr.bf16.mxu0 %v2650_v52 }
 0x7e4   : > { %2374 = vmatpush3.bf16.msra.mxu0 %v2651_v54 }
 0x887   : > { %v1759_v1 = vpop.f32.mrf.mxu0 }
 0x888   : > { %v1760_v2 = vadd.f32 %v2263_v0, %v1759_v1 }
 0x889   : > { %v2515_v4 = vpop.f32.mrf.mxu0 }
 0x88a   : > { %v3164_v6 = vadd.f32 %v2688_v5, %v1760_v2 }
 0x88b   : > { %v1762_v7 = vpop.f32.mrf.mxu0 }
 0x88c   : > { %1768 = vadd.xlane.f32.xlu0 %v3164_v6 }
 0x88d   : > { %v2516_v8 = vpop.f32.mrf.mxu0 }
 0x915   : > { %v1769_v13 = vpop.xlane.xlu0 %1768 }
 0x916   : > { %v1770_v14 = vmul.f32 0.0078125, %v1769_v13 }
 0x918   : > { %v1771_v15 = vsub.f32 %v3164_v6, %v1770_v14 }
 0x91a   : > { %v1772_v16 = vmul.f32 %v1771_v15, %v1771_v15 }
 0x91c   : > { %1773 = vadd.xlane.f32.xlu1 %v1772_v16 }
 0x9a5   : > { %v1774_v41 = vpop.xlane.xlu1 %1773 }
 0x9a6   : > { %v1775_v42 = vmul.f32 0.0078125, %v1774_v41 }
 0x9a8   : > { %v1776_v43 = vadd.f32 1e-05, %v1775_v42 }
 0x9aa   : > { %2686 = vrsqrt.f32 %v1776_v43 }
 0x9b7   : > { %v2687_v44 = vpop.eup %2686 }
 0x9b8   : > { %v1778_v46 = vmul.f32 %v2687_v44, %v1771_v15 }
 0x9ba   : > { %v1785_v48 = vmul.f32 %v2272_v45, %v1778_v46 }
 0x9bc   : > { %v1792_v49 = vadd.f32 %v2273_v47, %v1785_v48 }
 0x9be   : > { %v1793_v50 = vpack.c.bf16 %v1792_v49, %v1792_v49 }
 0x9c0   : > { %1935 = vmatmul.mubr.bf16.vlgmr.msra.gmra.mxu1 %v1793_v50 }
 0xa80   : > { %v1936_v61 = vpop.f32.mrf.mxu1 }
 0xa81   : > { %v1937_v62 = vadd.f32 %v1936_v61, %v1815_v59 }
 0xa82   : > { %v1938_v63 = vpop.f32.mrf.mxu1 }
 0xa83   : > { %v1939_v0 = vadd.f32 %v1938_v63, %v1819_v60  ;;  %v1943_v1 = vmax.f32 %v1937_v62, 0.0 }
 0xa84   : > { %v1940_v2 = vpop.f32.mrf.mxu1 }
 0xa85   : > { %v1944_v4 = vmax.f32 %v1939_v0, 0.0  ;;  %v1945_v8 = vpack.c.bf16 %v1943_v1, %v1943_v1 }
 0xa86   : > { %v1941_v5 = vpop.f32.mrf.mxu1 }
 0xa87   : > { %v1946_v7 = vpack.c.bf16 %v1944_v4, %v1944_v4 }
 0xa89   : > { %2114 = vmatprep.mubr.bf16.mxu0 %v1946_v7 }
 0xa8a   : > { %2115 = vmatmul.mubr.bf16.vlgmr.msra.gmra.mxu0 %v1945_v8 }
 0xb4a   : > { %v2375_v9 = vpop.f32.mrf.mxu0 }
 0xb4c   : > { %v2376_v11 = vpop.f32.mrf.mxu0 }
 0xb4d   : > { %v2377_v12 = vadd.f32 %v2376_v11, %v2375_v9 }
 0xb4e   : > { %v2378_v13 = vpop.f32.mrf.mxu0 }
 0xb4f   : > { %v2117_v14 = vadd.f32 %v2377_v12, %v2290_v10 }
 0xb50   : > { %v2379_v15 = vpop.f32.mrf.mxu0 }
 0xb51   : > { %v2122_v16 = vadd.f32 %v2117_v14, %v3164_v6 }
 0xb53   : > { %2123 = vst [vmem:[%s452_s28] sm:$0xff] %v2122_v16 }
 0xb54 PF: > { %s24_s21 = sadd.s32 1, %s2781_s21  }
 0xb55   : > { %p21_p2 = scmp.ge.s32.totalorder %s24_s21, 4  }
 0xb57   :  { %23 = sbr.rel (!%p21_p2) target bundleno = 2 (0x2), region = 111 }
 0xb5c   :  { %2143 = vsyncpa [#allocation4], 1 }
 0xb5d   :  { %2145 = vsyncpa [#allocation4 + $0x1], 1 }
 0xb5e   :  { %2146 = vsyncpa [#allocation6], 1 }

// kernel: transformer_mapper_seq_forward.3
= control target key start
LH: loop header
LB: loop body
LE: loop exit
PB: predicated region body
PF: predicated region fallthrough
CT: control target
= control target key end

     0   :  { %s2654_s21 = smov 0   ;;  %s3081_s0 = inlined_call_operand.vmem [shape: f32[2,8,128], index: 0, kind: input, shape index: {}, may-alias: {0,12}]   ;;  %s3082_s1 = inlined_call_operand.vmem [shape: f32[1,128], index: 1, kind: input, shape index: {}]   ;;  %s3083_s2 = inlined_call_operand.vmem [shape: f32[1,128], index: 2, kind: input, shape index: {}]   ;;  %s3084_s3 = inlined_call_operand.vmem [shape: bf16[128,384], index: 3, kind: input, shape index: {}]   ;;  %s3085_s4 = inlined_call_operand.vmem [shape: bf16[128,128], index: 4, kind: input, shape index: {}]   ;;  %s3086_s5 = inlined_call_operand.vmem [shape: f32[1,128], index: 5, kind: input, shape index: {}]   ;;  %s3087_s6 = inlined_call_operand.vmem [shape: f32[1,128], index: 6, kind: input, shape index: {}]   ;;  %s3088_s7 = inlined_call_operand.vmem [shape: f32[1,128], index: 7, kind: input, shape index: {}]   ;;  %s3089_s8 = inlined_call_operand.vmem [shape: bf16[128,256], index: 8, kind: input, shape index: {}]   ;;  %s3090_s9 = inlined_call_operand.vmem [shape: f32[1,256], index: 9, kind: input, shape index: {}]   ;;  %s3091_s10 = inlined_call_operand.vmem [shape: bf16[256,128], index: 10, kind: input, shape index: {}]   ;;  %s3092_s11 = inlined_call_operand.vmem [shape: f32[1,128], index: 11, kind: input, shape index: {}]   ;;  %s3093_s12 = inlined_call_operand.vmem [shape: f32[2,8,128], index: 12, kind: output, shape index: {}, may-alias: {0,12}]  }
   0x1 LB: > { %s2133_s22 = sadd.s32 4294967295, %s2577_s21   ;;  %p2137_p0 = scmp.ge.s32.totalorder %s2577_s21, 1  ;;  %s2577_s21 = sphi %s2654_s21, %s22_s21  }
   0x2   : > { %p361_p1 = scmp.lt.s32.totalorder %s2577_s21, 3 }
   0x4   : > { %p362_p2 = pnand %p2137_p0, %p361_p1 }
   0x5   : > { %p401_p3 = scmp.lt.s32.totalorder (!%p362_p2), %s2133_s22, 1  ;;  %s2582_s19 = smov (!%p362_p2), 112  }
   0x6   : > { %365 = sbr.rel (%p362_p2) target bundleno = 2854 (0xb26), region = 68  ;;  %s2583_s20 = smov (!%p362_p2), 80  }
   0x7   : > { %s2584_s24 = smov (!%p362_p2), 64   ;;  %s2585_s25 = smov (!%p362_p2), 48  }
   0x8   : > { %s2586_s27 = smov (!%p362_p2), 32   ;;  %s2587_s28 = smov (!%p362_p2), 16  }
   0x9   : > { %s2588_s29 = smov (!%p362_p2), 96  }
   0xb   : > { %s3095_s22 = smov (!%p401_p3, %s2133_s22), 1  ;;  %v2454_v1 = vld [vmem:[%s3084_s3 + $0xac] ss:$12 sps:$4 sm:$0xff]   ;;  %v2456_v2 = vld [vmem:[%s3084_s3 + $0xa8] ss:$12 sps:$4 sm:$0xff]   ;;  %v2579_v3 = vmov 0.0  }
   0xc   : > { %s2138_s23 = sshll.u32 %s3095_s22, 3  ;;  %2300 = vmatprep.subr.bf16.mxu1 %v2579_v3  ;;  %v2457_v4 = vld [vmem:[%s3084_s3 + $0xb0] ss:$12 sps:$4 sm:$0xff]   ;;  %v2458_v5 = vld [vmem:[%s3084_s3 + $0x94] ss:$12 sps:$4 sm:$0xff]   ;;  %600 = vmatprep.subr.bf16.mxu0 %v2454_v1  ;;  %v2580_v22 = vmov 0  }
   0xd   : > { %s2670_s26 = scalar_lea.vmem %s3081_s0, %s2138_s23  ;;  %v2460_v6 = vld [vmem:[%s3084_s3 + $0x90] ss:$12 sps:$4 sm:$0xff]   ;;  %v2461_v7 = vld [vmem:[%s3084_s3 + $0x98] ss:$12 sps:$4 sm:$0xff]   ;;  %601 = vmatpush1.bf16.msra.mxu0 %v2456_v2  ;;  %2301 = vmatpush3.bf16.msra.mxu1 %v2457_v4  ;;  %v2465_v14 = vld [vmem:[%s3084_s3 + $0x80] ss:$12 sps:$4 sm:$0xff]  }
   0xe   : > { %v410_v0 = vld [vmem:[%s2670_s26] sm:$0xff]  ;;  %602 = vmatprep.subr.bf16.mxu0 %v2458_v5  ;;  %2302 = vmatprep.subr.bf16.mxu1 %v2579_v3  ;;  %v2462_v12 = vld [vmem:[%s3084_s3 + $0x7c] ss:$12 sps:$4 sm:$0xff]   ;;  %v2470_v18 = vld [vmem:[%s3084_s3 + $0x4c] ss:$12 sps:$4 sm:$0xff]   ;;  %vm2581_vm0 = vmmov 0  }
   0xf   : > { %413 = vadd.xlane.f32.xlu0 %v410_v0  ;;  %v2464_v13 = vld [vmem:[%s3084_s3 + $0x78] ss:$12 sps:$4 sm:$0xff]   ;;  %v2468_v16 = vld [vmem:[%s3084_s3 + $0x60] ss:$12 sps:$4 sm:$0xff]   ;;  %v2469_v17 = vld [vmem:[%s3084_s3 + $0x68] ss:$12 sps:$4 sm:$0xff]   ;;  %632 = vmatprep.mubr.bf16.mxu0 %v2580_v22 }
  0x10   : > { %v2466_v15 = vld [vmem:[%s3084_s3 + $0x64] ss:$12 sps:$4 sm:$0xff]   ;;  %v2472_v19 = vld [vmem:[%s3084_s3 + $0x48] ss:$12 sps:$4 sm:$0xff]   ;;  %2316 = vmatprep.mubr.msk.bf16.mxu1 %vm2581_vm0, %v2579_v3  ;;  %v2481_v27 = vld [vmem:[%s3084_s3 + $0x20] ss:$12 sps:$4 sm:$0xff]  }
  0x11   : > { %603 = vmatpush1.bf16.msra.mxu0 %v2460_v6  ;;  %2303 = vmatpush3.bf16.msra.mxu1 %v2461_v7  ;;  %v2473_v20 = vld [vmem:[%s3084_s3 + $0x50] ss:$12 sps:$4 sm:$0xff]   ;;  %v2474_v21 = vld [vmem:[%s3084_s3 + $0x34] ss:$12 sps:$4 sm:$0xff]   ;;  %v2477_v24 = vld [vmem:[%s3084_s3 + $0x38] ss:$12 sps:$4 sm:$0xff]  }
  0x12   : > { %2304 = vmatprep.subr.bf16.mxu1 %v2579_v3  ;;  %604 = vmatprep.subr.bf16.mxu0 %v2462_v12  ;;  %v2476_v23 = vld [vmem:[%s3084_s3 + $0x30] ss:$12 sps:$4 sm:$0xff]   ;;  %v2480_v26 = vld [vmem:[%s3084_s3 + $0x18] ss:$12 sps:$4 sm:$0xff]   ;;  %v2484_v29 = vld [vmem:[%s3084_s3] ss:$12 sps:$4 sm:$0xff]  }
  0x13   : > { %v2478_v25 = vld [vmem:[%s3084_s3 + $0x1c] ss:$12 sps:$4 sm:$0xff]   ;;  %v2482_v28 = vld [vmem:[%s3084_s3 + $0x4] ss:$12 sps:$4 sm:$0xff]   ;;  %v2140_v35 = vld [vmem:[%s3082_s1] ss:$0 sm:$0xff] }
  0x14   : > { %v2485_v30 = vld [vmem:[%s3084_s3 + $0x8] ss:$12 sps:$4 sm:$0xff]   ;;  %v2141_v37 = vld [vmem:[%s3083_s2] ss:$0 sm:$0xff]  ;;  %vm685_vm1 = vcmask 130048   ;;  %vm748_vm2 = vcmask 1043456  }
  0x15   : > { %605 = vmatpush1.bf16.msra.mxu0 %v2464_v13  ;;  %2305 = vmatpush3.bf16.msra.mxu1 %v2465_v14  ;;  %vm732_vm3 = vcmask 64512   ;;  %vm910_vm4 = vcmask 261248   ;;  %vm1026_vm5 = vcmask 392448   ;;  %vm1142_vm6 = vcmask 523648  }
  0x16   : > { %2306 = vmatprep.subr.bf16.mxu1 %v2579_v3  ;;  %606 = vmatprep.subr.bf16.mxu0 %v2466_v15  ;;  %vm1258_vm7 = vcmask 654848   ;;  %vm1374_vm8 = vcmask 786048   ;;  %vm1490_vm9 = vcmask 917248   ;;  %vm1606_vm10 = vcmask 1048448  }
  0x19   : > { %607 = vmatpush1.bf16.msra.mxu0 %v2468_v16  ;;  %2307 = vmatpush3.bf16.msra.mxu1 %v2469_v17 }
  0x1a   : > { %608 = vmatprep.subr.bf16.mxu0 %v2470_v18  ;;  %2308 = vmatprep.subr.bf16.mxu1 %v2579_v3 }
  0x1d   : > { %609 = vmatpush1.bf16.msra.mxu0 %v2472_v19  ;;  %2309 = vmatpush3.bf16.msra.mxu1 %v2473_v20 }
  0x1e   : > { %610 = vmatprep.subr.bf16.mxu0 %v2474_v21  ;;  %2310 = vmatprep.subr.bf16.mxu1 %v2579_v3 }
  0x21   : > { %611 = vmatpush1.bf16.msra.mxu0 %v2476_v23  ;;  %2311 = vmatpush3.bf16.msra.mxu1 %v2477_v24 }
  0x22   : > { %612 = vmatprep.subr.bf16.mxu0 %v2478_v25  ;;  %2312 = vmatprep.subr.bf16.mxu1 %v2579_v3 }
  0x25   : > { %613 = vmatpush1.bf16.msra.mxu0 %v2480_v26  ;;  %2313 = vmatpush3.bf16.msra.mxu1 %v2481_v27 }
  0x26   : > { %614 = vmatprep.subr.bf16.mxu0 %v2482_v28  ;;  %2314 = vmatprep.subr.bf16.mxu1 %v2579_v3 }
  0x29   : > { %615 = vmatpush1.bf16.msra.mxu0 %v2484_v29  ;;  %2315 = vmatpush3.bf16.msra.mxu1 %v2485_v30 }
  0x2a   : > { %2320 = vmatprep.subr.bf16.mxu1 %v2579_v3  ;;  %2344 = vmatprep.subr.bf16.mxu0 %v2579_v3 }
  0x98   : > { %v414_v8 = vpop.xlane.xlu0 %413 }
  0x99   : > { %v416_v9 = vmul.f32 0.0078125, %v414_v8 }
  0x9b   : > { %v417_v10 = vsub.f32 %v410_v0, %v416_v9 }
  0x9d   : > { %v418_v11 = vmul.f32 %v417_v10, %v417_v10 }
  0x9f   : > { %419 = vadd.xlane.f32.xlu0 %v418_v11 }
 0x128   : > { %v420_v31 = vpop.xlane.xlu0 %419 }
 0x129   : > { %v421_v32 = vmul.f32 0.0078125, %v420_v31 }
 0x12b   : > { %v422_v33 = vadd.f32 1e-05, %v421_v32 }
 0x12d   : > { %2534 = vrsqrt.f32 %v422_v33 }
 0x13a   : > { %v2535_v34 = vpop.eup %2534 }
 0x13b   : > { %v424_v36 = vmul.f32 %v2535_v34, %v417_v10 }
 0x13d   : > { %v431_v38 = vmul.f32 %v2140_v35, %v424_v36 }
 0x13f   : > { %v438_v39 = vadd.f32 %v2141_v37, %v431_v38 }
 0x141   : > { %v439_v40 = vpack.c.bf16 %v438_v39, %v438_v39 }
 0x143   : > { %633 = vmatmul.mubr.bf16.vlgmr.msra.gmra.mxu0 %v439_v40  ;;  %2317 = vmatmul.mubr.bf16.vlgmr.msra.gmra.mxu1 %v439_v40 }
 0x144   : > { %2322 = vmatprep.mubr.msk.bf16.mxu1 %vm2581_vm0, %v2579_v3  ;;  %2346 = vmatprep.mubr.msk.bf16.mxu0 %vm2581_vm0, %v2579_v3 }
 0x203   : > { %v634_v41 = vpop.f32.mrf.mxu0  ;;  %v675_v42 = vpop.f32.mrf.mxu1 }
 0x204   : > { %v681_v51 = vmul.f32 0.25, %v634_v41  ;;  %v2771_v52 = vpack.c.bf16 %v675_v42, %v675_v42 }
 0x205   : > { %v636_v43 = vpop.f32.mrf.mxu0  ;;  %v2318_v44 = vpop.f32.mrf.mxu1 }
 0x206   : > { %v683_v45 = vpack.c.bf16 %v636_v43, %v636_v43  ;;  %v682_v53 = vpack.c.bf16 %v681_v51, %v681_v51  ;;  %v750_v54 = vsel %vm748_vm2, %v2771_v52, 0 }
 0x207   : > { %v638_v46 = vpop.f32.mrf.mxu0  ;;  %v678_v47 = vpop.f32.mrf.mxu1 }
 0x208   : > { %797 = vrot.lane.b32.xlu0 %v683_v45, %s2582_s19  ;;  %v690_v48 = vsel %vm685_vm1, %v683_v45, 0 }
 0x209   : > { %v639_v49 = vpop.f32.mrf.mxu0  ;;  %v2319_v50 = vpop.f32.mrf.mxu1  ;;  %2321 = vmatpush3.bf16.xpose.msra.mxu1 %v690_v48 }
 0x20a   : > { %2326 = vmatprep.subr.bf16.mxu1 %v2579_v3 }
 0x20c   : > { %1030 = vrot.lane.b32.xlu0 %v683_v45, %s2583_s20 }
 0x210   : > { %1146 = vrot.lane.b32.xlu0 %v683_v45, %s2584_s24  ;;  %2323 = vmatmul.mubr.msk.bf16.vlgmr.msra.gmra.mxu1 %vm685_vm1, %v682_v53 }
 0x211   : > { %2327 = vmatpush3.bf16.msra.mxu1 %v750_v54  ;;  %2328 = vmatprep.mubr.msk.bf16.mxu1 %vm2581_vm0, %v2579_v3 }
 0x212   : > { %2332 = vmatprep.subr.bf16.mxu1 %v2579_v3 }
 0x214   : > { %1262 = vrot.lane.b32.xlu0 %v683_v45, %s2585_s25 }
 0x218   : > { %1378 = vrot.lane.b32.xlu0 %v683_v45, %s2586_s27 }
 0x21c   : > { %1494 = vrot.lane.b32.xlu0 %v683_v45, %s2587_s28 }
 0x27a   : > { %v798_v4 = vpop.permute.xlu0 %797 }
 0x27b   : > { %v803_v13 = vsel %vm685_vm1, %v798_v4, 0 }
 0x27e   : > { %v1031_v8 = vpop.permute.xlu0 %1030 }
 0x27f   : > { %v1036_v11 = vsel %vm685_vm1, %v1031_v8, 0 }
 0x282   : > { %v1147_v14 = vpop.permute.xlu0 %1146 }
 0x283   : > { %v1152_v16 = vsel %vm685_vm1, %v1147_v14, 0 }
 0x286   : > { %v1263_v17 = vpop.permute.xlu0 %1262 }
 0x287   : > { %v1268_v19 = vsel %vm685_vm1, %v1263_v17, 0 }
 0x28a   : > { %v1379_v20 = vpop.permute.xlu0 %1378 }
 0x28b   : > { %v1384_v23 = vsel %vm685_vm1, %v1379_v20, 0 }
 0x28e   : > { %v1495_v24 = vpop.permute.xlu0 %1494 }
 0x28f   : > { %v1500_v26 = vsel %vm685_vm1, %v1495_v24, 0 }
 0x2d0   : > { %v726_v55 = vpop.f32.mrf.mxu1 }
 0x2d1   : > { %v733_v56 = vsel %vm732_vm3, %v726_v55, -inf }
 0x2d2   : > { %734 = vmax.xlane.f32.xlu1 %v733_v56  ;;  %v2324_v57 = vpop.f32.mrf.mxu1 }
 0x2d4   : > { %v729_v58 = vpop.f32.mrf.mxu1 }
 0x2d6   : > { %v2325_v59 = vpop.f32.mrf.mxu1 }
 0x35b   : > { %v735_v60 = vpop.xlane.xlu1 %734 }
 0x35c   : > { %v736_v61 = vsub.f32 %v726_v55, %v735_v60 }
 0x35e   : > { %v737_v62 = vmul.f32 1.442695, %v736_v61 }
 0x360   : > { %2536 = vpow2.f32 %v737_v62 }
 0x36d   : > { %v2537_v63 = vpop.eup %2536 }
 0x36e   : > { %v739_v0 = vsel %vm732_vm3, %v2537_v63, 0.0 }
 0x36f   : > { %740 = vadd.xlane.f32.xlu1 %v739_v0 }
 0x380   : > { %794 = vrot.lane.b32.xlu1 %v682_v53, %s2582_s19 }
 0x384   : > { %914 = vrot.lane.b32.xlu1 %v683_v45, %s2588_s29 }
 0x388   : > { %912 = vrot.lane.b32.xlu1 %v682_v53, %s2588_s29 }
 0x38c   : > { %1028 = vrot.lane.b32.xlu1 %v682_v53, %s2583_s20 }
 0x390   : > { %1144 = vrot.lane.b32.xlu1 %v682_v53, %s2584_s24 }
 0x394   : > { %1260 = vrot.lane.b32.xlu1 %v682_v53, %s2585_s25 }
 0x398   : > { %1376 = vrot.lane.b32.xlu1 %v682_v53, %s2586_s27 }
 0x39c   : > { %1492 = vrot.lane.b32.xlu1 %v682_v53, %s2587_s28 }
 0x3f8   : > { %v741_v1 = vpop.xlane.xlu1 %740 }
 0x3f9   : > { %2538 = vrcp.f32 %v741_v1 }
 0x3fc   : > { %v795_v2 = vpop.permute.xlu1 %794 }
 0x400   : > { %v915_v5 = vpop.permute.xlu1 %914 }
 0x401   : > { %v920_v6 = vsel %vm685_vm1, %v915_v5, 0 }
 0x402   : > { %2345 = vmatpush3.bf16.xpose.msra.mxu0 %v920_v6 }
 0x403   : > { %2356 = vmatprep.subr.bf16.mxu0 %v2579_v3 }
 0x404   : > { %v913_v10 = vpop.permute.xlu1 %912 }
 0x406   : > { %v2539_v7 = vpop.eup %2538 }
 0x407   : > { %v743_v9 = vmul.f32 %v2539_v7, %v2537_v63 }
 0x408   : > { %v1029_v15 = vpop.permute.xlu1 %1028 }
 0x409   : > { %2347 = vmatmul.mubr.msk.bf16.vlgmr.msra.gmra.mxu0 %vm685_vm1, %v913_v10  ;;  %v744_v12 = vpack.c.bf16 %v743_v9, %v743_v9 }
 0x40a   : > { %2357 = vmatpush3.bf16.xpose.msra.mxu0 %v1036_v11  ;;  %2358 = vmatprep.mubr.msk.bf16.mxu0 %vm2581_vm0, %v2579_v3 }
 0x40b   : > { %2329 = vmatmul.mubr.msk.bf16.vlgmr.msra.gmra.mxu1 %vm732_vm3, %v744_v12  ;;  %2368 = vmatprep.subr.bf16.mxu0 %v2579_v3 }
 0x40c   : > { %2333 = vmatpush3.bf16.xpose.msra.mxu1 %v803_v13  ;;  %2334 = vmatprep.mubr.msk.bf16.mxu1 %vm2581_vm0, %v2579_v3  ;;  %v1145_v18 = vpop.permute.xlu1 %1144 }
 0x40d   : > { %2338 = vmatprep.subr.bf16.mxu1 %v2579_v3 }
 0x410   : > { %v1261_v21 = vpop.permute.xlu1 %1260 }
 0x411   : > { %2359 = vmatmul.mubr.msk.bf16.vlgmr.msra.gmra.mxu0 %vm685_vm1, %v1029_v15 }
 0x412   : > { %2369 = vmatpush3.bf16.xpose.msra.mxu0 %v1152_v16  ;;  %2370 = vmatprep.mubr.msk.bf16.mxu0 %vm2581_vm0, %v2579_v3 }
 0x413   : > { %2335 = vmatmul.mubr.msk.bf16.vlgmr.msra.gmra.mxu1 %vm685_vm1, %v795_v2  ;;  %2380 = vmatprep.subr.bf16.mxu0 %v2579_v3 }
 0x414   : > { %2340 = vmatprep.mubr.msk.bf16.mxu1 %vm2581_vm0, %v2579_v3  ;;  %v1377_v25 = vpop.permute.xlu1 %1376 }
 0x418   : > { %v1493_v27 = vpop.permute.xlu1 %1492 }
 0x419   : > { %2371 = vmatmul.mubr.msk.bf16.vlgmr.msra.gmra.mxu0 %vm685_vm1, %v1145_v18 }
 0x41a   : > { %2381 = vmatpush3.bf16.xpose.msra.mxu0 %v1268_v19  ;;  %2382 = vmatprep.mubr.msk.bf16.mxu0 %vm2581_vm0, %v2579_v3 }
 0x41b   : > { %2392 = vmatprep.subr.bf16.mxu0 %v2579_v3 }
 0x421   : > { %2383 = vmatmul.mubr.msk.bf16.vlgmr.msra.gmra.mxu0 %vm685_vm1, %v1261_v21 }
 0x422   : > { %2393 = vmatpush3.bf16.xpose.msra.mxu0 %v1384_v23  ;;  %2394 = vmatprep.mubr.msk.bf16.mxu0 %vm2581_vm0, %v2579_v3 }
 0x423   : > { %2404 = vmatprep.subr.bf16.mxu0 %v2579_v3 }
 0x429   : > { %2395 = vmatmul.mubr.msk.bf16.vlgmr.msra.gmra.mxu0 %vm685_vm1, %v1377_v25 }
 0x42a   : > { %2405 = vmatpush3.bf16.xpose.msra.mxu0 %v1500_v26  ;;  %2406 = vmatprep.mubr.msk.bf16.mxu0 %vm2581_vm0, %v2579_v3 }
 0x42b   : > { %2416 = vmatprep.subr.bf16.mxu0 %v2579_v3 }
 0x431   : > { %2407 = vmatmul.mubr.msk.bf16.vlgmr.msra.gmra.mxu0 %vm685_vm1, %v1493_v27 }
 0x432   : > { %2432 = vmatprep.mubr.msk.bf16.mxu0 %vm2581_vm0, %v2579_v3 }
 0x4c9   : > { %v956_v28 = vpop.f32.mrf.mxu0 }
 0x4ca   : > { %v962_v29 = vsel %vm732_vm3, %v956_v28, -inf }
 0x4cb   : > { %v786_v30 = vpop.f32.mrf.mxu1  ;;  %963 = vmax.xlane.f32.xlu1 %v962_v29  ;;  %v2348_v31 = vpop.f32.mrf.mxu0 }
 0x4cc   : > { %792 = vst.msk [vmem:[#allocation2] sm:$0xff] %vm685_vm1, %v786_v30 }
 0x4cd   : > { %v2330_v32 = vpop.f32.mrf.mxu1  ;;  %v959_v33 = vpop.f32.mrf.mxu0 }
 0x4cf   : > { %v789_v34 = vpop.f32.mrf.mxu1  ;;  %v2349_v35 = vpop.f32.mrf.mxu0 }
 0x4d1   : > { %v2331_v36 = vpop.f32.mrf.mxu1  ;;  %v1072_v37 = vpop.f32.mrf.mxu0 }
 0x4d2   : > { %v1078_v45 = vsel %vm732_vm3, %v1072_v37, -inf }
 0x4d3   : > { %v839_v38 = vpop.f32.mrf.mxu1  ;;  %v2360_v39 = vpop.f32.mrf.mxu0 }
 0x4d4   : > { %v845_v40 = vsel %vm732_vm3, %v839_v38, -inf }
 0x4d5   : > { %846 = vmax.xlane.f32.xlu0 %v845_v40  ;;  %v2336_v41 = vpop.f32.mrf.mxu1  ;;  %v1075_v42 = vpop.f32.mrf.mxu0 }
 0x4d7   : > { %v842_v43 = vpop.f32.mrf.mxu1  ;;  %v2361_v44 = vpop.f32.mrf.mxu0 }
 0x4d9   : > { %v2337_v46 = vpop.f32.mrf.mxu1  ;;  %1079 = vmax.xlane.f32.xlu0 %v1078_v45  ;;  %v1188_v47 = vpop.f32.mrf.mxu0 }
 0x4da   : > { %v1194_v49 = vsel %vm732_vm3, %v1188_v47, -inf }
 0x4db   : > { %v2372_v48 = vpop.f32.mrf.mxu0 }
 0x4dd   : > { %1195 = vmax.xlane.f32.xlu0 %v1194_v49  ;;  %v1191_v50 = vpop.f32.mrf.mxu0 }
 0x4df   : > { %v2373_v51 = vpop.f32.mrf.mxu0 }
 0x4e1   : > { %v1304_v53 = vpop.f32.mrf.mxu0 }
 0x4e2   : > { %v1310_v54 = vsel %vm732_vm3, %v1304_v53, -inf }
 0x4e3   : > { %1311 = vmax.xlane.f32.xlu0 %v1310_v54  ;;  %v2384_v55 = vpop.f32.mrf.mxu0 }
 0x4e5   : > { %v1307_v56 = vpop.f32.mrf.mxu0 }
 0x4e7   : > { %v2385_v57 = vpop.f32.mrf.mxu0 }
 0x4e9   : > { %v1420_v58 = vpop.f32.mrf.mxu0 }
 0x4ea   : > { %v1426_v59 = vsel %vm732_vm3, %v1420_v58, -inf }
 0x4eb   : > { %1427 = vmax.xlane.f32.xlu1 %v1426_v59  ;;  %v2396_v60 = vpop.f32.mrf.mxu0 }
 0x4ed   : > { %v1423_v61 = vpop.f32.mrf.mxu0 }
 0x4ef   : > { %v2397_v62 = vpop.f32.mrf.mxu0 }
 0x4f1   : > { %v1536_v63 = vpop.f32.mrf.mxu0 }
 0x4f2   : > { %v1542_v0 = vsel %vm732_vm3, %v1536_v63, -inf }
 0x4f3   : > { %1543 = vmax.xlane.f32.xlu0 %v1542_v0  ;;  %v2408_v1 = vpop.f32.mrf.mxu0 }
 0x4f5   : > { %v1539_v2 = vpop.f32.mrf.mxu0 }
 0x4f7   : > { %v2409_v4 = vpop.f32.mrf.mxu0 }
 0x554   : > { %v964_v5 = vpop.xlane.xlu1 %963 }
 0x555   : > { %v965_v6 = vsub.f32 %v956_v28, %v964_v5 }
 0x557   : > { %v966_v7 = vmul.f32 1.442695, %v965_v6 }
 0x559   : > { %2540 = vpow2.f32 %v966_v7 }
 0x55e   : > { %v847_v8 = vpop.xlane.xlu0 %846 }
 0x55f   : > { %v848_v9 = vsub.f32 %v839_v38, %v847_v8 }
 0x561   : > { %v849_v12 = vmul.f32 1.442695, %v848_v9 }
 0x562   : > { %v1080_v10 = vpop.xlane.xlu0 %1079 }
 0x563   : > { %v1081_v11 = vsub.f32 %v1072_v37, %v1080_v10 }
 0x565   : > { %v1082_v13 = vmul.f32 1.442695, %v1081_v11 }
 0x566   : > { %v2840_v14 = vpop.eup %2540  ;;  %v1196_v15 = vpop.xlane.xlu0 %1195 }
 0x567   : > { %2542 = vpow2.f32 %v1082_v13  ;;  %v1197_v16 = vsub.f32 %v1188_v47, %v1196_v15  ;;  %v968_v17 = vsel %vm732_vm3, %v2840_v14, 0.0 }
 0x568   : > { %969 = vadd.xlane.f32.xlu0 %v968_v17  ;;  %2544 = vpow2.f32 %v849_v12 }
 0x569   : > { %v1198_v18 = vmul.f32 1.442695, %v1197_v16 }
 0x56b   : > { %2546 = vpow2.f32 %v1198_v18 }
 0x56c   : > { %v1312_v19 = vpop.xlane.xlu0 %1311 }
 0x56d   : > { %v1313_v20 = vsub.f32 %v1304_v53, %v1312_v19 }
 0x56f   : > { %v1314_v21 = vmul.f32 1.442695, %v1313_v20 }
 0x571   : > { %2548 = vpow2.f32 %v1314_v21 }
 0x574   : > { %v2844_v23 = vpop.eup %2542  ;;  %v1428_v31 = vpop.xlane.xlu1 %1427 }
 0x575   : > { %v1084_v24 = vsel %vm732_vm3, %v2844_v23, 0.0  ;;  %v2545_v25 = vpop.eup %2544  ;;  %v1429_v32 = vsub.f32 %v1420_v58, %v1428_v31 }
 0x576   : > { %1085 = vadd.xlane.f32.xlu1 %v1084_v24  ;;  %v851_v27 = vsel %vm732_vm3, %v2545_v25, 0.0 }
 0x577   : > { %v1430_v33 = vmul.f32 1.442695, %v1429_v32 }
 0x578   : > { %v2848_v26 = vpop.eup %2546 }
 0x579   : > { %v1200_v28 = vsel %vm732_vm3, %v2848_v26, 0.0  ;;  %2550 = vpow2.f32 %v1430_v33  ;;  %v2487_v33 = vld [vmem:[%s3085_s4 + $0x30] sm:$0xff]  }
 0x57a   : > { %852 = vadd.xlane.f32.xlu1 %v851_v27  ;;  %1201 = vadd.xlane.f32.xlu0 %v1200_v28 }
 0x57c   : > { %v1544_v34 = vpop.xlane.xlu0 %1543 }
 0x57d   : > { %v1545_v35 = vsub.f32 %v1536_v63, %v1544_v34  ;;  %v2488_v34 = vld [vmem:[%s3085_s4 + $0x28] sm:$0xff]  }
 0x57e   : > { %v2853_v29 = vpop.eup %2548 }
 0x57f   : > { %v1316_v30 = vsel %vm732_vm3, %v2853_v29, 0.0  ;;  %v1546_v36 = vmul.f32 1.442695, %v1545_v35 }
 0x580   : > { %1317 = vadd.xlane.f32.xlu0 %v1316_v30 }
 0x581   : > { %2552 = vpow2.f32 %v1546_v36  ;;  %v2489_v36 = vld [vmem:[%s3085_s4 + $0x20] sm:$0xff]  }
 0x586   : > { %v2863_v37 = vpop.eup %2550 }
 0x587   : > { %v1432_v38 = vsel %vm732_vm3, %v2863_v37, 0.0 }
 0x58b   : > { %858 = vrot.lane.b32.xlu1 %v2771_v52, %s2582_s19 }
 0x58e   : > { %v2867_v39 = vpop.eup %2552 }
 0x58f   : > { %v1548_v40 = vsel %vm732_vm3, %v2867_v39, 0.0 }
 0x596   : > { %974 = vrot.lane.b32.xlu0 %v2771_v52, %s2588_s29 }
 0x59a   : > { %1090 = vrot.lane.b32.xlu0 %v2771_v52, %s2583_s20 }
 0x5af   : > { %1433 = vadd.xlane.f32.xlu1 %v1432_v38 }
 0x5b9   : > { %1549 = vadd.xlane.f32.xlu0 %v1548_v40  ;;  %v2490_v40 = vld [vmem:[%s3085_s4 + $0x18] sm:$0xff]  }
 0x5c0   : > { %1206 = vrot.lane.b32.xlu1 %v2771_v52, %s2584_s24 }
 0x5c4   : > { %1438 = vrot.lane.b32.xlu1 %v2771_v52, %s2586_s27 }
 0x5c8   : > { %1554 = vrot.lane.b32.xlu1 %v2771_v52, %s2587_s28 }
 0x5cf   : > { %1322 = vrot.lane.b32.xlu0 %v2771_v52, %s2585_s25 }
 0x5f1   : > { %v970_v43 = vpop.xlane.xlu0 %969 }
 0x5ff   : > { %v1086_v41 = vpop.xlane.xlu1 %1085 }
 0x603   : > { %v853_v42 = vpop.xlane.xlu1 %852  ;;  %v1202_v46 = vpop.xlane.xlu0 %1201 }
 0x604   : > { %2554 = vrcp.f32 %v853_v42 }
 0x605   : > { %2556 = vrcp.f32 %v970_v43 }
 0x606   : > { %2558 = vrcp.f32 %v1086_v41  ;;  %v2491_v41 = vld [vmem:[%s3085_s4 + $0x10] sm:$0xff]  }
 0x607   : > { %v859_v44 = vpop.permute.xlu1 %858  ;;  %2560 = vrcp.f32 %v1202_v46 }
 0x608   : > { %v864_v45 = vsel %vm748_vm2, %v859_v44, 0 }
 0x609   : > { %2339 = vmatpush3.bf16.msra.mxu1 %v864_v45  ;;  %v1318_v47 = vpop.xlane.xlu0 %1317  ;;  %v2492_v45 = vld [vmem:[%s3085_s4 + $0x8] sm:$0xff]  }
 0x60a   : > { %2350 = vmatprep.subr.bf16.mxu1 %v2579_v3  ;;  %2562 = vrcp.f32 %v1318_v47  ;;  %v2493_v47 = vld [vmem:[%s3085_s4] sm:$0xff]  }
 0x60d   : > { %v975_v50 = vpop.permute.xlu0 %974 }
 0x60e   : > { %v980_v52 = vsel %vm748_vm2, %v975_v50, 0 }
 0x611   : > { %v2555_v48 = vpop.eup %2554  ;;  %v1091_v55 = vpop.permute.xlu0 %1090 }
 0x612   : > { %v855_v49 = vmul.f32 %v2555_v48, %v2545_v25  ;;  %v2557_v53 = vpop.eup %2556  ;;  %v1096_v58 = vsel %vm748_vm2, %v1091_v55, 0 }
 0x613   : > { %v972_v54 = vmul.f32 %v2557_v53, %v2840_v14  ;;  %v2559_v57 = vpop.eup %2558 }
 0x614   : > { %v856_v51 = vpack.c.bf16 %v855_v49, %v855_v49  ;;  %v1088_v59 = vmul.f32 %v2559_v57, %v2844_v23  ;;  %v2561_v61 = vpop.eup %2560 }
 0x615   : > { %v973_v56 = vpack.c.bf16 %v972_v54, %v972_v54  ;;  %v1204_v63 = vmul.f32 %v2561_v61, %v2848_v26 }
 0x616   : > { %2341 = vmatmul.mubr.msk.bf16.vlgmr.msra.gmra.mxu1 %vm732_vm3, %v856_v51  ;;  %v1089_v60 = vpack.c.bf16 %v1088_v59, %v1088_v59 }
 0x617   : > { %2351 = vmatpush3.bf16.msra.mxu1 %v980_v52  ;;  %2352 = vmatprep.mubr.msk.bf16.mxu1 %vm2581_vm0, %v2579_v3  ;;  %v1205_v2 = vpack.c.bf16 %v1204_v63, %v1204_v63  ;;  %v2563_v4 = vpop.eup %2562 }
 0x618   : > { %2362 = vmatprep.subr.bf16.mxu1 %v2579_v3  ;;  %v1320_v6 = vmul.f32 %v2563_v4, %v2853_v29 }
 0x61a   : > { %v1321_v10 = vpack.c.bf16 %v1320_v6, %v1320_v6 }
 0x61e   : > { %2353 = vmatmul.mubr.msk.bf16.vlgmr.msra.gmra.mxu1 %vm732_vm3, %v973_v56 }
 0x61f   : > { %2363 = vmatpush3.bf16.msra.mxu1 %v1096_v58  ;;  %2364 = vmatprep.mubr.msk.bf16.mxu1 %vm2581_vm0, %v2579_v3 }
 0x620   : > { %2374 = vmatprep.subr.bf16.mxu1 %v2579_v3 }
 0x626   : > { %2365 = vmatmul.mubr.msk.bf16.vlgmr.msra.gmra.mxu1 %vm732_vm3, %v1089_v60 }
 0x627   : > { %2376 = vmatprep.mubr.msk.bf16.mxu1 %vm2581_vm0, %v2579_v3 }
 0x638   : > { %v1434_v62 = vpop.xlane.xlu1 %1433 }
 0x639   : > { %2564 = vrcp.f32 %v1434_v62 }
 0x63c   : > { %v1207_v0 = vpop.permute.xlu1 %1206 }
 0x63d   : > { %v1212_v1 = vsel %vm748_vm2, %v1207_v0, 0  ;;  %v2182_v0 = vld [vmem:[%s3086_s5] ss:$0 sm:$0xff] }
 0x63e   : > { %2375 = vmatpush3.bf16.msra.mxu1 %v1212_v1 }
 0x63f   : > { %2386 = vmatprep.subr.bf16.mxu1 %v2579_v3 }
 0x640   : > { %v1439_v9 = vpop.permute.xlu1 %1438 }
 0x641   : > { %2377 = vmatmul.mubr.msk.bf16.vlgmr.msra.gmra.mxu1 %vm732_vm3, %v1205_v2  ;;  %v1444_v12 = vsel %vm748_vm2, %v1439_v9, 0  ;;  %v2494_v9 = vld [vmem:[%s3089_s8 + $0x70] ss:$8 sps:$4 sm:$0xff]  }
 0x642   : > { %v1550_v5 = vpop.xlane.xlu0 %1549  ;;  %2388 = vmatprep.mubr.msk.bf16.mxu1 %vm2581_vm0, %v2579_v3 }
 0x643   : > { %2566 = vrcp.f32 %v1550_v5  ;;  %v2570_v5 = vld [vmem:[%s2670_s26] sm:$0xff] }
 0x644   : > { %v1555_v14 = vpop.permute.xlu1 %1554 }
 0x645   : > { %v1560_v17 = vsel %vm748_vm2, %v1555_v14, 0 }
 0x646   : > { %v1323_v7 = vpop.permute.xlu0 %1322  ;;  %v2565_v11 = vpop.eup %2564 }
 0x647   : > { %v1328_v8 = vsel %vm748_vm2, %v1323_v7, 0  ;;  %v1436_v13 = vmul.f32 %v2565_v11, %v2863_v37  ;;  %v2499_v11 = vld [vmem:[%s3089_s8 + $0x64] ss:$8 sps:$4 sm:$0xff]  }
 0x648   : > { %2387 = vmatpush3.bf16.msra.mxu1 %v1328_v8 }
 0x649   : > { %2398 = vmatprep.subr.bf16.mxu1 %v2579_v3  ;;  %v1437_v15 = vpack.c.bf16 %v1436_v13, %v1436_v13 }
 0x64b   : > { %2389 = vmatmul.mubr.msk.bf16.vlgmr.msra.gmra.mxu1 %vm732_vm3, %v1321_v10  ;;  %v2496_v10 = vld [vmem:[%s3089_s8 + $0x74] ss:$8 sps:$4 sm:$0xff]  }
 0x64c   : > { %2399 = vmatpush3.bf16.msra.mxu1 %v1444_v12  ;;  %2400 = vmatprep.mubr.msk.bf16.mxu1 %vm2581_vm0, %v2579_v3  ;;  %v2497_v12 = vld [vmem:[%s3089_s8 + $0x60] ss:$8 sps:$4 sm:$0xff]  }
 0x64d   : > { %2410 = vmatprep.subr.bf16.mxu1 %v2579_v3 }
 0x650   : > { %v2567_v16 = vpop.eup %2566 }
 0x651   : > { %v1552_v18 = vmul.f32 %v2567_v16, %v2867_v39 }
 0x653   : > { %2401 = vmatmul.mubr.msk.bf16.vlgmr.msra.gmra.mxu1 %vm732_vm3, %v1437_v15  ;;  %v1553_v19 = vpack.c.bf16 %v1552_v18, %v1552_v18  ;;  %v2500_v18 = vld [vmem:[%s3089_s8 + $0x50] ss:$8 sps:$4 sm:$0xff]  }
 0x654   : > { %2411 = vmatpush3.bf16.msra.mxu1 %v1560_v17  ;;  %2412 = vmatprep.mubr.msk.bf16.mxu1 %vm2581_vm0, %v2579_v3  ;;  %v2502_v17 = vld [vmem:[%s3089_s8 + $0x54] ss:$8 sps:$4 sm:$0xff]  }
 0x655   : > { %1858 = vmatprep.subr.bf16.mxu1 %v2496_v10  ;;  %v2209_v10 = vld [vmem:[%s3092_s11] ss:$0 sm:$0xff] }
 0x65b   : > { %2413 = vmatmul.mubr.msk.bf16.vlgmr.msra.gmra.mxu1 %vm732_vm3, %v1553_v19  ;;  %v2503_v19 = vld [vmem:[%s3089_s8 + $0x40] ss:$8 sps:$4 sm:$0xff]  }
 0x65c   : > { %1890 = vmatprep.mubr.bf16.mxu1 %v2580_v22  ;;  %v2486_v22 = vld [vmem:[%s3085_s4 + $0x38] sm:$0xff]   ;;  %1859 = vmatpush1.bf16.msra.mxu1 %v2494_v9 }
 0x65d   : > { %2417 = vmatpush3.bf16.msra.mxu0 %v2486_v22  ;;  %1860 = vmatprep.subr.bf16.mxu1 %v2499_v11  ;;  %v2521_v22 = vld [vmem:[%s3091_s10 + $0x30] sm:$0xff]  }
 0x65e   : > { %2418 = vmatprep.subr.bf16.mxu0 %v2579_v3 }
 0x660   : > { %1861 = vmatpush1.bf16.msra.mxu1 %v2497_v12 }
 0x661   : > { %2419 = vmatpush3.bf16.msra.mxu0 %v2487_v33  ;;  %1862 = vmatprep.subr.bf16.mxu1 %v2502_v17  ;;  %v2522_v33 = vld [vmem:[%s3091_s10 + $0x68] sm:$0xff]  }
 0x662   : > { %2420 = vmatprep.subr.bf16.mxu0 %v2579_v3 }
 0x664   : > { %1863 = vmatpush1.bf16.msra.mxu1 %v2500_v18 }
 0x665   : > { %2421 = vmatpush3.bf16.msra.mxu0 %v2488_v34  ;;  %v2523_v34 = vld [vmem:[%s3091_s10 + $0x28] sm:$0xff]  }
 0x666   : > { %2422 = vmatprep.subr.bf16.mxu0 %v2579_v3 }
 0x669   : > { %2423 = vmatpush3.bf16.msra.mxu0 %v2489_v36  ;;  %v2525_v36 = vld [vmem:[%s3091_s10 + $0x20] sm:$0xff]  }
 0x66a   : > { %2424 = vmatprep.subr.bf16.mxu0 %v2579_v3 }
 0x66d   : > { %2425 = vmatpush3.bf16.msra.mxu0 %v2490_v40  ;;  %v2529_v40 = vld [vmem:[%s3091_s10 + $0x10] sm:$0xff]  }
 0x66e   : > { %2426 = vmatprep.subr.bf16.mxu0 %v2579_v3 }
 0x671   : > { %2427 = vmatpush3.bf16.msra.mxu0 %v2491_v41 }
 0x672   : > { %2428 = vmatprep.subr.bf16.mxu0 %v2579_v3 }
 0x675   : > { %2429 = vmatpush3.bf16.msra.mxu0 %v2492_v45  ;;  %v2191_v45 = vld [vmem:[%s3087_s6] ss:$0 sm:$0xff] }
 0x676   : > { %2430 = vmatprep.subr.bf16.mxu0 %v2579_v3 }
 0x679   : > { %2431 = vmatpush3.bf16.msra.mxu0 %v2493_v47  ;;  %v2192_v47 = vld [vmem:[%s3088_s7] ss:$0 sm:$0xff] }
 0x6d6   : > { %v900_v20 = vpop.f32.mrf.mxu1 }
 0x6d7   : > { %907 = vrot.lane.b32.xlu1 %v900_v20, %s2587_s28  ;;  %v2505_v20 = vld [vmem:[%s3089_s8 + $0x44] ss:$8 sps:$4 sm:$0xff]  }
 0x6d8   : > { %v2342_v21 = vpop.f32.mrf.mxu1  ;;  %1864 = vmatprep.subr.bf16.mxu1 %v2505_v20 }
 0x6d9   : > { %v2508_v21 = vld [vmem:[%s3089_s8 + $0x34] ss:$8 sps:$4 sm:$0xff]   ;;  %1865 = vmatpush1.bf16.msra.mxu1 %v2503_v19 }
 0x6da   : > { %v903_v23 = vpop.f32.mrf.mxu1  ;;  %1866 = vmatprep.subr.bf16.mxu1 %v2508_v21 }
 0x6db   : > { %v2506_v23 = vld [vmem:[%s3089_s8 + $0x30] ss:$8 sps:$4 sm:$0xff]  }
 0x6dc   : > { %v2343_v24 = vpop.f32.mrf.mxu1 }
 0x6dd   : > { %v2511_v24 = vld [vmem:[%s3089_s8 + $0x24] ss:$8 sps:$4 sm:$0xff]   ;;  %1867 = vmatpush1.bf16.msra.mxu1 %v2506_v23 }
 0x6de   : > { %v1016_v25 = vpop.f32.mrf.mxu1  ;;  %1868 = vmatprep.subr.bf16.mxu1 %v2511_v24 }
 0x6df   : > { %1023 = vrot.lane.b32.xlu1 %v1016_v25, %s2586_s27  ;;  %v2509_v25 = vld [vmem:[%s3089_s8 + $0x20] ss:$8 sps:$4 sm:$0xff]  }
 0x6e0   : > { %v2354_v26 = vpop.f32.mrf.mxu1 }
 0x6e1   : > { %v2514_v26 = vld [vmem:[%s3089_s8 + $0x14] ss:$8 sps:$4 sm:$0xff]   ;;  %1869 = vmatpush1.bf16.msra.mxu1 %v2509_v25 }
 0x6e2   : > { %v1019_v27 = vpop.f32.mrf.mxu1  ;;  %1870 = vmatprep.subr.bf16.mxu1 %v2514_v26 }
 0x6e3   : > { %v2512_v27 = vld [vmem:[%s3089_s8 + $0x10] ss:$8 sps:$4 sm:$0xff]  }
 0x6e4   : > { %v2355_v28 = vpop.f32.mrf.mxu1 }
 0x6e5   : > { %v2517_v28 = vld [vmem:[%s3089_s8 + $0x4] ss:$8 sps:$4 sm:$0xff]   ;;  %1871 = vmatpush1.bf16.msra.mxu1 %v2512_v27 }
 0x6e6   : > { %v1132_v29 = vpop.f32.mrf.mxu1  ;;  %1872 = vmatprep.subr.bf16.mxu1 %v2517_v28 }
 0x6e7   : > { %1139 = vrot.lane.b32.xlu1 %v1132_v29, %s2585_s25  ;;  %v2515_v29 = vld [vmem:[%s3089_s8] ss:$8 sps:$4 sm:$0xff]  }
 0x6e8   : > { %v2366_v30 = vpop.f32.mrf.mxu1 }
 0x6e9   : > { %1873 = vmatpush1.bf16.msra.mxu1 %v2515_v29  ;;  %v2518_v30 = vld [vmem:[%s3091_s10 + $0x78] sm:$0xff]  }
 0x6ea   : > { %v1135_v31 = vpop.f32.mrf.mxu1  ;;  %2278 = vmatprep.subr.bf16.mxu0 %v2518_v30 }
 0x6eb   : > { %v2519_v31 = vld [vmem:[%s3091_s10 + $0x38] sm:$0xff]  }
 0x6ec   : > { %v2367_v32 = vpop.f32.mrf.mxu1 }
 0x6ed   : > { %v2520_v32 = vld [vmem:[%s3091_s10 + $0x70] sm:$0xff]  }
 0x701   : > { %v1248_v35 = vpop.f32.mrf.mxu1 }
 0x702   : > { %1255 = vrot.lane.b32.xlu0 %v1248_v35, %s2584_s24  ;;  %v2524_v35 = vld [vmem:[%s3091_s10 + $0x60] sm:$0xff]  }
 0x703   : > { %v2378_v37 = vpop.f32.mrf.mxu1 }
 0x704   : > { %v2526_v37 = vld [vmem:[%s3091_s10 + $0x58] sm:$0xff]  }
 0x705   : > { %v1251_v38 = vpop.f32.mrf.mxu1 }
 0x706   : > { %v2527_v38 = vld [vmem:[%s3091_s10 + $0x18] sm:$0xff]  }
 0x707   : > { %v2379_v39 = vpop.f32.mrf.mxu1 }
 0x708   : > { %v2528_v39 = vld [vmem:[%s3091_s10 + $0x50] sm:$0xff]  }
 0x70b   : > { %v1364_v42 = vpop.f32.mrf.mxu1 }
 0x70c   : > { %1371 = vrot.lane.b32.xlu1 %v1364_v42, %s2583_s20  ;;  %s408_s20 = scalar_lea.vmem %s3093_s12, %s2138_s23 }
 0x70d   : > { %v2390_v43 = vpop.f32.mrf.mxu1 }
 0x70f   : > { %v1367_v44 = vpop.f32.mrf.mxu1 }
 0x711   : > { %v2391_v46 = vpop.f32.mrf.mxu1 }
 0x713   : > { %v1480_v48 = vpop.f32.mrf.mxu1 }
 0x714   : > { %1487 = vrot.lane.b32.xlu0 %v1480_v48, %s2588_s29 }
 0x715   : > { %v2402_v49 = vpop.f32.mrf.mxu1 }
 0x717   : > { %v1483_v50 = vpop.f32.mrf.mxu1 }
 0x719   : > { %v2403_v51 = vpop.f32.mrf.mxu1 }
 0x71a   : > { %v2530_v51 = vld [vmem:[%s3091_s10 + $0x48] sm:$0xff]  }
 0x71b   : > { %v1596_v53 = vpop.f32.mrf.mxu1 }
 0x71c   : > { %1603 = vrot.lane.b32.xlu1 %v1596_v53, %s2582_s19  ;;  %v2531_v53 = vld [vmem:[%s3091_s10 + $0x8] sm:$0xff]  }
 0x71d   : > { %v2414_v52 = vpop.f32.mrf.mxu1 }
 0x71e   : > { %v2532_v52 = vld [vmem:[%s3091_s10 + $0x40] sm:$0xff]  }
 0x71f   : > { %v1599_v54 = vpop.f32.mrf.mxu1 }
 0x720   : > { %v2533_v54 = vld [vmem:[%s3091_s10] sm:$0xff]  }
 0x721   : > { %v2415_v55 = vpop.f32.mrf.mxu1 }
 0x722   : > { %v1768_v55 = vlaneseq }
 0x749   : > { %v908_v56 = vpop.permute.xlu1 %907 }
 0x74a   : > { %911 = vst.msk [vmem:[#allocation2] sm:$0xff] %vm910_vm4, %v908_v56  ;;  %v1769_v56 = vshrl.u32 %v1768_v55, 7 }
 0x751   : > { %v1024_v57 = vpop.permute.xlu1 %1023 }
 0x752   : > { %1027 = vst.msk [vmem:[#allocation2] sm:$0xff] %vm1026_vm5, %v1024_v57  ;;  %v1770_v57 = vsub.s32 0, %v1769_v56 }
 0x759   : > { %v1140_v3 = vpop.permute.xlu1 %1139 }
 0x75a   : > { %1143 = vst.msk [vmem:[#allocation2] sm:$0xff] %vm1142_vm6, %v1140_v3  ;;  %v1766_v3 = vld [vmem:[%s3090_s9] sm:$0x3] }
 0x774   : > { %v1256_v58 = vpop.permute.xlu0 %1255 }
 0x775   : > { %1259 = vst.msk [vmem:[#allocation2] sm:$0xff] %vm1258_vm7, %v1256_v58  ;;  %v1774_v58 = vsub.s32 1, %v1769_v56 }
 0x77e   : > { %v1372_v59 = vpop.permute.xlu1 %1371 }
 0x77f   : > { %1375 = vst.msk [vmem:[#allocation2] sm:$0xff] %vm1374_vm8, %v1372_v59  ;;  %v1771_v59 = vrot.slane %v1766_v3, %v1770_v57 }
 0x786   : > { %v1488_v60 = vpop.permute.xlu0 %1487 }
 0x787   : > { %1491 = vst.msk [vmem:[#allocation2] sm:$0xff] %vm1490_vm9, %v1488_v60  ;;  %v1775_v60 = vrot.slane %v1766_v3, %v1774_v58 }
 0x78e   : > { %v1604_v61 = vpop.permute.xlu1 %1603 }
 0x78f   : > { %1607 = vst.msk [vmem:[#allocation2] sm:$0xff] %vm1606_vm10, %v1604_v61 }
 0x796   : > { %v1608_v62 = vld [vmem:[#allocation2] sm:$0xff] }
 0x797   : > { %v1609_v63 = vpack.c.bf16 %v1608_v62, %v1608_v62 }
 0x799   : > { %2433 = vmatmul.mubr.bf16.vlgmr.msra.gmra.mxu0 %v1609_v63 }
 0x79a   : > { %2279 = vmatpush3.bf16.msra.mxu0 %v2519_v31 }
 0x79b   : > { %2280 = vmatprep.subr.bf16.mxu0 %v2520_v32 }
 0x79e   : > { %2281 = vmatpush3.bf16.msra.mxu0 %v2521_v22 }
 0x79f   : > { %2282 = vmatprep.subr.bf16.mxu0 %v2522_v33 }
 0x7a2   : > { %2283 = vmatpush3.bf16.msra.mxu0 %v2523_v34 }
 0x7a3   : > { %2284 = vmatprep.subr.bf16.mxu0 %v2524_v35 }
 0x7a6   : > { %2285 = vmatpush3.bf16.msra.mxu0 %v2525_v36 }
 0x7a7   : > { %2286 = vmatprep.subr.bf16.mxu0 %v2526_v37 }
 0x7aa   : > { %2287 = vmatpush3.bf16.msra.mxu0 %v2527_v38 }
 0x7ab   : > { %2288 = vmatprep.subr.bf16.mxu0 %v2528_v39 }
 0x7ae   : > { %2289 = vmatpush3.bf16.msra.mxu0 %v2529_v40 }
 0x7af   : > { %2290 = vmatprep.subr.bf16.mxu0 %v2530_v51 }
 0x7b2   : > { %2291 = vmatpush3.bf16.msra.mxu0 %v2531_v53 }
 0x7b3   : > { %2292 = vmatprep.subr.bf16.mxu0 %v2532_v52 }
 0x7b6   : > { %2293 = vmatpush3.bf16.msra.mxu0 %v2533_v54 }
 0x859   : > { %v1715_v1 = vpop.f32.mrf.mxu0 }
 0x85a   : > { %v1716_v2 = vadd.f32 %v2182_v0, %v1715_v1 }
 0x85b   : > { %v2434_v4 = vpop.f32.mrf.mxu0 }
 0x85c   : > { %v2960_v6 = vadd.f32 %v2570_v5, %v1716_v2 }
 0x85d   : > { %v1718_v7 = vpop.f32.mrf.mxu0 }
 0x85e   : > { %1724 = vadd.xlane.f32.xlu0 %v2960_v6 }
 0x85f   : > { %v2435_v8 = vpop.f32.mrf.mxu0 }
 0x8e7   : > { %v1725_v13 = vpop.xlane.xlu0 %1724 }
 0x8e8   : > { %v1726_v14 = vmul.f32 0.0078125, %v1725_v13 }
 0x8ea   : > { %v1727_v15 = vsub.f32 %v2960_v6, %v1726_v14 }
 0x8ec   : > { %v1728_v16 = vmul.f32 %v1727_v15, %v1727_v15 }
 0x8ee   : > { %1729 = vadd.xlane.f32.xlu1 %v1728_v16 }
 0x977   : > { %v1730_v41 = vpop.xlane.xlu1 %1729 }
 0x978   : > { %v1731_v42 = vmul.f32 0.0078125, %v1730_v41 }
 0x97a   : > { %v1732_v43 = vadd.f32 1e-05, %v1731_v42 }
 0x97c   : > { %2568 = vrsqrt.f32 %v1732_v43 }
 0x989   : > { %v2569_v44 = vpop.eup %2568 }
 0x98a   : > { %v1734_v46 = vmul.f32 %v2569_v44, %v1727_v15 }
 0x98c   : > { %v1741_v48 = vmul.f32 %v2191_v45, %v1734_v46 }
 0x98e   : > { %v1748_v49 = vadd.f32 %v2192_v47, %v1741_v48 }
 0x990   : > { %v1749_v50 = vpack.c.bf16 %v1748_v49, %v1748_v49 }
 0x992   : > { %1891 = vmatmul.mubr.bf16.vlgmr.msra.gmra.mxu1 %v1749_v50 }
 0xa52   : > { %v1892_v61 = vpop.f32.mrf.mxu1 }
 0xa53   : > { %v1893_v62 = vadd.f32 %v1892_v61, %v1771_v59 }
 0xa54   : > { %v1894_v63 = vpop.f32.mrf.mxu1 }
 0xa55   : > { %v1895_v0 = vadd.f32 %v1894_v63, %v1775_v60  ;;  %v1899_v1 = vmax.f32 %v1893_v62, 0.0 }
 0xa56   : > { %v1896_v2 = vpop.f32.mrf.mxu1 }
 0xa57   : > { %v1900_v4 = vmax.f32 %v1895_v0, 0.0  ;;  %v1901_v8 = vpack.c.bf16 %v1899_v1, %v1899_v1 }
 0xa58   : > { %v1897_v5 = vpop.f32.mrf.mxu1 }
 0xa59   : > { %v1902_v7 = vpack.c.bf16 %v1900_v4, %v1900_v4 }
 0xa5b   : > { %2070 = vmatprep.mubr.bf16.mxu0 %v1902_v7 }
 0xa5c   : > { %2071 = vmatmul.mubr.bf16.vlgmr.msra.gmra.mxu0 %v1901_v8 }
 0xb1c   : > { %v2294_v9 = vpop.f32.mrf.mxu0 }
 0xb1e   : > { %v2295_v11 = vpop.f32.mrf.mxu0 }
 0xb1f   : > { %v2296_v12 = vadd.f32 %v2295_v11, %v2294_v9 }
 0xb20   : > { %v2297_v13 = vpop.f32.mrf.mxu0 }
 0xb21   : > { %v2073_v14 = vadd.f32 %v2296_v12, %v2209_v10 }
 0xb22   : > { %v2298_v15 = vpop.f32.mrf.mxu0 }
 0xb23   : > { %v2078_v16 = vadd.f32 %v2073_v14, %v2960_v6 }
 0xb25   : > { %2079 = vst [vmem:[%s408_s20] sm:$0xff] %v2078_v16 }
 0xb26 PF: > { %s22_s21 = sadd.s32 1, %s2577_s21  }
 0xb27   : > { %p19_p4 = scmp.ge.s32.totalorder %s22_s21, 4  }
 0xb29   :  { %21 = sbr.rel (!%p19_p4) target bundleno = 1 (0x1), region = 98 }

// kernel: transformer_mapper_seq_forward.2
= control target key start
LH: loop header
LB: loop body
LE: loop exit
PB: predicated region body
PF: predicated region fallthrough
CT: control target
= control target key end

     0   :  { %17 = vsyncpa [#allocation4], 0  ;;  %s3189_s0 = inlined_call_operand.vmem [shape: f32[2,8,128], index: 0, kind: input, shape index: {}, may-alias: {0,12}]   ;;  %s3190_s1 = inlined_call_operand.vmem [shape: f32[1,128], index: 1, kind: input, shape index: {}]   ;;  %s3191_s2 = inlined_call_operand.vmem [shape: f32[1,128], index: 2, kind: input, shape index: {}]   ;;  %s3192_s3 = inlined_call_operand.hbm [shape: bf16[128,384], index: 3, kind: input, shape index: {}]   ;;  %s3193_s4 = inlined_call_operand.vmem [shape: bf16[128,128], index: 4, kind: input, shape index: {}]   ;;  %s3194_s5 = inlined_call_operand.vmem [shape: f32[1,128], index: 5, kind: input, shape index: {}]   ;;  %s3195_s6 = inlined_call_operand.vmem [shape: f32[1,128], index: 6, kind: input, shape index: {}]   ;;  %s3196_s7 = inlined_call_operand.vmem [shape: f32[1,128], index: 7, kind: input, shape index: {}]   ;;  %s3197_s8 = inlined_call_operand.hbm [shape: bf16[128,256], index: 8, kind: input, shape index: {}]   ;;  %s3198_s9 = inlined_call_operand.vmem [shape: f32[1,256], index: 9, kind: input, shape index: {}]   ;;  %s3199_s10 = inlined_call_operand.hbm [shape: bf16[256,128], index: 10, kind: input, shape index: {}]   ;;  %s3200_s11 = inlined_call_operand.vmem [shape: f32[1,128], index: 11, kind: input, shape index: {}]   ;;  %s3201_s12 = inlined_call_operand.vmem [shape: f32[2,8,128], index: 12, kind: output, shape index: {}, may-alias: {0,12}]  }
   0x1   :  { %18 = vsyncpa [#allocation6], 0  ;;  %s2867_s21 = smov 0  }
   0x2 LB: > { %s2783_s22 = smov [#allocation5]   ;;  %s2873_s24 = sadd.s32 4294967295, %s2781_s21   ;;  %s2781_s21 = sphi %s2867_s21, %s24_s21  }
   0x3   : > { %s355_s23 = sshll.u32 %s2783_s22, 4  ;;  %p2210_p0 = scmp.ge.s32.totalorder %s2781_s21, 1  ;;  %s356_s23 = int_to_ptr.vmem [resolvable:$true] %s355_s23 }
   0x4   : > { %p312_p1 = scmp.lt.s32.totalorder %s2781_s21, 3  ;;  %p2539_p2 = scmp.eq.s32.totalorder %s2873_s24, 0 }
   0x5   : > { %s2784_s26 = smov [#allocation3]   ;;  %s2785_s29 = smov [#allocation7]  }
   0x6   : > { %p2878_p3 = pnand %p2210_p0, %p312_p1  ;;  %s330_s27 = sshll.u32 %s2784_s26, 4  ;;  %s2884_s27 = int_to_ptr.vmem [resolvable:$true] %s330_s27 }
   0x7   : > { %s2892_s30 = sshll.u32 %s2785_s29, 4  ;;  %s2700_s13 = scalar_lea.vmem %s356_s23, 2048  ;;  %s372_s30 = int_to_ptr.vmem [resolvable:$true] %s2892_s30 }
   0x8   : > { %p2529_p4 = pneg %p2878_p3  ;;  %p2701_p7 = scmp.ne.s32.totalorder %s356_s23, %s2700_s13 }
   0x9   : > { %p2708_p10 = scmp.lt.s32.totalorder %s356_s23, %s356_s23  ;;  %p2709_p11 = scmp.lt.s32.totalorder %s2700_s13, %s2700_s13 }
   0xa   : > { %p2888_p5 = pnand %p2539_p2, %p2529_p4 }
   0xb   : > { %p2710_p12 = por %p2709_p11, %p2708_p10 }
   0xc   : > { %p2691_p6 = pneg %p2888_p5 }
   0xe   : > { %p2703_p8 = pnand %p2701_p7, %p2691_p6 }
  0x10   : > { %p2704_p9 = pneg %p2703_p8 }
  0x12   : > { %p2711_p13 = pnand %p2710_p12, %p2704_p9 }
  0x14   : > { %2714 = shalt.err (!%p2711_p13)
}
  0x15   : > { %s2786_s14 = smov 128   ;;  %s2787_s15 = smov 8  }
  0x16   : > { %2535 = dma.hbm_to_vmem [thread:$0]  (!%p2888_p5), %s3197_s8, 2048, %s356_s23, [#allocation6], %s2786_s14, %s2786_s14, %s2787_s15  }
  0x17   : > { %s2726_s18 = scalar_lea.vmem %s2884_s27, 3072  ;;  %p2734_p7 = scmp.lt.s32.totalorder %s2884_s27, %s2884_s27 }
  0x18   : > { %p2727_p0 = scmp.ne.s32.totalorder %s2884_s27, %s2726_s18  ;;  %p2735_p8 = scmp.lt.s32.totalorder %s2726_s18, %s2726_s18 }
  0x1a   : > { %p2729_p1 = pnand %p2727_p0, %p2691_p6  ;;  %p2736_p9 = por %p2735_p8, %p2734_p7 }
  0x1c   : > { %p2730_p4 = pneg %p2729_p1 }
  0x1e   : > { %p2737_p10 = pnand %p2736_p9, %p2730_p4 }
  0x20   : > { %2740 = shalt.err (!%p2737_p10)
}
  0x21   : > { %s2788_s19 = smov 192   ;;  %s2789_s20 = smov 12  }
  0x22   : > { %2532 = dma.hbm_to_vmem [thread:$0]  (!%p2888_p5), %s3192_s3, 3072, %s2884_s27, [#allocation4], %s2788_s19, %s2788_s19, %s2789_s20  }
  0x23   : > { %s2752_s26 = scalar_lea.vmem %s372_s30, 2048  ;;  %p2760_p0 = scmp.lt.s32.totalorder %s372_s30, %s372_s30 }
  0x24   : > { %p2753_p11 = scmp.ne.s32.totalorder %s372_s30, %s2752_s26  ;;  %p2761_p1 = scmp.lt.s32.totalorder %s2752_s26, %s2752_s26 }
  0x26   : > { %p2755_p12 = pnand %p2753_p11, %p2691_p6  ;;  %p2762_p4 = por %p2761_p1, %p2760_p0 }
  0x28   : > { %p2756_p13 = pneg %p2755_p12 }
  0x2a   : > { %p2763_p7 = pnand %p2762_p4, %p2756_p13 }
  0x2c   : > { %2766 = shalt.err (!%p2763_p7)
}
  0x2d   : > { %s2790_s29 = smov 64   ;;  %s2791_s13 = smov 4  }
  0x2e   : > { %2538 = dma.hbm_to_vmem [thread:$0]  (!%p2888_p5), %s3199_s10, 2048, %s372_s30, [#allocation6], %s2790_s29, %s2790_s29, %s2791_s13  }
  0x2f   : > { %397 = sbr.rel (%p2878_p3) target bundleno = 2900 (0xb54), region = 68 }
  0x34   : > { %2772 = dma.done.wait (%p2539_p2), [#allocation4], 3072  }
  0x35   : > { %2774 = vsyncadd (%p2539_p2), [#allocation4], 4294964224 }
  0x36   : > { %2776 = dma.done.wait (%p2539_p2), [#allocation6], 4096  }
  0x37   : > { %2778 = vsyncadd (%p2539_p2), [#allocation6], 4294963200  ;;  %p445_p6 = scmp.lt.s32.totalorder %s2873_s24, 1  ;;  %v2572_v1 = vld [vmem:[#allocation3 + $0xac] ss:$12 sps:$4 sm:$0xff]   ;;  %v2792_v3 = vmov 0.0  }
  0x38   : > { %v2574_v2 = vld [vmem:[#allocation3 + $0xa8] ss:$12 sps:$4 sm:$0xff]   ;;  %2381 = vmatprep.subr.bf16.mxu1 %v2792_v3  ;;  %v2575_v4 = vld [vmem:[#allocation3 + $0xb0] ss:$12 sps:$4 sm:$0xff]   ;;  %644 = vmatprep.subr.bf16.mxu0 %v2572_v1  ;;  %v2579_v7 = vld [vmem:[#allocation3 + $0x98] ss:$12 sps:$4 sm:$0xff]  }
  0x39   : > { %s3205_s24 = smov (!%p445_p6, %s2873_s24), 1  ;;  %v2576_v5 = vld [vmem:[#allocation3 + $0x94] ss:$12 sps:$4 sm:$0xff]   ;;  %v2578_v6 = vld [vmem:[#allocation3 + $0x90] ss:$12 sps:$4 sm:$0xff]   ;;  %645 = vmatpush1.bf16.msra.mxu0 %v2574_v2  ;;  %2382 = vmatpush3.bf16.msra.mxu1 %v2575_v4  ;;  %v2793_v22 = vmov 0  }
  0x3a   : > { %s2219_s25 = sshll.u32 %s3205_s24, 3  ;;  %646 = vmatprep.subr.bf16.mxu0 %v2576_v5  ;;  %2383 = vmatprep.subr.bf16.mxu1 %v2792_v3  ;;  %v2580_v12 = vld [vmem:[#allocation3 + $0x7c] ss:$12 sps:$4 sm:$0xff]   ;;  %v2582_v13 = vld [vmem:[#allocation3 + $0x78] ss:$12 sps:$4 sm:$0xff]   ;;  %vm2794_vm0 = vmmov 0  }
  0x3b   : > { %s2946_s30 = scalar_lea.vmem %s3189_s0, %s2219_s25  ;;  %v2583_v14 = vld [vmem:[#allocation3 + $0x80] ss:$12 sps:$4 sm:$0xff]   ;;  %v2584_v15 = vld [vmem:[#allocation3 + $0x64] ss:$12 sps:$4 sm:$0xff]   ;;  %v2587_v17 = vld [vmem:[#allocation3 + $0x68] ss:$12 sps:$4 sm:$0xff]   ;;  %676 = vmatprep.mubr.bf16.mxu0 %v2793_v22  ;;  %2397 = vmatprep.mubr.msk.bf16.mxu1 %vm2794_vm0, %v2792_v3  ;;  %s452_s28 = scalar_lea.vmem %s3201_s12, %s2219_s25 }
  0x3c   : > { %v454_v0 = vld [vmem:[%s2946_s30] sm:$0xff]  ;;  %v2586_v16 = vld [vmem:[#allocation3 + $0x60] ss:$12 sps:$4 sm:$0xff]   ;;  %v2590_v19 = vld [vmem:[#allocation3 + $0x48] ss:$12 sps:$4 sm:$0xff]   ;;  %vm729_vm1 = vcmask 130048  }
  0x3d   : > { %457 = vadd.xlane.f32.xlu0 %v454_v0  ;;  %647 = vmatpush1.bf16.msra.mxu0 %v2578_v6  ;;  %v2588_v18 = vld [vmem:[#allocation3 + $0x4c] ss:$12 sps:$4 sm:$0xff]   ;;  %v2591_v20 = vld [vmem:[#allocation3 + $0x50] ss:$12 sps:$4 sm:$0xff]   ;;  %v2592_v21 = vld [vmem:[#allocation3 + $0x34] ss:$12 sps:$4 sm:$0xff]  }
  0x3e   : > { %2384 = vmatpush3.bf16.msra.mxu1 %v2579_v7  ;;  %648 = vmatprep.subr.bf16.mxu0 %v2580_v12  ;;  %v2594_v23 = vld [vmem:[#allocation3 + $0x30] ss:$12 sps:$4 sm:$0xff]   ;;  %v2595_v24 = vld [vmem:[#allocation3 + $0x38] ss:$12 sps:$4 sm:$0xff]   ;;  %v2599_v27 = vld [vmem:[#allocation3 + $0x20] ss:$12 sps:$4 sm:$0xff]  }
  0x3f   : > { %2385 = vmatprep.subr.bf16.mxu1 %v2792_v3  ;;  %v2596_v25 = vld [vmem:[#allocation3 + $0x1c] ss:$12 sps:$4 sm:$0xff]   ;;  %v2598_v26 = vld [vmem:[#allocation3 + $0x18] ss:$12 sps:$4 sm:$0xff]   ;;  %v2602_v29 = vld [vmem:[#allocation3] ss:$12 sps:$4 sm:$0xff]  }
  0x40   : > { %v2600_v28 = vld [vmem:[#allocation3 + $0x4] ss:$12 sps:$4 sm:$0xff]   ;;  %v2603_v30 = vld [vmem:[#allocation3 + $0x8] ss:$12 sps:$4 sm:$0xff]   ;;  %v2221_v35 = vld [vmem:[%s3190_s1] ss:$0 sm:$0xff] }
  0x41   : > { %649 = vmatpush1.bf16.msra.mxu0 %v2582_v13  ;;  %v2222_v37 = vld [vmem:[%s3191_s2] ss:$0 sm:$0xff]  ;;  %s2795_s20 = smov 112   ;;  %s2796_s22 = smov 80   ;;  %vm792_vm2 = vcmask 1043456   ;;  %vm776_vm3 = vcmask 64512  }
  0x42   : > { %2386 = vmatpush3.bf16.msra.mxu1 %v2583_v14  ;;  %650 = vmatprep.subr.bf16.mxu0 %v2584_v15  ;;  %s2797_s23 = smov 64   ;;  %s2798_s26 = smov 48   ;;  %vm954_vm4 = vcmask 261248   ;;  %vm1070_vm5 = vcmask 392448   ;;  %vm1186_vm6 = vcmask 523648   ;;  %vm1302_vm7 = vcmask 654848  }
  0x43   : > { %2387 = vmatprep.subr.bf16.mxu1 %v2792_v3  ;;  %s2799_s29 = smov 32   ;;  %s2800_s13 = smov 16   ;;  %vm1418_vm8 = vcmask 786048   ;;  %vm1534_vm9 = vcmask 917248   ;;  %vm1650_vm10 = vcmask 1048448  }
  0x44   : > { %s2801_s14 = smov 96  }
  0x45   : > { %651 = vmatpush1.bf16.msra.mxu0 %v2586_v16 }
  0x46   : > { %2388 = vmatpush3.bf16.msra.mxu1 %v2587_v17  ;;  %652 = vmatprep.subr.bf16.mxu0 %v2588_v18 }
  0x47   : > { %2389 = vmatprep.subr.bf16.mxu1 %v2792_v3 }
  0x49   : > { %653 = vmatpush1.bf16.msra.mxu0 %v2590_v19 }
  0x4a   : > { %2390 = vmatpush3.bf16.msra.mxu1 %v2591_v20  ;;  %654 = vmatprep.subr.bf16.mxu0 %v2592_v21 }
  0x4b   : > { %2391 = vmatprep.subr.bf16.mxu1 %v2792_v3 }
  0x4d   : > { %655 = vmatpush1.bf16.msra.mxu0 %v2594_v23 }
  0x4e   : > { %2392 = vmatpush3.bf16.msra.mxu1 %v2595_v24  ;;  %656 = vmatprep.subr.bf16.mxu0 %v2596_v25 }
  0x4f   : > { %2393 = vmatprep.subr.bf16.mxu1 %v2792_v3 }
  0x51   : > { %657 = vmatpush1.bf16.msra.mxu0 %v2598_v26 }
  0x52   : > { %2394 = vmatpush3.bf16.msra.mxu1 %v2599_v27  ;;  %658 = vmatprep.subr.bf16.mxu0 %v2600_v28 }
  0x53   : > { %2395 = vmatprep.subr.bf16.mxu1 %v2792_v3 }
  0x55   : > { %659 = vmatpush1.bf16.msra.mxu0 %v2602_v29 }
  0x56   : > { %2396 = vmatpush3.bf16.msra.mxu1 %v2603_v30  ;;  %2425 = vmatprep.subr.bf16.mxu0 %v2792_v3 }
  0x57   : > { %2401 = vmatprep.subr.bf16.mxu1 %v2792_v3 }
  0xc6   : > { %v458_v8 = vpop.xlane.xlu0 %457 }
  0xc7   : > { %v460_v9 = vmul.f32 0.0078125, %v458_v8 }
  0xc9   : > { %v461_v10 = vsub.f32 %v454_v0, %v460_v9 }
  0xcb   : > { %v462_v11 = vmul.f32 %v461_v10, %v461_v10 }
  0xcd   : > { %463 = vadd.xlane.f32.xlu0 %v462_v11 }
 0x156   : > { %v464_v31 = vpop.xlane.xlu0 %463 }
 0x157   : > { %v465_v32 = vmul.f32 0.0078125, %v464_v31 }
 0x159   : > { %v466_v33 = vadd.f32 1e-05, %v465_v32 }
 0x15b   : > { %2652 = vrsqrt.f32 %v466_v33 }
 0x168   : > { %v2653_v34 = vpop.eup %2652 }
 0x169   : > { %v468_v36 = vmul.f32 %v2653_v34, %v461_v10 }
 0x16b   : > { %v475_v38 = vmul.f32 %v2221_v35, %v468_v36 }
 0x16d   : > { %v482_v39 = vadd.f32 %v2222_v37, %v475_v38 }
 0x16f   : > { %v483_v40 = vpack.c.bf16 %v482_v39, %v482_v39 }
 0x171   : > { %677 = vmatmul.mubr.bf16.vlgmr.msra.gmra.mxu0 %v483_v40  ;;  %2398 = vmatmul.mubr.bf16.vlgmr.msra.gmra.mxu1 %v483_v40 }
 0x172   : > { %2403 = vmatprep.mubr.msk.bf16.mxu1 %vm2794_vm0, %v2792_v3  ;;  %2427 = vmatprep.mubr.msk.bf16.mxu0 %vm2794_vm0, %v2792_v3 }
 0x231   : > { %v678_v41 = vpop.f32.mrf.mxu0  ;;  %v719_v42 = vpop.f32.mrf.mxu1 }
 0x232   : > { %v725_v51 = vmul.f32 0.25, %v678_v41  ;;  %v2975_v52 = vpack.c.bf16 %v719_v42, %v719_v42 }
 0x233   : > { %v680_v43 = vpop.f32.mrf.mxu0  ;;  %v2399_v44 = vpop.f32.mrf.mxu1 }
 0x234   : > { %v727_v45 = vpack.c.bf16 %v680_v43, %v680_v43  ;;  %v726_v53 = vpack.c.bf16 %v725_v51, %v725_v51  ;;  %v794_v54 = vsel %vm792_vm2, %v2975_v52, 0 }
 0x235   : > { %v682_v46 = vpop.f32.mrf.mxu0  ;;  %v722_v47 = vpop.f32.mrf.mxu1 }
 0x236   : > { %841 = vrot.lane.b32.xlu0 %v727_v45, %s2795_s20  ;;  %v734_v48 = vsel %vm729_vm1, %v727_v45, 0 }
 0x237   : > { %v683_v49 = vpop.f32.mrf.mxu0  ;;  %v2400_v50 = vpop.f32.mrf.mxu1  ;;  %2402 = vmatpush3.bf16.xpose.msra.mxu1 %v734_v48 }
 0x238   : > { %2407 = vmatprep.subr.bf16.mxu1 %v2792_v3 }
 0x23a   : > { %1074 = vrot.lane.b32.xlu0 %v727_v45, %s2796_s22 }
 0x23e   : > { %1190 = vrot.lane.b32.xlu0 %v727_v45, %s2797_s23  ;;  %2404 = vmatmul.mubr.msk.bf16.vlgmr.msra.gmra.mxu1 %vm729_vm1, %v726_v53 }
 0x23f   : > { %2408 = vmatpush3.bf16.msra.mxu1 %v794_v54  ;;  %2409 = vmatprep.mubr.msk.bf16.mxu1 %vm2794_vm0, %v2792_v3 }
 0x240   : > { %2413 = vmatprep.subr.bf16.mxu1 %v2792_v3 }
 0x242   : > { %1306 = vrot.lane.b32.xlu0 %v727_v45, %s2798_s26 }
 0x246   : > { %1422 = vrot.lane.b32.xlu0 %v727_v45, %s2799_s29 }
 0x24a   : > { %1538 = vrot.lane.b32.xlu0 %v727_v45, %s2800_s13 }
 0x2a8   : > { %v842_v4 = vpop.permute.xlu0 %841 }
 0x2a9   : > { %v847_v13 = vsel %vm729_vm1, %v842_v4, 0 }
 0x2ac   : > { %v1075_v8 = vpop.permute.xlu0 %1074 }
 0x2ad   : > { %v1080_v11 = vsel %vm729_vm1, %v1075_v8, 0 }
 0x2b0   : > { %v1191_v14 = vpop.permute.xlu0 %1190 }
 0x2b1   : > { %v1196_v16 = vsel %vm729_vm1, %v1191_v14, 0 }
 0x2b4   : > { %v1307_v17 = vpop.permute.xlu0 %1306 }
 0x2b5   : > { %v1312_v19 = vsel %vm729_vm1, %v1307_v17, 0 }
 0x2b8   : > { %v1423_v20 = vpop.permute.xlu0 %1422 }
 0x2b9   : > { %v1428_v23 = vsel %vm729_vm1, %v1423_v20, 0 }
 0x2bc   : > { %v1539_v24 = vpop.permute.xlu0 %1538 }
 0x2bd   : > { %v1544_v26 = vsel %vm729_vm1, %v1539_v24, 0 }
 0x2fe   : > { %v770_v55 = vpop.f32.mrf.mxu1 }
 0x2ff   : > { %v777_v56 = vsel %vm776_vm3, %v770_v55, -inf }
 0x300   : > { %778 = vmax.xlane.f32.xlu1 %v777_v56  ;;  %v2405_v57 = vpop.f32.mrf.mxu1 }
 0x302   : > { %v773_v58 = vpop.f32.mrf.mxu1 }
 0x304   : > { %v2406_v59 = vpop.f32.mrf.mxu1 }
 0x389   : > { %v779_v60 = vpop.xlane.xlu1 %778 }
 0x38a   : > { %v780_v61 = vsub.f32 %v770_v55, %v779_v60 }
 0x38c   : > { %v781_v62 = vmul.f32 1.442695, %v780_v61 }
 0x38e   : > { %2654 = vpow2.f32 %v781_v62 }
 0x39b   : > { %v2655_v63 = vpop.eup %2654 }
 0x39c   : > { %v783_v0 = vsel %vm776_vm3, %v2655_v63, 0.0 }
 0x39d   : > { %784 = vadd.xlane.f32.xlu1 %v783_v0 }
 0x3ae   : > { %838 = vrot.lane.b32.xlu1 %v726_v53, %s2795_s20 }
 0x3b2   : > { %958 = vrot.lane.b32.xlu1 %v727_v45, %s2801_s14 }
 0x3b6   : > { %956 = vrot.lane.b32.xlu1 %v726_v53, %s2801_s14 }
 0x3ba   : > { %1072 = vrot.lane.b32.xlu1 %v726_v53, %s2796_s22 }
 0x3be   : > { %1188 = vrot.lane.b32.xlu1 %v726_v53, %s2797_s23 }
 0x3c2   : > { %1304 = vrot.lane.b32.xlu1 %v726_v53, %s2798_s26 }
 0x3c6   : > { %1420 = vrot.lane.b32.xlu1 %v726_v53, %s2799_s29 }
 0x3ca   : > { %1536 = vrot.lane.b32.xlu1 %v726_v53, %s2800_s13 }
 0x426   : > { %v785_v1 = vpop.xlane.xlu1 %784 }
 0x427   : > { %2656 = vrcp.f32 %v785_v1 }
 0x42a   : > { %v839_v2 = vpop.permute.xlu1 %838 }
 0x42e   : > { %v959_v5 = vpop.permute.xlu1 %958 }
 0x42f   : > { %v964_v6 = vsel %vm729_vm1, %v959_v5, 0 }
 0x430   : > { %2426 = vmatpush3.bf16.xpose.msra.mxu0 %v964_v6 }
 0x431   : > { %2437 = vmatprep.subr.bf16.mxu0 %v2792_v3 }
 0x432   : > { %v957_v10 = vpop.permute.xlu1 %956 }
 0x434   : > { %v2657_v7 = vpop.eup %2656 }
 0x435   : > { %v787_v9 = vmul.f32 %v2657_v7, %v2655_v63 }
 0x436   : > { %v1073_v15 = vpop.permute.xlu1 %1072 }
 0x437   : > { %2428 = vmatmul.mubr.msk.bf16.vlgmr.msra.gmra.mxu0 %vm729_vm1, %v957_v10  ;;  %v788_v12 = vpack.c.bf16 %v787_v9, %v787_v9 }
 0x438   : > { %2438 = vmatpush3.bf16.xpose.msra.mxu0 %v1080_v11  ;;  %2439 = vmatprep.mubr.msk.bf16.mxu0 %vm2794_vm0, %v2792_v3 }
 0x439   : > { %2410 = vmatmul.mubr.msk.bf16.vlgmr.msra.gmra.mxu1 %vm776_vm3, %v788_v12  ;;  %2449 = vmatprep.subr.bf16.mxu0 %v2792_v3 }
 0x43a   : > { %2414 = vmatpush3.bf16.xpose.msra.mxu1 %v847_v13  ;;  %2415 = vmatprep.mubr.msk.bf16.mxu1 %vm2794_vm0, %v2792_v3  ;;  %v1189_v18 = vpop.permute.xlu1 %1188 }
 0x43b   : > { %2419 = vmatprep.subr.bf16.mxu1 %v2792_v3 }
 0x43e   : > { %v1305_v21 = vpop.permute.xlu1 %1304 }
 0x43f   : > { %2440 = vmatmul.mubr.msk.bf16.vlgmr.msra.gmra.mxu0 %vm729_vm1, %v1073_v15 }
 0x440   : > { %2450 = vmatpush3.bf16.xpose.msra.mxu0 %v1196_v16  ;;  %2451 = vmatprep.mubr.msk.bf16.mxu0 %vm2794_vm0, %v2792_v3 }
 0x441   : > { %2416 = vmatmul.mubr.msk.bf16.vlgmr.msra.gmra.mxu1 %vm729_vm1, %v839_v2  ;;  %2461 = vmatprep.subr.bf16.mxu0 %v2792_v3 }
 0x442   : > { %2421 = vmatprep.mubr.msk.bf16.mxu1 %vm2794_vm0, %v2792_v3  ;;  %v1421_v25 = vpop.permute.xlu1 %1420 }
 0x446   : > { %v1537_v27 = vpop.permute.xlu1 %1536 }
 0x447   : > { %2452 = vmatmul.mubr.msk.bf16.vlgmr.msra.gmra.mxu0 %vm729_vm1, %v1189_v18 }
 0x448   : > { %2462 = vmatpush3.bf16.xpose.msra.mxu0 %v1312_v19  ;;  %2463 = vmatprep.mubr.msk.bf16.mxu0 %vm2794_vm0, %v2792_v3 }
 0x449   : > { %2473 = vmatprep.subr.bf16.mxu0 %v2792_v3 }
 0x44f   : > { %2464 = vmatmul.mubr.msk.bf16.vlgmr.msra.gmra.mxu0 %vm729_vm1, %v1305_v21 }
 0x450   : > { %2474 = vmatpush3.bf16.xpose.msra.mxu0 %v1428_v23  ;;  %2475 = vmatprep.mubr.msk.bf16.mxu0 %vm2794_vm0, %v2792_v3 }
 0x451   : > { %2485 = vmatprep.subr.bf16.mxu0 %v2792_v3 }
 0x457   : > { %2476 = vmatmul.mubr.msk.bf16.vlgmr.msra.gmra.mxu0 %vm729_vm1, %v1421_v25 }
 0x458   : > { %2486 = vmatpush3.bf16.xpose.msra.mxu0 %v1544_v26  ;;  %2487 = vmatprep.mubr.msk.bf16.mxu0 %vm2794_vm0, %v2792_v3 }
 0x459   : > { %2497 = vmatprep.subr.bf16.mxu0 %v2792_v3 }
 0x45f   : > { %2488 = vmatmul.mubr.msk.bf16.vlgmr.msra.gmra.mxu0 %vm729_vm1, %v1537_v27 }
 0x460   : > { %2513 = vmatprep.mubr.msk.bf16.mxu0 %vm2794_vm0, %v2792_v3 }
 0x4f7   : > { %v1000_v28 = vpop.f32.mrf.mxu0 }
 0x4f8   : > { %v1006_v29 = vsel %vm776_vm3, %v1000_v28, -inf }
 0x4f9   : > { %v830_v30 = vpop.f32.mrf.mxu1  ;;  %1007 = vmax.xlane.f32.xlu1 %v1006_v29  ;;  %v2429_v31 = vpop.f32.mrf.mxu0 }
 0x4fa   : > { %836 = vst.msk [vmem:[#allocation2] sm:$0xff] %vm729_vm1, %v830_v30 }
 0x4fb   : > { %v2411_v32 = vpop.f32.mrf.mxu1  ;;  %v1003_v33 = vpop.f32.mrf.mxu0 }
 0x4fd   : > { %v833_v34 = vpop.f32.mrf.mxu1  ;;  %v2430_v35 = vpop.f32.mrf.mxu0 }
 0x4ff   : > { %v2412_v36 = vpop.f32.mrf.mxu1  ;;  %v1116_v37 = vpop.f32.mrf.mxu0 }
 0x500   : > { %v1122_v45 = vsel %vm776_vm3, %v1116_v37, -inf }
 0x501   : > { %v883_v38 = vpop.f32.mrf.mxu1  ;;  %v2441_v39 = vpop.f32.mrf.mxu0 }
 0x502   : > { %v889_v40 = vsel %vm776_vm3, %v883_v38, -inf }
 0x503   : > { %890 = vmax.xlane.f32.xlu0 %v889_v40  ;;  %v2417_v41 = vpop.f32.mrf.mxu1  ;;  %v1119_v42 = vpop.f32.mrf.mxu0 }
 0x505   : > { %v886_v43 = vpop.f32.mrf.mxu1  ;;  %v2442_v44 = vpop.f32.mrf.mxu0 }
 0x507   : > { %v2418_v46 = vpop.f32.mrf.mxu1  ;;  %1123 = vmax.xlane.f32.xlu0 %v1122_v45  ;;  %v1232_v47 = vpop.f32.mrf.mxu0 }
 0x508   : > { %v1238_v49 = vsel %vm776_vm3, %v1232_v47, -inf }
 0x509   : > { %v2453_v48 = vpop.f32.mrf.mxu0 }
 0x50b   : > { %1239 = vmax.xlane.f32.xlu0 %v1238_v49  ;;  %v1235_v50 = vpop.f32.mrf.mxu0 }
 0x50d   : > { %v2454_v51 = vpop.f32.mrf.mxu0 }
 0x50f   : > { %v1348_v53 = vpop.f32.mrf.mxu0 }
 0x510   : > { %v1354_v54 = vsel %vm776_vm3, %v1348_v53, -inf }
 0x511   : > { %1355 = vmax.xlane.f32.xlu0 %v1354_v54  ;;  %v2465_v55 = vpop.f32.mrf.mxu0 }
 0x513   : > { %v1351_v56 = vpop.f32.mrf.mxu0 }
 0x515   : > { %v2466_v57 = vpop.f32.mrf.mxu0 }
 0x517   : > { %v1464_v58 = vpop.f32.mrf.mxu0 }
 0x518   : > { %v1470_v59 = vsel %vm776_vm3, %v1464_v58, -inf }
 0x519   : > { %1471 = vmax.xlane.f32.xlu1 %v1470_v59  ;;  %v2477_v60 = vpop.f32.mrf.mxu0 }
 0x51b   : > { %v1467_v61 = vpop.f32.mrf.mxu0 }
 0x51d   : > { %v2478_v62 = vpop.f32.mrf.mxu0 }
 0x51f   : > { %v1580_v63 = vpop.f32.mrf.mxu0 }
 0x520   : > { %v1586_v0 = vsel %vm776_vm3, %v1580_v63, -inf }
 0x521   : > { %1587 = vmax.xlane.f32.xlu0 %v1586_v0  ;;  %v2489_v1 = vpop.f32.mrf.mxu0 }
 0x523   : > { %v1583_v2 = vpop.f32.mrf.mxu0 }
 0x525   : > { %v2490_v4 = vpop.f32.mrf.mxu0 }
 0x582   : > { %v1008_v5 = vpop.xlane.xlu1 %1007 }
 0x583   : > { %v1009_v6 = vsub.f32 %v1000_v28, %v1008_v5 }
 0x585   : > { %v1010_v7 = vmul.f32 1.442695, %v1009_v6 }
 0x587   : > { %2658 = vpow2.f32 %v1010_v7 }
 0x58c   : > { %v891_v8 = vpop.xlane.xlu0 %890 }
 0x58d   : > { %v892_v9 = vsub.f32 %v883_v38, %v891_v8 }
 0x58f   : > { %v893_v12 = vmul.f32 1.442695, %v892_v9 }
 0x590   : > { %v1124_v10 = vpop.xlane.xlu0 %1123 }
 0x591   : > { %v1125_v11 = vsub.f32 %v1116_v37, %v1124_v10 }
 0x593   : > { %v1126_v13 = vmul.f32 1.442695, %v1125_v11 }
 0x594   : > { %v3044_v14 = vpop.eup %2658  ;;  %v1240_v15 = vpop.xlane.xlu0 %1239 }
 0x595   : > { %2660 = vpow2.f32 %v1126_v13  ;;  %v1241_v16 = vsub.f32 %v1232_v47, %v1240_v15  ;;  %v1012_v17 = vsel %vm776_vm3, %v3044_v14, 0.0 }
 0x596   : > { %1013 = vadd.xlane.f32.xlu0 %v1012_v17  ;;  %2662 = vpow2.f32 %v893_v12 }
 0x597   : > { %v1242_v18 = vmul.f32 1.442695, %v1241_v16 }
 0x599   : > { %2664 = vpow2.f32 %v1242_v18 }
 0x59a   : > { %v1356_v19 = vpop.xlane.xlu0 %1355 }
 0x59b   : > { %v1357_v20 = vsub.f32 %v1348_v53, %v1356_v19 }
 0x59d   : > { %v1358_v21 = vmul.f32 1.442695, %v1357_v20 }
 0x59f   : > { %2666 = vpow2.f32 %v1358_v21 }
 0x5a2   : > { %v3048_v23 = vpop.eup %2660  ;;  %v1472_v31 = vpop.xlane.xlu1 %1471 }
 0x5a3   : > { %v1128_v24 = vsel %vm776_vm3, %v3048_v23, 0.0  ;;  %v2663_v25 = vpop.eup %2662  ;;  %v1473_v32 = vsub.f32 %v1464_v58, %v1472_v31 }
 0x5a4   : > { %1129 = vadd.xlane.f32.xlu1 %v1128_v24  ;;  %v895_v27 = vsel %vm776_vm3, %v2663_v25, 0.0 }
 0x5a5   : > { %v1474_v33 = vmul.f32 1.442695, %v1473_v32 }
 0x5a6   : > { %v3052_v26 = vpop.eup %2664 }
 0x5a7   : > { %v1244_v28 = vsel %vm776_vm3, %v3052_v26, 0.0  ;;  %2668 = vpow2.f32 %v1474_v33  ;;  %v2605_v33 = vld [vmem:[%s3193_s4 + $0x30] sm:$0xff]  }
 0x5a8   : > { %896 = vadd.xlane.f32.xlu1 %v895_v27  ;;  %1245 = vadd.xlane.f32.xlu0 %v1244_v28 }
 0x5aa   : > { %v1588_v34 = vpop.xlane.xlu0 %1587 }
 0x5ab   : > { %v1589_v35 = vsub.f32 %v1580_v63, %v1588_v34  ;;  %v2606_v34 = vld [vmem:[%s3193_s4 + $0x28] sm:$0xff]  }
 0x5ac   : > { %v3057_v29 = vpop.eup %2666 }
 0x5ad   : > { %v1360_v30 = vsel %vm776_vm3, %v3057_v29, 0.0  ;;  %v1590_v36 = vmul.f32 1.442695, %v1589_v35 }
 0x5ae   : > { %1361 = vadd.xlane.f32.xlu0 %v1360_v30 }
 0x5af   : > { %2670 = vpow2.f32 %v1590_v36  ;;  %v2607_v36 = vld [vmem:[%s3193_s4 + $0x20] sm:$0xff]  }
 0x5b4   : > { %v3067_v37 = vpop.eup %2668 }
 0x5b5   : > { %v1476_v38 = vsel %vm776_vm3, %v3067_v37, 0.0 }
 0x5b9   : > { %902 = vrot.lane.b32.xlu1 %v2975_v52, %s2795_s20 }
 0x5bc   : > { %v3071_v39 = vpop.eup %2670 }
 0x5bd   : > { %v1592_v40 = vsel %vm776_vm3, %v3071_v39, 0.0 }
 0x5c4   : > { %1018 = vrot.lane.b32.xlu0 %v2975_v52, %s2801_s14 }
 0x5c8   : > { %1134 = vrot.lane.b32.xlu0 %v2975_v52, %s2796_s22 }
 0x5dd   : > { %1477 = vadd.xlane.f32.xlu1 %v1476_v38 }
 0x5e7   : > { %1593 = vadd.xlane.f32.xlu0 %v1592_v40  ;;  %v2608_v40 = vld [vmem:[%s3193_s4 + $0x18] sm:$0xff]  }
 0x5ee   : > { %1250 = vrot.lane.b32.xlu1 %v2975_v52, %s2797_s23 }
 0x5f2   : > { %1482 = vrot.lane.b32.xlu1 %v2975_v52, %s2799_s29 }
 0x5f6   : > { %1598 = vrot.lane.b32.xlu1 %v2975_v52, %s2800_s13 }
 0x5fd   : > { %1366 = vrot.lane.b32.xlu0 %v2975_v52, %s2798_s26 }
 0x61f   : > { %v1014_v43 = vpop.xlane.xlu0 %1013 }
 0x62d   : > { %v1130_v41 = vpop.xlane.xlu1 %1129 }
 0x631   : > { %v897_v42 = vpop.xlane.xlu1 %896  ;;  %v1246_v46 = vpop.xlane.xlu0 %1245 }
 0x632   : > { %2672 = vrcp.f32 %v897_v42 }
 0x633   : > { %2674 = vrcp.f32 %v1014_v43 }
 0x634   : > { %2676 = vrcp.f32 %v1130_v41  ;;  %v2609_v41 = vld [vmem:[%s3193_s4 + $0x10] sm:$0xff]  }
 0x635   : > { %v903_v44 = vpop.permute.xlu1 %902  ;;  %2678 = vrcp.f32 %v1246_v46 }
 0x636   : > { %v908_v45 = vsel %vm792_vm2, %v903_v44, 0 }
 0x637   : > { %2420 = vmatpush3.bf16.msra.mxu1 %v908_v45  ;;  %v1362_v47 = vpop.xlane.xlu0 %1361  ;;  %v2610_v45 = vld [vmem:[%s3193_s4 + $0x8] sm:$0xff]  }
 0x638   : > { %2431 = vmatprep.subr.bf16.mxu1 %v2792_v3  ;;  %2680 = vrcp.f32 %v1362_v47  ;;  %v2611_v47 = vld [vmem:[%s3193_s4] sm:$0xff]  }
 0x63b   : > { %v1019_v50 = vpop.permute.xlu0 %1018 }
 0x63c   : > { %v1024_v52 = vsel %vm792_vm2, %v1019_v50, 0 }
 0x63f   : > { %v2673_v48 = vpop.eup %2672  ;;  %v1135_v55 = vpop.permute.xlu0 %1134 }
 0x640   : > { %v899_v49 = vmul.f32 %v2673_v48, %v2663_v25  ;;  %v2675_v53 = vpop.eup %2674  ;;  %v1140_v58 = vsel %vm792_vm2, %v1135_v55, 0 }
 0x641   : > { %v1016_v54 = vmul.f32 %v2675_v53, %v3044_v14  ;;  %v2677_v57 = vpop.eup %2676 }
 0x642   : > { %v900_v51 = vpack.c.bf16 %v899_v49, %v899_v49  ;;  %v1132_v59 = vmul.f32 %v2677_v57, %v3048_v23  ;;  %v2679_v61 = vpop.eup %2678 }
 0x643   : > { %v1017_v56 = vpack.c.bf16 %v1016_v54, %v1016_v54  ;;  %v1248_v63 = vmul.f32 %v2679_v61, %v3052_v26 }
 0x644   : > { %2422 = vmatmul.mubr.msk.bf16.vlgmr.msra.gmra.mxu1 %vm776_vm3, %v900_v51  ;;  %v1133_v60 = vpack.c.bf16 %v1132_v59, %v1132_v59 }
 0x645   : > { %2432 = vmatpush3.bf16.msra.mxu1 %v1024_v52  ;;  %2433 = vmatprep.mubr.msk.bf16.mxu1 %vm2794_vm0, %v2792_v3  ;;  %v1249_v2 = vpack.c.bf16 %v1248_v63, %v1248_v63  ;;  %v2681_v4 = vpop.eup %2680 }
 0x646   : > { %2443 = vmatprep.subr.bf16.mxu1 %v2792_v3  ;;  %v1364_v6 = vmul.f32 %v2681_v4, %v3057_v29 }
 0x648   : > { %v1365_v10 = vpack.c.bf16 %v1364_v6, %v1364_v6 }
 0x64c   : > { %2434 = vmatmul.mubr.msk.bf16.vlgmr.msra.gmra.mxu1 %vm776_vm3, %v1017_v56 }
 0x64d   : > { %2444 = vmatpush3.bf16.msra.mxu1 %v1140_v58  ;;  %2445 = vmatprep.mubr.msk.bf16.mxu1 %vm2794_vm0, %v2792_v3 }
 0x64e   : > { %2455 = vmatprep.subr.bf16.mxu1 %v2792_v3 }
 0x654   : > { %2446 = vmatmul.mubr.msk.bf16.vlgmr.msra.gmra.mxu1 %vm776_vm3, %v1133_v60 }
 0x655   : > { %2457 = vmatprep.mubr.msk.bf16.mxu1 %vm2794_vm0, %v2792_v3 }
 0x666   : > { %v1478_v62 = vpop.xlane.xlu1 %1477 }
 0x667   : > { %2682 = vrcp.f32 %v1478_v62 }
 0x66a   : > { %v1251_v0 = vpop.permute.xlu1 %1250 }
 0x66b   : > { %v1256_v1 = vsel %vm792_vm2, %v1251_v0, 0  ;;  %v2263_v0 = vld [vmem:[%s3194_s5] ss:$0 sm:$0xff] }
 0x66c   : > { %2456 = vmatpush3.bf16.msra.mxu1 %v1256_v1 }
 0x66d   : > { %2467 = vmatprep.subr.bf16.mxu1 %v2792_v3 }
 0x66e   : > { %v1483_v9 = vpop.permute.xlu1 %1482 }
 0x66f   : > { %2458 = vmatmul.mubr.msk.bf16.vlgmr.msra.gmra.mxu1 %vm776_vm3, %v1249_v2  ;;  %v1488_v12 = vsel %vm792_vm2, %v1483_v9, 0  ;;  %v2612_v9 = vld [vmem:[#allocation5 + $0x70] ss:$8 sps:$4 sm:$0xff]  }
 0x670   : > { %v1594_v5 = vpop.xlane.xlu0 %1593  ;;  %2469 = vmatprep.mubr.msk.bf16.mxu1 %vm2794_vm0, %v2792_v3 }
 0x671   : > { %2684 = vrcp.f32 %v1594_v5  ;;  %v2688_v5 = vld [vmem:[%s2946_s30] sm:$0xff] }
 0x672   : > { %v1599_v14 = vpop.permute.xlu1 %1598 }
 0x673   : > { %v1604_v17 = vsel %vm792_vm2, %v1599_v14, 0 }
 0x674   : > { %v1367_v7 = vpop.permute.xlu0 %1366  ;;  %v2683_v11 = vpop.eup %2682 }
 0x675   : > { %v1372_v8 = vsel %vm792_vm2, %v1367_v7, 0  ;;  %v1480_v13 = vmul.f32 %v2683_v11, %v3067_v37  ;;  %v2617_v11 = vld [vmem:[#allocation5 + $0x64] ss:$8 sps:$4 sm:$0xff]  }
 0x676   : > { %2468 = vmatpush3.bf16.msra.mxu1 %v1372_v8 }
 0x677   : > { %2479 = vmatprep.subr.bf16.mxu1 %v2792_v3  ;;  %v1481_v15 = vpack.c.bf16 %v1480_v13, %v1480_v13 }
 0x679   : > { %2470 = vmatmul.mubr.msk.bf16.vlgmr.msra.gmra.mxu1 %vm776_vm3, %v1365_v10  ;;  %v2614_v10 = vld [vmem:[#allocation5 + $0x74] ss:$8 sps:$4 sm:$0xff]  }
 0x67a   : > { %2480 = vmatpush3.bf16.msra.mxu1 %v1488_v12  ;;  %2481 = vmatprep.mubr.msk.bf16.mxu1 %vm2794_vm0, %v2792_v3  ;;  %v2615_v12 = vld [vmem:[#allocation5 + $0x60] ss:$8 sps:$4 sm:$0xff]  }
 0x67b   : > { %2491 = vmatprep.subr.bf16.mxu1 %v2792_v3 }
 0x67e   : > { %v2685_v16 = vpop.eup %2684 }
 0x67f   : > { %v1596_v18 = vmul.f32 %v2685_v16, %v3071_v39 }
 0x681   : > { %2482 = vmatmul.mubr.msk.bf16.vlgmr.msra.gmra.mxu1 %vm776_vm3, %v1481_v15  ;;  %v1597_v19 = vpack.c.bf16 %v1596_v18, %v1596_v18  ;;  %v2618_v18 = vld [vmem:[#allocation5 + $0x50] ss:$8 sps:$4 sm:$0xff]  }
 0x682   : > { %2492 = vmatpush3.bf16.msra.mxu1 %v1604_v17  ;;  %2493 = vmatprep.mubr.msk.bf16.mxu1 %vm2794_vm0, %v2792_v3  ;;  %v2620_v17 = vld [vmem:[#allocation5 + $0x54] ss:$8 sps:$4 sm:$0xff]  }
 0x683   : > { %1902 = vmatprep.subr.bf16.mxu1 %v2614_v10  ;;  %v2290_v10 = vld [vmem:[%s3200_s11] ss:$0 sm:$0xff] }
 0x689   : > { %2494 = vmatmul.mubr.msk.bf16.vlgmr.msra.gmra.mxu1 %vm776_vm3, %v1597_v19  ;;  %v2621_v19 = vld [vmem:[#allocation5 + $0x40] ss:$8 sps:$4 sm:$0xff]  }
 0x68a   : > { %1934 = vmatprep.mubr.bf16.mxu1 %v2793_v22  ;;  %v2604_v22 = vld [vmem:[%s3193_s4 + $0x38] sm:$0xff]   ;;  %1903 = vmatpush1.bf16.msra.mxu1 %v2612_v9 }
 0x68b   : > { %2498 = vmatpush3.bf16.msra.mxu0 %v2604_v22  ;;  %1904 = vmatprep.subr.bf16.mxu1 %v2617_v11  ;;  %v2639_v22 = vld [vmem:[#allocation7 + $0x30] sm:$0xff]  }
 0x68c   : > { %2499 = vmatprep.subr.bf16.mxu0 %v2792_v3 }
 0x68e   : > { %1905 = vmatpush1.bf16.msra.mxu1 %v2615_v12 }
 0x68f   : > { %2500 = vmatpush3.bf16.msra.mxu0 %v2605_v33  ;;  %1906 = vmatprep.subr.bf16.mxu1 %v2620_v17  ;;  %v2640_v33 = vld [vmem:[#allocation7 + $0x68] sm:$0xff]  }
 0x690   : > { %2501 = vmatprep.subr.bf16.mxu0 %v2792_v3 }
 0x692   : > { %1907 = vmatpush1.bf16.msra.mxu1 %v2618_v18 }
 0x693   : > { %2502 = vmatpush3.bf16.msra.mxu0 %v2606_v34  ;;  %v2641_v34 = vld [vmem:[#allocation7 + $0x28] sm:$0xff]  }
 0x694   : > { %2503 = vmatprep.subr.bf16.mxu0 %v2792_v3 }
 0x697   : > { %2504 = vmatpush3.bf16.msra.mxu0 %v2607_v36  ;;  %v2643_v36 = vld [vmem:[#allocation7 + $0x20] sm:$0xff]  }
 0x698   : > { %2505 = vmatprep.subr.bf16.mxu0 %v2792_v3 }
 0x69b   : > { %2506 = vmatpush3.bf16.msra.mxu0 %v2608_v40  ;;  %v2647_v40 = vld [vmem:[#allocation7 + $0x10] sm:$0xff]  }
 0x69c   : > { %2507 = vmatprep.subr.bf16.mxu0 %v2792_v3 }
 0x69f   : > { %2508 = vmatpush3.bf16.msra.mxu0 %v2609_v41 }
 0x6a0   : > { %2509 = vmatprep.subr.bf16.mxu0 %v2792_v3 }
 0x6a3   : > { %2510 = vmatpush3.bf16.msra.mxu0 %v2610_v45  ;;  %v2272_v45 = vld [vmem:[%s3195_s6] ss:$0 sm:$0xff] }
 0x6a4   : > { %2511 = vmatprep.subr.bf16.mxu0 %v2792_v3 }
 0x6a7   : > { %2512 = vmatpush3.bf16.msra.mxu0 %v2611_v47  ;;  %v2273_v47 = vld [vmem:[%s3196_s7] ss:$0 sm:$0xff] }
 0x704   : > { %v944_v20 = vpop.f32.mrf.mxu1 }
 0x705   : > { %951 = vrot.lane.b32.xlu1 %v944_v20, %s2800_s13  ;;  %v2623_v20 = vld [vmem:[#allocation5 + $0x44] ss:$8 sps:$4 sm:$0xff]  }
 0x706   : > { %v2423_v21 = vpop.f32.mrf.mxu1  ;;  %1908 = vmatprep.subr.bf16.mxu1 %v2623_v20 }
 0x707   : > { %v2626_v21 = vld [vmem:[#allocation5 + $0x34] ss:$8 sps:$4 sm:$0xff]   ;;  %1909 = vmatpush1.bf16.msra.mxu1 %v2621_v19 }
 0x708   : > { %v947_v23 = vpop.f32.mrf.mxu1  ;;  %1910 = vmatprep.subr.bf16.mxu1 %v2626_v21 }
 0x709   : > { %v2624_v23 = vld [vmem:[#allocation5 + $0x30] ss:$8 sps:$4 sm:$0xff]  }
 0x70a   : > { %v2424_v24 = vpop.f32.mrf.mxu1 }
 0x70b   : > { %v2629_v24 = vld [vmem:[#allocation5 + $0x24] ss:$8 sps:$4 sm:$0xff]   ;;  %1911 = vmatpush1.bf16.msra.mxu1 %v2624_v23 }
 0x70c   : > { %v1060_v25 = vpop.f32.mrf.mxu1  ;;  %1912 = vmatprep.subr.bf16.mxu1 %v2629_v24 }
 0x70d   : > { %1067 = vrot.lane.b32.xlu1 %v1060_v25, %s2799_s29  ;;  %v2627_v25 = vld [vmem:[#allocation5 + $0x20] ss:$8 sps:$4 sm:$0xff]  }
 0x70e   : > { %v2435_v26 = vpop.f32.mrf.mxu1 }
 0x70f   : > { %v2632_v26 = vld [vmem:[#allocation5 + $0x14] ss:$8 sps:$4 sm:$0xff]   ;;  %1913 = vmatpush1.bf16.msra.mxu1 %v2627_v25 }
 0x710   : > { %v1063_v27 = vpop.f32.mrf.mxu1  ;;  %1914 = vmatprep.subr.bf16.mxu1 %v2632_v26 }
 0x711   : > { %v2630_v27 = vld [vmem:[#allocation5 + $0x10] ss:$8 sps:$4 sm:$0xff]  }
 0x712   : > { %v2436_v28 = vpop.f32.mrf.mxu1 }
 0x713   : > { %v2635_v28 = vld [vmem:[#allocation5 + $0x4] ss:$8 sps:$4 sm:$0xff]   ;;  %1915 = vmatpush1.bf16.msra.mxu1 %v2630_v27 }
 0x714   : > { %v1176_v29 = vpop.f32.mrf.mxu1  ;;  %1916 = vmatprep.subr.bf16.mxu1 %v2635_v28 }
 0x715   : > { %1183 = vrot.lane.b32.xlu1 %v1176_v29, %s2798_s26  ;;  %v2633_v29 = vld [vmem:[#allocation5] ss:$8 sps:$4 sm:$0xff]  }
 0x716   : > { %v2447_v30 = vpop.f32.mrf.mxu1 }
 0x717   : > { %1917 = vmatpush1.bf16.msra.mxu1 %v2633_v29  ;;  %v2636_v30 = vld [vmem:[#allocation7 + $0x78] sm:$0xff]  }
 0x718   : > { %v1179_v31 = vpop.f32.mrf.mxu1  ;;  %2359 = vmatprep.subr.bf16.mxu0 %v2636_v30 }
 0x719   : > { %v2637_v31 = vld [vmem:[#allocation7 + $0x38] sm:$0xff]  }
 0x71a   : > { %v2448_v32 = vpop.f32.mrf.mxu1 }
 0x71b   : > { %v2638_v32 = vld [vmem:[#allocation7 + $0x70] sm:$0xff]  }
 0x72f   : > { %v1292_v35 = vpop.f32.mrf.mxu1 }
 0x730   : > { %1299 = vrot.lane.b32.xlu0 %v1292_v35, %s2797_s23  ;;  %v2642_v35 = vld [vmem:[#allocation7 + $0x60] sm:$0xff]  }
 0x731   : > { %v2459_v37 = vpop.f32.mrf.mxu1 }
 0x732   : > { %v2644_v37 = vld [vmem:[#allocation7 + $0x58] sm:$0xff]  }
 0x733   : > { %v1295_v38 = vpop.f32.mrf.mxu1 }
 0x734   : > { %v2645_v38 = vld [vmem:[#allocation7 + $0x18] sm:$0xff]  }
 0x735   : > { %v2460_v39 = vpop.f32.mrf.mxu1 }
 0x736   : > { %v2646_v39 = vld [vmem:[#allocation7 + $0x50] sm:$0xff]  }
 0x739   : > { %v1408_v42 = vpop.f32.mrf.mxu1 }
 0x73a   : > { %1415 = vrot.lane.b32.xlu1 %v1408_v42, %s2796_s22 }
 0x73b   : > { %v2471_v43 = vpop.f32.mrf.mxu1 }
 0x73d   : > { %v1411_v44 = vpop.f32.mrf.mxu1 }
 0x73f   : > { %v2472_v46 = vpop.f32.mrf.mxu1 }
 0x741   : > { %v1524_v48 = vpop.f32.mrf.mxu1 }
 0x742   : > { %1531 = vrot.lane.b32.xlu0 %v1524_v48, %s2801_s14 }
 0x743   : > { %v2483_v49 = vpop.f32.mrf.mxu1 }
 0x745   : > { %v1527_v50 = vpop.f32.mrf.mxu1 }
 0x747   : > { %v2484_v51 = vpop.f32.mrf.mxu1 }
 0x748   : > { %v2648_v51 = vld [vmem:[#allocation7 + $0x48] sm:$0xff]  }
 0x749   : > { %v1640_v53 = vpop.f32.mrf.mxu1 }
 0x74a   : > { %1647 = vrot.lane.b32.xlu1 %v1640_v53, %s2795_s20  ;;  %v2649_v53 = vld [vmem:[#allocation7 + $0x8] sm:$0xff]  }
 0x74b   : > { %v2495_v52 = vpop.f32.mrf.mxu1 }
 0x74c   : > { %v2650_v52 = vld [vmem:[#allocation7 + $0x40] sm:$0xff]  }
 0x74d   : > { %v1643_v54 = vpop.f32.mrf.mxu1 }
 0x74e   : > { %v2651_v54 = vld [vmem:[#allocation7] sm:$0xff]  }
 0x74f   : > { %v2496_v55 = vpop.f32.mrf.mxu1 }
 0x750   : > { %v1812_v55 = vlaneseq }
 0x777   : > { %v952_v56 = vpop.permute.xlu1 %951 }
 0x778   : > { %955 = vst.msk [vmem:[#allocation2] sm:$0xff] %vm954_vm4, %v952_v56  ;;  %v1813_v56 = vshrl.u32 %v1812_v55, 7 }
 0x77f   : > { %v1068_v57 = vpop.permute.xlu1 %1067 }
 0x780   : > { %1071 = vst.msk [vmem:[#allocation2] sm:$0xff] %vm1070_vm5, %v1068_v57  ;;  %v1814_v57 = vsub.s32 0, %v1813_v56 }
 0x787   : > { %v1184_v3 = vpop.permute.xlu1 %1183 }
 0x788   : > { %1187 = vst.msk [vmem:[#allocation2] sm:$0xff] %vm1186_vm6, %v1184_v3  ;;  %v1810_v3 = vld [vmem:[%s3198_s9] sm:$0x3] }
 0x7a2   : > { %v1300_v58 = vpop.permute.xlu0 %1299 }
 0x7a3   : > { %1303 = vst.msk [vmem:[#allocation2] sm:$0xff] %vm1302_vm7, %v1300_v58  ;;  %v1818_v58 = vsub.s32 1, %v1813_v56 }
 0x7ac   : > { %v1416_v59 = vpop.permute.xlu1 %1415 }
 0x7ad   : > { %1419 = vst.msk [vmem:[#allocation2] sm:$0xff] %vm1418_vm8, %v1416_v59  ;;  %v1815_v59 = vrot.slane %v1810_v3, %v1814_v57 }
 0x7b4   : > { %v1532_v60 = vpop.permute.xlu0 %1531 }
 0x7b5   : > { %1535 = vst.msk [vmem:[#allocation2] sm:$0xff] %vm1534_vm9, %v1532_v60  ;;  %v1819_v60 = vrot.slane %v1810_v3, %v1818_v58 }
 0x7bc   : > { %v1648_v61 = vpop.permute.xlu1 %1647 }
 0x7bd   : > { %1651 = vst.msk [vmem:[#allocation2] sm:$0xff] %vm1650_vm10, %v1648_v61 }
 0x7c4   : > { %v1652_v62 = vld [vmem:[#allocation2] sm:$0xff] }
 0x7c5   : > { %v1653_v63 = vpack.c.bf16 %v1652_v62, %v1652_v62 }
 0x7c7   : > { %2514 = vmatmul.mubr.bf16.vlgmr.msra.gmra.mxu0 %v1653_v63 }
 0x7c8   : > { %2360 = vmatpush3.bf16.msra.mxu0 %v2637_v31 }
 0x7c9   : > { %2361 = vmatprep.subr.bf16.mxu0 %v2638_v32 }
 0x7cc   : > { %2362 = vmatpush3.bf16.msra.mxu0 %v2639_v22 }
 0x7cd   : > { %2363 = vmatprep.subr.bf16.mxu0 %v2640_v33 }
 0x7d0   : > { %2364 = vmatpush3.bf16.msra.mxu0 %v2641_v34 }
 0x7d1   : > { %2365 = vmatprep.subr.bf16.mxu0 %v2642_v35 }
 0x7d4   : > { %2366 = vmatpush3.bf16.msra.mxu0 %v2643_v36 }
 0x7d5   : > { %2367 = vmatprep.subr.bf16.mxu0 %v2644_v37 }
 0x7d8   : > { %2368 = vmatpush3.bf16.msra.mxu0 %v2645_v38 }
 0x7d9   : > { %2369 = vmatprep.subr.bf16.mxu0 %v2646_v39 }
 0x7dc   : > { %2370 = vmatpush3.bf16.msra.mxu0 %v2647_v40 }
 0x7dd   : > { %2371 = vmatprep.subr.bf16.mxu0 %v2648_v51 }
 0x7e0   : > { %2372 = vmatpush3.bf16.msra.mxu0 %v2649_v53 }
 0x7e1   : > { %2373 = vmatprep.subr.bf16.mxu0 %v2650_v52 }
 0x7e4   : > { %2374 = vmatpush3.bf16.msra.mxu0 %v2651_v54 }
 0x887   : > { %v1759_v1 = vpop.f32.mrf.mxu0 }
 0x888   : > { %v1760_v2 = vadd.f32 %v2263_v0, %v1759_v1 }
 0x889   : > { %v2515_v4 = vpop.f32.mrf.mxu0 }
 0x88a   : > { %v3164_v6 = vadd.f32 %v2688_v5, %v1760_v2 }
 0x88b   : > { %v1762_v7 = vpop.f32.mrf.mxu0 }
 0x88c   : > { %1768 = vadd.xlane.f32.xlu0 %v3164_v6 }
 0x88d   : > { %v2516_v8 = vpop.f32.mrf.mxu0 }
 0x915   : > { %v1769_v13 = vpop.xlane.xlu0 %1768 }
 0x916   : > { %v1770_v14 = vmul.f32 0.0078125, %v1769_v13 }
 0x918   : > { %v1771_v15 = vsub.f32 %v3164_v6, %v1770_v14 }
 0x91a   : > { %v1772_v16 = vmul.f32 %v1771_v15, %v1771_v15 }
 0x91c   : > { %1773 = vadd.xlane.f32.xlu1 %v1772_v16 }
 0x9a5   : > { %v1774_v41 = vpop.xlane.xlu1 %1773 }
 0x9a6   : > { %v1775_v42 = vmul.f32 0.0078125, %v1774_v41 }
 0x9a8   : > { %v1776_v43 = vadd.f32 1e-05, %v1775_v42 }
 0x9aa   : > { %2686 = vrsqrt.f32 %v1776_v43 }
 0x9b7   : > { %v2687_v44 = vpop.eup %2686 }
 0x9b8   : > { %v1778_v46 = vmul.f32 %v2687_v44, %v1771_v15 }
 0x9ba   : > { %v1785_v48 = vmul.f32 %v2272_v45, %v1778_v46 }
 0x9bc   : > { %v1792_v49 = vadd.f32 %v2273_v47, %v1785_v48 }
 0x9be   : > { %v1793_v50 = vpack.c.bf16 %v1792_v49, %v1792_v49 }
 0x9c0   : > { %1935 = vmatmul.mubr.bf16.vlgmr.msra.gmra.mxu1 %v1793_v50 }
 0xa80   : > { %v1936_v61 = vpop.f32.mrf.mxu1 }
 0xa81   : > { %v1937_v62 = vadd.f32 %v1936_v61, %v1815_v59 }
 0xa82   : > { %v1938_v63 = vpop.f32.mrf.mxu1 }
 0xa83   : > { %v1939_v0 = vadd.f32 %v1938_v63, %v1819_v60  ;;  %v1943_v1 = vmax.f32 %v1937_v62, 0.0 }
 0xa84   : > { %v1940_v2 = vpop.f32.mrf.mxu1 }
 0xa85   : > { %v1944_v4 = vmax.f32 %v1939_v0, 0.0  ;;  %v1945_v8 = vpack.c.bf16 %v1943_v1, %v1943_v1 }
 0xa86   : > { %v1941_v5 = vpop.f32.mrf.mxu1 }
 0xa87   : > { %v1946_v7 = vpack.c.bf16 %v1944_v4, %v1944_v4 }
 0xa89   : > { %2114 = vmatprep.mubr.bf16.mxu0 %v1946_v7 }
 0xa8a   : > { %2115 = vmatmul.mubr.bf16.vlgmr.msra.gmra.mxu0 %v1945_v8 }
 0xb4a   : > { %v2375_v9 = vpop.f32.mrf.mxu0 }
 0xb4c   : > { %v2376_v11 = vpop.f32.mrf.mxu0 }
 0xb4d   : > { %v2377_v12 = vadd.f32 %v2376_v11, %v2375_v9 }
 0xb4e   : > { %v2378_v13 = vpop.f32.mrf.mxu0 }
 0xb4f   : > { %v2117_v14 = vadd.f32 %v2377_v12, %v2290_v10 }
 0xb50   : > { %v2379_v15 = vpop.f32.mrf.mxu0 }
 0xb51   : > { %v2122_v16 = vadd.f32 %v2117_v14, %v3164_v6 }
 0xb53   : > { %2123 = vst [vmem:[%s452_s28] sm:$0xff] %v2122_v16 }
 0xb54 PF: > { %s24_s21 = sadd.s32 1, %s2781_s21  }
 0xb55   : > { %p21_p2 = scmp.ge.s32.totalorder %s24_s21, 4  }
 0xb57   :  { %23 = sbr.rel (!%p21_p2) target bundleno = 2 (0x2), region = 111 }
 0xb5c   :  { %2143 = vsyncpa [#allocation4], 1 }
 0xb5d   :  { %2145 = vsyncpa [#allocation4 + $0x1], 1 }
 0xb5e   :  { %2146 = vsyncpa [#allocation6], 1 }

</bundles_post_ra>
